<compile_context>
chip_gen: v7x
topology: tpu7x:2x2x1
jax: 0.10.0
libtpu: 0.0.40
codegen_flags: <defaults>
</compile_context>

<pallas_src>
import math
import functools

import jax
import jax.numpy as jnp
from jax.experimental import pallas as pl
from jax.experimental.pallas import tpu as pltpu


# ----------------------------------------------------------------------------
# Kernel 1: MoSA attention (batched over (b, c) spatial maps)
# ----------------------------------------------------------------------------

def _mosa_attn_kernel(v_ref, o_ref, *, scale):
    v = v_ref[...].astype(jnp.float32)                               # (G, H, W)
    s = jnp.einsum("ghw,gkw->ghk", v, v,
                   preferred_element_type=jnp.float32) * scale       # (G, H, H)
    s = s - jnp.max(s, axis=-1, keepdims=True)
    e = jnp.exp(s)
    p = e * pl.reciprocal(jnp.sum(e, axis=-1, keepdims=True), approx=True)
    o = jnp.einsum("ghk,gkw->ghw", p, v, preferred_element_type=jnp.float32)
    o_ref[...] = o.astype(o_ref.dtype)


def mosa_attention(x):
    """out[b, c] = softmax(x[b, c] @ x[b, c]^T * 64**-0.5) @ x[b, c]  (NCHW)."""
    B, C, H, W = x.shape
    scale = 64.0 ** (-0.5)      # MoSA hard-codes dim_head = 64 in the reference
    vf = x.reshape(B * C, H, W)
    maps_per_step = C           # one batch element's maps per grid step
    out = pl.pallas_call(
        functools.partial(_mosa_attn_kernel, scale=scale),
        out_shape=jax.ShapeDtypeStruct((B * C, H, W), x.dtype),
        grid=(B * C // maps_per_step,),
        in_specs=[pl.BlockSpec((maps_per_step, H, W), lambda i: (i, 0, 0))],
        out_specs=pl.BlockSpec((maps_per_step, H, W), lambda i: (i, 0, 0)),
        compiler_params=pltpu.CompilerParams(dimension_semantics=("parallel",)),
    )(vf)
    return out.reshape(B, C, H, W)


# ----------------------------------------------------------------------------
# Kernel 2: fused MoSA tail + MoFFN (channel-last, one batch element per step)
# ----------------------------------------------------------------------------

_PAD_OFF = 8  # sublane-aligned column offset of the interior inside the scratch


def _dw3x3_bn_relu(pad_ref, x_hwc, w, b, H, W):
    """Depthwise 3x3 (stride 1, pad 1) + folded-BN bias + ReLU, channel-last.

    pad_ref : VMEM scratch (H + 2, W + 2 * _PAD_OFF, C) used as zero-padded input.
    x_hwc   : (H, W, C) float32 input values.
    w       : (3, 3, C) float32 depthwise weights (BN folded).
    b       : (1, C)    float32 bias (BN folded).
    """
    C = x_hwc.shape[-1]
    pad_ref[...] = jnp.zeros(pad_ref.shape, jnp.float32)
    pad_ref[1:H + 1, _PAD_OFF:_PAD_OFF + W, :] = x_hwc               # aligned store
    acc = jnp.zeros((H, W, C), jnp.float32)
    for dh in range(3):
        for dw in range(3):
            col = _PAD_OFF - 1 + dw
            acc = acc + pad_ref[dh:dh + H, col:col + W, :] * w[dh, dw]
    return jnp.maximum(acc + b, 0.0)


def _mot_tail_kernel(attn_ref, x_ref,
                     wdw0_ref, bdw0_ref,
                     wg0m_ref, bg0m_ref, wg0c_ref, bg0c_ref,
                     wg1m_ref, bg1m_ref, wg1c_ref, bg1c_ref,
                     wse1_ref, bse1_ref, wse2_ref, bse2_ref,
                     wg2m_ref, bg2m_ref, wg2c_ref, bg2c_ref,
                     o_ref,
                     pad8_ref, pad16_ref, pad4_ref):
    f32 = jnp.float32
    _, H, W, C0 = x_ref.shape                                        # (1, H, W, inp)

    x = x_ref[0].astype(f32)                                         # (H, W, 8)
    attn = attn_ref[0].astype(f32)                                   # (H, W, 8)

    # ---------------- MoSA: attention + dwconv3x3_bn_relu(x) ---------------
    dw0 = _dw3x3_bn_relu(pad8_ref, x, wdw0_ref[...].astype(f32),
                         bdw0_ref[...].astype(f32), H, W)
    inner = attn + dw0                                               # (H, W, 8)

    # ---------------- MoSA ghost block (+ residual x) ----------------------
    cm0 = wg0m_ref.shape[1]                                          # main half (4)
    m1 = jnp.dot(inner.reshape(H * W, C0), wg0m_ref[...].astype(f32),
                 preferred_element_type=f32)
    m1 = jnp.maximum(m1 + bg0m_ref[...].astype(f32), 0.0)            # (HW, 4)
    m1 = m1.reshape(H, W, cm0)
    c1 = _dw3x3_bn_relu(pad4_ref, m1, wg0c_ref[...].astype(f32),
                        bg0c_ref[...].astype(f32), H, W)             # (H, W, 4)
    # mosa_out = concat(m1, c1) + x   (kept as two channel halves, never concat'd)
    mosa_lo = m1 + x_ref[0, :, :, :cm0].astype(f32)
    mosa_hi = c1 + x_ref[0, :, :, cm0:].astype(f32)

    # ---------------- MoFFN ghost1: 1x1 (inp->hid/2) -> dw3x3 --------------
    cm1 = wg1m_ref.shape[1]                                          # 16
    m2 = jnp.dot(mosa_lo.reshape(H * W, cm0), wg1m_ref[:cm0, :].astype(f32),
                 preferred_element_type=f32)
    m2 = m2 + jnp.dot(mosa_hi.reshape(H * W, cm0), wg1m_ref[cm0:, :].astype(f32),
                      preferred_element_type=f32)
    m2 = jnp.maximum(m2 + bg1m_ref[...].astype(f32), 0.0)            # (HW, 16)
    m2_hwc = m2.reshape(H, W, cm1)
    c2 = _dw3x3_bn_relu(pad16_ref, m2_hwc, wg1c_ref[...].astype(f32),
                        bg1c_ref[...].astype(f32), H, W)             # (H, W, 16)
    c2f = c2.reshape(H * W, cm1)

    # ---------------- SE over the (unmaterialized) 32-channel concat -------
    pool_lo = jnp.mean(m2, axis=0, keepdims=True)                    # (1, 16)
    pool_hi = jnp.mean(c2f, axis=0, keepdims=True)                   # (1, 16)
    h = jnp.dot(pool_lo, wse1_ref[:cm1, :].astype(f32), preferred_element_type=f32)
    h = h + jnp.dot(pool_hi, wse1_ref[cm1:, :].astype(f32), preferred_element_type=f32)
    h = jnp.maximum(h + bse1_ref[...].astype(f32), 0.0)              # (1, mid_p)
    gate_lo = jax.nn.sigmoid(
        jnp.dot(h, wse2_ref[:, :cm1].astype(f32), preferred_element_type=f32)
        + bse2_ref[:, :cm1].astype(f32))                             # (1, 16)
    gate_hi = jax.nn.sigmoid(
        jnp.dot(h, wse2_ref[:, cm1:].astype(f32), preferred_element_type=f32)
        + bse2_ref[:, cm1:].astype(f32))                             # (1, 16)
    se_lo = m2 * gate_lo                                             # (HW, 16)
    se_hi = c2f * gate_hi                                            # (HW, 16)

    # ---------------- MoFFN ghost2: 1x1 (hid->oup/2) -> dw3x3 --------------
    cm2 = wg2m_ref.shape[1]                                          # 4
    m3 = jnp.dot(se_lo, wg2m_ref[:cm1, :].astype(f32), preferred_element_type=f32)
    m3 = m3 + jnp.dot(se_hi, wg2m_ref[cm1:, :].astype(f32), preferred_element_type=f32)
    m3 = jnp.maximum(m3 + bg2m_ref[...].astype(f32), 0.0)            # (HW, 4)
    m3_hwc = m3.reshape(H, W, cm2)
    c3 = _dw3x3_bn_relu(pad4_ref, m3_hwc, wg2c_ref[...].astype(f32),
                        bg2c_ref[...].astype(f32), H, W)             # (H, W, 4)

    # ---- out = ghost2_out + mosa_out (MoFFN res) + mosa_out (MoT res) -----
    o_ref[0, :, :, :cm2] = (m3_hwc + 2.0 * mosa_lo).astype(o_ref.dtype)
    o_ref[0, :, :, cm2:] = (c3 + 2.0 * mosa_hi).astype(o_ref.dtype)


def mot_tail(attn_nhwc, x_nhwc, params):
    B, H, W, C = x_nhwc.shape
    g0, g1, se, g2 = (params["mosa_ghost"], params["ffn_ghost1"],
                      params["se"], params["ffn_ghost2"])
    weights = [
        params["mosa_dw_w"], params["mosa_dw_b"],
        g0["main_w"], g0["main_b"], g0["cheap_w"], g0["cheap_b"],
        g1["main_w"], g1["main_b"], g1["cheap_w"], g1["cheap_b"],
        se["w1"], se["b1"], se["w2"], se["b2"],
        g2["main_w"], g2["main_b"], g2["cheap_w"], g2["cheap_b"],
    ]
    act_spec = pl.BlockSpec((1, H, W, C), lambda b: (b, 0, 0, 0))
    w_specs = [pl.BlockSpec(w.shape, lambda b, r=w.ndim: (0,) * r) for w in weights]
    pad_w = W + 2 * _PAD_OFF
    return pl.pallas_call(
        _mot_tail_kernel,
        out_shape=jax.ShapeDtypeStruct((B, H, W, C), x_nhwc.dtype),
        grid=(B,),
        in_specs=[act_spec, act_spec] + w_specs,
        out_specs=pl.BlockSpec((1, H, W, C), lambda b: (b, 0, 0, 0)),
        scratch_shapes=[
            pltpu.VMEM((H + 2, pad_w, C), jnp.float32),                       # pad8
            pltpu.VMEM((H + 2, pad_w, g1["main_w"].shape[1]), jnp.float32),   # pad16
            pltpu.VMEM((H + 2, pad_w, g0["main_w"].shape[1]), jnp.float32),   # pad4
        ],
        compiler_params=pltpu.CompilerParams(dimension_semantics=("parallel",)),
    )(attn_nhwc, x_nhwc, *weights)


# ----------------------------------------------------------------------------
# MoTBlock forward (NCHW external interface, like the PyTorch module)
# ----------------------------------------------------------------------------

def mot_block(x, params):
    attn = mosa_attention(x)                       # (B, C, H, W)
    x_nhwc = x.transpose(0, 2, 3, 1)
    attn_nhwc = attn.transpose(0, 2, 3, 1)
    out_nhwc = mot_tail(attn_nhwc, x_nhwc, params)
    return out_nhwc.transpose(0, 3, 1, 2)


# ----------------------------------------------------------------------------
# Deterministic parameter initialization (BN folded, inference semantics)
# ----------------------------------------------------------------------------

def _fold_bn(key, out_c):
    kg, kb, km, kv = jax.random.split(key, 4)
    gamma = 1.0 + 0.1 * jax.random.normal(kg, (out_c,), jnp.float32)
    beta = 0.05 * jax.random.normal(kb, (out_c,), jnp.float32)
    mean = 0.05 * jax.random.normal(km, (out_c,), jnp.float32)
    var = jax.random.uniform(kv, (out_c,), jnp.float32, 0.5, 1.5)
    s = gamma / jnp.sqrt(var + 1e-5)
    b = beta - mean * s
    return s, b


def init_pw(key, in_c, out_c):
    kw, kbn = jax.random.split(key)
    w = 0.2 * jax.random.normal(kw, (out_c, in_c), jnp.float32)     # torch (out, in, 1, 1)
    s, b = _fold_bn(kbn, out_c)
    return (w * s[:, None]).T, b.reshape(1, out_c)                  # (in_c, out_c), (1, out_c)


def init_dw(key, c):
    kw, kbn = jax.random.split(key)
    w = 0.2 * jax.random.normal(kw, (c, 3, 3), jnp.float32)         # torch (c, 1, 3, 3)
    s, b = _fold_bn(kbn, c)
    w = w * s[:, None, None]
    return w.transpose(1, 2, 0), b.reshape(1, c)                    # (3, 3, c), (1, c)


def init_ghost(key, in_c, out_c):
    main_c = math.ceil(0.5 * out_c)
    cheap_c = out_c - main_c
    assert main_c == cheap_c, "depthwise cheap conv requires main_c == cheap_c"
    k1, k2 = jax.random.split(key)
    mw, mb = init_pw(k1, in_c, main_c)
    cw, cb = init_dw(k2, cheap_c)
    return dict(main_w=mw, main_b=mb, cheap_w=cw, cheap_b=cb)


def init_se(key, channels, reduction=16):
    mid = channels // reduction
    k1, k2, k3, k4 = jax.random.split(key, 4)
    w1 = 0.2 * jax.random.normal(k1, (mid, channels), jnp.float32)  # torch conv1 (mid, C, 1, 1)
    b1 = 0.05 * jax.random.normal(k2, (mid,), jnp.float32)
    w2 = 0.2 * jax.random.normal(k3, (channels, mid), jnp.float32)  # torch conv2 (C, mid, 1, 1)
    b2 = 0.05 * jax.random.normal(k4, (channels,), jnp.float32)
    # zero-pad the tiny bottleneck dim up to 8 lanes (mathematically exact: padded
    # units get 0 pre-activation and 0 outgoing weights).
    mid_p = max(8, ((mid + 7) // 8) * 8)
    w1p = jnp.zeros((channels, mid_p), jnp.float32).at[:, :mid].set(w1.T)
    b1p = jnp.zeros((1, mid_p), jnp.float32).at[:, :mid].set(b1)
    w2p = jnp.zeros((mid_p, channels), jnp.float32).at[:mid, :].set(w2.T)
    b2p = b2.reshape(1, channels)
    return dict(w1=w1p, b1=b1p, w2=w2p, b2=b2p)


# ----------------------------------------------------------------------------

if __name__ == "__main__":
    # MoTBlock(inp, hidden_dim, oup) -- residual connections require oup == inp.
    inp = oup = 8
    hidden = 32
    B, H, W = 2, 16, 16

    key = jax.random.PRNGKey(0)
    kx, kp = jax.random.split(key)
    x = jax.random.normal(kx, (B, inp, H, W), jnp.float32)

    k1, k2, k3, k4, k5 = jax.random.split(kp, 5)
    dw_w, dw_b = init_dw(k1, inp)
    params = dict(
        mosa_dw_w=dw_w, mosa_dw_b=dw_b,
        mosa_ghost=init_ghost(k2, inp, oup),
        ffn_ghost1=init_ghost(k3, inp, hidden),
        se=init_se(k4, hidden),
        ffn_ghost2=init_ghost(k5, hidden, oup),
    )

    out = jax.jit(mot_block)(x, params)
    jax.block_until_ready(out)
    assert out.shape == (B, oup, H, W) and out.dtype == jnp.float32
    assert bool(jnp.all(jnp.isfinite(out)))
    print("KERNEL_OK")
</pallas_src>

<mosaic_0001>
module attributes {stable_mosaic.version = 11 : i64} {
  func.func @_mosa_attn_kernel(%arg0: i32, %arg1: memref<8x16x16xf32, #tpu.memory_space<vmem>>, %arg2: memref<8x16x16xf32, #tpu.memory_space<vmem>>) attributes {dimension_semantics = [#tpu.dimension_semantics<parallel>], iteration_bounds = array<i64: 2>, scalar_prefetch = 0 : i64, scratch_operands = 0 : i64, tpu.core_type = #tpu.core_type<tc>, window_params = [{transform_indices = @transform_0, window_bounds = array<i64: 8, 16, 16>}, {transform_indices = @transform_1, window_bounds = array<i64: 8, 16, 16>}]} {
    %c0 = arith.constant 0 : index
    %c0_0 = arith.constant 0 : index
    %c0_1 = arith.constant 0 : index
    %0 = vector.load %arg1[%c0, %c0_0, %c0_1] : memref<8x16x16xf32, #tpu.memory_space<vmem>>, vector<8x16x16xf32>
    "tpu.trace_start"() <{level = 10 : i32, message = "ghw,gkw->ghk"}> : () -> ()
    %cst = arith.constant dense<0.000000e+00> : vector<8x16x16xf32>
    %1 = tpu.matmul %0, %0, %cst {dimension_numbers = #tpu.dot_dimension_numbers<[2], [2], [1], [1], [0, 0, 0, 1, 1, 1], [0], [0]>} : vector<8x16x16xf32>, vector<8x16x16xf32>, vector<8x16x16xf32> -> vector<8x16x16xf32>
    "tpu.trace_stop"() : () -> ()
    %cst_2 = arith.constant 1.250000e-01 : f32
    %2 = vector.broadcast %cst_2 : f32 to vector<8x16x16xf32>
    %3 = arith.mulf %1, %2 : vector<8x16x16xf32>
    %cst_3 = arith.constant dense<0xFF800000> : vector<8x16xf32>
    %4 = vector.multi_reduction <maximumf>, %3, %cst_3 [2] : vector<8x16x16xf32> to vector<8x16xf32>
    %5 = vector.shape_cast %4 : vector<8x16xf32> to vector<8x16x1xf32>
    %6 = vector.broadcast %5 : vector<8x16x1xf32> to vector<8x16x16xf32>
    %7 = arith.subf %3, %6 : vector<8x16x16xf32>
    %8 = math.exp %7 : vector<8x16x16xf32>
    %cst_4 = arith.constant dense<0.000000e+00> : vector<8x16xf32>
    %9 = vector.multi_reduction <add>, %8, %cst_4 [2] : vector<8x16x16xf32> to vector<8x16xf32>
    %10 = vector.shape_cast %9 : vector<8x16xf32> to vector<8x16x1xf32>
    %11 = tpu.reciprocal %10 {approx = true} : vector<8x16x1xf32> -> vector<8x16x1xf32>
    %12 = vector.broadcast %11 : vector<8x16x1xf32> to vector<8x16x16xf32>
    %13 = arith.mulf %8, %12 : vector<8x16x16xf32>
    "tpu.trace_start"() <{level = 10 : i32, message = "ghk,gkw->ghw"}> : () -> ()
    %cst_5 = arith.constant dense<0.000000e+00> : vector<8x16x16xf32>
    %14 = tpu.matmul %13, %0, %cst_5 {dimension_numbers = #tpu.dot_dimension_numbers<[2], [1], [1], [2], [0, 0, 0, 1, 1, 2], [0], [0]>} : vector<8x16x16xf32>, vector<8x16x16xf32>, vector<8x16x16xf32> -> vector<8x16x16xf32>
    "tpu.trace_stop"() : () -> ()
    %c0_6 = arith.constant 0 : index
    %c0_7 = arith.constant 0 : index
    %c0_8 = arith.constant 0 : index
    %15 = vector.load %arg2[%c0_6, %c0_7, %c0_8] : memref<8x16x16xf32, #tpu.memory_space<vmem>>, vector<8x16x16xf32>
    tpu.vector_store %arg2[%c0_6, %c0_7, %c0_8], %14 {strides = array<i32>} : memref<8x16x16xf32, #tpu.memory_space<vmem>>, vector<8x16x16xf32>,
    return
  }
  func.func @transform_0(%arg0: i32) -> (i32, i32, i32) {
    %c0_i32 = arith.constant 0 : i32
    %c0_i32_0 = arith.constant 0 : i32
    %c0_i32_1 = arith.constant 0 : i32
    return %arg0, %c0_i32, %c0_i32_0 : i32, i32, i32
  }
  func.func @transform_1(%arg0: i32) -> (i32, i32, i32) {
    %c0_i32 = arith.constant 0 : i32
    %c0_i32_0 = arith.constant 0 : i32
    %c0_i32_1 = arith.constant 0 : i32
    return %arg0, %c0_i32, %c0_i32_0 : i32, i32, i32
  }
}

module attributes {stable_mosaic.version = 11 : i64} {
  func.func @_mot_tail_kernel(%arg0: i32, %arg1: memref<1x16x16x8xf32, #tpu.memory_space<vmem>>, %arg2: memref<1x16x16x8xf32, #tpu.memory_space<vmem>>, %arg3: memref<3x3x8xf32, #tpu.memory_space<vmem>>, %arg4: memref<1x8xf32, #tpu.memory_space<vmem>>, %arg5: memref<8x4xf32, #tpu.memory_space<vmem>>, %arg6: memref<1x4xf32, #tpu.memory_space<vmem>>, %arg7: memref<3x3x4xf32, #tpu.memory_space<vmem>>, %arg8: memref<1x4xf32, #tpu.memory_space<vmem>>, %arg9: memref<8x16xf32, #tpu.memory_space<vmem>>, %arg10: memref<1x16xf32, #tpu.memory_space<vmem>>, %arg11: memref<3x3x16xf32, #tpu.memory_space<vmem>>, %arg12: memref<1x16xf32, #tpu.memory_space<vmem>>, %arg13: memref<32x8xf32, #tpu.memory_space<vmem>>, %arg14: memref<1x8xf32, #tpu.memory_space<vmem>>, %arg15: memref<8x32xf32, #tpu.memory_space<vmem>>, %arg16: memref<1x32xf32, #tpu.memory_space<vmem>>, %arg17: memref<32x4xf32, #tpu.memory_space<vmem>>, %arg18: memref<1x4xf32, #tpu.memory_space<vmem>>, %arg19: memref<3x3x4xf32, #tpu.memory_space<vmem>>, %arg20: memref<1x4xf32, #tpu.memory_space<vmem>>, %arg21: memref<1x16x16x8xf32, #tpu.memory_space<vmem>>, %arg22: memref<18x32x8xf32, #tpu.memory_space<vmem>>, %arg23: memref<18x32x16xf32, #tpu.memory_space<vmem>>, %arg24: memref<18x32x4xf32, #tpu.memory_space<vmem>>) attributes {dimension_semantics = [#tpu.dimension_semantics<parallel>], iteration_bounds = array<i64: 2>, scalar_prefetch = 0 : i64, scratch_operands = 3 : i64, tpu.core_type = #tpu.core_type<tc>, window_params = [{transform_indices = @transform_0, window_bounds = array<i64: 1, 16, 16, 8>}, {transform_indices = @transform_1, window_bounds = array<i64: 1, 16, 16, 8>}, {pipeline_mode = #tpu.pipeline_mode<synchronous>, transform_indices = @transform_2, window_bounds = array<i64: 3, 3, 8>}, {pipeline_mode = #tpu.pipeline_mode<synchronous>, transform_indices = @transform_3, window_bounds = array<i64: 1, 8>}, {pipeline_mode = #tpu.pipeline_mode<synchronous>, transform_indices = @transform_4, window_bounds = array<i64: 8, 4>}, {pipeline_mode = #tpu.pipeline_mode<synchronous>, transform_indices = @transform_5, window_bounds = array<i64: 1, 4>}, {pipeline_mode = #tpu.pipeline_mode<synchronous>, transform_indices = @transform_6, window_bounds = array<i64: 3, 3, 4>}, {pipeline_mode = #tpu.pipeline_mode<synchronous>, transform_indices = @transform_7, window_bounds = array<i64: 1, 4>}, {pipeline_mode = #tpu.pipeline_mode<synchronous>, transform_indices = @transform_8, window_bounds = array<i64: 8, 16>}, {pipeline_mode = #tpu.pipeline_mode<synchronous>, transform_indices = @transform_9, window_bounds = array<i64: 1, 16>}, {pipeline_mode = #tpu.pipeline_mode<synchronous>, transform_indices = @transform_10, window_bounds = array<i64: 3, 3, 16>}, {pipeline_mode = #tpu.pipeline_mode<synchronous>, transform_indices = @transform_11, window_bounds = array<i64: 1, 16>}, {pipeline_mode = #tpu.pipeline_mode<synchronous>, transform_indices = @transform_12, window_bounds = array<i64: 32, 8>}, {pipeline_mode = #tpu.pipeline_mode<synchronous>, transform_indices = @transform_13, window_bounds = array<i64: 1, 8>}, {pipeline_mode = #tpu.pipeline_mode<synchronous>, transform_indices = @transform_14, window_bounds = array<i64: 8, 32>}, {pipeline_mode = #tpu.pipeline_mode<synchronous>, transform_indices = @transform_15, window_bounds = array<i64: 1, 32>}, {pipeline_mode = #tpu.pipeline_mode<synchronous>, transform_indices = @transform_16, window_bounds = array<i64: 32, 4>}, {pipeline_mode = #tpu.pipeline_mode<synchronous>, transform_indices = @transform_17, window_bounds = array<i64: 1, 4>}, {pipeline_mode = #tpu.pipeline_mode<synchronous>, transform_indices = @transform_18, window_bounds = array<i64: 3, 3, 4>}, {pipeline_mode = #tpu.pipeline_mode<synchronous>, transform_indices = @transform_19, window_bounds = array<i64: 1, 4>}, {transform_indices = @transform_20, window_bounds = array<i64: 1, 16, 16, 8>}]} {
    %c0 = arith.constant 0 : index
    %c0_0 = arith.constant 0 : index
    %c0_1 = arith.constant 0 : index
    %c0_2 = arith.constant 0 : index
    %0 = vector.load %arg2[%c0, %c0_0, %c0_1, %c0_2] : memref<1x16x16x8xf32, #tpu.memory_space<vmem>>, vector<1x16x16x8xf32>
    %1 = vector.shape_cast %0 : vector<1x16x16x8xf32> to vector<16x16x8xf32>
    %c0_3 = arith.constant 0 : index
    %c0_4 = arith.constant 0 : index
    %c0_5 = arith.constant 0 : index
    %c0_6 = arith.constant 0 : index
    %2 = vector.load %arg1[%c0_3, %c0_4, %c0_5, %c0_6] : memref<1x16x16x8xf32, #tpu.memory_space<vmem>>, vector<1x16x16x8xf32>
    %3 = vector.shape_cast %2 : vector<1x16x16x8xf32> to vector<16x16x8xf32>
    %c0_7 = arith.constant 0 : index
    %c0_8 = arith.constant 0 : index
    %c0_9 = arith.constant 0 : index
    %4 = vector.load %arg3[%c0_7, %c0_8, %c0_9] : memref<3x3x8xf32, #tpu.memory_space<vmem>>, vector<3x3x8xf32>
    %c0_10 = arith.constant 0 : index
    %c0_11 = arith.constant 0 : index
    %5 = vector.load %arg4[%c0_10, %c0_11] : memref<1x8xf32, #tpu.memory_space<vmem>>, vector<1x8xf32>
    %cst = arith.constant 0.000000e+00 : f32
    %6 = vector.broadcast %cst : f32 to vector<18x32x8xf32>
    %c0_12 = arith.constant 0 : index
    %c0_13 = arith.constant 0 : index
    %c0_14 = arith.constant 0 : index
    %7 = vector.load %arg22[%c0_12, %c0_13, %c0_14] : memref<18x32x8xf32, #tpu.memory_space<vmem>>, vector<18x32x8xf32>
    tpu.vector_store %arg22[%c0_12, %c0_13, %c0_14], %6 {strides = array<i32>} : memref<18x32x8xf32, #tpu.memory_space<vmem>>, vector<18x32x8xf32>,
    %c1 = arith.constant 1 : index
    %c8 = arith.constant 8 : index
    %c0_15 = arith.constant 0 : index
    %8 = vector.load %arg22[%c1, %c8, %c0_15] : memref<18x32x8xf32, #tpu.memory_space<vmem>>, vector<16x16x8xf32>
    tpu.vector_store %arg22[%c1, %c8, %c0_15], %1 {strides = array<i32>} : memref<18x32x8xf32, #tpu.memory_space<vmem>>, vector<16x16x8xf32>,
    %cst_16 = arith.constant 0.000000e+00 : f32
    %9 = vector.broadcast %cst_16 : f32 to vector<16x16x8xf32>
    %c0_17 = arith.constant 0 : index
    %c7 = arith.constant 7 : index
    %c0_18 = arith.constant 0 : index
    %10 = vector.load %arg22[%c0_17, %c7, %c0_18] : memref<18x32x8xf32, #tpu.memory_space<vmem>>, vector<16x16x8xf32>
    %11 = vector.extract_strided_slice %4 {offsets = [0, 0, 0], sizes = [1, 1, 8], strides = [1, 1, 1]} : vector<3x3x8xf32> to vector<1x1x8xf32>
    %12 = vector.shape_cast %11 : vector<1x1x8xf32> to vector<8xf32>
    %13 = vector.shape_cast %12 : vector<8xf32> to vector<1x1x8xf32>
    %14 = vector.broadcast %13 : vector<1x1x8xf32> to vector<16x16x8xf32>
    %15 = arith.mulf %10, %14 : vector<16x16x8xf32>
    %16 = arith.addf %9, %15 : vector<16x16x8xf32>
    %c0_19 = arith.constant 0 : index
    %c8_20 = arith.constant 8 : index
    %c0_21 = arith.constant 0 : index
    %17 = vector.load %arg22[%c0_19, %c8_20, %c0_21] : memref<18x32x8xf32, #tpu.memory_space<vmem>>, vector<16x16x8xf32>
    %18 = vector.extract_strided_slice %4 {offsets = [0, 1, 0], sizes = [1, 1, 8], strides = [1, 1, 1]} : vector<3x3x8xf32> to vector<1x1x8xf32>
    %19 = vector.shape_cast %18 : vector<1x1x8xf32> to vector<8xf32>
    %20 = vector.shape_cast %19 : vector<8xf32> to vector<1x1x8xf32>
    %21 = vector.broadcast %20 : vector<1x1x8xf32> to vector<16x16x8xf32>
    %22 = arith.mulf %17, %21 : vector<16x16x8xf32>
    %23 = arith.addf %16, %22 : vector<16x16x8xf32>
    %c0_22 = arith.constant 0 : index
    %c9 = arith.constant 9 : index
    %c0_23 = arith.constant 0 : index
    %24 = vector.load %arg22[%c0_22, %c9, %c0_23] : memref<18x32x8xf32, #tpu.memory_space<vmem>>, vector<16x16x8xf32>
    %25 = vector.extract_strided_slice %4 {offsets = [0, 2, 0], sizes = [1, 1, 8], strides = [1, 1, 1]} : vector<3x3x8xf32> to vector<1x1x8xf32>
    %26 = vector.shape_cast %25 : vector<1x1x8xf32> to vector<8xf32>
    %27 = vector.shape_cast %26 : vector<8xf32> to vector<1x1x8xf32>
    %28 = vector.broadcast %27 : vector<1x1x8xf32> to vector<16x16x8xf32>
    %29 = arith.mulf %24, %28 : vector<16x16x8xf32>
    %30 = arith.addf %23, %29 : vector<16x16x8xf32>
    %c1_24 = arith.constant 1 : index
    %c7_25 = arith.constant 7 : index
    %c0_26 = arith.constant 0 : index
    %31 = vector.load %arg22[%c1_24, %c7_25, %c0_26] : memref<18x32x8xf32, #tpu.memory_space<vmem>>, vector<16x16x8xf32>
    %32 = vector.extract_strided_slice %4 {offsets = [1, 0, 0], sizes = [1, 1, 8], strides = [1, 1, 1]} : vector<3x3x8xf32> to vector<1x1x8xf32>
    %33 = vector.shape_cast %32 : vector<1x1x8xf32> to vector<8xf32>
    %34 = vector.shape_cast %33 : vector<8xf32> to vector<1x1x8xf32>
    %35 = vector.broadcast %34 : vector<1x1x8xf32> to vector<16x16x8xf32>
    %36 = arith.mulf %31, %35 : vector<16x16x8xf32>
    %37 = arith.addf %30, %36 : vector<16x16x8xf32>
    %c1_27 = arith.constant 1 : index
    %c8_28 = arith.constant 8 : index
    %c0_29 = arith.constant 0 : index
    %38 = vector.load %arg22[%c1_27, %c8_28, %c0_29] : memref<18x32x8xf32, #tpu.memory_space<vmem>>, vector<16x16x8xf32>
    %39 = vector.extract_strided_slice %4 {offsets = [1, 1, 0], sizes = [1, 1, 8], strides = [1, 1, 1]} : vector<3x3x8xf32> to vector<1x1x8xf32>
    %40 = vector.shape_cast %39 : vector<1x1x8xf32> to vector<8xf32>
    %41 = vector.shape_cast %40 : vector<8xf32> to vector<1x1x8xf32>
    %42 = vector.broadcast %41 : vector<1x1x8xf32> to vector<16x16x8xf32>
    %43 = arith.mulf %38, %42 : vector<16x16x8xf32>
    %44 = arith.addf %37, %43 : vector<16x16x8xf32>
    %c1_30 = arith.constant 1 : index
    %c9_31 = arith.constant 9 : index
    %c0_32 = arith.constant 0 : index
    %45 = vector.load %arg22[%c1_30, %c9_31, %c0_32] : memref<18x32x8xf32, #tpu.memory_space<vmem>>, vector<16x16x8xf32>
    %46 = vector.extract_strided_slice %4 {offsets = [1, 2, 0], sizes = [1, 1, 8], strides = [1, 1, 1]} : vector<3x3x8xf32> to vector<1x1x8xf32>
    %47 = vector.shape_cast %46 : vector<1x1x8xf32> to vector<8xf32>
    %48 = vector.shape_cast %47 : vector<8xf32> to vector<1x1x8xf32>
    %49 = vector.broadcast %48 : vector<1x1x8xf32> to vector<16x16x8xf32>
    %50 = arith.mulf %45, %49 : vector<16x16x8xf32>
    %51 = arith.addf %44, %50 : vector<16x16x8xf32>
    %c2 = arith.constant 2 : index
    %c7_33 = arith.constant 7 : index
    %c0_34 = arith.constant 0 : index
    %52 = vector.load %arg22[%c2, %c7_33, %c0_34] : memref<18x32x8xf32, #tpu.memory_space<vmem>>, vector<16x16x8xf32>
    %53 = vector.extract_strided_slice %4 {offsets = [2, 0, 0], sizes = [1, 1, 8], strides = [1, 1, 1]} : vector<3x3x8xf32> to vector<1x1x8xf32>
    %54 = vector.shape_cast %53 : vector<1x1x8xf32> to vector<8xf32>
    %55 = vector.shape_cast %54 : vector<8xf32> to vector<1x1x8xf32>
    %56 = vector.broadcast %55 : vector<1x1x8xf32> to vector<16x16x8xf32>
    %57 = arith.mulf %52, %56 : vector<16x16x8xf32>
    %58 = arith.addf %51, %57 : vector<16x16x8xf32>
    %c2_35 = arith.constant 2 : index
    %c8_36 = arith.constant 8 : index
    %c0_37 = arith.constant 0 : index
    %59 = vector.load %arg22[%c2_35, %c8_36, %c0_37] : memref<18x32x8xf32, #tpu.memory_space<vmem>>, vector<16x16x8xf32>
    %60 = vector.extract_strided_slice %4 {offsets = [2, 1, 0], sizes = [1, 1, 8], strides = [1, 1, 1]} : vector<3x3x8xf32> to vector<1x1x8xf32>
    %61 = vector.shape_cast %60 : vector<1x1x8xf32> to vector<8xf32>
    %62 = vector.shape_cast %61 : vector<8xf32> to vector<1x1x8xf32>
    %63 = vector.broadcast %62 : vector<1x1x8xf32> to vector<16x16x8xf32>
    %64 = arith.mulf %59, %63 : vector<16x16x8xf32>
    %65 = arith.addf %58, %64 : vector<16x16x8xf32>
    %c2_38 = arith.constant 2 : index
    %c9_39 = arith.constant 9 : index
    %c0_40 = arith.constant 0 : index
    %66 = vector.load %arg22[%c2_38, %c9_39, %c0_40] : memref<18x32x8xf32, #tpu.memory_space<vmem>>, vector<16x16x8xf32>
    %67 = vector.extract_strided_slice %4 {offsets = [2, 2, 0], sizes = [1, 1, 8], strides = [1, 1, 1]} : vector<3x3x8xf32> to vector<1x1x8xf32>
    %68 = vector.shape_cast %67 : vector<1x1x8xf32> to vector<8xf32>
    %69 = vector.shape_cast %68 : vector<8xf32> to vector<1x1x8xf32>
    %70 = vector.broadcast %69 : vector<1x1x8xf32> to vector<16x16x8xf32>
    %71 = arith.mulf %66, %70 : vector<16x16x8xf32>
    %72 = arith.addf %65, %71 : vector<16x16x8xf32>
    %73 = vector.shape_cast %5 : vector<1x8xf32> to vector<1x1x8xf32>
    %74 = vector.broadcast %73 : vector<1x1x8xf32> to vector<16x16x8xf32>
    %75 = arith.addf %72, %74 : vector<16x16x8xf32>
    %cst_41 = arith.constant 0.000000e+00 : f32
    %76 = vector.broadcast %cst_41 : f32 to vector<16x16x8xf32>
    %77 = arith.maximumf %75, %76 : vector<16x16x8xf32>
    %78 = arith.addf %3, %77 : vector<16x16x8xf32>
    %79 = vector.shape_cast %78 : vector<16x16x8xf32> to vector<256x8xf32>
    %c0_42 = arith.constant 0 : index
    %c0_43 = arith.constant 0 : index
    %80 = vector.load %arg5[%c0_42, %c0_43] : memref<8x4xf32, #tpu.memory_space<vmem>>, vector<8x4xf32>
    %cst_44 = arith.constant dense<0.000000e+00> : vector<256x4xf32>
    %81 = tpu.matmul %79, %80, %cst_44 {dimension_numbers = #tpu.dot_dimension_numbers<[1], [0], [0], [1], [0, 0, 1, 1], [], []>} : vector<256x8xf32>, vector<8x4xf32>, vector<256x4xf32> -> vector<256x4xf32>
    %c0_45 = arith.constant 0 : index
    %c0_46 = arith.constant 0 : index
    %82 = vector.load %arg6[%c0_45, %c0_46] : memref<1x4xf32, #tpu.memory_space<vmem>>, vector<1x4xf32>
    %83 = vector.broadcast %82 : vector<1x4xf32> to vector<256x4xf32>
    %84 = arith.addf %81, %83 : vector<256x4xf32>
    %cst_47 = arith.constant 0.000000e+00 : f32
    %85 = vector.broadcast %cst_47 : f32 to vector<256x4xf32>
    %86 = arith.maximumf %84, %85 : vector<256x4xf32>
    %87 = vector.shape_cast %86 : vector<256x4xf32> to vector<16x16x4xf32>
    %c0_48 = arith.constant 0 : index
    %c0_49 = arith.constant 0 : index
    %c0_50 = arith.constant 0 : index
    %88 = vector.load %arg7[%c0_48, %c0_49, %c0_50] : memref<3x3x4xf32, #tpu.memory_space<vmem>>, vector<3x3x4xf32>
    %c0_51 = arith.constant 0 : index
    %c0_52 = arith.constant 0 : index
    %89 = vector.load %arg8[%c0_51, %c0_52] : memref<1x4xf32, #tpu.memory_space<vmem>>, vector<1x4xf32>
    %cst_53 = arith.constant 0.000000e+00 : f32
    %90 = vector.broadcast %cst_53 : f32 to vector<18x32x4xf32>
    %c0_54 = arith.constant 0 : index
    %c0_55 = arith.constant 0 : index
    %c0_56 = arith.constant 0 : index
    %91 = vector.load %arg24[%c0_54, %c0_55, %c0_56] : memref<18x32x4xf32, #tpu.memory_space<vmem>>, vector<18x32x4xf32>
    tpu.vector_store %arg24[%c0_54, %c0_55, %c0_56], %90 {strides = array<i32>} : memref<18x32x4xf32, #tpu.memory_space<vmem>>, vector<18x32x4xf32>,
    %c1_57 = arith.constant 1 : index
    %c8_58 = arith.constant 8 : index
    %c0_59 = arith.constant 0 : index
    %92 = vector.load %arg24[%c1_57, %c8_58, %c0_59] : memref<18x32x4xf32, #tpu.memory_space<vmem>>, vector<16x16x4xf32>
    tpu.vector_store %arg24[%c1_57, %c8_58, %c0_59], %87 {strides = array<i32>} : memref<18x32x4xf32, #tpu.memory_space<vmem>>, vector<16x16x4xf32>,
    %cst_60 = arith.constant 0.000000e+00 : f32
    %93 = vector.broadcast %cst_60 : f32 to vector<16x16x4xf32>
    %c0_61 = arith.constant 0 : index
    %c7_62 = arith.constant 7 : index
    %c0_63 = arith.constant 0 : index
    %94 = vector.load %arg24[%c0_61, %c7_62, %c0_63] : memref<18x32x4xf32, #tpu.memory_space<vmem>>, vector<16x16x4xf32>
    %95 = vector.extract_strided_slice %88 {offsets = [0, 0, 0], sizes = [1, 1, 4], strides = [1, 1, 1]} : vector<3x3x4xf32> to vector<1x1x4xf32>
    %96 = vector.shape_cast %95 : vector<1x1x4xf32> to vector<4xf32>
    %97 = vector.shape_cast %96 : vector<4xf32> to vector<1x1x4xf32>
    %98 = vector.broadcast %97 : vector<1x1x4xf32> to vector<16x16x4xf32>
    %99 = arith.mulf %94, %98 : vector<16x16x4xf32>
    %100 = arith.addf %93, %99 : vector<16x16x4xf32>
    %c0_64 = arith.constant 0 : index
    %c8_65 = arith.constant 8 : index
    %c0_66 = arith.constant 0 : index
    %101 = vector.load %arg24[%c0_64, %c8_65, %c0_66] : memref<18x32x4xf32, #tpu.memory_space<vmem>>, vector<16x16x4xf32>
    %102 = vector.extract_strided_slice %88 {offsets = [0, 1, 0], sizes = [1, 1, 4], strides = [1, 1, 1]} : vector<3x3x4xf32> to vector<1x1x4xf32>
    %103 = vector.shape_cast %102 : vector<1x1x4xf32> to vector<4xf32>
    %104 = vector.shape_cast %103 : vector<4xf32> to vector<1x1x4xf32>
    %105 = vector.broadcast %104 : vector<1x1x4xf32> to vector<16x16x4xf32>
    %106 = arith.mulf %101, %105 : vector<16x16x4xf32>
    %107 = arith.addf %100, %106 : vector<16x16x4xf32>
    %c0_67 = arith.constant 0 : index
    %c9_68 = arith.constant 9 : index
    %c0_69 = arith.constant 0 : index
    %108 = vector.load %arg24[%c0_67, %c9_68, %c0_69] : memref<18x32x4xf32, #tpu.memory_space<vmem>>, vector<16x16x4xf32>
    %109 = vector.extract_strided_slice %88 {offsets = [0, 2, 0], sizes = [1, 1, 4], strides = [1, 1, 1]} : vector<3x3x4xf32> to vector<1x1x4xf32>
    %110 = vector.shape_cast %109 : vector<1x1x4xf32> to vector<4xf32>
    %111 = vector.shape_cast %110 : vector<4xf32> to vector<1x1x4xf32>
    %112 = vector.broadcast %111 : vector<1x1x4xf32> to vector<16x16x4xf32>
    %113 = arith.mulf %108, %112 : vector<16x16x4xf32>
    %114 = arith.addf %107, %113 : vector<16x16x4xf32>
    %c1_70 = arith.constant 1 : index
    %c7_71 = arith.constant 7 : index
    %c0_72 = arith.constant 0 : index
    %115 = vector.load %arg24[%c1_70, %c7_71, %c0_72] : memref<18x32x4xf32, #tpu.memory_space<vmem>>, vector<16x16x4xf32>
    %116 = vector.extract_strided_slice %88 {offsets = [1, 0, 0], sizes = [1, 1, 4], strides = [1, 1, 1]} : vector<3x3x4xf32> to vector<1x1x4xf32>
    %117 = vector.shape_cast %116 : vector<1x1x4xf32> to vector<4xf32>
    %118 = vector.shape_cast %117 : vector<4xf32> to vector<1x1x4xf32>
    %119 = vector.broadcast %118 : vector<1x1x4xf32> to vector<16x16x4xf32>
    %120 = arith.mulf %115, %119 : vector<16x16x4xf32>
    %121 = arith.addf %114, %120 : vector<16x16x4xf32>
    %c1_73 = arith.constant 1 : index
    %c8_74 = arith.constant 8 : index
    %c0_75 = arith.constant 0 : index
    %122 = vector.load %arg24[%c1_73, %c8_74, %c0_75] : memref<18x32x4xf32, #tpu.memory_space<vmem>>, vector<16x16x4xf32>
    %123 = vector.extract_strided_slice %88 {offsets = [1, 1, 0], sizes = [1, 1, 4], strides = [1, 1, 1]} : vector<3x3x4xf32> to vector<1x1x4xf32>
    %124 = vector.shape_cast %123 : vector<1x1x4xf32> to vector<4xf32>
    %125 = vector.shape_cast %124 : vector<4xf32> to vector<1x1x4xf32>
    %126 = vector.broadcast %125 : vector<1x1x4xf32> to vector<16x16x4xf32>
    %127 = arith.mulf %122, %126 : vector<16x16x4xf32>
    %128 = arith.addf %121, %127 : vector<16x16x4xf32>
    %c1_76 = arith.constant 1 : index
    %c9_77 = arith.constant 9 : index
    %c0_78 = arith.constant 0 : index
    %129 = vector.load %arg24[%c1_76, %c9_77, %c0_78] : memref<18x32x4xf32, #tpu.memory_space<vmem>>, vector<16x16x4xf32>
    %130 = vector.extract_strided_slice %88 {offsets = [1, 2, 0], sizes = [1, 1, 4], strides = [1, 1, 1]} : vector<3x3x4xf32> to vector<1x1x4xf32>
    %131 = vector.shape_cast %130 : vector<1x1x4xf32> to vector<4xf32>
    %132 = vector.shape_cast %131 : vector<4xf32> to vector<1x1x4xf32>
    %133 = vector.broadcast %132 : vector<1x1x4xf32> to vector<16x16x4xf32>
    %134 = arith.mulf %129, %133 : vector<16x16x4xf32>
    %135 = arith.addf %128, %134 : vector<16x16x4xf32>
    %c2_79 = arith.constant 2 : index
    %c7_80 = arith.constant 7 : index
    %c0_81 = arith.constant 0 : index
    %136 = vector.load %arg24[%c2_79, %c7_80, %c0_81] : memref<18x32x4xf32, #tpu.memory_space<vmem>>, vector<16x16x4xf32>
    %137 = vector.extract_strided_slice %88 {offsets = [2, 0, 0], sizes = [1, 1, 4], strides = [1, 1, 1]} : vector<3x3x4xf32> to vector<1x1x4xf32>
    %138 = vector.shape_cast %137 : vector<1x1x4xf32> to vector<4xf32>
    %139 = vector.shape_cast %138 : vector<4xf32> to vector<1x1x4xf32>
    %140 = vector.broadcast %139 : vector<1x1x4xf32> to vector<16x16x4xf32>
    %141 = arith.mulf %136, %140 : vector<16x16x4xf32>
    %142 = arith.addf %135, %141 : vector<16x16x4xf32>
    %c2_82 = arith.constant 2 : index
    %c8_83 = arith.constant 8 : index
    %c0_84 = arith.constant 0 : index
    %143 = vector.load %arg24[%c2_82, %c8_83, %c0_84] : memref<18x32x4xf32, #tpu.memory_space<vmem>>, vector<16x16x4xf32>
    %144 = vector.extract_strided_slice %88 {offsets = [2, 1, 0], sizes = [1, 1, 4], strides = [1, 1, 1]} : vector<3x3x4xf32> to vector<1x1x4xf32>
    %145 = vector.shape_cast %144 : vector<1x1x4xf32> to vector<4xf32>
    %146 = vector.shape_cast %145 : vector<4xf32> to vector<1x1x4xf32>
    %147 = vector.broadcast %146 : vector<1x1x4xf32> to vector<16x16x4xf32>
    %148 = arith.mulf %143, %147 : vector<16x16x4xf32>
    %149 = arith.addf %142, %148 : vector<16x16x4xf32>
    %c2_85 = arith.constant 2 : index
    %c9_86 = arith.constant 9 : index
    %c0_87 = arith.constant 0 : index
    %150 = vector.load %arg24[%c2_85, %c9_86, %c0_87] : memref<18x32x4xf32, #tpu.memory_space<vmem>>, vector<16x16x4xf32>
    %151 = vector.extract_strided_slice %88 {offsets = [2, 2, 0], sizes = [1, 1, 4], strides = [1, 1, 1]} : vector<3x3x4xf32> to vector<1x1x4xf32>
    %152 = vector.shape_cast %151 : vector<1x1x4xf32> to vector<4xf32>
    %153 = vector.shape_cast %152 : vector<4xf32> to vector<1x1x4xf32>
    %154 = vector.broadcast %153 : vector<1x1x4xf32> to vector<16x16x4xf32>
    %155 = arith.mulf %150, %154 : vector<16x16x4xf32>
    %156 = arith.addf %149, %155 : vector<16x16x4xf32>
    %157 = vector.shape_cast %89 : vector<1x4xf32> to vector<1x1x4xf32>
    %158 = vector.broadcast %157 : vector<1x1x4xf32> to vector<16x16x4xf32>
    %159 = arith.addf %156, %158 : vector<16x16x4xf32>
    %cst_88 = arith.constant 0.000000e+00 : f32
    %160 = vector.broadcast %cst_88 : f32 to vector<16x16x4xf32>
    %161 = arith.maximumf %159, %160 : vector<16x16x4xf32>
    %c0_89 = arith.constant 0 : index
    %c0_90 = arith.constant 0 : index
    %c0_91 = arith.constant 0 : index
    %c0_92 = arith.constant 0 : index
    %162 = vector.load %arg2[%c0_89, %c0_90, %c0_91, %c0_92] : memref<1x16x16x8xf32, #tpu.memory_space<vmem>>, vector<1x16x16x4xf32>
    %163 = vector.shape_cast %162 : vector<1x16x16x4xf32> to vector<16x16x4xf32>
    %164 = arith.addf %87, %163 : vector<16x16x4xf32>
    %c0_93 = arith.constant 0 : index
    %c0_94 = arith.constant 0 : index
    %c0_95 = arith.constant 0 : index
    %c4 = arith.constant 4 : index
    %165 = vector.load %arg2[%c0_93, %c0_94, %c0_95, %c4] : memref<1x16x16x8xf32, #tpu.memory_space<vmem>>, vector<1x16x16x4xf32>
    %166 = vector.shape_cast %165 : vector<1x16x16x4xf32> to vector<16x16x4xf32>
    %167 = arith.addf %161, %166 : vector<16x16x4xf32>
    %168 = vector.shape_cast %164 : vector<16x16x4xf32> to vector<256x4xf32>
    %c0_96 = arith.constant 0 : index
    %c0_97 = arith.constant 0 : index
    %169 = vector.load %arg9[%c0_96, %c0_97] : memref<8x16xf32, #tpu.memory_space<vmem>>, vector<4x16xf32>
    %cst_98 = arith.constant dense<0.000000e+00> : vector<256x16xf32>
    %170 = tpu.matmul %168, %169, %cst_98 {dimension_numbers = #tpu.dot_dimension_numbers<[1], [0], [0], [1], [0, 0, 1, 1], [], []>} : vector<256x4xf32>, vector<4x16xf32>, vector<256x16xf32> -> vector<256x16xf32>
    %171 = vector.shape_cast %167 : vector<16x16x4xf32> to vector<256x4xf32>
    %c4_99 = arith.constant 4 : index
    %c0_100 = arith.constant 0 : index
    %172 = vector.load %arg9[%c4_99, %c0_100] : memref<8x16xf32, #tpu.memory_space<vmem>>, vector<4x16xf32>
    %cst_101 = arith.constant dense<0.000000e+00> : vector<256x16xf32>
    %173 = tpu.matmul %171, %172, %cst_101 {dimension_numbers = #tpu.dot_dimension_numbers<[1], [0], [0], [1], [0, 0, 1, 1], [], []>} : vector<256x4xf32>, vector<4x16xf32>, vector<256x16xf32> -> vector<256x16xf32>
    %174 = arith.addf %170, %173 : vector<256x16xf32>
    %c0_102 = arith.constant 0 : index
    %c0_103 = arith.constant 0 : index
    %175 = vector.load %arg10[%c0_102, %c0_103] : memref<1x16xf32, #tpu.memory_space<vmem>>, vector<1x16xf32>
    %176 = vector.broadcast %175 : vector<1x16xf32> to vector<256x16xf32>
    %177 = arith.addf %174, %176 : vector<256x16xf32>
    %cst_104 = arith.constant 0.000000e+00 : f32
    %178 = vector.broadcast %cst_104 : f32 to vector<256x16xf32>
    %179 = arith.maximumf %177, %178 : vector<256x16xf32>
    %180 = vector.shape_cast %179 : vector<256x16xf32> to vector<16x16x16xf32>
    %c0_105 = arith.constant 0 : index
    %c0_106 = arith.constant 0 : index
    %c0_107 = arith.constant 0 : index
    %181 = vector.load %arg11[%c0_105, %c0_106, %c0_107] : memref<3x3x16xf32, #tpu.memory_space<vmem>>, vector<3x3x16xf32>
    %c0_108 = arith.constant 0 : index
    %c0_109 = arith.constant 0 : index
    %182 = vector.load %arg12[%c0_108, %c0_109] : memref<1x16xf32, #tpu.memory_space<vmem>>, vector<1x16xf32>
    %cst_110 = arith.constant 0.000000e+00 : f32
    %183 = vector.broadcast %cst_110 : f32 to vector<18x32x16xf32>
    %c0_111 = arith.constant 0 : index
    %c0_112 = arith.constant 0 : index
    %c0_113 = arith.constant 0 : index
    %184 = vector.load %arg23[%c0_111, %c0_112, %c0_113] : memref<18x32x16xf32, #tpu.memory_space<vmem>>, vector<18x32x16xf32>
    tpu.vector_store %arg23[%c0_111, %c0_112, %c0_113], %183 {strides = array<i32>} : memref<18x32x16xf32, #tpu.memory_space<vmem>>, vector<18x32x16xf32>,
    %c1_114 = arith.constant 1 : index
    %c8_115 = arith.constant 8 : index
    %c0_116 = arith.constant 0 : index
    %185 = vector.load %arg23[%c1_114, %c8_115, %c0_116] : memref<18x32x16xf32, #tpu.memory_space<vmem>>, vector<16x16x16xf32>
    tpu.vector_store %arg23[%c1_114, %c8_115, %c0_116], %180 {strides = array<i32>} : memref<18x32x16xf32, #tpu.memory_space<vmem>>, vector<16x16x16xf32>,
    %cst_117 = arith.constant 0.000000e+00 : f32
    %186 = vector.broadcast %cst_117 : f32 to vector<16x16x16xf32>
    %c0_118 = arith.constant 0 : index
    %c7_119 = arith.constant 7 : index
    %c0_120 = arith.constant 0 : index
    %187 = vector.load %arg23[%c0_118, %c7_119, %c0_120] : memref<18x32x16xf32, #tpu.memory_space<vmem>>, vector<16x16x16xf32>
    %188 = vector.extract_strided_slice %181 {offsets = [0, 0, 0], sizes = [1, 1, 16], strides = [1, 1, 1]} : vector<3x3x16xf32> to vector<1x1x16xf32>
    %189 = vector.shape_cast %188 : vector<1x1x16xf32> to vector<16xf32>
    %190 = vector.shape_cast %189 : vector<16xf32> to vector<1x1x16xf32>
    %191 = vector.broadcast %190 : vector<1x1x16xf32> to vector<16x16x16xf32>
    %192 = arith.mulf %187, %191 : vector<16x16x16xf32>
    %193 = arith.addf %186, %192 : vector<16x16x16xf32>
    %c0_121 = arith.constant 0 : index
    %c8_122 = arith.constant 8 : index
    %c0_123 = arith.constant 0 : index
    %194 = vector.load %arg23[%c0_121, %c8_122, %c0_123] : memref<18x32x16xf32, #tpu.memory_space<vmem>>, vector<16x16x16xf32>
    %195 = vector.extract_strided_slice %181 {offsets = [0, 1, 0], sizes = [1, 1, 16], strides = [1, 1, 1]} : vector<3x3x16xf32> to vector<1x1x16xf32>
    %196 = vector.shape_cast %195 : vector<1x1x16xf32> to vector<16xf32>
    %197 = vector.shape_cast %196 : vector<16xf32> to vector<1x1x16xf32>
    %198 = vector.broadcast %197 : vector<1x1x16xf32> to vector<16x16x16xf32>
    %199 = arith.mulf %194, %198 : vector<16x16x16xf32>
    %200 = arith.addf %193, %199 : vector<16x16x16xf32>
    %c0_124 = arith.constant 0 : index
    %c9_125 = arith.constant 9 : index
    %c0_126 = arith.constant 0 : index
    %201 = vector.load %arg23[%c0_124, %c9_125, %c0_126] : memref<18x32x16xf32, #tpu.memory_space<vmem>>, vector<16x16x16xf32>
    %202 = vector.extract_strided_slice %181 {offsets = [0, 2, 0], sizes = [1, 1, 16], strides = [1, 1, 1]} : vector<3x3x16xf32> to vector<1x1x16xf32>
    %203 = vector.shape_cast %202 : vector<1x1x16xf32> to vector<16xf32>
    %204 = vector.shape_cast %203 : vector<16xf32> to vector<1x1x16xf32>
    %205 = vector.broadcast %204 : vector<1x1x16xf32> to vector<16x16x16xf32>
    %206 = arith.mulf %201, %205 : vector<16x16x16xf32>
    %207 = arith.addf %200, %206 : vector<16x16x16xf32>
    %c1_127 = arith.constant 1 : index
    %c7_128 = arith.constant 7 : index
    %c0_129 = arith.constant 0 : index
    %208 = vector.load %arg23[%c1_127, %c7_128, %c0_129] : memref<18x32x16xf32, #tpu.memory_space<vmem>>, vector<16x16x16xf32>
    %209 = vector.extract_strided_slice %181 {offsets = [1, 0, 0], sizes = [1, 1, 16], strides = [1, 1, 1]} : vector<3x3x16xf32> to vector<1x1x16xf32>
    %210 = vector.shape_cast %209 : vector<1x1x16xf32> to vector<16xf32>
    %211 = vector.shape_cast %210 : vector<16xf32> to vector<1x1x16xf32>
    %212 = vector.broadcast %211 : vector<1x1x16xf32> to vector<16x16x16xf32>
    %213 = arith.mulf %208, %212 : vector<16x16x16xf32>
    %214 = arith.addf %207, %213 : vector<16x16x16xf32>
    %c1_130 = arith.constant 1 : index
    %c8_131 = arith.constant 8 : index
    %c0_132 = arith.constant 0 : index
    %215 = vector.load %arg23[%c1_130, %c8_131, %c0_132] : memref<18x32x16xf32, #tpu.memory_space<vmem>>, vector<16x16x16xf32>
    %216 = vector.extract_strided_slice %181 {offsets = [1, 1, 0], sizes = [1, 1, 16], strides = [1, 1, 1]} : vector<3x3x16xf32> to vector<1x1x16xf32>
    %217 = vector.shape_cast %216 : vector<1x1x16xf32> to vector<16xf32>
    %218 = vector.shape_cast %217 : vector<16xf32> to vector<1x1x16xf32>
    %219 = vector.broadcast %218 : vector<1x1x16xf32> to vector<16x16x16xf32>
    %220 = arith.mulf %215, %219 : vector<16x16x16xf32>
    %221 = arith.addf %214, %220 : vector<16x16x16xf32>
    %c1_133 = arith.constant 1 : index
    %c9_134 = arith.constant 9 : index
    %c0_135 = arith.constant 0 : index
    %222 = vector.load %arg23[%c1_133, %c9_134, %c0_135] : memref<18x32x16xf32, #tpu.memory_space<vmem>>, vector<16x16x16xf32>
    %223 = vector.extract_strided_slice %181 {offsets = [1, 2, 0], sizes = [1, 1, 16], strides = [1, 1, 1]} : vector<3x3x16xf32> to vector<1x1x16xf32>
    %224 = vector.shape_cast %223 : vector<1x1x16xf32> to vector<16xf32>
    %225 = vector.shape_cast %224 : vector<16xf32> to vector<1x1x16xf32>
    %226 = vector.broadcast %225 : vector<1x1x16xf32> to vector<16x16x16xf32>
    %227 = arith.mulf %222, %226 : vector<16x16x16xf32>
    %228 = arith.addf %221, %227 : vector<16x16x16xf32>
    %c2_136 = arith.constant 2 : index
    %c7_137 = arith.constant 7 : index
    %c0_138 = arith.constant 0 : index
    %229 = vector.load %arg23[%c2_136, %c7_137, %c0_138] : memref<18x32x16xf32, #tpu.memory_space<vmem>>, vector<16x16x16xf32>
    %230 = vector.extract_strided_slice %181 {offsets = [2, 0, 0], sizes = [1, 1, 16], strides = [1, 1, 1]} : vector<3x3x16xf32> to vector<1x1x16xf32>
    %231 = vector.shape_cast %230 : vector<1x1x16xf32> to vector<16xf32>
    %232 = vector.shape_cast %231 : vector<16xf32> to vector<1x1x16xf32>
    %233 = vector.broadcast %232 : vector<1x1x16xf32> to vector<16x16x16xf32>
    %234 = arith.mulf %229, %233 : vector<16x16x16xf32>
    %235 = arith.addf %228, %234 : vector<16x16x16xf32>
    %c2_139 = arith.constant 2 : index
    %c8_140 = arith.constant 8 : index
    %c0_141 = arith.constant 0 : index
    %236 = vector.load %arg23[%c2_139, %c8_140, %c0_141] : memref<18x32x16xf32, #tpu.memory_space<vmem>>, vector<16x16x16xf32>
    %237 = vector.extract_strided_slice %181 {offsets = [2, 1, 0], sizes = [1, 1, 16], strides = [1, 1, 1]} : vector<3x3x16xf32> to vector<1x1x16xf32>
    %238 = vector.shape_cast %237 : vector<1x1x16xf32> to vector<16xf32>
    %239 = vector.shape_cast %238 : vector<16xf32> to vector<1x1x16xf32>
    %240 = vector.broadcast %239 : vector<1x1x16xf32> to vector<16x16x16xf32>
    %241 = arith.mulf %236, %240 : vector<16x16x16xf32>
    %242 = arith.addf %235, %241 : vector<16x16x16xf32>
    %c2_142 = arith.constant 2 : index
    %c9_143 = arith.constant 9 : index
    %c0_144 = arith.constant 0 : index
    %243 = vector.load %arg23[%c2_142, %c9_143, %c0_144] : memref<18x32x16xf32, #tpu.memory_space<vmem>>, vector<16x16x16xf32>
    %244 = vector.extract_strided_slice %181 {offsets = [2, 2, 0], sizes = [1, 1, 16], strides = [1, 1, 1]} : vector<3x3x16xf32> to vector<1x1x16xf32>
    %245 = vector.shape_cast %244 : vector<1x1x16xf32> to vector<16xf32>
    %246 = vector.shape_cast %245 : vector<16xf32> to vector<1x1x16xf32>
    %247 = vector.broadcast %246 : vector<1x1x16xf32> to vector<16x16x16xf32>
    %248 = arith.mulf %243, %247 : vector<16x16x16xf32>
    %249 = arith.addf %242, %248 : vector<16x16x16xf32>
    %250 = vector.shape_cast %182 : vector<1x16xf32> to vector<1x1x16xf32>
    %251 = vector.broadcast %250 : vector<1x1x16xf32> to vector<16x16x16xf32>
    %252 = arith.addf %249, %251 : vector<16x16x16xf32>
    %cst_145 = arith.constant 0.000000e+00 : f32
    %253 = vector.broadcast %cst_145 : f32 to vector<16x16x16xf32>
    %254 = arith.maximumf %252, %253 : vector<16x16x16xf32>
    %255 = vector.shape_cast %254 : vector<16x16x16xf32> to vector<256x16xf32>
    %cst_146 = arith.constant dense<0.000000e+00> : vector<16xf32>
    %256 = vector.multi_reduction <add>, %179, %cst_146 [0] : vector<256x16xf32> to vector<16xf32>
    %257 = vector.shape_cast %256 : vector<16xf32> to vector<1x16xf32>
    %cst_147 = arith.constant 2.560000e+02 : f32
    %258 = vector.broadcast %cst_147 : f32 to vector<1x16xf32>
    %259 = arith.divf %257, %258 : vector<1x16xf32>
    %cst_148 = arith.constant dense<0.000000e+00> : vector<16xf32>
    %260 = vector.multi_reduction <add>, %255, %cst_148 [0] : vector<256x16xf32> to vector<16xf32>
    %261 = vector.shape_cast %260 : vector<16xf32> to vector<1x16xf32>
    %cst_149 = arith.constant 2.560000e+02 : f32
    %262 = vector.broadcast %cst_149 : f32 to vector<1x16xf32>
    %263 = arith.divf %261, %262 : vector<1x16xf32>
    %c0_150 = arith.constant 0 : index
    %c0_151 = arith.constant 0 : index
    %264 = vector.load %arg13[%c0_150, %c0_151] : memref<32x8xf32, #tpu.memory_space<vmem>>, vector<16x8xf32>
    %cst_152 = arith.constant dense<0.000000e+00> : vector<1x8xf32>
    %265 = tpu.matmul %259, %264, %cst_152 {dimension_numbers = #tpu.dot_dimension_numbers<[1], [0], [0], [1], [0, 0, 1, 1], [], []>} : vector<1x16xf32>, vector<16x8xf32>, vector<1x8xf32> -> vector<1x8xf32>
    %c16 = arith.constant 16 : index
    %c0_153 = arith.constant 0 : index
    %266 = vector.load %arg13[%c16, %c0_153] : memref<32x8xf32, #tpu.memory_space<vmem>>, vector<16x8xf32>
    %cst_154 = arith.constant dense<0.000000e+00> : vector<1x8xf32>
    %267 = tpu.matmul %263, %266, %cst_154 {dimension_numbers = #tpu.dot_dimension_numbers<[1], [0], [0], [1], [0, 0, 1, 1], [], []>} : vector<1x16xf32>, vector<16x8xf32>, vector<1x8xf32> -> vector<1x8xf32>
    %268 = arith.addf %265, %267 : vector<1x8xf32>
    %c0_155 = arith.constant 0 : index
    %c0_156 = arith.constant 0 : index
    %269 = vector.load %arg14[%c0_155, %c0_156] : memref<1x8xf32, #tpu.memory_space<vmem>>, vector<1x8xf32>
    %270 = arith.addf %268, %269 : vector<1x8xf32>
    %cst_157 = arith.constant 0.000000e+00 : f32
    %271 = vector.broadcast %cst_157 : f32 to vector<1x8xf32>
    %272 = arith.maximumf %270, %271 : vector<1x8xf32>
    %c0_158 = arith.constant 0 : index
    %c0_159 = arith.constant 0 : index
    %273 = vector.load %arg15[%c0_158, %c0_159] : memref<8x32xf32, #tpu.memory_space<vmem>>, vector<8x16xf32>
    %cst_160 = arith.constant dense<0.000000e+00> : vector<1x16xf32>
    %274 = tpu.matmul %272, %273, %cst_160 {dimension_numbers = #tpu.dot_dimension_numbers<[1], [0], [0], [1], [0, 0, 1, 1], [], []>} : vector<1x8xf32>, vector<8x16xf32>, vector<1x16xf32> -> vector<1x16xf32>
    %c0_161 = arith.constant 0 : index
    %c0_162 = arith.constant 0 : index
    %275 = vector.load %arg16[%c0_161, %c0_162] : memref<1x32xf32, #tpu.memory_space<vmem>>, vector<1x16xf32>
    %276 = arith.addf %274, %275 : vector<1x16xf32>
    %277 = arith.negf %276 : vector<1x16xf32>
    %278 = math.exp %277 : vector<1x16xf32>
    %cst_163 = arith.constant 1.000000e+00 : f32
    %279 = vector.broadcast %cst_163 : f32 to vector<1x16xf32>
    %280 = arith.addf %279, %278 : vector<1x16xf32>
    %281 = arith.divf %279, %280 : vector<1x16xf32>
    %c0_164 = arith.constant 0 : index
    %c16_165 = arith.constant 16 : index
    %282 = vector.load %arg15[%c0_164, %c16_165] : memref<8x32xf32, #tpu.memory_space<vmem>>, vector<8x16xf32>
    %cst_166 = arith.constant dense<0.000000e+00> : vector<1x16xf32>
    %283 = tpu.matmul %272, %282, %cst_166 {dimension_numbers = #tpu.dot_dimension_numbers<[1], [0], [0], [1], [0, 0, 1, 1], [], []>} : vector<1x8xf32>, vector<8x16xf32>, vector<1x16xf32> -> vector<1x16xf32>
    %c0_167 = arith.constant 0 : index
    %c16_168 = arith.constant 16 : index
    %284 = vector.load %arg16[%c0_167, %c16_168] : memref<1x32xf32, #tpu.memory_space<vmem>>, vector<1x16xf32>
    %285 = arith.addf %283, %284 : vector<1x16xf32>
    %286 = arith.negf %285 : vector<1x16xf32>
    %287 = math.exp %286 : vector<1x16xf32>
    %cst_169 = arith.constant 1.000000e+00 : f32
    %288 = vector.broadcast %cst_169 : f32 to vector<1x16xf32>
    %289 = arith.addf %288, %287 : vector<1x16xf32>
    %290 = arith.divf %288, %289 : vector<1x16xf32>
    %291 = vector.broadcast %281 : vector<1x16xf32> to vector<256x16xf32>
    %292 = arith.mulf %179, %291 : vector<256x16xf32>
    %293 = vector.broadcast %290 : vector<1x16xf32> to vector<256x16xf32>
    %294 = arith.mulf %255, %293 : vector<256x16xf32>
    %c0_170 = arith.constant 0 : index
    %c0_171 = arith.constant 0 : index
    %295 = vector.load %arg17[%c0_170, %c0_171] : memref<32x4xf32, #tpu.memory_space<vmem>>, vector<16x4xf32>
    %cst_172 = arith.constant dense<0.000000e+00> : vector<256x4xf32>
    %296 = tpu.matmul %292, %295, %cst_172 {dimension_numbers = #tpu.dot_dimension_numbers<[1], [0], [0], [1], [0, 0, 1, 1], [], []>} : vector<256x16xf32>, vector<16x4xf32>, vector<256x4xf32> -> vector<256x4xf32>
    %c16_173 = arith.constant 16 : index
    %c0_174 = arith.constant 0 : index
    %297 = vector.load %arg17[%c16_173, %c0_174] : memref<32x4xf32, #tpu.memory_space<vmem>>, vector<16x4xf32>
    %cst_175 = arith.constant dense<0.000000e+00> : vector<256x4xf32>
    %298 = tpu.matmul %294, %297, %cst_175 {dimension_numbers = #tpu.dot_dimension_numbers<[1], [0], [0], [1], [0, 0, 1, 1], [], []>} : vector<256x16xf32>, vector<16x4xf32>, vector<256x4xf32> -> vector<256x4xf32>
    %299 = arith.addf %296, %298 : vector<256x4xf32>
    %c0_176 = arith.constant 0 : index
    %c0_177 = arith.constant 0 : index
    %300 = vector.load %arg18[%c0_176, %c0_177] : memref<1x4xf32, #tpu.memory_space<vmem>>, vector<1x4xf32>
    %301 = vector.broadcast %300 : vector<1x4xf32> to vector<256x4xf32>
    %302 = arith.addf %299, %301 : vector<256x4xf32>
    %cst_178 = arith.constant 0.000000e+00 : f32
    %303 = vector.broadcast %cst_178 : f32 to vector<256x4xf32>
    %304 = arith.maximumf %302, %303 : vector<256x4xf32>
    %305 = vector.shape_cast %304 : vector<256x4xf32> to vector<16x16x4xf32>
    %c0_179 = arith.constant 0 : index
    %c0_180 = arith.constant 0 : index
    %c0_181 = arith.constant 0 : index
    %306 = vector.load %arg19[%c0_179, %c0_180, %c0_181] : memref<3x3x4xf32, #tpu.memory_space<vmem>>, vector<3x3x4xf32>
    %c0_182 = arith.constant 0 : index
    %c0_183 = arith.constant 0 : index
    %307 = vector.load %arg20[%c0_182, %c0_183] : memref<1x4xf32, #tpu.memory_space<vmem>>, vector<1x4xf32>
    %cst_184 = arith.constant 0.000000e+00 : f32
    %308 = vector.broadcast %cst_184 : f32 to vector<18x32x4xf32>
    %c0_185 = arith.constant 0 : index
    %c0_186 = arith.constant 0 : index
    %c0_187 = arith.constant 0 : index
    %309 = vector.load %arg24[%c0_185, %c0_186, %c0_187] : memref<18x32x4xf32, #tpu.memory_space<vmem>>, vector<18x32x4xf32>
    tpu.vector_store %arg24[%c0_185, %c0_186, %c0_187], %308 {strides = array<i32>} : memref<18x32x4xf32, #tpu.memory_space<vmem>>, vector<18x32x4xf32>,
    %c1_188 = arith.constant 1 : index
    %c8_189 = arith.constant 8 : index
    %c0_190 = arith.constant 0 : index
    %310 = vector.load %arg24[%c1_188, %c8_189, %c0_190] : memref<18x32x4xf32, #tpu.memory_space<vmem>>, vector<16x16x4xf32>
    tpu.vector_store %arg24[%c1_188, %c8_189, %c0_190], %305 {strides = array<i32>} : memref<18x32x4xf32, #tpu.memory_space<vmem>>, vector<16x16x4xf32>,
    %cst_191 = arith.constant 0.000000e+00 : f32
    %311 = vector.broadcast %cst_191 : f32 to vector<16x16x4xf32>
    %c0_192 = arith.constant 0 : index
    %c7_193 = arith.constant 7 : index
    %c0_194 = arith.constant 0 : index
    %312 = vector.load %arg24[%c0_192, %c7_193, %c0_194] : memref<18x32x4xf32, #tpu.memory_space<vmem>>, vector<16x16x4xf32>
    %313 = vector.extract_strided_slice %306 {offsets = [0, 0, 0], sizes = [1, 1, 4], strides = [1, 1, 1]} : vector<3x3x4xf32> to vector<1x1x4xf32>
    %314 = vector.shape_cast %313 : vector<1x1x4xf32> to vector<4xf32>
    %315 = vector.shape_cast %314 : vector<4xf32> to vector<1x1x4xf32>
    %316 = vector.broadcast %315 : vector<1x1x4xf32> to vector<16x16x4xf32>
    %317 = arith.mulf %312, %316 : vector<16x16x4xf32>
    %318 = arith.addf %311, %317 : vector<16x16x4xf32>
    %c0_195 = arith.constant 0 : index
    %c8_196 = arith.constant 8 : index
    %c0_197 = arith.constant 0 : index
    %319 = vector.load %arg24[%c0_195, %c8_196, %c0_197] : memref<18x32x4xf32, #tpu.memory_space<vmem>>, vector<16x16x4xf32>
    %320 = vector.extract_strided_slice %306 {offsets = [0, 1, 0], sizes = [1, 1, 4], strides = [1, 1, 1]} : vector<3x3x4xf32> to vector<1x1x4xf32>
    %321 = vector.shape_cast %320 : vector<1x1x4xf32> to vector<4xf32>
    %322 = vector.shape_cast %321 : vector<4xf32> to vector<1x1x4xf32>
    %323 = vector.broadcast %322 : vector<1x1x4xf32> to vector<16x16x4xf32>
    %324 = arith.mulf %319, %323 : vector<16x16x4xf32>
    %325 = arith.addf %318, %324 : vector<16x16x4xf32>
    %c0_198 = arith.constant 0 : index
    %c9_199 = arith.constant 9 : index
    %c0_200 = arith.constant 0 : index
    %326 = vector.load %arg24[%c0_198, %c9_199, %c0_200] : memref<18x32x4xf32, #tpu.memory_space<vmem>>, vector<16x16x4xf32>
    %327 = vector.extract_strided_slice %306 {offsets = [0, 2, 0], sizes = [1, 1, 4], strides = [1, 1, 1]} : vector<3x3x4xf32> to vector<1x1x4xf32>
    %328 = vector.shape_cast %327 : vector<1x1x4xf32> to vector<4xf32>
    %329 = vector.shape_cast %328 : vector<4xf32> to vector<1x1x4xf32>
    %330 = vector.broadcast %329 : vector<1x1x4xf32> to vector<16x16x4xf32>
    %331 = arith.mulf %326, %330 : vector<16x16x4xf32>
    %332 = arith.addf %325, %331 : vector<16x16x4xf32>
    %c1_201 = arith.constant 1 : index
    %c7_202 = arith.constant 7 : index
    %c0_203 = arith.constant 0 : index
    %333 = vector.load %arg24[%c1_201, %c7_202, %c0_203] : memref<18x32x4xf32, #tpu.memory_space<vmem>>, vector<16x16x4xf32>
    %334 = vector.extract_strided_slice %306 {offsets = [1, 0, 0], sizes = [1, 1, 4], strides = [1, 1, 1]} : vector<3x3x4xf32> to vector<1x1x4xf32>
    %335 = vector.shape_cast %334 : vector<1x1x4xf32> to vector<4xf32>
    %336 = vector.shape_cast %335 : vector<4xf32> to vector<1x1x4xf32>
    %337 = vector.broadcast %336 : vector<1x1x4xf32> to vector<16x16x4xf32>
    %338 = arith.mulf %333, %337 : vector<16x16x4xf32>
    %339 = arith.addf %332, %338 : vector<16x16x4xf32>
    %c1_204 = arith.constant 1 : index
    %c8_205 = arith.constant 8 : index
    %c0_206 = arith.constant 0 : index
    %340 = vector.load %arg24[%c1_204, %c8_205, %c0_206] : memref<18x32x4xf32, #tpu.memory_space<vmem>>, vector<16x16x4xf32>
    %341 = vector.extract_strided_slice %306 {offsets = [1, 1, 0], sizes = [1, 1, 4], strides = [1, 1, 1]} : vector<3x3x4xf32> to vector<1x1x4xf32>
    %342 = vector.shape_cast %341 : vector<1x1x4xf32> to vector<4xf32>
    %343 = vector.shape_cast %342 : vector<4xf32> to vector<1x1x4xf32>
    %344 = vector.broadcast %343 : vector<1x1x4xf32> to vector<16x16x4xf32>
    %345 = arith.mulf %340, %344 : vector<16x16x4xf32>
    %346 = arith.addf %339, %345 : vector<16x16x4xf32>
    %c1_207 = arith.constant 1 : index
    %c9_208 = arith.constant 9 : index
    %c0_209 = arith.constant 0 : index
    %347 = vector.load %arg24[%c1_207, %c9_208, %c0_209] : memref<18x32x4xf32, #tpu.memory_space<vmem>>, vector<16x16x4xf32>
    %348 = vector.extract_strided_slice %306 {offsets = [1, 2, 0], sizes = [1, 1, 4], strides = [1, 1, 1]} : vector<3x3x4xf32> to vector<1x1x4xf32>
    %349 = vector.shape_cast %348 : vector<1x1x4xf32> to vector<4xf32>
    %350 = vector.shape_cast %349 : vector<4xf32> to vector<1x1x4xf32>
    %351 = vector.broadcast %350 : vector<1x1x4xf32> to vector<16x16x4xf32>
    %352 = arith.mulf %347, %351 : vector<16x16x4xf32>
    %353 = arith.addf %346, %352 : vector<16x16x4xf32>
    %c2_210 = arith.constant 2 : index
    %c7_211 = arith.constant 7 : index
    %c0_212 = arith.constant 0 : index
    %354 = vector.load %arg24[%c2_210, %c7_211, %c0_212] : memref<18x32x4xf32, #tpu.memory_space<vmem>>, vector<16x16x4xf32>
    %355 = vector.extract_strided_slice %306 {offsets = [2, 0, 0], sizes = [1, 1, 4], strides = [1, 1, 1]} : vector<3x3x4xf32> to vector<1x1x4xf32>
    %356 = vector.shape_cast %355 : vector<1x1x4xf32> to vector<4xf32>
    %357 = vector.shape_cast %356 : vector<4xf32> to vector<1x1x4xf32>
    %358 = vector.broadcast %357 : vector<1x1x4xf32> to vector<16x16x4xf32>
    %359 = arith.mulf %354, %358 : vector<16x16x4xf32>
    %360 = arith.addf %353, %359 : vector<16x16x4xf32>
    %c2_213 = arith.constant 2 : index
    %c8_214 = arith.constant 8 : index
    %c0_215 = arith.constant 0 : index
    %361 = vector.load %arg24[%c2_213, %c8_214, %c0_215] : memref<18x32x4xf32, #tpu.memory_space<vmem>>, vector<16x16x4xf32>
    %362 = vector.extract_strided_slice %306 {offsets = [2, 1, 0], sizes = [1, 1, 4], strides = [1, 1, 1]} : vector<3x3x4xf32> to vector<1x1x4xf32>
    %363 = vector.shape_cast %362 : vector<1x1x4xf32> to vector<4xf32>
    %364 = vector.shape_cast %363 : vector<4xf32> to vector<1x1x4xf32>
    %365 = vector.broadcast %364 : vector<1x1x4xf32> to vector<16x16x4xf32>
    %366 = arith.mulf %361, %365 : vector<16x16x4xf32>
    %367 = arith.addf %360, %366 : vector<16x16x4xf32>
    %c2_216 = arith.constant 2 : index
    %c9_217 = arith.constant 9 : index
    %c0_218 = arith.constant 0 : index
    %368 = vector.load %arg24[%c2_216, %c9_217, %c0_218] : memref<18x32x4xf32, #tpu.memory_space<vmem>>, vector<16x16x4xf32>
    %369 = vector.extract_strided_slice %306 {offsets = [2, 2, 0], sizes = [1, 1, 4], strides = [1, 1, 1]} : vector<3x3x4xf32> to vector<1x1x4xf32>
    %370 = vector.shape_cast %369 : vector<1x1x4xf32> to vector<4xf32>
    %371 = vector.shape_cast %370 : vector<4xf32> to vector<1x1x4xf32>
    %372 = vector.broadcast %371 : vector<1x1x4xf32> to vector<16x16x4xf32>
    %373 = arith.mulf %368, %372 : vector<16x16x4xf32>
    %374 = arith.addf %367, %373 : vector<16x16x4xf32>
    %375 = vector.shape_cast %307 : vector<1x4xf32> to vector<1x1x4xf32>
    %376 = vector.broadcast %375 : vector<1x1x4xf32> to vector<16x16x4xf32>
    %377 = arith.addf %374, %376 : vector<16x16x4xf32>
    %cst_219 = arith.constant 0.000000e+00 : f32
    %378 = vector.broadcast %cst_219 : f32 to vector<16x16x4xf32>
    %379 = arith.maximumf %377, %378 : vector<16x16x4xf32>
    %cst_220 = arith.constant 2.000000e+00 : f32
    %380 = vector.broadcast %cst_220 : f32 to vector<16x16x4xf32>
    %381 = arith.mulf %380, %164 : vector<16x16x4xf32>
    %382 = arith.addf %305, %381 : vector<16x16x4xf32>
    %c0_221 = arith.constant 0 : index
    %c0_222 = arith.constant 0 : index
    %c0_223 = arith.constant 0 : index
    %c0_224 = arith.constant 0 : index
    %383 = vector.load %arg21[%c0_221, %c0_222, %c0_223, %c0_224] : memref<1x16x16x8xf32, #tpu.memory_space<vmem>>, vector<1x16x16x4xf32>
    %384 = vector.shape_cast %383 : vector<1x16x16x4xf32> to vector<16x16x4xf32>
    %385 = vector.shape_cast %382 : vector<16x16x4xf32> to vector<1x16x16x4xf32>
    tpu.vector_store %arg21[%c0_221, %c0_222, %c0_223, %c0_224], %385 {strides = array<i32>} : memref<1x16x16x8xf32, #tpu.memory_space<vmem>>, vector<1x16x16x4xf32>,
    %cst_225 = arith.constant 2.000000e+00 : f32
    %386 = vector.broadcast %cst_225 : f32 to vector<16x16x4xf32>
    %387 = arith.mulf %386, %167 : vector<16x16x4xf32>
    %388 = arith.addf %379, %387 : vector<16x16x4xf32>
    %c0_226 = arith.constant 0 : index
    %c0_227 = arith.constant 0 : index
    %c0_228 = arith.constant 0 : index
    %c4_229 = arith.constant 4 : index
    %389 = vector.load %arg21[%c0_226, %c0_227, %c0_228, %c4_229] : memref<1x16x16x8xf32, #tpu.memory_space<vmem>>, vector<1x16x16x4xf32>
    %390 = vector.shape_cast %389 : vector<1x16x16x4xf32> to vector<16x16x4xf32>
    %391 = vector.shape_cast %388 : vector<16x16x4xf32> to vector<1x16x16x4xf32>
    tpu.vector_store %arg21[%c0_226, %c0_227, %c0_228, %c4_229], %391 {strides = array<i32>} : memref<1x16x16x8xf32, #tpu.memory_space<vmem>>, vector<1x16x16x4xf32>,
    return
  }
  func.func @transform_0(%arg0: i32) -> (i32, i32, i32, i32) {
    %c0_i32 = arith.constant 0 : i32
    %c0_i32_0 = arith.constant 0 : i32
    %c0_i32_1 = arith.constant 0 : i32
    %c0_i32_2 = arith.constant 0 : i32
    return %arg0, %c0_i32, %c0_i32_0, %c0_i32_1 : i32, i32, i32, i32
  }
  func.func @transform_1(%arg0: i32) -> (i32, i32, i32, i32) {
    %c0_i32 = arith.constant 0 : i32
    %c0_i32_0 = arith.constant 0 : i32
    %c0_i32_1 = arith.constant 0 : i32
    %c0_i32_2 = arith.constant 0 : i32
    return %arg0, %c0_i32, %c0_i32_0, %c0_i32_1 : i32, i32, i32, i32
  }
  func.func @transform_2(%arg0: i32) -> (i32, i32, i32) {
    %c0_i32 = arith.constant 0 : i32
    %c0_i32_0 = arith.constant 0 : i32
    %c0_i32_1 = arith.constant 0 : i32
    %c0_i32_2 = arith.constant 0 : i32
    return %c0_i32, %c0_i32_0, %c0_i32_1 : i32, i32, i32
  }
  func.func @transform_3(%arg0: i32) -> (i32, i32) {
    %c0_i32 = arith.constant 0 : i32
    %c0_i32_0 = arith.constant 0 : i32
    %c0_i32_1 = arith.constant 0 : i32
    return %c0_i32, %c0_i32_0 : i32, i32
  }
  func.func @transform_4(%arg0: i32) -> (i32, i32) {
    %c0_i32 = arith.constant 0 : i32
    %c0_i32_0 = arith.constant 0 : i32
    %c0_i32_1 = arith.constant 0 : i32
    return %c0_i32, %c0_i32_0 : i32, i32
  }
  func.func @transform_5(%arg0: i32) -> (i32, i32) {
    %c0_i32 = arith.constant 0 : i32
    %c0_i32_0 = arith.constant 0 : i32
    %c0_i32_1 = arith.constant 0 : i32
    return %c0_i32, %c0_i32_0 : i32, i32
  }
  func.func @transform_6(%arg0: i32) -> (i32, i32, i32) {
    %c0_i32 = arith.constant 0 : i32
    %c0_i32_0 = arith.constant 0 : i32
    %c0_i32_1 = arith.constant 0 : i32
    %c0_i32_2 = arith.constant 0 : i32
    return %c0_i32, %c0_i32_0, %c0_i32_1 : i32, i32, i32
  }
  func.func @transform_7(%arg0: i32) -> (i32, i32) {
    %c0_i32 = arith.constant 0 : i32
    %c0_i32_0 = arith.constant 0 : i32
    %c0_i32_1 = arith.constant 0 : i32
    return %c0_i32, %c0_i32_0 : i32, i32
  }
  func.func @transform_8(%arg0: i32) -> (i32, i32) {
    %c0_i32 = arith.constant 0 : i32
    %c0_i32_0 = arith.constant 0 : i32
    %c0_i32_1 = arith.constant 0 : i32
    return %c0_i32, %c0_i32_0 : i32, i32
  }
  func.func @transform_9(%arg0: i32) -> (i32, i32) {
    %c0_i32 = arith.constant 0 : i32
    %c0_i32_0 = arith.constant 0 : i32
    %c0_i32_1 = arith.constant 0 : i32
    return %c0_i32, %c0_i32_0 : i32, i32
  }
  func.func @transform_10(%arg0: i32) -> (i32, i32, i32) {
    %c0_i32 = arith.constant 0 : i32
    %c0_i32_0 = arith.constant 0 : i32
    %c0_i32_1 = arith.constant 0 : i32
    %c0_i32_2 = arith.constant 0 : i32
    return %c0_i32, %c0_i32_0, %c0_i32_1 : i32, i32, i32
  }
  func.func @transform_11(%arg0: i32) -> (i32, i32) {
    %c0_i32 = arith.constant 0 : i32
    %c0_i32_0 = arith.constant 0 : i32
    %c0_i32_1 = arith.constant 0 : i32
    return %c0_i32, %c0_i32_0 : i32, i32
  }
  func.func @transform_12(%arg0: i32) -> (i32, i32) {
    %c0_i32 = arith.constant 0 : i32
    %c0_i32_0 = arith.constant 0 : i32
    %c0_i32_1 = arith.constant 0 : i32
    return %c0_i32, %c0_i32_0 : i32, i32
  }
  func.func @transform_13(%arg0: i32) -> (i32, i32) {
    %c0_i32 = arith.constant 0 : i32
    %c0_i32_0 = arith.constant 0 : i32
    %c0_i32_1 = arith.constant 0 : i32
    return %c0_i32, %c0_i32_0 : i32, i32
  }
  func.func @transform_14(%arg0: i32) -> (i32, i32) {
    %c0_i32 = arith.constant 0 : i32
    %c0_i32_0 = arith.constant 0 : i32
    %c0_i32_1 = arith.constant 0 : i32
    return %c0_i32, %c0_i32_0 : i32, i32
  }
  func.func @transform_15(%arg0: i32) -> (i32, i32) {
    %c0_i32 = arith.constant 0 : i32
    %c0_i32_0 = arith.constant 0 : i32
    %c0_i32_1 = arith.constant 0 : i32
    return %c0_i32, %c0_i32_0 : i32, i32
  }
  func.func @transform_16(%arg0: i32) -> (i32, i32) {
    %c0_i32 = arith.constant 0 : i32
    %c0_i32_0 = arith.constant 0 : i32
    %c0_i32_1 = arith.constant 0 : i32
    return %c0_i32, %c0_i32_0 : i32, i32
  }
  func.func @transform_17(%arg0: i32) -> (i32, i32) {
    %c0_i32 = arith.constant 0 : i32
    %c0_i32_0 = arith.constant 0 : i32
    %c0_i32_1 = arith.constant 0 : i32
    return %c0_i32, %c0_i32_0 : i32, i32
  }
  func.func @transform_18(%arg0: i32) -> (i32, i32, i32) {
    %c0_i32 = arith.constant 0 : i32
    %c0_i32_0 = arith.constant 0 : i32
    %c0_i32_1 = arith.constant 0 : i32
    %c0_i32_2 = arith.constant 0 : i32
    return %c0_i32, %c0_i32_0, %c0_i32_1 : i32, i32, i32
  }
  func.func @transform_19(%arg0: i32) -> (i32, i32) {
    %c0_i32 = arith.constant 0 : i32
    %c0_i32_0 = arith.constant 0 : i32
    %c0_i32_1 = arith.constant 0 : i32
    return %c0_i32, %c0_i32_0 : i32, i32
  }
  func.func @transform_20(%arg0: i32) -> (i32, i32, i32, i32) {
    %c0_i32 = arith.constant 0 : i32
    %c0_i32_0 = arith.constant 0 : i32
    %c0_i32_1 = arith.constant 0 : i32
    %c0_i32_2 = arith.constant 0 : i32
    return %arg0, %c0_i32, %c0_i32_0, %c0_i32_1 : i32, i32, i32, i32
  }
}

</mosaic_0001>

<bundles_post_ra>
// kernel: mot_block.2
= control target key start
LH: loop header
LB: loop body
LE: loop exit
PB: predicated region body
PF: predicated region fallthrough
CT: control target
= control target key end

     0   :  { %6 = vsyncpa [#allocation3], 0  ;;  %s2663_s0 = inlined_call_operand.hbm [shape: f32[16,16,16], index: 0, kind: input, shape index: {}]   ;;  %s2664_s1 = inlined_call_operand.vmem [shape: f32[16,16,16], index: 1, kind: output, shape index: {}]  }
   0x1   :  { %8 = vsyncpa [#allocation3 + $0x1], 0  ;;  %s2238_s6 = smov 0   ;;  %s2240_s7 = smov 0  }
   0x2   :  { %s2242_s8 = smov 0   ;;  %s2244_s9 = smov 0  }
   0x3 LB: > { %s1732_s10 = sadd.s32 4294967295, %s2223_s9   ;;  %s2258_s11 = sadd.s32 1, %s2223_s9   ;;  %s2223_s9 = sphi %s2244_s9, %s2673_s9   ;;  %s2219_s8 = sphi %s2242_s8, %s2672_s8   ;;  %s2215_s7 = sphi %s2240_s7, %s2671_s7   ;;  %s2211_s6 = sphi %s2238_s6, %s2670_s6  }
   0x4   : > { %s18_s12 = ssub.s32 %s2223_s9, %s2258_s11  ;;  %s21_s13 = sadd.s32 1, %s2219_s8 }
   0x5   : > { %p19_p0 = scmp.eq.s32.totalorder %s18_s12, 0  ;;  %p28_p1 = scmp.ne.s32.totalorder %s2219_s8, %s2215_s7 }
   0x6   : > { %p29_p2 = scmp.eq.s32.totalorder %s2223_s9, 0  ;;  %p34_p3 = scmp.ne.s32.totalorder %s2215_s7, %s2211_s6 }
   0x7   : > { %s2268_s14 = scalar_select %p19_p0, %s2219_s8, %s21_s13  }
   0x8   : > { %p30_p4 = por %p29_p2, %p28_p1  ;;  %p35_p5 = scmp.eq.s32.totalorder %s1732_s10, 0 }
   0x9   : > { %p2060_p6 = scmp.lt.s32.totalorder %s2223_s9, 2  ;;  %s84_s16 = sand.u32 1, %s2219_s8  }
   0xa   : > { %p2273_p7 = por %p35_p5, %p34_p3  ;;  %s1736_s17 = sshll.u32 %s84_s16, 7 }
   0xb   : > { %s1796_s18 = sshll.u32 %s2223_s9, 11  ;;  %s88_s22 = scalar_lea.vmem [#allocation2], %s1736_s17 }
   0xc   : > { %s2282_s21 = scalar_lea.hbm %s2663_s0, %s1796_s18  ;;  %s96_s23 = sshll.u32 %s88_s22, 4  ;;  %s2284_s23 = int_to_ptr.vmem [resolvable:$true] %s96_s23 }
   0xd   : > { %p2286_p8 = pnand %p2060_p6, %p30_p4  ;;  %s2291_s25 = scalar_lea.sflag [#allocation3], %s84_s16 }
   0xe   : > { %s2159_s26 = scalar_lea.hbm %s2282_s21, 2048  ;;  %s2164_s29 = scalar_lea.hbm %s2663_s0, 4096 }
   0xf   : > { %p2160_p10 = scmp.ne.s32.totalorder %s2282_s21, %s2159_s26  ;;  %p2161_p11 = pneg %p2286_p8 }
  0x10   : > { %p2165_p0 = scmp.lt.u32.totalorder %s2282_s21, %s2663_s0  ;;  %p2166_p1 = scmp.lt.u32.totalorder %s2164_s29, %s2159_s26 }
  0x11   : > { %p2162_p12 = pnand %p2161_p11, %p2160_p10  ;;  %p2168_p3 = scmp.lt.u32.totalorder %s2159_s26, %s2282_s21 }
  0x12   : > { %p2167_p2 = por %p2166_p1, %p2165_p0 }
  0x13   : > { %p2163_p13 = pneg %p2162_p12 }
  0x14   : > { %p2169_p4 = por %p2168_p3, %p2167_p2 }
  0x16   : > { %p2170_p5 = pnand %p2169_p4, %p2163_p13 }
  0x18   : > { %2173 = shalt.err (!%p2170_p5)
}
  0x19   : > { %s2174_s3 = scalar_lea.vmem %s2284_s23, 2048  ;;  %s2225_s4 = smov [#allocation2]  }
  0x1a   : > { %p2175_p6 = scmp.ne.s32.totalorder %s2284_s23, %s2174_s3  ;;  %s2179_s5 = sshll.u32 %s2225_s4, 4  ;;  %s2180_s5 = int_to_ptr.vmem [resolvable:$false] %s2179_s5 }
  0x1b   : > { %s2181_s6 = scalar_lea.vmem %s2180_s5, 4096  ;;  %p2182_p9 = scmp.lt.s32.totalorder %s2284_s23, %s2180_s5 }
  0x1c   : > { %p2177_p10 = pnand %p2175_p6, %p2161_p11  ;;  %p2183_p0 = scmp.lt.s32.totalorder %s2181_s6, %s2174_s3 }
  0x1e   : > { %p2178_p12 = pneg %p2177_p10  ;;  %p2184_p1 = por %p2183_p0, %p2182_p9 }
  0x20   : > { %p2185_p2 = pnand %p2184_p1, %p2178_p12 }
  0x22   : > { %2188 = shalt.err (!%p2185_p2)
}
  0x23   : > { %s2226_s12 = smov 128   ;;  %s2227_s13 = smov 8  }
  0x24   : > { %2059 = dma.hbm_to_vmem [thread:$0]  (!%p2286_p8), %s2282_s21, 2048, %s2284_s23, %s2291_s25, %s2226_s12, %s2226_s12, %s2227_s13  }
  0x25   : > { %p104_p11 = scmp.lt.s32.totalorder %s2223_s9, 3  ;;  %p2667_p13 = scmp.ge.s32.totalorder %s2223_s9, 1 }
  0x27   : > { %p105_p3 = pnand %p2667_p13, %p104_p11 }
  0x28   : > { %s110_s16 = sand.u32 (!%p105_p3), 1, %s2215_s7  }
  0x29   : > { %108 = sbr.rel (%p105_p3) target bundleno = 834 (0x342), region = 24  ;;  %s1741_s17 = sshll.u32 (!%p105_p3), %s110_s16, 7 }
  0x2a   : > { %s111_s18 = scalar_lea.sflag (!%p105_p3), [#allocation3], %s110_s16  ;;  %s2323_s19 = scalar_lea.vmem (!%p105_p3), [#allocation2], %s1741_s17 }
  0x30   : > { %2206 = dma.done.wait (%p2273_p7), %s111_s18, 2048  }
  0x31   : > { %2208 = vsyncadd (%p2273_p7), %s111_s18, 4294965248  ;;  %vm158_vm0 = vcmask 130048   ;;  %v142_v1 = vld [vmem:[%s2323_s19] sm:$0xff]  ;;  %v143_v2 = vld [vmem:[%s2323_s19 + $0x8] sm:$0xff]  ;;  %s1742_s15 = sshll.u32 %s1732_s10, 3 }
  0x32   : > { %vm2331_vm1 = vmpackc.low %vm158_vm0, %vm158_vm0  ;;  %v144_v3 = vld [vmem:[%s2323_s19 + $0x10] sm:$0xff]  ;;  %v1974_v4 = vpack.c.bf16 %v143_v2, %v142_v1  ;;  %v145_v5 = vld [vmem:[%s2323_s19 + $0x18] sm:$0xff]  ;;  %1866 = vmatprep.mubr.msk.f32.mxu0 %vm158_vm0, %v142_v1  ;;  %p136_p7 = scmp.lt.s32.totalorder %s1742_s15, 15 }
  0x33   : > { %1873 = vmatprep.mubr.msk.f32.mxu1 %vm158_vm0, %v144_v3  ;;  %v146_v6 = vld [vmem:[%s2323_s19 + $0x20] sm:$0xff]  ;;  %v147_v7 = vld [vmem:[%s2323_s19 + $0x28] sm:$0xff]  ;;  %v1980_v8 = vpack.c.bf16 %v145_v5, %v144_v3  ;;  %v148_v10 = vld [vmem:[%s2323_s19 + $0x30] sm:$0xff] }
  0x34   : > { %v2343_v9 = vpack.c.bf16 %v147_v7, %v146_v6  ;;  %v149_v11 = vld [vmem:[%s2323_s19 + $0x38] sm:$0xff]  ;;  %1976 = vmatprep.subr.msk.bf16.mxu0 %vm2331_vm1, %v1974_v4  ;;  %v150_v13 = vld [vmem:[%s2323_s19 + $0x40] sm:$0xff]  ;;  %v151_v14 = vld [vmem:[%s2323_s19 + $0x48] sm:$0xff]  ;;  %s2675_s15 = smov (!%p136_p7, %s1742_s15), 15 }
  0x35   : > { %v2349_v12 = vpack.c.bf16 %v149_v11, %v148_v10  ;;  %1982 = vmatprep.subr.msk.bf16.mxu1 %vm2331_vm1, %v1980_v8  ;;  %1979 = vmatpush3.bf16.xpose.msk.msra.mxu0 %vm2331_vm1, %v1974_v4  ;;  %v152_v15 = vld [vmem:[%s2323_s19 + $0x50] sm:$0xff]  ;;  %v153_v16 = vld [vmem:[%s2323_s19 + $0x58] sm:$0xff]  ;;  %v2367_v17 = vpack.c.bf16 %v151_v14, %v150_v13  ;;  %v154_v19 = vld [vmem:[%s2323_s19 + $0x60] sm:$0xff]  ;;  %s1797_s20 = sshll.u32 %s2675_s15, 4 }
  0x36   : > { %1985 = vmatpush3.bf16.xpose.msk.msra.mxu1 %vm2331_vm1, %v1980_v8  ;;  %1988 = vmatprep.subr.msk.bf16.mxu0 %vm2331_vm1, %v2343_v9  ;;  %v2370_v18 = vpack.c.bf16 %v153_v16, %v152_v15  ;;  %v155_v20 = vld [vmem:[%s2323_s19 + $0x68] sm:$0xff]  ;;  %v156_v21 = vld [vmem:[%s2323_s19 + $0x70] sm:$0xff]  ;;  %v157_v22 = vld [vmem:[%s2323_s19 + $0x78] sm:$0xff]  ;;  %s2616_s23 = scalar_lea.vmem %s2664_s1, %s1797_s20 }
  0x37   : > { %1994 = vmatprep.subr.msk.bf16.mxu1 %vm2331_vm1, %v2349_v12  ;;  %v2391_v23 = vpack.c.bf16 %v155_v20, %v154_v19  ;;  %v2394_v24 = vpack.c.bf16 %v157_v22, %v156_v21 }
  0x3c   : > { %1867 = vmatmul.mubr.msk.f32.vlgmr.msra.gmra.mrb[0].mxu0 %vm158_vm0, %v143_v2 }
  0x3d   : > { %1874 = vmatmul.mubr.msk.f32.vlgmr.msra.gmra.mrb[0].mxu1 %vm158_vm0, %v145_v5  ;;  %1991 = vmatpush3.bf16.xpose.msk.msra.mxu0 %vm2331_vm1, %v2343_v9 }
  0x3e   : > { %1997 = vmatpush3.bf16.xpose.msk.msra.mxu1 %vm2331_vm1, %v2349_v12  ;;  %1887 = vmatprep.mubr.msk.f32.mxu1 %vm158_vm0, %v148_v10 }
  0x3f   : > { %1880 = vmatprep.mubr.msk.f32.mxu0 %vm158_vm0, %v146_v6  ;;  %2000 = vmatprep.subr.msk.bf16.mxu0 %vm2331_vm1, %v2367_v17 }
  0x40   : > { %2006 = vmatprep.subr.msk.bf16.mxu1 %vm2331_vm1, %v2370_v18 }
  0x44   : > { %1881 = vmatmul.mubr.msk.f32.vlgmr.msra.gmra.mrb[2].mxu0 %vm158_vm0, %v147_v7 }
  0x45   : > { %1888 = vmatmul.mubr.msk.f32.vlgmr.msra.gmra.mrb[2].mxu1 %vm158_vm0, %v149_v11  ;;  %2003 = vmatpush3.bf16.xpose.msk.msra.mxu0 %vm2331_vm1, %v2367_v17 }
  0x46   : > { %2009 = vmatpush3.bf16.xpose.msk.msra.mxu1 %vm2331_vm1, %v2370_v18  ;;  %1901 = vmatprep.mubr.msk.f32.mxu1 %vm158_vm0, %v152_v15 }
  0x47   : > { %1894 = vmatprep.mubr.msk.f32.mxu0 %vm158_vm0, %v150_v13  ;;  %2012 = vmatprep.subr.msk.bf16.mxu0 %vm2331_vm1, %v2391_v23 }
  0x48   : > { %2018 = vmatprep.subr.msk.bf16.mxu1 %vm2331_vm1, %v2394_v24 }
  0x4c   : > { %1895 = vmatmul.mubr.msk.f32.vlgmr.msra.gmra.mrb[4].mxu0 %vm158_vm0, %v151_v14 }
  0x4d   : > { %1902 = vmatmul.mubr.msk.f32.vlgmr.msra.gmra.mrb[4].mxu1 %vm158_vm0, %v153_v16  ;;  %2015 = vmatpush3.bf16.xpose.msk.msra.mxu0 %vm2331_vm1, %v2391_v23 }
  0x4e   : > { %2021 = vmatpush3.bf16.xpose.msk.msra.mxu1 %vm2331_vm1, %v2394_v24  ;;  %1908 = vmatprep.mubr.msk.f32.mxu0 %vm158_vm0, %v154_v19 }
  0x4f   : > { %1915 = vmatprep.mubr.msk.f32.mxu1 %vm158_vm0, %v156_v21  ;;  %2023 = vmatprep.subr.bf16.mxu0 %v1974_v4 }
  0x50   : > { %2027 = vmatprep.subr.bf16.mxu1 %v1980_v8 }
  0x54   : > { %1909 = vmatmul.mubr.msk.f32.vlgmr.msra.gmra.mrb[6].mxu0 %vm158_vm0, %v155_v20 }
  0x55   : > { %1916 = vmatmul.mubr.msk.f32.vlgmr.msra.gmra.mrb[6].mxu1 %vm158_vm0, %v157_v22  ;;  %2025 = vmatpush3.bf16.msra.mxu0 %v1974_v4 }
  0x56   : > { %2029 = vmatpush3.bf16.msra.mxu1 %v1980_v8  ;;  %2031 = vmatprep.subr.bf16.mxu0 %v2343_v9 }
  0x57   : > { %2035 = vmatprep.subr.bf16.mxu1 %v2349_v12 }
 0x10f   : > { %v1868_v25 = vpop.f32.mrb[0].mxu0 }
 0x110   : > { %v2425_v26 = vmul.f32 0.125, %v1868_v25  ;;  %v231_v27 = vpop.f32.mrb[1].mxu0  ;;  %v1875_v28 = vpop.f32.mrb[0].mxu1 }
 0x111   : > { %v2427_v29 = vmul.f32 0.125, %v231_v27  ;;  %v2429_v30 = vmul.f32 0.125, %v1875_v28  ;;  %v312_v31 = vpop.f32.mrb[1].mxu1 }
 0x112   : > { %v2431_v32 = vmul.f32 0.125, %v312_v31  ;;  %v826_v33 = vsel %vm158_vm0, %v2425_v26, -inf }
 0x113   : > { %827 = vmax.xlane.f32.xlu1 %v826_v33  ;;  %v823_v34 = vsel %vm158_vm0, %v2427_v29, -inf  ;;  %v832_v35 = vsel %vm158_vm0, %v2429_v30, -inf }
 0x114   : > { %824 = vmax.xlane.f32.xlu0 %v823_v34  ;;  %v829_v36 = vsel %vm158_vm0, %v2431_v32, -inf }
 0x117   : > { %833 = vmax.xlane.f32.xlu1 %v832_v35  ;;  %v1882_v37 = vpop.f32.mrb[2].mxu0 }
 0x118   : > { %v1889_v38 = vpop.f32.mrb[2].mxu1  ;;  %830 = vmax.xlane.f32.xlu0 %v829_v36  ;;  %v2441_v39 = vmul.f32 0.125, %v1882_v37  ;;  %v393_v40 = vpop.f32.mrb[3].mxu0 }
 0x119   : > { %v2443_v41 = vmul.f32 0.125, %v1889_v38  ;;  %v474_v42 = vpop.f32.mrb[3].mxu1  ;;  %v2445_v43 = vmul.f32 0.125, %v393_v40 }
 0x11a   : > { %v2447_v44 = vmul.f32 0.125, %v474_v42  ;;  %v838_v45 = vsel %vm158_vm0, %v2441_v39, -inf }
 0x11b   : > { %v844_v46 = vsel %vm158_vm0, %v2443_v41, -inf  ;;  %v835_v48 = vsel %vm158_vm0, %v2445_v43, -inf }
 0x11c   : > { %845 = vmax.xlane.f32.xlu1 %v844_v46  ;;  %839 = vmax.xlane.f32.xlu0 %v838_v45  ;;  %v841_v47 = vsel %vm158_vm0, %v2447_v44, -inf }
 0x11f   : > { %v1896_v49 = vpop.f32.mrb[4].mxu0 }
 0x120   : > { %v1903_v50 = vpop.f32.mrb[4].mxu1  ;;  %842 = vmax.xlane.f32.xlu1 %v841_v47  ;;  %836 = vmax.xlane.f32.xlu0 %v835_v48  ;;  %v2457_v51 = vmul.f32 0.125, %v1896_v49  ;;  %v555_v52 = vpop.f32.mrb[5].mxu0 }
 0x121   : > { %v2459_v53 = vmul.f32 0.125, %v1903_v50  ;;  %v636_v54 = vpop.f32.mrb[5].mxu1  ;;  %v2461_v55 = vmul.f32 0.125, %v555_v52 }
 0x122   : > { %v2463_v56 = vmul.f32 0.125, %v636_v54  ;;  %v850_v57 = vsel %vm158_vm0, %v2457_v51, -inf }
 0x123   : > { %v856_v58 = vsel %vm158_vm0, %v2459_v53, -inf  ;;  %v847_v60 = vsel %vm158_vm0, %v2461_v55, -inf }
 0x124   : > { %857 = vmax.xlane.f32.xlu1 %v856_v58  ;;  %851 = vmax.xlane.f32.xlu0 %v850_v57  ;;  %v853_v59 = vsel %vm158_vm0, %v2463_v56, -inf }
 0x127   : > { %v1910_v61 = vpop.f32.mrb[6].mxu0 }
 0x128   : > { %v1917_v62 = vpop.f32.mrb[6].mxu1  ;;  %854 = vmax.xlane.f32.xlu1 %v853_v59  ;;  %848 = vmax.xlane.f32.xlu0 %v847_v60  ;;  %v717_v63 = vpop.f32.mrb[7].mxu0  ;;  %v2477_v3 = vmul.f32 0.125, %v1910_v61 }
 0x129   : > { %v798_v0 = vpop.f32.mrb[7].mxu1  ;;  %v2473_v1 = vmul.f32 0.125, %v717_v63  ;;  %v2481_v5 = vmul.f32 0.125, %v1917_v62 }
 0x12a   : > { %v2475_v2 = vmul.f32 0.125, %v798_v0  ;;  %v862_v7 = vsel %vm158_vm0, %v2477_v3, -inf }
 0x12b   : > { %v859_v4 = vsel %vm158_vm0, %v2473_v1, -inf  ;;  %v868_v8 = vsel %vm158_vm0, %v2481_v5, -inf }
 0x12c   : > { %v865_v6 = vsel %vm158_vm0, %v2475_v2, -inf  ;;  %860 = vmax.xlane.f32.xlu0 %v859_v4 }
 0x12d   : > { %866 = vmax.xlane.f32.xlu1 %v865_v6 }
 0x130   : > { %863 = vmax.xlane.f32.xlu0 %v862_v7 }
 0x131   : > { %869 = vmax.xlane.f32.xlu1 %v868_v8 }
 0x1a0   : > { %v828_v10 = vpop.xlane.xlu1 %827 }
 0x1a1   : > { %v872_v11 = vsub.f32 %v2425_v26, %v828_v10  ;;  %v825_v13 = vpop.xlane.xlu0 %824 }
 0x1a2   : > { %v871_v14 = vsub.f32 %v2427_v29, %v825_v13 }
 0x1a3   : > { %v889_v15 = vmul.f32 1.442695, %v872_v11 }
 0x1a4   : > { %v887_v16 = vmul.f32 1.442695, %v871_v14  ;;  %v834_v19 = vpop.xlane.xlu1 %833 }
 0x1a5   : > { %2095 = vpow2.f32 %v889_v15  ;;  %v874_v20 = vsub.f32 %v2429_v30, %v834_v19  ;;  %v831_v21 = vpop.xlane.xlu0 %830 }
 0x1a6   : > { %v873_v22 = vsub.f32 %v2431_v32, %v831_v21  ;;  %2097 = vpow2.f32 %v887_v16 }
 0x1a7   : > { %v893_v25 = vmul.f32 1.442695, %v874_v20 }
 0x1a8   : > { %v891_v27 = vmul.f32 1.442695, %v873_v22 }
 0x1a9   : > { %2099 = vpow2.f32 %v893_v25  ;;  %v846_v28 = vpop.xlane.xlu1 %845  ;;  %v840_v31 = vpop.xlane.xlu0 %839 }
 0x1aa   : > { %v878_v26 = vsub.f32 %v2443_v41, %v846_v28  ;;  %v876_v33 = vsub.f32 %v2441_v39, %v840_v31  ;;  %2101 = vpow2.f32 %v891_v27 }
 0x1ac   : > { %v901_v29 = vmul.f32 1.442695, %v878_v26  ;;  %v897_v34 = vmul.f32 1.442695, %v876_v33 }
 0x1ad   : > { %v843_v35 = vpop.xlane.xlu1 %842  ;;  %v837_v36 = vpop.xlane.xlu0 %836 }
 0x1ae   : > { %2103 = vpow2.f32 %v901_v29  ;;  %v877_v30 = vsub.f32 %v2447_v44, %v843_v35  ;;  %v875_v32 = vsub.f32 %v2445_v43, %v837_v36 }
 0x1af   : > { %v2497_v37 = vpop.eup %2095  ;;  %2105 = vpow2.f32 %v897_v34 }
 0x1b0   : > { %v899_v38 = vmul.f32 1.442695, %v877_v30  ;;  %v895_v40 = vmul.f32 1.442695, %v875_v32  ;;  %v922_v41 = vsel %vm158_vm0, %v2497_v37, 0.0  ;;  %v2501_v42 = vpop.eup %2097 }
 0x1b1   : > { %v858_v39 = vpop.xlane.xlu1 %857  ;;  %v852_v45 = vpop.xlane.xlu0 %851  ;;  %923 = vadd.xlane.f32.xlu0 %v922_v41  ;;  %v919_v50 = vsel %vm158_vm0, %v2501_v42, 0.0 }
 0x1b2   : > { %2107 = vpow2.f32 %v899_v38  ;;  %v882_v46 = vsub.f32 %v2459_v53, %v858_v39  ;;  %v880_v44 = vsub.f32 %v2457_v51, %v852_v45 }
 0x1b3   : > { %v2505_v47 = vpop.eup %2099  ;;  %2109 = vpow2.f32 %v895_v40 }
 0x1b4   : > { %v909_v43 = vmul.f32 1.442695, %v882_v46  ;;  %v905_v48 = vmul.f32 1.442695, %v880_v44  ;;  %v928_v49 = vsel %vm158_vm0, %v2505_v47, 0.0  ;;  %v2511_v52 = vpop.eup %2101 }
 0x1b5   : > { %v855_v54 = vpop.xlane.xlu1 %854  ;;  %929 = vadd.xlane.f32.xlu1 %v928_v49  ;;  %v849_v57 = vpop.xlane.xlu0 %848  ;;  %920 = vadd.xlane.f32.xlu0 %v919_v50  ;;  %v925_v61 = vsel %vm158_vm0, %v2511_v52, 0.0 }
 0x1b6   : > { %2111 = vpow2.f32 %v909_v43  ;;  %v881_v51 = vsub.f32 %v2463_v56, %v855_v54  ;;  %v879_v53 = vsub.f32 %v2461_v55, %v849_v57 }
 0x1b7   : > { %2113 = vpow2.f32 %v905_v48 }
 0x1b8   : > { %v2515_v58 = vpop.eup %2103  ;;  %v907_v59 = vmul.f32 1.442695, %v881_v51  ;;  %v903_v60 = vmul.f32 1.442695, %v879_v53 }
 0x1b9   : > { %v2519_v62 = vpop.eup %2105  ;;  %926 = vadd.xlane.f32.xlu1 %v925_v61  ;;  %v861_v63 = vpop.xlane.xlu0 %860  ;;  %v940_v8 = vsel %vm158_vm0, %v2515_v58, 0.0 }
 0x1ba   : > { %2115 = vpow2.f32 %v907_v59  ;;  %v867_v0 = vpop.xlane.xlu1 %866  ;;  %v883_v4 = vsub.f32 %v2473_v1, %v861_v63  ;;  %v934_v56 = vsel %vm158_vm0, %v2519_v62, 0.0 }
 0x1bb   : > { %2117 = vpow2.f32 %v903_v60  ;;  %v885_v55 = vsub.f32 %v2475_v2, %v867_v0  ;;  %935 = vadd.xlane.f32.xlu0 %v934_v56 }
 0x1bc   : > { %v2525_v6 = vpop.eup %2107  ;;  %v911_v7 = vmul.f32 1.442695, %v883_v4 }
 0x1bd   : > { %v2529_v10 = vpop.eup %2109  ;;  %v915_v11 = vmul.f32 1.442695, %v885_v55  ;;  %941 = vadd.xlane.f32.xlu1 %v940_v8  ;;  %v864_v13 = vpop.xlane.xlu0 %863  ;;  %v937_v20 = vsel %vm158_vm0, %v2525_v6, 0.0 }
 0x1be   : > { %2119 = vpow2.f32 %v911_v7  ;;  %v870_v1 = vpop.xlane.xlu1 %869  ;;  %v884_v14 = vsub.f32 %v2477_v3, %v864_v13  ;;  %v931_v15 = vsel %vm158_vm0, %v2529_v10, 0.0 }
 0x1bf   : > { %2121 = vpow2.f32 %v915_v11  ;;  %v886_v2 = vsub.f32 %v2481_v5, %v870_v1  ;;  %932 = vadd.xlane.f32.xlu0 %v931_v15 }
 0x1c0   : > { %v2535_v16 = vpop.eup %2111  ;;  %v913_v19 = vmul.f32 1.442695, %v884_v14 }
 0x1c1   : > { %v2539_v21 = vpop.eup %2113  ;;  %v917_v22 = vmul.f32 1.442695, %v886_v2  ;;  %938 = vadd.xlane.f32.xlu1 %v937_v20  ;;  %v952_v5 = vsel %vm158_vm0, %v2535_v16, 0.0 }
 0x1c2   : > { %2123 = vpow2.f32 %v913_v19  ;;  %v946_v3 = vsel %vm158_vm0, %v2539_v21, 0.0 }
 0x1c3   : > { %2125 = vpow2.f32 %v917_v22  ;;  %947 = vadd.xlane.f32.xlu0 %v946_v3 }
 0x1c4   : > { %v2543_v25 = vpop.eup %2115 }
 0x1c5   : > { %v2547_v27 = vpop.eup %2117  ;;  %953 = vadd.xlane.f32.xlu1 %v952_v5  ;;  %v949_v26 = vsel %vm158_vm0, %v2543_v25, 0.0 }
 0x1c6   : > { %v943_v28 = vsel %vm158_vm0, %v2547_v27, 0.0 }
 0x1c7   : > { %944 = vadd.xlane.f32.xlu0 %v943_v28 }
 0x1c8   : > { %v2551_v31 = vpop.eup %2119 }
 0x1c9   : > { %v2555_v33 = vpop.eup %2121  ;;  %950 = vadd.xlane.f32.xlu1 %v949_v26  ;;  %v955_v29 = vsel %vm158_vm0, %v2551_v31, 0.0 }
 0x1ca   : > { %v961_v35 = vsel %vm158_vm0, %v2555_v33, 0.0 }
 0x1cb   : > { %956 = vadd.xlane.f32.xlu0 %v955_v29 }
 0x1cc   : > { %v2559_v34 = vpop.eup %2123 }
 0x1cd   : > { %v2563_v36 = vpop.eup %2125  ;;  %962 = vadd.xlane.f32.xlu1 %v961_v35  ;;  %v958_v30 = vsel %vm158_vm0, %v2559_v34, 0.0 }
 0x1ce   : > { %v964_v32 = vsel %vm158_vm0, %v2563_v36, 0.0 }
 0x1cf   : > { %959 = vadd.xlane.f32.xlu0 %v958_v30 }
 0x1d1   : > { %965 = vadd.xlane.f32.xlu1 %v964_v32 }
 0x23e   : > { %v924_v38 = vpop.xlane.xlu0 %923 }
 0x23f   : > { %2127 = vrcp.f32 %v924_v38 }
 0x242   : > { %v930_v40 = vpop.xlane.xlu1 %929  ;;  %v921_v41 = vpop.xlane.xlu0 %920 }
 0x243   : > { %2129 = vrcp.f32 %v921_v41 }
 0x244   : > { %2131 = vrcp.f32 %v930_v40 }
 0x246   : > { %v927_v39 = vpop.xlane.xlu1 %926 }
 0x247   : > { %2133 = vrcp.f32 %v927_v39 }
 0x248   : > { %v936_v45 = vpop.xlane.xlu0 %935 }
 0x249   : > { %2135 = vrcp.f32 %v936_v45  ;;  %v2128_v43 = vpop.eup %2127 }
 0x24a   : > { %v942_v46 = vpop.xlane.xlu1 %941  ;;  %v984_v57 = vmul.f32 %v2128_v43, %v2497_v37 }
 0x24c   : > { %v933_v44 = vpop.xlane.xlu0 %932 }
 0x24d   : > { %2137 = vrcp.f32 %v933_v44  ;;  %v2130_v48 = vpop.eup %2129 }
 0x24e   : > { %2139 = vrcp.f32 %v942_v46  ;;  %v939_v49 = vpop.xlane.xlu1 %938  ;;  %v983_v50 = vmul.f32 %v2130_v48, %v2501_v42  ;;  %v2132_v54 = vpop.eup %2131 }
 0x24f   : > { %2141 = vrcp.f32 %v939_v49  ;;  %v986_v61 = vmul.f32 %v2132_v54, %v2505_v47 }
 0x250   : > { %v948_v51 = vpop.xlane.xlu0 %947  ;;  %1922 = vmatprep.mubr.msk.f32.mxu0 %vm158_vm0, %v983_v50 }
 0x251   : > { %v2134_v53 = vpop.eup %2133  ;;  %1923 = vmatmul.mubr.msk.f32.vlgmr.msra.gmra.mrb[8].mxu0 %vm158_vm0, %v984_v57  ;;  %2143 = vrcp.f32 %v948_v51 }
 0x252   : > { %v954_v59 = vpop.xlane.xlu1 %953  ;;  %v985_v60 = vmul.f32 %v2134_v53, %v2511_v52  ;;  %2033 = vmatpush3.bf16.msra.mxu0 %v2343_v9 }
 0x253   : > { %2039 = vmatprep.subr.bf16.mxu0 %v2367_v17  ;;  %v2136_v37 = vpop.eup %2135 }
 0x254   : > { %v945_v63 = vpop.xlane.xlu0 %944  ;;  %1929 = vmatprep.mubr.msk.f32.mxu1 %vm158_vm0, %v985_v60  ;;  %v988_v56 = vmul.f32 %v2136_v37, %v2519_v62 }
 0x255   : > { %2145 = vrcp.f32 %v945_v63  ;;  %1930 = vmatmul.mubr.msk.f32.vlgmr.msra.gmra.mrb[8].mxu1 %vm158_vm0, %v986_v61 }
 0x256   : > { %2147 = vrcp.f32 %v954_v59  ;;  %v951_v42 = vpop.xlane.xlu1 %950  ;;  %2037 = vmatpush3.bf16.msra.mxu1 %v2349_v12 }
 0x257   : > { %v2138_v0 = vpop.eup %2137  ;;  %2149 = vrcp.f32 %v951_v42  ;;  %2043 = vmatprep.subr.bf16.mxu1 %v2370_v18 }
 0x258   : > { %v2140_v47 = vpop.eup %2139  ;;  %v957_v9 = vpop.xlane.xlu0 %956  ;;  %v987_v52 = vmul.f32 %v2138_v0, %v2529_v10 }
 0x259   : > { %v2142_v4 = vpop.eup %2141  ;;  %2151 = vrcp.f32 %v957_v9  ;;  %v990_v8 = vmul.f32 %v2140_v47, %v2515_v58 }
 0x25a   : > { %1936 = vmatprep.mubr.msk.f32.mxu0 %vm158_vm0, %v987_v52  ;;  %v963_v55 = vpop.xlane.xlu1 %962  ;;  %v989_v7 = vmul.f32 %v2142_v4, %v2525_v6 }
 0x25b   : > { %2153 = vrcp.f32 %v963_v55  ;;  %1937 = vmatmul.mubr.msk.f32.vlgmr.msra.gmra.mrb[10].mxu0 %vm158_vm0, %v988_v56  ;;  %v2144_v62 = vpop.eup %2143 }
 0x25c   : > { %v960_v12 = vpop.xlane.xlu0 %959  ;;  %1943 = vmatprep.mubr.msk.f32.mxu1 %vm158_vm0, %v989_v7  ;;  %2041 = vmatpush3.bf16.msra.mxu0 %v2367_v17  ;;  %v992_v1 = vmul.f32 %v2144_v62, %v2539_v21 }
 0x25d   : > { %2155 = vrcp.f32 %v960_v12  ;;  %1944 = vmatmul.mubr.msk.f32.vlgmr.msra.gmra.mrb[10].mxu1 %vm158_vm0, %v990_v8  ;;  %2047 = vmatprep.subr.bf16.mxu0 %v2391_v23 }
 0x25e   : > { %v966_v10 = vpop.xlane.xlu1 %965  ;;  %2045 = vmatpush3.bf16.msra.mxu1 %v2370_v18 }
 0x25f   : > { %v2146_v6 = vpop.eup %2145  ;;  %2157 = vrcp.f32 %v966_v10  ;;  %2051 = vmatprep.subr.bf16.mxu1 %v2394_v24 }
 0x260   : > { %v2148_v58 = vpop.eup %2147  ;;  %v991_v11 = vmul.f32 %v2146_v6, %v2547_v27 }
 0x261   : > { %v2150_v13 = vpop.eup %2149  ;;  %v994_v15 = vmul.f32 %v2148_v58, %v2535_v16 }
 0x262   : > { %1950 = vmatprep.mubr.msk.f32.mxu0 %vm158_vm0, %v991_v11  ;;  %v993_v17 = vmul.f32 %v2150_v13, %v2543_v25 }
 0x263   : > { %v2152_v14 = vpop.eup %2151  ;;  %1951 = vmatmul.mubr.msk.f32.vlgmr.msra.gmra.mrb[12].mxu0 %vm158_vm0, %v992_v1 }
 0x264   : > { %1957 = vmatprep.mubr.msk.f32.mxu1 %vm158_vm0, %v993_v17  ;;  %v995_v18 = vmul.f32 %v2152_v14, %v2551_v31  ;;  %2049 = vmatpush3.bf16.msra.mxu0 %v2391_v23 }
 0x265   : > { %v2154_v2 = vpop.eup %2153  ;;  %1958 = vmatmul.mubr.msk.f32.vlgmr.msra.gmra.mrb[12].mxu1 %vm158_vm0, %v994_v15 }
 0x266   : > { %1964 = vmatprep.mubr.msk.f32.mxu0 %vm158_vm0, %v995_v18  ;;  %2053 = vmatpush3.bf16.msra.mxu1 %v2394_v24  ;;  %v997_v19 = vmul.f32 %v2154_v2, %v2555_v33 }
 0x267   : > { %v2156_v20 = vpop.eup %2155 }
 0x268   : > { %v996_v16 = vmul.f32 %v2156_v20, %v2559_v34  ;;  %1971 = vmatprep.mubr.msk.f32.mxu1 %vm158_vm0, %v997_v19 }
 0x269   : > { %v2158_v21 = vpop.eup %2157 }
 0x26a   : > { %v998_v22 = vmul.f32 %v2158_v21, %v2563_v36  ;;  %1965 = vmatmul.mubr.msk.f32.vlgmr.msra.gmra.mrb[14].mxu0 %vm158_vm0, %v996_v16 }
 0x26c   : > { %1972 = vmatmul.mubr.msk.f32.vlgmr.msra.gmra.mrb[14].mxu1 %vm158_vm0, %v998_v22 }
 0x324   : > { %v1924_v23 = vpop.f32.mrb[8].mxu0 }
 0x325   : > { %1648 = vst.msk [vmem:[%s2616_s23 + $0x8] sm:$0xff] %vm158_vm0, %v1924_v23  ;;  %v1071_v24 = vpop.f32.mrb[9].mxu0 }
 0x326   : > { %1647 = vst.msk [vmem:[%s2616_s23] sm:$0xff] %vm158_vm0, %v1071_v24 }
 0x328   : > { %v1931_v3 = vpop.f32.mrb[8].mxu1 }
 0x329   : > { %1650 = vst.msk [vmem:[%s2616_s23 + $0x18] sm:$0xff] %vm158_vm0, %v1931_v3  ;;  %v1152_v25 = vpop.f32.mrb[9].mxu1 }
 0x32a   : > { %1649 = vst.msk [vmem:[%s2616_s23 + $0x10] sm:$0xff] %vm158_vm0, %v1152_v25 }
 0x32e   : > { %v1938_v5 = vpop.f32.mrb[10].mxu0 }
 0x32f   : > { %1652 = vst.msk [vmem:[%s2616_s23 + $0x28] sm:$0xff] %vm158_vm0, %v1938_v5  ;;  %v1233_v27 = vpop.f32.mrb[11].mxu0 }
 0x330   : > { %1651 = vst.msk [vmem:[%s2616_s23 + $0x20] sm:$0xff] %vm158_vm0, %v1233_v27  ;;  %v1945_v28 = vpop.f32.mrb[10].mxu1 }
 0x331   : > { %1654 = vst.msk [vmem:[%s2616_s23 + $0x38] sm:$0xff] %vm158_vm0, %v1945_v28  ;;  %v1314_v31 = vpop.f32.mrb[11].mxu1 }
 0x332   : > { %1653 = vst.msk [vmem:[%s2616_s23 + $0x30] sm:$0xff] %vm158_vm0, %v1314_v31 }
 0x336   : > { %v1952_v26 = vpop.f32.mrb[12].mxu0 }
 0x337   : > { %1656 = vst.msk [vmem:[%s2616_s23 + $0x48] sm:$0xff] %vm158_vm0, %v1952_v26  ;;  %v1395_v33 = vpop.f32.mrb[13].mxu0 }
 0x338   : > { %1655 = vst.msk [vmem:[%s2616_s23 + $0x40] sm:$0xff] %vm158_vm0, %v1395_v33  ;;  %v1959_v29 = vpop.f32.mrb[12].mxu1 }
 0x339   : > { %1658 = vst.msk [vmem:[%s2616_s23 + $0x58] sm:$0xff] %vm158_vm0, %v1959_v29  ;;  %v1476_v34 = vpop.f32.mrb[13].mxu1 }
 0x33a   : > { %1657 = vst.msk [vmem:[%s2616_s23 + $0x50] sm:$0xff] %vm158_vm0, %v1476_v34 }
 0x33d   : > { %v1966_v35 = vpop.f32.mrb[14].mxu0 }
 0x33e   : > { %1660 = vst.msk [vmem:[%s2616_s23 + $0x68] sm:$0xff] %vm158_vm0, %v1966_v35  ;;  %v1557_v36 = vpop.f32.mrb[15].mxu0 }
 0x33f   : > { %1659 = vst.msk [vmem:[%s2616_s23 + $0x60] sm:$0xff] %vm158_vm0, %v1557_v36  ;;  %v1973_v30 = vpop.f32.mrb[14].mxu1 }
 0x340   : > { %1662 = vst.msk [vmem:[%s2616_s23 + $0x78] sm:$0xff] %vm158_vm0, %v1973_v30  ;;  %v1638_v32 = vpop.f32.mrb[15].mxu1 }
 0x341   : > { %1661 = vst.msk [vmem:[%s2616_s23 + $0x70] sm:$0xff] %vm158_vm0, %v1638_v32 }
 0x342 PF: > { %p11_p8 = scmp.ge.s32.totalorder %s2258_s11, 4   ;;  %s2670_s6 = smov %s2215_s7 }
 0x343   : > { %s2671_s7 = smov %s2219_s8  ;;  %s2672_s8 = smov %s2268_s14 }
 0x344   : > { %s2673_s9 = smov %s2258_s11  ;;  %13 = sbr.rel (!%p11_p8) target bundleno = 3 (0x3), region = 64 }
 0x34b   :  { %1687 = vsyncpa [#allocation3], 1 }
 0x34c   :  { %1689 = vsyncpa [#allocation3 + $0x1], 1 }

// kernel: mot_block.3
= control target key start
LH: loop header
LB: loop body
LE: loop exit
PB: predicated region body
PF: predicated region fallthrough
CT: control target
= control target key end

     0   :  { %s14496_s0 = inlined_call_operand.vmem [shape: f32[2,16,16,8], index: 0, kind: input, shape index: {}]   ;;  %s14497_s1 = inlined_call_operand.vmem [shape: f32[2,16,16,8], index: 1, kind: input, shape index: {}]   ;;  %s14498_s2 = inlined_call_operand.vmem [shape: f32[3,3,8], index: 2, kind: input, shape index: {}]   ;;  %s14499_s3 = inlined_call_operand.vmem [shape: f32[1,8], index: 3, kind: input, shape index: {}]   ;;  %s14500_s4 = inlined_call_operand.vmem [shape: f32[8,4], index: 4, kind: input, shape index: {}]   ;;  %s14501_s5 = inlined_call_operand.vmem [shape: f32[1,4], index: 5, kind: input, shape index: {}]   ;;  %s14502_s6 = inlined_call_operand.vmem [shape: f32[3,3,4], index: 6, kind: input, shape index: {}]   ;;  %s14503_s7 = inlined_call_operand.vmem [shape: f32[1,4], index: 7, kind: input, shape index: {}]   ;;  %s14504_s8 = inlined_call_operand.vmem [shape: f32[8,16], index: 8, kind: input, shape index: {}]   ;;  %s14505_s9 = inlined_call_operand.vmem [shape: f32[1,16], index: 9, kind: input, shape index: {}]   ;;  %s14506_s10 = inlined_call_operand.vmem [shape: f32[3,3,16], index: 10, kind: input, shape index: {}]   ;;  %s14507_s11 = inlined_call_operand.vmem [shape: f32[1,16], index: 11, kind: input, shape index: {}]   ;;  %s14508_s12 = inlined_call_operand.vmem [shape: f32[32,8], index: 12, kind: input, shape index: {}]   ;;  %s14509_s13 = inlined_call_operand.vmem [shape: f32[1,8], index: 13, kind: input, shape index: {}]   ;;  %s14510_s14 = inlined_call_operand.vmem [shape: f32[8,32], index: 14, kind: input, shape index: {}]   ;;  %s14511_s15 = inlined_call_operand.vmem [shape: f32[1,32], index: 15, kind: input, shape index: {}]   ;;  %s14512_s16 = inlined_call_operand.vmem [shape: f32[32,4], index: 16, kind: input, shape index: {}]   ;;  %s14513_s17 = inlined_call_operand.vmem [shape: f32[1,4], index: 17, kind: input, shape index: {}]   ;;  %s14514_s18 = inlined_call_operand.vmem [shape: f32[3,3,4], index: 18, kind: input, shape index: {}]   ;;  %s14515_s19 = inlined_call_operand.vmem [shape: f32[1,4], index: 19, kind: input, shape index: {}]   ;;  %s14516_s20 = inlined_call_operand.vmem [shape: f32[2,16,16,8], index: 20, kind: output, shape index: {}]  }
   0x1   :  { %14736 = sst [smem:[#allocation122_spill]] %s14496_s0 }
   0x2   :  { %14737 = sst [smem:[#allocation123_spill]] %s14497_s1  ;;  %s8908_s1 = smov 0  }
   0x3   :  { %14738 = sst [smem:[#allocation124_spill]] %s14498_s2 }
   0x4   :  { %14739 = sst [smem:[#allocation125_spill]] %s14499_s3 }
   0x5   :  { %14740 = sst [smem:[#allocation126_spill]] %s14500_s4 }
   0x6 LB: > { %s8014_s22 = sadd.s32 4294967295, %s8795_s1   ;;  %p8018_p0 = scmp.ge.s32.totalorder %s8795_s1, 1  ;;  %s8795_s1 = sphi %s8908_s1, %s30_s1  }
   0x7   : > { %p572_p1 = scmp.lt.s32.totalorder %s8795_s1, 3 }
   0x9   : > { %p573_p2 = pnand %p8018_p0, %p572_p1 }
   0xb   : > { %576 = sbr.rel (%p573_p2) target bundleno = 2030 (0x7ee), region = 100 }
  0x12   : > { %s14741_s2 = sld [smem:[#allocation126_spill]]  ;;  %p635_p3 = scmp.lt.s32.totalorder %s8014_s22, 1  ;;  %v856_v1 = vlaneseq  ;;  %vm718_vm0 = vcmask 64512   ;;  %v14519_v2 = vmov 0.0   ;;  %vm3591_vm1 = vcmask 1043456  }
  0x13   : > { %719 = vst.msk [vmem:[#allocation2] sm:$0xff] %vm718_vm0, %v14519_v2  ;;  %720 = vst.msk [vmem:[#allocation2 + $0x8] sm:$0xff] %vm718_vm0, %v14519_v2  ;;  %s14742_s26 = sld [smem:[#allocation124_spill]]  ;;  %s14746_s29 = sld [smem:[#allocation123_spill]]  ;;  %vm2192_vm2 = vcmask 31744   ;;  %vm4219_vm3 = vcmask 130048  }
  0x14   : > { %s15204_s22 = smov (!%p635_p3, %s8014_s22), 1  ;;  %721 = vst.msk [vmem:[#allocation2 + $0x10] sm:$0xff] %vm718_vm0, %v14519_v2  ;;  %723 = vst.msk [vmem:[#allocation2 + $0x20] sm:$0xff] %vm718_vm0, %v14519_v2  ;;  %v8944_v3 = vshrl.u32 %v856_v1, 7  ;;  %s14747_s25 = sld [smem:[#allocation125_spill]]  ;;  %vm8801_vm4 = vmmov 0  }
  0x15   : > { %724 = vst.msk [vmem:[#allocation2 + $0x28] sm:$0xff] %vm718_vm0, %v14519_v2  ;;  %725 = vst.msk [vmem:[#allocation2 + $0x30] sm:$0xff] %vm718_vm0, %v14519_v2  ;;  %s9077_s27 = sshll.u32 %s15204_s22, 8  ;;  %s14748_s4 = sld [smem:[#allocation122_spill]]  ;;  %vm7914_vm5 = vcmask 64544  }
  0x16   : > { %727 = vst.msk [vmem:[#allocation2 + $0x40] sm:$0xff] %vm718_vm0, %v14519_v2  ;;  %728 = vst.msk [vmem:[#allocation2 + $0x48] sm:$0xff] %vm718_vm0, %v14519_v2  ;;  %v9080_v5 = vsub.s32 0, %v8944_v3  ;;  %v9083_v6 = vsub.s32 1, %v8944_v3  ;;  %v9086_v7 = vsub.s32 2, %v8944_v3  ;;  %s8798_s0 = smov 124  }
  0x17   : > { %729 = vst.msk [vmem:[#allocation2 + $0x50] sm:$0xff] %vm718_vm0, %v14519_v2  ;;  %722 = vst.msk [vmem:[#allocation2 + $0x18] sm:$0xff] %vm718_vm0, %v14519_v2  ;;  %s8799_s21 = smov 112   ;;  %s8802_s3 = smov 4  }
  0x18   : > { %v8919_v0 = vld [vmem:[%s14741_s2] sm:$0xff]  ;;  %726 = vst.msk [vmem:[#allocation2 + $0x38] sm:$0xff] %vm718_vm0, %v14519_v2  ;;  %730 = vst.msk [vmem:[#allocation2 + $0x58] sm:$0xff] %vm718_vm0, %v14519_v2 }
  0x19   : > { %8382 = vmatprep.subr.mxu0 %v8919_v0  ;;  %8674 = vmatprep.subr.mxu1 %v8919_v0  ;;  %731 = vst.msk [vmem:[#allocation2 + $0x60] sm:$0xff] %vm718_vm0, %v14519_v2  ;;  %732 = vst.msk [vmem:[#allocation2 + $0x68] sm:$0xff] %vm718_vm0, %v14519_v2  ;;  %v714_v4 = vld [vmem:[%s14742_s26] sm:$0x7]  ;;  %s9092_s30 = scalar_lea.vmem %s14746_s29, %s9077_s27  ;;  %v715_v15 = vld [vmem:[%s14742_s26 + $0x4] sm:$0x7] }
  0x1a   : > { %8383 = vmatpush3.msra.mxu0 %v8919_v0  ;;  %733 = vst.msk [vmem:[#allocation2 + $0x70] sm:$0xff] %vm718_vm0, %v14519_v2  ;;  %734 = vst.msk [vmem:[#allocation2 + $0x78] sm:$0xff] %vm718_vm0, %v14519_v2  ;;  %8675 = vmatpush3.msra.mxu1 %v8919_v0  ;;  %v650_v8 = vld [vmem:[%s9092_s30] sm:$0xff]  ;;  %v651_v9 = vld [vmem:[%s9092_s30 + $0x8] sm:$0xff]  ;;  %v9098_v11 = vrot.slane %v714_v4, %v9080_v5  ;;  %v9101_v12 = vrot.slane %v714_v4, %v9083_v6 }
  0x1b   : > { %735 = vst.msk [vmem:[#allocation2 + $0x80] sm:$0xff] %vm718_vm0, %v14519_v2  ;;  %736 = vst.msk [vmem:[#allocation2 + $0x88] sm:$0xff] %vm718_vm0, %v14519_v2  ;;  %v652_v10 = vld [vmem:[%s9092_s30 + $0x10] sm:$0xff]  ;;  %v9104_v13 = vrot.slane %v714_v4, %v9086_v7  ;;  %v653_v14 = vld [vmem:[%s9092_s30 + $0x18] sm:$0xff]  ;;  %v9125_v25 = vrot.slane %v715_v15, %v9080_v5  ;;  %v9128_v29 = vrot.slane %v715_v15, %v9083_v6  ;;  %s9241_s29 = scalar_lea.vmem %s14748_s4, %s9077_s27 }
  0x1c   : > { %737 = vst.msk [vmem:[#allocation2 + $0x90] sm:$0xff] %vm718_vm0, %v14519_v2  ;;  %738 = vst.msk [vmem:[#allocation2 + $0x98] sm:$0xff] %vm718_vm0, %v14519_v2  ;;  %v716_v16 = vld [vmem:[%s14742_s26 + $0x8] sm:$0x7]  ;;  %v654_v17 = vld [vmem:[%s9092_s30 + $0x20] sm:$0xff]  ;;  %v9136_v36 = vrot.slane %v715_v15, %v9086_v7 }
  0x1d   : > { %739 = vst.msk [vmem:[#allocation2 + $0xa0] sm:$0xff] %vm718_vm0, %v14519_v2  ;;  %740 = vst.msk [vmem:[#allocation2 + $0xa8] sm:$0xff] %vm718_vm0, %v14519_v2  ;;  %v655_v18 = vld [vmem:[%s9092_s30 + $0x28] sm:$0xff]  ;;  %v925_v27 = vld [vmem:[#allocation2 + $0x10] sm:$0xff]  ;;  %v9139_v37 = vrot.slane %v716_v16, %v9080_v5  ;;  %v9145_v39 = vrot.slane %v716_v16, %v9083_v6  ;;  %v9150_v45 = vrot.slane %v716_v16, %v9086_v7 }
  0x1e   : > { %741 = vst.msk [vmem:[#allocation2 + $0xb0] sm:$0xff] %vm718_vm0, %v14519_v2  ;;  %742 = vst.msk [vmem:[#allocation2 + $0xb8] sm:$0xff] %vm718_vm0, %v14519_v2  ;;  %v824_v19 = vld [vmem:[#allocation2 + $0x7] sm:$0xff]  ;;  %v825_v26 = vld [vmem:[#allocation2 + $0xf] sm:$0xff]  ;;  %v961_v31 = vmul.f32 %v9101_v12, %v925_v27 }
  0x1f   : > { %743 = vst.msk [vmem:[#allocation2 + $0xc0] sm:$0xff] %vm718_vm0, %v14519_v2  ;;  %744 = vst.msk [vmem:[#allocation2 + $0xc8] sm:$0xff] %vm718_vm0, %v14519_v2  ;;  %v924_v20 = vld [vmem:[#allocation2 + $0x8] sm:$0xff]  ;;  %v860_v22 = vmul.f32 %v9098_v11, %v824_v19  ;;  %v1025_v28 = vld [vmem:[#allocation2 + $0x11] sm:$0xff]  ;;  %v861_v30 = vmul.f32 %v9098_v11, %v825_v26 }
  0x20   : > { %745 = vst.msk [vmem:[#allocation2 + $0xd0] sm:$0xff] %vm718_vm0, %v14519_v2  ;;  %746 = vst.msk [vmem:[#allocation2 + $0xd8] sm:$0xff] %vm718_vm0, %v14519_v2  ;;  %v1024_v21 = vld [vmem:[#allocation2 + $0x9] sm:$0xff]  ;;  %v960_v23 = vmul.f32 %v9101_v12, %v924_v20  ;;  %v1061_v32 = vmul.f32 %v9104_v13, %v1025_v28  ;;  %v657_v34 = vld [vmem:[%s9092_s30 + $0x38] sm:$0xff] }
  0x21   : > { %747 = vst.msk [vmem:[#allocation2 + $0xe0] sm:$0xff] %vm718_vm0, %v14519_v2  ;;  %748 = vst.msk [vmem:[#allocation2 + $0xe8] sm:$0xff] %vm718_vm0, %v14519_v2  ;;  %v1060_v24 = vmul.f32 %v9104_v13, %v1024_v21  ;;  %v656_v33 = vld [vmem:[%s9092_s30 + $0x30] sm:$0xff]  ;;  %v658_v38 = vld [vmem:[%s9092_s30 + $0x40] sm:$0xff]  ;;  %v993_v40 = vadd.f32 %v961_v31, %v861_v30 }
  0x22   : > { %749 = vst.msk [vmem:[#allocation2 + $0xf0] sm:$0xff] %vm718_vm0, %v14519_v2  ;;  %750 = vst.msk [vmem:[#allocation2 + $0xf8] sm:$0xff] %vm718_vm0, %v14519_v2  ;;  %v992_v35 = vadd.f32 %v960_v23, %v860_v22  ;;  %v659_v41 = vld [vmem:[%s9092_s30 + $0x48] sm:$0xff] }
  0x23   : > { %751 = vst.msk [vmem:[#allocation2 + $0x100] sm:$0xff] %vm718_vm0, %v14519_v2  ;;  %752 = vst.msk [vmem:[#allocation2 + $0x108] sm:$0xff] %vm718_vm0, %v14519_v2  ;;  %v1093_v50 = vadd.f32 %v1061_v32, %v993_v40 }
  0x24   : > { %753 = vst.msk [vmem:[#allocation2 + $0x110] sm:$0xff] %vm718_vm0, %v14519_v2  ;;  %754 = vst.msk [vmem:[#allocation2 + $0x118] sm:$0xff] %vm718_vm0, %v14519_v2  ;;  %v1092_v42 = vadd.f32 %v1060_v24, %v992_v35 }
  0x25   : > { %755 = vst.msk [vmem:[#allocation2 + $0x120] sm:$0xff] %vm718_vm0, %v14519_v2  ;;  %756 = vst.msk [vmem:[#allocation2 + $0x128] sm:$0xff] %vm718_vm0, %v14519_v2 }
  0x26   : > { %757 = vst.msk [vmem:[#allocation2 + $0x130] sm:$0xff] %vm718_vm0, %v14519_v2  ;;  %758 = vst.msk [vmem:[#allocation2 + $0x138] sm:$0xff] %vm718_vm0, %v14519_v2 }
  0x27   : > { %759 = vst.msk [vmem:[#allocation2 + $0x140] sm:$0xff] %vm718_vm0, %v14519_v2  ;;  %760 = vst.msk [vmem:[#allocation2 + $0x148] sm:$0xff] %vm718_vm0, %v14519_v2 }
  0x28   : > { %761 = vst.msk [vmem:[#allocation2 + $0x150] sm:$0xff] %vm718_vm0, %v14519_v2  ;;  %762 = vst.msk [vmem:[#allocation2 + $0x158] sm:$0xff] %vm718_vm0, %v14519_v2 }
  0x29   : > { %763 = vst.msk [vmem:[#allocation2 + $0x160] sm:$0xff] %vm718_vm0, %v14519_v2  ;;  %764 = vst.msk [vmem:[#allocation2 + $0x168] sm:$0xff] %vm718_vm0, %v14519_v2 }
  0x2a   : > { %765 = vst.msk [vmem:[#allocation2 + $0x170] sm:$0xff] %vm718_vm0, %v14519_v2  ;;  %766 = vst.msk [vmem:[#allocation2 + $0x178] sm:$0xff] %vm718_vm0, %v14519_v2 }
  0x2b   : > { %767 = vst.msk [vmem:[#allocation2 + $0x180] sm:$0xff] %vm718_vm0, %v14519_v2  ;;  %768 = vst.msk [vmem:[#allocation2 + $0x188] sm:$0xff] %vm718_vm0, %v14519_v2 }
  0x2c   : > { %769 = vst.msk [vmem:[#allocation2 + $0x190] sm:$0xff] %vm718_vm0, %v14519_v2  ;;  %770 = vst.msk [vmem:[#allocation2 + $0x198] sm:$0xff] %vm718_vm0, %v14519_v2 }
  0x2d   : > { %771 = vst.msk [vmem:[#allocation2 + $0x1a0] sm:$0xff] %vm718_vm0, %v14519_v2  ;;  %772 = vst.msk [vmem:[#allocation2 + $0x1a8] sm:$0xff] %vm718_vm0, %v14519_v2 }
  0x2e   : > { %773 = vst.msk [vmem:[#allocation2 + $0x1b0] sm:$0xff] %vm718_vm0, %v14519_v2  ;;  %774 = vst.msk [vmem:[#allocation2 + $0x1b8] sm:$0xff] %vm718_vm0, %v14519_v2 }
  0x2f   : > { %775 = vst.msk [vmem:[#allocation2 + $0x1c0] sm:$0xff] %vm718_vm0, %v14519_v2  ;;  %776 = vst.msk [vmem:[#allocation2 + $0x1c8] sm:$0xff] %vm718_vm0, %v14519_v2 }
  0x30   : > { %777 = vst.msk [vmem:[#allocation2 + $0x1d0] sm:$0xff] %vm718_vm0, %v14519_v2  ;;  %778 = vst.msk [vmem:[#allocation2 + $0x1d8] sm:$0xff] %vm718_vm0, %v14519_v2 }
  0x31   : > { %779 = vst.msk [vmem:[#allocation2 + $0x1e0] sm:$0xff] %vm718_vm0, %v14519_v2  ;;  %780 = vst.msk [vmem:[#allocation2 + $0x1e8] sm:$0xff] %vm718_vm0, %v14519_v2 }
  0x32   : > { %781 = vst.msk [vmem:[#allocation2 + $0x1f0] sm:$0xff] %vm718_vm0, %v14519_v2  ;;  %782 = vst.msk [vmem:[#allocation2 + $0x1f8] sm:$0xff] %vm718_vm0, %v14519_v2 }
  0x33   : > { %783 = vst.msk [vmem:[#allocation2 + $0x200] sm:$0xff] %vm718_vm0, %v14519_v2  ;;  %784 = vst.msk [vmem:[#allocation2 + $0x208] sm:$0xff] %vm718_vm0, %v14519_v2 }
  0x34   : > { %785 = vst.msk [vmem:[#allocation2 + $0x210] sm:$0xff] %vm718_vm0, %v14519_v2  ;;  %786 = vst.msk [vmem:[#allocation2 + $0x218] sm:$0xff] %vm718_vm0, %v14519_v2 }
  0x35   : > { %787 = vst.msk [vmem:[#allocation2 + $0x220] sm:$0xff] %vm718_vm0, %v14519_v2  ;;  %788 = vst.msk [vmem:[#allocation2 + $0x228] sm:$0xff] %vm718_vm0, %v14519_v2 }
  0x36   : > { %789 = vst.msk [vmem:[#allocation2 + $0x230] sm:$0xff] %vm718_vm0, %v14519_v2  ;;  %790 = vst.msk [vmem:[#allocation2 + $0x238] sm:$0xff] %vm718_vm0, %v14519_v2 }
  0x37   : > { %14743 = vst [vmem:[#allocation5_spill] sm:$0xff] %v9080_v5  ;;  %14744 = vst [vmem:[#allocation6_spill] sm:$0xff] %v9083_v6 }
  0x38   : > { %14745 = vst [vmem:[#allocation7_spill] sm:$0xff] %v9086_v7  ;;  %792 = vst.msk [vmem:[#allocation2 + $0x28] sm:$0xff] %vm718_vm0, %v650_v8 }
  0x39   : > { %793 = vst.msk [vmem:[#allocation2 + $0x30] sm:$0xff] %vm718_vm0, %v651_v9  ;;  %794 = vst.msk [vmem:[#allocation2 + $0x48] sm:$0xff] %vm718_vm0, %v652_v10 }
  0x3a   : > { %795 = vst.msk [vmem:[#allocation2 + $0x50] sm:$0xff] %vm718_vm0, %v653_v14  ;;  %796 = vst.msk [vmem:[#allocation2 + $0x68] sm:$0xff] %vm718_vm0, %v654_v17 }
  0x3b   : > { %797 = vst.msk [vmem:[#allocation2 + $0x70] sm:$0xff] %vm718_vm0, %v655_v18  ;;  %798 = vst.msk [vmem:[#allocation2 + $0x88] sm:$0xff] %vm718_vm0, %v656_v33 }
  0x3c   : > { %799 = vst.msk [vmem:[#allocation2 + $0x90] sm:$0xff] %vm718_vm0, %v657_v34  ;;  %800 = vst.msk [vmem:[#allocation2 + $0xa8] sm:$0xff] %vm718_vm0, %v658_v38 }
  0x3d   : > { %801 = vst.msk [vmem:[#allocation2 + $0xb0] sm:$0xff] %vm718_vm0, %v659_v41 }
  0x3f   : > { %v1124_v43 = vld [vmem:[#allocation2 + $0x27] sm:$0xff] }
  0x40   : > { %v1224_v44 = vld [vmem:[#allocation2 + $0x28] sm:$0xff]  ;;  %v1160_v46 = vmul.f32 %v9125_v25, %v1124_v43  ;;  %v1225_v55 = vld [vmem:[#allocation2 + $0x30] sm:$0xff]  ;;  %v862_v56 = vmul.f32 %v1124_v43, %v9098_v11 }
  0x41   : > { %v1260_v47 = vmul.f32 %v9128_v29, %v1224_v44  ;;  %v1324_v48 = vld [vmem:[#allocation2 + $0x29] sm:$0xff]  ;;  %v1261_v61 = vmul.f32 %v9128_v29, %v1225_v55  ;;  %v1325_v62 = vld [vmem:[#allocation2 + $0x31] sm:$0xff]  ;;  %v962_v8 = vmul.f32 %v1224_v44, %v9101_v12  ;;  %v963_v32 = vmul.f32 %v1225_v55, %v9101_v12 }
  0x42   : > { %v9155_v49 = vld [vmem:[#allocation2 + $0x47] sm:$0xff]  ;;  %v1360_v51 = vmul.f32 %v9136_v36, %v1324_v48  ;;  %v1125_v54 = vld [vmem:[#allocation2 + $0x2f] sm:$0xff]  ;;  %v1192_v57 = vadd.f32 %v1160_v46, %v1092_v42  ;;  %v1361_v1 = vmul.f32 %v9136_v36, %v1325_v62  ;;  %v1062_v16 = vmul.f32 %v1324_v48, %v9104_v13  ;;  %v661_v48 = vld [vmem:[%s9092_s30 + $0x58] sm:$0xff] }
  0x43   : > { %v1461_v52 = vmul.f32 %v9139_v37, %v9155_v49  ;;  %v1525_v53 = vld [vmem:[#allocation2 + $0x48] sm:$0xff]  ;;  %v1161_v60 = vmul.f32 %v9125_v25, %v1125_v54  ;;  %v9173_v4 = vld [vmem:[#allocation2 + $0x50] sm:$0xff]  ;;  %v994_v18 = vadd.f32 %v962_v8, %v862_v56  ;;  %v1162_v19 = vmul.f32 %v9155_v49, %v9125_v25  ;;  %803 = vst.msk [vmem:[#allocation2 + $0xd0] sm:$0xff] %vm718_vm0, %v661_v48  ;;  %v662_v56 = vld [vmem:[%s9092_s30 + $0x60] sm:$0xff] }
  0x44   : > { %v1561_v58 = vmul.f32 %v9145_v39, %v1525_v53  ;;  %v9162_v59 = vld [vmem:[#allocation2 + $0x49] sm:$0xff]  ;;  %v1292_v9 = vadd.f32 %v1260_v47, %v1192_v57  ;;  %v1562_v14 = vmul.f32 %v9145_v39, %v9173_v4  ;;  %v9178_v15 = vld [vmem:[#allocation2 + $0x51] sm:$0xff]  ;;  %v1262_v20 = vmul.f32 %v1525_v53, %v9128_v29  ;;  %804 = vst.msk [vmem:[#allocation2 + $0xe8] sm:$0xff] %vm718_vm0, %v662_v56 }
  0x45   : > { %v9166_v63 = vld [vmem:[#allocation2 + $0x4f] sm:$0xff]  ;;  %v1661_v0 = vmul.f32 %v9150_v45, %v9162_v59  ;;  %v1193_v10 = vadd.f32 %v1161_v60, %v1093_v50  ;;  %v1662_v17 = vmul.f32 %v9150_v45, %v9178_v15  ;;  %v9186_v21 = vld [vmem:[#allocation2 + $0x67] sm:$0xff]  ;;  %v1362_v24 = vmul.f32 %v9162_v59, %v9136_v36  ;;  %v9218_v50 = vld [vmem:[%s14747_s25] ss:$0 sm:$0xff] }
  0x46   : > { %v1462_v3 = vmul.f32 %v9139_v37, %v9166_v63  ;;  %v1392_v22 = vadd.f32 %v1360_v51, %v1292_v9  ;;  %v1463_v26 = vmul.f32 %v9139_v37, %v9186_v21  ;;  %v1094_v27 = vadd.f32 %v1062_v16, %v994_v18  ;;  %v9192_v28 = vld [vmem:[#allocation2 + $0x68] sm:$0xff]  ;;  %v660_v47 = vld [vmem:[%s9092_s30 + $0x50] sm:$0xff]  ;;  %v665_v8 = vld [vmem:[%s9092_s30 + $0x78] sm:$0xff] }
  0x47   : > { %v1293_v23 = vadd.f32 %v1261_v61, %v1193_v10  ;;  %v9194_v30 = vld [vmem:[#allocation2 + $0x69] sm:$0xff]  ;;  %v863_v31 = vmul.f32 %v1125_v54, %v9098_v11  ;;  %v1063_v33 = vmul.f32 %v1325_v62, %v9104_v13  ;;  %v9201_v38 = vmul.f32 %v9145_v39, %v9192_v28  ;;  %802 = vst.msk [vmem:[#allocation2 + $0xc8] sm:$0xff] %vm718_vm0, %v660_v47 }
  0x48   : > { %v1493_v34 = vadd.f32 %v1461_v52, %v1392_v22  ;;  %v9205_v40 = vmul.f32 %v9150_v45, %v9194_v30  ;;  %v1194_v41 = vadd.f32 %v1162_v19, %v1094_v27  ;;  %v1163_v43 = vmul.f32 %v9166_v63, %v9125_v25  ;;  %v9211_v46 = vld [vmem:[#allocation2 + $0x6f] sm:$0xff]  ;;  %807 = vst.msk [vmem:[#allocation2 + $0x110] sm:$0xff] %vm718_vm0, %v665_v8 }
  0x49   : > { %v1393_v35 = vadd.f32 %v1361_v1, %v1293_v23  ;;  %v995_v42 = vadd.f32 %v963_v32, %v863_v31  ;;  %v1263_v44 = vmul.f32 %v9173_v4, %v9128_v29  ;;  %v1363_v54 = vmul.f32 %v9178_v15, %v9136_v36  ;;  %v663_v57 = vld [vmem:[%s9092_s30 + $0x68] sm:$0xff]  ;;  %v9228_v62 = vld [vmem:[#allocation2 + $0x70] sm:$0xff]  ;;  %v669_v32 = vld [vmem:[%s9092_s30 + $0x98] sm:$0xff] }
  0x4a   : > { %v1593_v51 = vadd.f32 %v1561_v58, %v1493_v34  ;;  %v1464_v55 = vmul.f32 %v9139_v37, %v9211_v46  ;;  %v1294_v60 = vadd.f32 %v1262_v20, %v1194_v41  ;;  %v864_v58 = vmul.f32 %v9155_v49, %v9098_v11  ;;  %805 = vst.msk [vmem:[#allocation2 + $0xf0] sm:$0xff] %vm718_vm0, %v663_v57  ;;  %v9249_v19 = vld [vmem:[#allocation2 + $0x71] sm:$0xff]  ;;  %v667_v22 = vld [vmem:[%s9092_s30 + $0x88] sm:$0xff] }
  0x4b   : > { %v1494_v52 = vadd.f32 %v1462_v3, %v1393_v35  ;;  %v1095_v61 = vadd.f32 %v1063_v33, %v995_v42  ;;  %v964_v1 = vmul.f32 %v1525_v53, %v9101_v12  ;;  %v664_v3 = vld [vmem:[%s9092_s30 + $0x70] sm:$0xff]  ;;  %v1564_v49 = vmul.f32 %v9145_v39, %v9228_v62  ;;  %809 = vst.msk [vmem:[#allocation2 + $0x130] sm:$0xff] %vm718_vm0, %v667_v22  ;;  %v682_v33 = vld [vmem:[%s9241_s29] sm:$0xff] }
  0x4c   : > { %v1693_v9 = vadd.f32 %v1661_v0, %v1593_v51  ;;  %v1064_v53 = vmul.f32 %v9162_v59, %v9104_v13  ;;  %806 = vst.msk [vmem:[#allocation2 + $0x108] sm:$0xff] %vm718_vm0, %v664_v3  ;;  %v1394_v16 = vadd.f32 %v1362_v24, %v1294_v60  ;;  %v1164_v0 = vmul.f32 %v9186_v21, %v9125_v25  ;;  %v668_v24 = vld [vmem:[%s9092_s30 + $0x90] sm:$0xff]  ;;  %v9267_v42 = vld [vmem:[#allocation2 + $0x87] sm:$0xff] }
  0x4d   : > { %v1594_v10 = vadd.f32 %v1562_v14, %v1494_v52  ;;  %v1195_v18 = vadd.f32 %v1163_v43, %v1095_v61  ;;  %v996_v20 = vadd.f32 %v964_v1, %v864_v58  ;;  %v666_v14 = vld [vmem:[%s9092_s30 + $0x80] sm:$0xff]  ;;  %v1664_v27 = vmul.f32 %v9150_v45, %v9249_v19  ;;  %810 = vst.msk [vmem:[#allocation2 + $0x148] sm:$0xff] %vm718_vm0, %v668_v24  ;;  %v683_v52 = vld [vmem:[%s9241_s29 + $0x8] sm:$0xff] }
  0x4e   : > { %v1731_v23 = vadd.f32 %v9218_v50, %v1693_v9  ;;  %v1264_v31 = vmul.f32 %v9192_v28, %v9128_v29  ;;  %808 = vst.msk [vmem:[#allocation2 + $0x128] sm:$0xff] %vm718_vm0, %v666_v14  ;;  %v1495_v34 = vadd.f32 %v1463_v26, %v1394_v16  ;;  %811 = vst.msk [vmem:[#allocation2 + $0x150] sm:$0xff] %vm718_vm0, %v669_v32  ;;  %v9272_v43 = vld [vmem:[%s9092_s30 + $0xa0] sm:$0xff]  ;;  %v9295_v9 = vld [vmem:[#allocation2 + $0x88] sm:$0xff] }
  0x4f   : > { %v1694_v59 = vadd.f32 %v1662_v17, %v1594_v10  ;;  %v1295_v35 = vadd.f32 %v1263_v44, %v1195_v18  ;;  %v1096_v41 = vadd.f32 %v1064_v53, %v996_v20  ;;  %v1364_v17 = vmul.f32 %v9194_v30, %v9136_v36  ;;  %14749 = vst [vmem:[#allocation8_spill] sm:$0xff] %v9272_v43  ;;  %v9280_v44 = vld [vmem:[%s9092_s30 + $0xa8] sm:$0xff] }
  0x50   : > { %v1763_v47 = vmax.f32 %v1731_v23, 0.0  ;;  %v1465_v51 = vmul.f32 %v9139_v37, %v9267_v42  ;;  %v865_v26 = vmul.f32 %v9166_v63, %v9098_v11  ;;  %14750 = vst [vmem:[#allocation9_spill] sm:$0xff] %v9280_v44  ;;  %812 = vst.msk [vmem:[#allocation2 + $0x168] sm:$0xff] %vm718_vm0, %v9272_v43  ;;  %v1595_v56 = vadd.f32 %v9201_v38, %v1495_v34 }
  0x51   : > { %v1732_v48 = vadd.f32 %v9218_v50, %v1694_v59  ;;  %v1395_v57 = vadd.f32 %v1363_v54, %v1295_v35  ;;  %v1196_v60 = vadd.f32 %v1164_v0, %v1096_v41  ;;  %v965_v61 = vmul.f32 %v9173_v4, %v9101_v12  ;;  %813 = vst.msk [vmem:[#allocation2 + $0x170] sm:$0xff] %vm718_vm0, %v9280_v44  ;;  %v9303_v0 = vld [vmem:[#allocation2 + $0x89] sm:$0xff] }
  0x52   : > { %v1795_v58 = vadd.f32 %v1763_v47, %v682_v33  ;;  %v1065_v63 = vmul.f32 %v9178_v15, %v9104_v13  ;;  %v1165_v3 = vmul.f32 %v9211_v46, %v9125_v25  ;;  %v1695_v8 = vadd.f32 %v9205_v40, %v1595_v56  ;;  %v9315_v33 = vld [vmem:[#allocation2 + $0x8f] sm:$0xff] }
  0x53   : > { %v1764_v1 = vmax.f32 %v1732_v48, 0.0  ;;  %v1496_v38 = vadd.f32 %v1464_v55, %v1395_v57  ;;  %v1296_v54 = vadd.f32 %v1264_v31, %v1196_v60  ;;  %v997_v10 = vadd.f32 %v965_v61, %v865_v26  ;;  %v684_v55 = vld [vmem:[%s9241_s29 + $0x10] sm:$0xff]  ;;  %v9514_v2 = vld [vmem:[#allocation2 + $0x108] sm:$0xff] }
  0x54   : > { %8384 = vmatprep.mubr.msk.f32.mxu0 %vm718_vm0, %v1795_v58  ;;  %v1565_v53 = vmul.f32 %v9145_v39, %v9295_v9  ;;  %v1265_v15 = vmul.f32 %v9228_v62, %v9128_v29  ;;  %v1733_v16 = vadd.f32 %v9218_v50, %v1695_v8  ;;  %v1665_v14 = vmul.f32 %v9150_v45, %v9303_v0  ;;  %v9324_v48 = vld [vmem:[#allocation2 + $0x90] sm:$0xff]  ;;  %v686_v58 = vld [vmem:[%s9241_s29 + $0x20] sm:$0xff] }
  0x55   : > { %v1796_v4 = vadd.f32 %v1764_v1, %v683_v52  ;;  %v1596_v18 = vadd.f32 %v1564_v49, %v1496_v38  ;;  %v1396_v20 = vadd.f32 %v1364_v17, %v1296_v54  ;;  %v1097_v40 = vadd.f32 %v1065_v63, %v997_v10  ;;  %v9335_v1 = vld [vmem:[#allocation2 + $0x91] sm:$0xff] }
  0x56   : > { %v1365_v22 = vmul.f32 %v9249_v19, %v9136_v36  ;;  %v866_v23 = vmul.f32 %v9186_v21, %v9098_v11  ;;  %v966_v49 = vmul.f32 %v9192_v28, %v9101_v12  ;;  %v1765_v59 = vmax.f32 %v1733_v16, 0.0  ;;  %v9348_v16 = vld [vmem:[#allocation2 + $0xa8] sm:$0xff] }
  0x57   : > { %8385 = vmatmul.mubr.msk.f32.vlgmr.msra.gmra.mrb[0].mxu0 %vm718_vm0, %v1796_v4  ;;  %v1696_v31 = vadd.f32 %v1664_v27, %v1596_v18  ;;  %v1497_v24 = vadd.f32 %v1465_v51, %v1396_v20  ;;  %v1197_v32 = vadd.f32 %v1165_v3, %v1097_v40  ;;  %v1466_v34 = vmul.f32 %v9139_v37, %v9315_v33  ;;  %v685_v51 = vld [vmem:[%s9241_s29 + $0x18] sm:$0xff]  ;;  %v9337_v3 = vld [vmem:[#allocation2 + $0xa7] sm:$0xff]  ;;  %v9351_v18 = vld [vmem:[%s9092_s30 + $0xb0] sm:$0xff] }
  0x58   : > { %v998_v35 = vadd.f32 %v966_v49, %v866_v23  ;;  %v1066_v41 = vmul.f32 %v9194_v30, %v9104_v13  ;;  %v1166_v21 = vmul.f32 %v9267_v42, %v9125_v25  ;;  %v1797_v17 = vadd.f32 %v1765_v59, %v684_v55  ;;  %14751 = vst [vmem:[#allocation10_spill] sm:$0xff] %v9351_v18 }
  0x59   : > { %v1734_v28 = vadd.f32 %v9218_v50, %v1696_v31  ;;  %v1597_v47 = vadd.f32 %v1565_v53, %v1497_v24  ;;  %v1297_v27 = vadd.f32 %v1265_v15, %v1197_v32  ;;  %v1566_v26 = vmul.f32 %v9145_v39, %v9324_v48  ;;  %814 = vst.msk [vmem:[#allocation2 + $0x188] sm:$0xff] %vm718_vm0, %v9351_v18  ;;  %v9382_v24 = vld [vmem:[%s9092_s30 + $0xd0] sm:$0xff] }
  0x5a   : > { %v1098_v52 = vadd.f32 %v1066_v41, %v998_v35  ;;  %v1266_v56 = vmul.f32 %v9295_v9, %v9128_v29  ;;  %8387 = vmatprep.mubr.msk.f32.mxu0 %vm718_vm0, %v1797_v17  ;;  %v1366_v61 = vmul.f32 %v9303_v0, %v9136_v36  ;;  %v867_v8 = vmul.f32 %v9211_v46, %v9098_v11  ;;  %v9354_v46 = vld [vmem:[%s9092_s30 + $0xb8] sm:$0xff] }
  0x5b   : > { %v1766_v30 = vmax.f32 %v1734_v28, 0.0  ;;  %v1697_v57 = vadd.f32 %v1665_v14, %v1597_v47  ;;  %v1397_v60 = vadd.f32 %v1365_v22, %v1297_v27  ;;  %v967_v38 = vmul.f32 %v9228_v62, %v9101_v12  ;;  %14752 = vst [vmem:[#allocation11_spill] sm:$0xff] %v9354_v46  ;;  %815 = vst.msk [vmem:[#allocation2 + $0x190] sm:$0xff] %vm718_vm0, %v9354_v46  ;;  %v9367_v14 = vld [vmem:[%s9092_s30 + $0xc0] sm:$0xff]  ;;  %v9370_v22 = vld [vmem:[%s9092_s30 + $0xc8] sm:$0xff] }
  0x5c   : > { %v1198_v63 = vadd.f32 %v1166_v21, %v1098_v52  ;;  %v1067_v54 = vmul.f32 %v9249_v19, %v9104_v13  ;;  %v1666_v15 = vmul.f32 %v9150_v45, %v9335_v1  ;;  %v1467_v62 = vmul.f32 %v9139_v37, %v9337_v3  ;;  %v9358_v19 = vld [vmem:[#allocation2 + $0xa9] sm:$0xff]  ;;  %14753 = vst [vmem:[#allocation12_spill] sm:$0xff] %v9367_v14  ;;  %v9389_v21 = vld [vmem:[%s9092_s30 + $0xd8] sm:$0xff] }
  0x5d   : > { %v1798_v10 = vadd.f32 %v1766_v30, %v685_v51  ;;  %v1735_v4 = vadd.f32 %v9218_v50, %v1697_v57  ;;  %v1498_v53 = vadd.f32 %v1466_v34, %v1397_v60  ;;  %v999_v40 = vadd.f32 %v967_v38, %v867_v8  ;;  %14754 = vst [vmem:[#allocation13_spill] sm:$0xff] %v9370_v22  ;;  %v9393_v47 = vld [vmem:[#allocation2 + $0xaf] sm:$0xff]  ;;  %v9421_v60 = vld [vmem:[%s9092_s30 + $0xf8] sm:$0xff] }
  0x5e   : > { %v1298_v20 = vadd.f32 %v1266_v56, %v1198_v63  ;;  %v1167_v55 = vmul.f32 %v9315_v33, %v9125_v25  ;;  %v1567_v59 = vmul.f32 %v9145_v39, %v9348_v16  ;;  %v1667_v31 = vmul.f32 %v9150_v45, %v9358_v19  ;;  %816 = vst.msk [vmem:[#allocation2 + $0x1a8] sm:$0xff] %vm718_vm0, %v9367_v14  ;;  %v9427_v63 = vld [vmem:[#allocation2 + $0xb1] sm:$0xff] }
  0x5f   : > { %8388 = vmatmul.mubr.msk.f32.gmra.mrb[2].mxu0 %vm718_vm0, %v1798_v10  ;;  %v1767_v23 = vmax.f32 %v1735_v4, 0.0  ;;  %v1598_v49 = vadd.f32 %v1566_v26, %v1498_v53  ;;  %817 = vst.msk [vmem:[#allocation2 + $0x1b0] sm:$0xff] %vm718_vm0, %v9370_v22  ;;  %14755 = vst [vmem:[#allocation14_spill] sm:$0xff] %v9382_v24  ;;  %v1099_v34 = vadd.f32 %v1067_v54, %v999_v40  ;;  %v9405_v26 = vld [vmem:[%s9092_s30 + $0xe8] sm:$0xff] }
  0x60   : > { %v1398_v32 = vadd.f32 %v1366_v61, %v1298_v20  ;;  %v1267_v35 = vmul.f32 %v9324_v48, %v9128_v29  ;;  %v868_v41 = vmul.f32 %v9267_v42, %v9098_v11  ;;  %14756 = vst [vmem:[#allocation15_spill] sm:$0xff] %v9389_v21  ;;  %818 = vst.msk [vmem:[#allocation2 + $0x1c8] sm:$0xff] %vm718_vm0, %v9382_v24  ;;  %v9402_v42 = vld [vmem:[%s9092_s30 + $0xe0] sm:$0xff]  ;;  %v687_v54 = vld [vmem:[%s9241_s29 + $0x28] sm:$0xff] }
  0x61   : > { %v1799_v17 = vadd.f32 %v1767_v23, %v686_v58  ;;  %v1698_v28 = vadd.f32 %v1666_v15, %v1598_v49  ;;  %v968_v27 = vmul.f32 %v9295_v9, %v9101_v12  ;;  %v1068_v51 = vmul.f32 %v9303_v0, %v9104_v13  ;;  %819 = vst.msk [vmem:[#allocation2 + $0x1d0] sm:$0xff] %vm718_vm0, %v9389_v21  ;;  %v9411_v9 = vld [vmem:[#allocation2 + $0xb0] sm:$0xff] }
  0x62   : > { %14757 = vst [vmem:[#allocation16_spill] sm:$0xff] %v9402_v42  ;;  %14758 = vst [vmem:[#allocation17_spill] sm:$0xff] %v9405_v26  ;;  %v1499_v52 = vadd.f32 %v1467_v62, %v1398_v32  ;;  %v1199_v56 = vadd.f32 %v1167_v55, %v1099_v34  ;;  %v1367_v30 = vmul.f32 %v9335_v1, %v9136_v36  ;;  %v9418_v0 = vld [vmem:[%s9092_s30 + $0xf0] sm:$0xff] }
  0x63   : > { %v1468_v57 = vmul.f32 %v9139_v37, %v9393_v47  ;;  %820 = vst.msk [vmem:[#allocation2 + $0x1e8] sm:$0xff] %vm718_vm0, %v9402_v42  ;;  %821 = vst.msk [vmem:[#allocation2 + $0x1f0] sm:$0xff] %vm718_vm0, %v9405_v26  ;;  %8390 = vmatprep.mubr.msk.f32.mxu0 %vm718_vm0, %v1799_v17  ;;  %v1736_v61 = vadd.f32 %v9218_v50, %v1698_v28  ;;  %v1568_v58 = vmul.f32 %v9145_v39, %v9411_v9  ;;  %v9450_v17 = vld [vmem:[#allocation2 + $0xc8] sm:$0xff] }
  0x64   : > { %14759 = vst [vmem:[#allocation18_spill] sm:$0xff] %v9418_v0  ;;  %14760 = vst [vmem:[#allocation19_spill] sm:$0xff] %v9421_v60  ;;  %v1000_v8 = vadd.f32 %v968_v27, %v868_v41  ;;  %v1168_v38 = vmul.f32 %v9337_v3, %v9125_v25  ;;  %v1599_v10 = vadd.f32 %v1567_v59, %v1499_v52  ;;  %v9448_v41 = vld [vmem:[#allocation2 + $0xc7] sm:$0xff]  ;;  %v688_v52 = vld [vmem:[%s9241_s29 + $0x30] sm:$0xff] }
  0x65   : > { %822 = vst.msk [vmem:[#allocation2 + $0x208] sm:$0xff] %vm718_vm0, %v9418_v0  ;;  %823 = vst.msk [vmem:[#allocation2 + $0x210] sm:$0xff] %vm718_vm0, %v9421_v60  ;;  %v1299_v4 = vadd.f32 %v1267_v35, %v1199_v56  ;;  %v1668_v53 = vmul.f32 %v9150_v45, %v9427_v63  ;;  %v1268_v15 = vmul.f32 %v9348_v16, %v9128_v29  ;;  %v1768_v20 = vmax.f32 %v1736_v61, 0.0 }
  0x66   : > { %v1100_v62 = vadd.f32 %v1068_v51, %v1000_v8  ;;  %v869_v40 = vmul.f32 %v9315_v33, %v9098_v11  ;;  %v969_v55 = vmul.f32 %v9324_v48, %v9101_v12  ;;  %v1699_v23 = vadd.f32 %v1667_v31, %v1599_v10 }
  0x67   : > { %v1399_v49 = vadd.f32 %v1367_v30, %v1299_v4  ;;  %v1368_v59 = vmul.f32 %v9358_v19, %v9136_v36  ;;  %v1069_v32 = vmul.f32 %v9335_v1, %v9104_v13  ;;  %v1800_v34 = vadd.f32 %v1768_v20, %v687_v54  ;;  %v9459_v1 = vld [vmem:[#allocation2 + $0xc9] sm:$0xff] }
  0x68   : > { %v1200_v35 = vadd.f32 %v1168_v38, %v1100_v62  ;;  %v1001_v28 = vadd.f32 %v969_v55, %v869_v40  ;;  %v1169_v33 = vmul.f32 %v9393_v47, %v9125_v25  ;;  %v1737_v48 = vadd.f32 %v9218_v50, %v1699_v23 }
  0x69   : > { %v1500_v31 = vadd.f32 %v1468_v57, %v1399_v49  ;;  %v1469_v27 = vmul.f32 %v9139_v37, %v9448_v41  ;;  %v1569_v51 = vmul.f32 %v9145_v39, %v9450_v17  ;;  %8391 = vmatmul.mubr.msk.f32.gmra.mrb[4].mxu0 %vm718_vm0, %v1800_v34  ;;  %v1669_v30 = vmul.f32 %v9150_v45, %v9459_v1  ;;  %v9467_v57 = vld [vmem:[#allocation2 + $0xe7] sm:$0xff]  ;;  %v9477_v49 = vld [vmem:[#allocation2 + $0xcf] sm:$0xff] }
  0x6a   : > { %v1300_v56 = vadd.f32 %v1268_v15, %v1200_v35  ;;  %v1101_v61 = vadd.f32 %v1069_v32, %v1001_v28  ;;  %v1269_v8 = vmul.f32 %v9411_v9, %v9128_v29  ;;  %v1769_v38 = vmax.f32 %v1737_v48, 0.0  ;;  %v9487_v48 = vld [vmem:[#allocation2 + $0xd1] sm:$0xff] }
  0x6b   : > { %v1600_v54 = vadd.f32 %v1568_v58, %v1500_v31  ;;  %v872_v10 = vmul.f32 %v9448_v41, %v9098_v11  ;;  %v972_v4 = vmul.f32 %v9450_v17, %v9101_v12  ;;  %v1369_v15 = vmul.f32 %v9427_v63, %v9136_v36  ;;  %v9479_v58 = vld [vmem:[#allocation2 + $0xd0] sm:$0xff] }
  0x6c   : > { %v1400_v20 = vadd.f32 %v1368_v59, %v1300_v56  ;;  %v1201_v62 = vadd.f32 %v1169_v33, %v1101_v61  ;;  %v1072_v40 = vmul.f32 %v9459_v1, %v9104_v13  ;;  %v1801_v55 = vadd.f32 %v1769_v38, %v688_v52  ;;  %v9497_v61 = vld [vmem:[#allocation2 + $0xef] sm:$0xff] }
  0x6d   : > { %v1700_v23 = vadd.f32 %v1668_v53, %v1600_v54  ;;  %v1004_v32 = vadd.f32 %v972_v4, %v872_v10  ;;  %v1172_v34 = vmul.f32 %v9125_v25, %v9467_v57  ;;  %v1470_v28 = vmul.f32 %v9139_v37, %v9477_v49  ;;  %v9489_v53 = vld [vmem:[#allocation2 + $0xe8] sm:$0xff] }
  0x6e   : > { %v1501_v35 = vadd.f32 %v1469_v27, %v1400_v20  ;;  %v1301_v59 = vadd.f32 %v1269_v8, %v1201_v62  ;;  %v1570_v33 = vmul.f32 %v9145_v39, %v9479_v58  ;;  %8393 = vmatprep.mubr.msk.f32.mxu0 %vm718_vm0, %v1801_v55  ;;  %v1670_v27 = vmul.f32 %v9150_v45, %v9487_v48  ;;  %v689_v8 = vld [vmem:[%s9241_s29 + $0x38] sm:$0xff]  ;;  %v9500_v10 = vld [vmem:[#allocation2 + $0xe9] sm:$0xff] }
  0x6f   : > { %v1738_v31 = vadd.f32 %v9218_v50, %v1700_v23  ;;  %v1104_v52 = vadd.f32 %v1072_v40, %v1004_v32  ;;  %v1272_v56 = vmul.f32 %v9128_v29, %v9489_v53  ;;  %v873_v4 = vmul.f32 %v9477_v49, %v9098_v11  ;;  %v3271_v32 = vld [vmem:[%s9092_s30 + $0x10] sm:$0xff] }
  0x70   : > { %v1601_v38 = vadd.f32 %v1569_v51, %v1501_v35  ;;  %v1401_v54 = vadd.f32 %v1369_v15, %v1301_v59  ;;  %v973_v20 = vmul.f32 %v9479_v58, %v9101_v12  ;;  %v1372_v40 = vmul.f32 %v9136_v36, %v9500_v10  ;;  %v3269_v51 = vld [vmem:[%s9092_s30] sm:$0xff]  ;;  %3369 = vrot.lane.b32.xlu1 %v3271_v32, %s8798_s0 }
  0x71   : > { %v1770_v62 = vmax.f32 %v1738_v31, 0.0  ;;  %v1204_v55 = vadd.f32 %v1172_v34, %v1104_v52  ;;  %v1073_v23 = vmul.f32 %v9487_v48, %v9104_v13  ;;  %v9512_v59 = vld [vmem:[#allocation2 + $0x107] sm:$0xff]  ;;  %v1173_v34 = vmul.f32 %v9125_v25, %v9497_v61  ;;  %3365 = vrot.lane.b32.xlu0 %v3269_v51, %s8798_s0 }
  0x72   : > { %v1701_v15 = vadd.f32 %v1669_v30, %v1601_v38  ;;  %v1502_v35 = vadd.f32 %v1470_v28, %v1401_v54  ;;  %v1005_v7 = vadd.f32 %v973_v20, %v873_v4  ;;  %v1473_v6 = vmul.f32 %v9139_v37, %v9512_v59  ;;  %v9523_v28 = vld [vmem:[#allocation2 + $0xf0] sm:$0xff]  ;;  %v3272_v38 = vld [vmem:[%s9092_s30 + $0x18] sm:$0xff] }
  0x73   : > { %v1802_v31 = vadd.f32 %v1770_v62, %v689_v8  ;;  %v1304_v52 = vadd.f32 %v1272_v56, %v1204_v55  ;;  %v1573_v30 = vmul.f32 %v9145_v39, %v9514_v2  ;;  %v1273_v32 = vmul.f32 %v9128_v29, %v9523_v28  ;;  %v9530_v8 = vld [vmem:[#allocation2 + $0xf1] sm:$0xff]  ;;  %v3270_v56 = vld [vmem:[%s9092_s30 + $0x8] sm:$0xff]  ;;  %v690_v62 = vld [vmem:[%s9241_s29 + $0x40] sm:$0xff] }
  0x74   : > { %v1739_v54 = vadd.f32 %v9218_v50, %v1701_v15  ;;  %v1602_v4 = vadd.f32 %v1570_v33, %v1502_v35  ;;  %v1105_v20 = vadd.f32 %v1073_v23, %v1005_v7  ;;  %v1373_v5 = vmul.f32 %v9136_v36, %v9530_v8  ;;  %v9541_v15 = vld [vmem:[#allocation2 + $0x109] sm:$0xff]  ;;  %3371 = vrot.lane.b32.xlu1 %v3272_v38, %s8798_s0  ;;  %v3273_v38 = vld [vmem:[%s9092_s30 + $0x20] sm:$0xff] }
  0x75   : > { %8394 = vmatmul.mubr.msk.f32.gmra.mrb[6].mxu0 %vm718_vm0, %v1802_v31  ;;  %v1404_v55 = vadd.f32 %v1372_v40, %v1304_v52  ;;  %v870_v51 = vmul.f32 %v9337_v3, %v9098_v11  ;;  %v970_v7 = vmul.f32 %v9348_v16, %v9101_v12  ;;  %v1070_v40 = vmul.f32 %v9358_v19, %v9104_v13  ;;  %v9548_v3 = vld [vmem:[#allocation2 + $0x10f] sm:$0xff] }
  0x76   : > { %v1771_v33 = vmax.f32 %v1739_v54, 0.0  ;;  %v1702_v23 = vadd.f32 %v1670_v27, %v1602_v4  ;;  %v1205_v35 = vadd.f32 %v1173_v34, %v1105_v20  ;;  %v1673_v52 = vmul.f32 %v9150_v45, %v9541_v15  ;;  %3367 = vrot.lane.b32.xlu0 %v3270_v56, %s8798_s0  ;;  %v3274_v27 = vld [vmem:[%s9092_s30 + $0x28] sm:$0xff] }
  0x77   : > { %v1505_v31 = vadd.f32 %v1473_v6, %v1404_v55  ;;  %v1002_v0 = vadd.f32 %v970_v7, %v870_v51  ;;  %v1170_v16 = vmul.f32 %v9448_v41, %v9125_v25  ;;  %v1474_v19 = vmul.f32 %v9139_v37, %v9548_v3  ;;  %v9557_v6 = vld [vmem:[#allocation2 + $0x110] sm:$0xff]  ;;  %v691_v20 = vld [vmem:[%s9241_s29 + $0x48] sm:$0xff] }
  0x78   : > { %v1803_v34 = vadd.f32 %v1771_v33, %v690_v62  ;;  %v1740_v54 = vadd.f32 %v9218_v50, %v1702_v23  ;;  %v1305_v4 = vadd.f32 %v1273_v32, %v1205_v35  ;;  %v1574_v51 = vmul.f32 %v9145_v39, %v9557_v6  ;;  %3375 = vrot.lane.b32.xlu1 %v3274_v27, %s8798_s0  ;;  %v9571_v23 = vld [vmem:[#allocation2 + $0x111] sm:$0xff] }
  0x79   : > { %v1605_v55 = vadd.f32 %v1573_v30, %v1505_v31  ;;  %v1102_v7 = vadd.f32 %v1070_v40, %v1002_v0  ;;  %v1270_v41 = vmul.f32 %v9450_v17, %v9128_v29  ;;  %v1370_v62 = vmul.f32 %v9459_v1, %v9136_v36  ;;  %v3276_v31 = vld [vmem:[%s9092_s30 + $0x38] sm:$0xff] }
  0x7a   : > { %8396 = vmatprep.mubr.msk.f32.mxu0 %vm718_vm0, %v1803_v34  ;;  %v1772_v56 = vmax.f32 %v1740_v54, 0.0  ;;  %v1405_v32 = vadd.f32 %v1373_v5, %v1305_v4  ;;  %v871_v33 = vmul.f32 %v9393_v47, %v9098_v11  ;;  %v971_v17 = vmul.f32 %v9411_v9, %v9101_v12  ;;  %3373 = vrot.lane.b32.xlu0 %v3273_v38, %s8798_s0 }
  0x7b   : > { %v1705_v30 = vadd.f32 %v1673_v52, %v1605_v55  ;;  %v1202_v0 = vadd.f32 %v1170_v16, %v1102_v7  ;;  %v1071_v35 = vmul.f32 %v9427_v63, %v9104_v13  ;;  %v1674_v47 = vmul.f32 %v9150_v45, %v9571_v23  ;;  %v3275_v52 = vld [vmem:[%s9092_s30 + $0x30] sm:$0xff]  ;;  %v694_v63 = vld [vmem:[%s9241_s29 + $0x60] sm:$0xff] }
  0x7c   : > { %v1804_v5 = vadd.f32 %v1772_v56, %v691_v20  ;;  %v1506_v1 = vadd.f32 %v1474_v19, %v1405_v32  ;;  %v1471_v40 = vmul.f32 %v9139_v37, %v9467_v57  ;;  %v1003_v34 = vadd.f32 %v971_v17, %v871_v33  ;;  %3379 = vrot.lane.b32.xlu1 %v3276_v31, %s8798_s0 }
  0x7d   : > { %v1743_v16 = vadd.f32 %v9218_v50, %v1705_v30  ;;  %v1302_v27 = vadd.f32 %v1270_v41, %v1202_v0  ;;  %v1171_v9 = vmul.f32 %v9477_v49, %v9125_v25  ;;  %v1571_v4 = vmul.f32 %v9145_v39, %v9489_v53  ;;  %v3278_v30 = vld [vmem:[%s9092_s30 + $0x48] sm:$0xff]  ;;  %v3277_v0 = vld [vmem:[%s9092_s30 + $0x40] sm:$0xff] }
  0x7e   : > { %8397 = vmatmul.mubr.msk.f32.gmra.mrb[8].mxu0 %vm718_vm0, %v1804_v5  ;;  %v1606_v54 = vadd.f32 %v1574_v51, %v1506_v1  ;;  %v1671_v19 = vmul.f32 %v9150_v45, %v9500_v10  ;;  %v1271_v38 = vmul.f32 %v9479_v58, %v9128_v29  ;;  %v1103_v7 = vadd.f32 %v1071_v35, %v1003_v34 }
  0x7f   : > { %v1775_v20 = vmax.f32 %v1743_v16, 0.0  ;;  %v1402_v55 = vadd.f32 %v1370_v62, %v1302_v27  ;;  %v874_v49 = vmul.f32 %v9467_v57, %v9098_v11  ;;  %3377 = vrot.lane.b32.xlu0 %v3275_v52, %s8798_s0  ;;  %v1371_v41 = vmul.f32 %v9487_v48, %v9136_v36 }
  0x80   : > { %v1706_v51 = vadd.f32 %v1674_v47, %v1606_v54  ;;  %v974_v56 = vmul.f32 %v9489_v53, %v9101_v12  ;;  %v1074_v58 = vmul.f32 %v9500_v10, %v9104_v13  ;;  %v1203_v33 = vadd.f32 %v1171_v9, %v1103_v7  ;;  %v695_v10 = vld [vmem:[%s9241_s29 + $0x68] sm:$0xff]  ;;  %3383 = vrot.lane.b32.xlu1 %v3278_v30, %s8798_s0  ;;  %v3280_v7 = vld [vmem:[%s9092_s30 + $0x58] sm:$0xff] }
  0x81   : > { %v1807_v32 = vadd.f32 %v1775_v20, %v694_v63  ;;  %v1503_v62 = vadd.f32 %v1471_v40, %v1402_v55  ;;  %v1472_v57 = vmul.f32 %v9139_v37, %v9497_v61  ;;  %v1572_v35 = vmul.f32 %v9145_v39, %v9523_v28  ;;  %v9628_v54 = vld [vmem:[#allocation2 + $0x127] sm:$0xff] }
  0x82   : > { %v1744_v17 = vadd.f32 %v9218_v50, %v1706_v51  ;;  %v1006_v48 = vadd.f32 %v974_v56, %v874_v49  ;;  %v1174_v53 = vmul.f32 %v9512_v59, %v9125_v25  ;;  %v1303_v1 = vadd.f32 %v1271_v38, %v1203_v33  ;;  %v9632_v20 = vld [vmem:[#allocation2 + $0x128] sm:$0xff] }
  0x83   : > { %8402 = vmatprep.mubr.msk.f32.mxu1 %vm718_vm0, %v1807_v32  ;;  %v1603_v5 = vadd.f32 %v1571_v4, %v1503_v62  ;;  %v1672_v47 = vmul.f32 %v9150_v45, %v9530_v8  ;;  %v1274_v40 = vmul.f32 %v9514_v2, %v9128_v29  ;;  %v875_v16 = vmul.f32 %v9497_v61, %v9098_v11 }
  0x84   : > { %v1776_v31 = vmax.f32 %v1744_v17, 0.0  ;;  %v1106_v52 = vadd.f32 %v1074_v58, %v1006_v48  ;;  %v975_v27 = vmul.f32 %v9523_v28, %v9101_v12  ;;  %3381 = vrot.lane.b32.xlu0 %v3277_v0, %s8798_s0  ;;  %v1403_v9 = vadd.f32 %v1371_v41, %v1303_v1  ;;  %v692_v58 = vld [vmem:[%s9241_s29 + $0x50] sm:$0xff]  ;;  %3387 = vrot.lane.b32.xlu1 %v3280_v7, %s8798_s0 }
  0x85   : > { %v1703_v34 = vadd.f32 %v1671_v19, %v1603_v5  ;;  %v1374_v63 = vmul.f32 %v9541_v15, %v9136_v36  ;;  %v1075_v4 = vmul.f32 %v9530_v8, %v9104_v13  ;;  %v1175_v55 = vmul.f32 %v9548_v3, %v9125_v25  ;;  %v3279_v19 = vld [vmem:[%s9092_s30 + $0x50] sm:$0xff] }
  0x86   : > { %v1808_v38 = vadd.f32 %v1776_v31, %v695_v10  ;;  %v1206_v61 = vadd.f32 %v1174_v53, %v1106_v52  ;;  %v1007_v28 = vadd.f32 %v975_v27, %v875_v16  ;;  %v1504_v51 = vadd.f32 %v1472_v57, %v1403_v9  ;;  %v9643_v8 = vld [vmem:[#allocation2 + $0x129] sm:$0xff] }
  0x87   : > { %v1741_v49 = vadd.f32 %v9218_v50, %v1703_v34  ;;  %v1475_v41 = vmul.f32 %v9139_v37, %v9628_v54  ;;  %v1575_v56 = vmul.f32 %v9145_v39, %v9632_v20  ;;  %v1675_v62 = vmul.f32 %v9150_v45, %v9643_v8  ;;  %v9661_v31 = vld [vmem:[#allocation2 + $0x12f] sm:$0xff] }
  0x88   : > { %8403 = vmatmul.mubr.msk.f32.vlgmr.msra.gmra.mrb[0].mxu1 %vm718_vm0, %v1808_v38  ;;  %v1306_v32 = vadd.f32 %v1274_v40, %v1206_v61  ;;  %v1107_v33 = vadd.f32 %v1075_v4, %v1007_v28  ;;  %v1275_v30 = vmul.f32 %v9557_v6, %v9128_v29  ;;  %v1604_v0 = vadd.f32 %v1572_v35, %v1504_v51  ;;  %v3282_v16 = vld [vmem:[%s9092_s30 + $0x68] sm:$0xff] }
  0x89   : > { %v1773_v57 = vmax.f32 %v1741_v49, 0.0  ;;  %v876_v17 = vmul.f32 %v9512_v59, %v9098_v11  ;;  %v976_v48 = vmul.f32 %v9514_v2, %v9101_v12  ;;  %3385 = vrot.lane.b32.xlu0 %v3279_v19, %s8798_s0  ;;  %v1375_v5 = vmul.f32 %v9571_v23, %v9136_v36  ;;  %v9663_v59 = vld [vmem:[#allocation2 + $0x130] sm:$0xff]  ;;  %3391 = vrot.lane.b32.xlu1 %v3282_v16, %s8798_s0 }
  0x8a   : > { %v1406_v53 = vadd.f32 %v1374_v63, %v1306_v32  ;;  %v1207_v10 = vadd.f32 %v1175_v55, %v1107_v33  ;;  %v1076_v1 = vmul.f32 %v9541_v15, %v9104_v13  ;;  %v1704_v40 = vadd.f32 %v1672_v47, %v1604_v0  ;;  %v9672_v63 = vld [vmem:[#allocation2 + $0x131] sm:$0xff]  ;;  %v3281_v47 = vld [vmem:[%s9092_s30 + $0x60] sm:$0xff] }
  0x8b   : > { %v1805_v35 = vadd.f32 %v1773_v57, %v692_v58  ;;  %v1008_v2 = vadd.f32 %v976_v48, %v876_v17  ;;  %v1176_v52 = vmul.f32 %v9628_v54, %v9125_v25  ;;  %v1476_v9 = vmul.f32 %v9139_v37, %v9661_v31  ;;  %v693_v55 = vld [vmem:[%s9241_s29 + $0x58] sm:$0xff] }
  0x8c   : > { %v1507_v27 = vadd.f32 %v1475_v41, %v1406_v53  ;;  %v1307_v34 = vadd.f32 %v1275_v30, %v1207_v10  ;;  %v1576_v15 = vmul.f32 %v9145_v39, %v9663_v59  ;;  %v1742_v4 = vadd.f32 %v9218_v50, %v1704_v40 }
  0x8d   : > { %8399 = vmatprep.mubr.msk.f32.mxu0 %vm718_vm0, %v1805_v35  ;;  %v1676_v38 = vmul.f32 %v9150_v45, %v9672_v63  ;;  %v1108_v61 = vadd.f32 %v1076_v1, %v1008_v2  ;;  %v1276_v28 = vmul.f32 %v9632_v20, %v9128_v29  ;;  %v877_v49 = vmul.f32 %v9548_v3, %v9098_v11  ;;  %v9693_v3 = vld [vmem:[#allocation2 + $0x147] sm:$0xff]  ;;  %v696_v2 = vld [vmem:[%s9241_s29 + $0x70] sm:$0xff] }
  0x8e   : > { %v1607_v7 = vadd.f32 %v1575_v56, %v1507_v27  ;;  %v1407_v19 = vadd.f32 %v1375_v5, %v1307_v34  ;;  %v977_v51 = vmul.f32 %v9557_v6, %v9101_v12  ;;  %v1774_v41 = vmax.f32 %v1742_v4, 0.0  ;;  %3389 = vrot.lane.b32.xlu0 %v3281_v47, %s8798_s0  ;;  %v3284_v56 = vld [vmem:[%s9092_s30 + $0x78] sm:$0xff]  ;;  %v9695_v6 = vld [vmem:[#allocation2 + $0x148] sm:$0xff] }
  0x8f   : > { %v1208_v58 = vadd.f32 %v1176_v52, %v1108_v61  ;;  %v1376_v32 = vmul.f32 %v9643_v8, %v9136_v36  ;;  %v1077_v33 = vmul.f32 %v9571_v23, %v9104_v13  ;;  %v1177_v17 = vmul.f32 %v9661_v31, %v9125_v25  ;;  %3395 = vrot.lane.b32.xlu1 %v3284_v56, %s8798_s0  ;;  %v1641_v4 = vld [vmem:[#allocation2 + $0x149] sm:$0xff] }
  0x90   : > { %v1707_v30 = vadd.f32 %v1675_v62, %v1607_v7  ;;  %v1508_v57 = vadd.f32 %v1476_v9, %v1407_v19  ;;  %v1009_v0 = vadd.f32 %v977_v51, %v877_v49  ;;  %v1806_v48 = vadd.f32 %v1774_v41, %v693_v55  ;;  %v3283_v62 = vld [vmem:[%s9092_s30 + $0x70] sm:$0xff]  ;;  %v3286_v9 = vld [vmem:[%s9092_s30 + $0x88] sm:$0xff]  ;;  %v3285_v49 = vld [vmem:[%s9092_s30 + $0x80] sm:$0xff] }
  0x91   : > { %v1308_v53 = vadd.f32 %v1276_v28, %v1208_v58  ;;  %v1477_v23 = vmul.f32 %v9139_v37, %v9693_v3  ;;  %v1577_v10 = vmul.f32 %v9145_v39, %v9695_v6  ;;  %v1277_v40 = vmul.f32 %v9663_v59, %v9128_v29  ;;  %v9721_v19 = vld [vmem:[#allocation2 + $0x14f] sm:$0xff] }
  0x92   : > { %v1745_v5 = vadd.f32 %v9218_v50, %v1707_v30  ;;  %v1608_v1 = vadd.f32 %v1576_v15, %v1508_v57  ;;  %v1109_v35 = vadd.f32 %v1077_v33, %v1009_v0  ;;  %8400 = vmatmul.mubr.msk.f32.gmra.mrb[10].mxu0 %vm718_vm0, %v1806_v48  ;;  %v1377_v16 = vmul.f32 %v9672_v63, %v9136_v36  ;;  %v9729_v58 = vld [vmem:[#allocation2 + $0x150] sm:$0xff]  ;;  %v3288_v0 = vld [vmem:[%s9092_s30 + $0x98] sm:$0xff] }
  0x93   : > { %v1408_v52 = vadd.f32 %v1376_v32, %v1308_v53  ;;  %v878_v27 = vmul.f32 %v9628_v54, %v9098_v11  ;;  %v978_v34 = vmul.f32 %v9632_v20, %v9101_v12  ;;  %v1078_v28 = vmul.f32 %v9643_v8, %v9104_v13  ;;  %3393 = vrot.lane.b32.xlu0 %v3283_v62, %s8798_s0  ;;  %v697_v32 = vld [vmem:[%s9241_s29 + $0x78] sm:$0xff] }
  0x94   : > { %v1777_v15 = vmax.f32 %v1745_v5, 0.0  ;;  %v1708_v47 = vadd.f32 %v1676_v38, %v1608_v1  ;;  %v1209_v61 = vadd.f32 %v1177_v17, %v1109_v35  ;;  %v1677_v7 = vmul.f32 %v9150_v45, %v1641_v4  ;;  %3399 = vrot.lane.b32.xlu1 %v3286_v9, %s8798_s0  ;;  %v1642_v62 = vld [vmem:[#allocation2 + $0x151] sm:$0xff]  ;;  %v9743_v1 = vld [vmem:[#allocation2 + $0x167] sm:$0xff] }
  0x95   : > { %v1509_v55 = vadd.f32 %v1477_v23, %v1408_v52  ;;  %v1010_v54 = vadd.f32 %v978_v34, %v878_v27  ;;  %v1178_v20 = vmul.f32 %v9693_v3, %v9125_v25  ;;  %v1478_v8 = vmul.f32 %v9139_v37, %v9721_v19  ;;  %v3287_v27 = vld [vmem:[%s9092_s30 + $0x90] sm:$0xff] }
  0x96   : > { %v1809_v38 = vadd.f32 %v1777_v15, %v696_v2  ;;  %v1746_v51 = vadd.f32 %v9218_v50, %v1708_v47  ;;  %v1309_v41 = vadd.f32 %v1277_v40, %v1209_v61  ;;  %v1578_v56 = vmul.f32 %v9145_v39, %v9729_v58  ;;  %v9755_v15 = vld [vmem:[#allocation2 + $0x168] sm:$0xff]  ;;  %v698_v61 = vld [vmem:[%s9241_s29 + $0x80] sm:$0xff] }
  0x97   : > { %v1609_v33 = vadd.f32 %v1577_v10, %v1509_v55  ;;  %v1110_v30 = vadd.f32 %v1078_v28, %v1010_v54  ;;  %v1278_v57 = vmul.f32 %v9695_v6, %v9128_v29  ;;  %v1378_v53 = vmul.f32 %v1641_v4, %v9136_v36  ;;  %3397 = vrot.lane.b32.xlu0 %v3285_v49, %s8798_s0  ;;  %v9757_v47 = vld [vmem:[#allocation2 + $0x169] sm:$0xff] }
  0x98   : > { %8405 = vmatprep.mubr.msk.f32.mxu1 %vm718_vm0, %v1809_v38  ;;  %v1778_v17 = vmax.f32 %v1746_v51, 0.0  ;;  %v1409_v48 = vadd.f32 %v1377_v16, %v1309_v41  ;;  %v879_v23 = vmul.f32 %v9661_v31, %v9098_v11  ;;  %v979_v35 = vmul.f32 %v9663_v59, %v9101_v12  ;;  %3403 = vrot.lane.b32.xlu1 %v3288_v0, %s8798_s0 }
  0x99   : > { %v1709_v10 = vadd.f32 %v1677_v7, %v1609_v33  ;;  %v1210_v5 = vadd.f32 %v1178_v20, %v1110_v30  ;;  %v1079_v40 = vmul.f32 %v9672_v63, %v9104_v13  ;;  %v1678_v16 = vmul.f32 %v9150_v45, %v1642_v62 }
  0x9a   : > { %v1810_v2 = vadd.f32 %v1778_v17, %v697_v32  ;;  %v1510_v52 = vadd.f32 %v1478_v8, %v1409_v48  ;;  %v1479_v31 = vmul.f32 %v9139_v37, %v9743_v1  ;;  %v1011_v59 = vadd.f32 %v979_v35, %v879_v23  ;;  %v9773_v32 = vld [vmem:[#allocation2 + $0x16f] sm:$0xff] }
  0x9b   : > { %v1747_v34 = vadd.f32 %v9218_v50, %v1709_v10  ;;  %v1310_v9 = vadd.f32 %v1278_v57, %v1210_v5  ;;  %v1179_v63 = vmul.f32 %v9721_v19, %v9125_v25  ;;  %v1579_v55 = vmul.f32 %v9145_v39, %v9755_v15  ;;  %3401 = vrot.lane.b32.xlu0 %v3287_v27, %s8798_s0  ;;  %v9782_v17 = vld [vmem:[#allocation2 + $0x170] sm:$0xff]  ;;  %v699_v10 = vld [vmem:[%s9241_s29 + $0x88] sm:$0xff] }
  0x9c   : > { %8406 = vmatmul.mubr.msk.f32.gmra.mrb[2].mxu1 %vm718_vm0, %v1810_v2  ;;  %v1610_v28 = vadd.f32 %v1578_v56, %v1510_v52  ;;  %v1679_v7 = vmul.f32 %v9150_v45, %v9757_v47  ;;  %v1279_v54 = vmul.f32 %v9729_v58, %v9128_v29  ;;  %v1111_v38 = vadd.f32 %v1079_v40, %v1011_v59  ;;  %v9787_v23 = vld [vmem:[#allocation2 + $0x171] sm:$0xff] }
  0x9d   : > { %v1779_v20 = vmax.f32 %v1747_v34, 0.0  ;;  %v1410_v49 = vadd.f32 %v1378_v53, %v1310_v9  ;;  %v880_v51 = vmul.f32 %v9693_v3, %v9098_v11  ;;  %v1379_v8 = vmul.f32 %v1642_v62, %v9136_v36  ;;  %3407 = vrot.lane.b32.xlu1 %v9280_v44, %s8798_s0 }
  0x9e   : > { %v1710_v41 = vadd.f32 %v1678_v16, %v1610_v28  ;;  %v980_v33 = vmul.f32 %v9695_v6, %v9101_v12  ;;  %v1080_v56 = vmul.f32 %v1641_v4, %v9104_v13  ;;  %v1211_v0 = vadd.f32 %v1179_v63, %v1111_v38  ;;  %v9810_v28 = vld [vmem:[#allocation2 + $0x188] sm:$0xff] }
  0x9f   : > { %v1811_v30 = vadd.f32 %v1779_v20, %v698_v61  ;;  %v1511_v57 = vadd.f32 %v1479_v31, %v1410_v49  ;;  %v1480_v3 = vmul.f32 %v9139_v37, %v9773_v32  ;;  %v1580_v53 = vmul.f32 %v9145_v39, %v9782_v17  ;;  %3405 = vrot.lane.b32.xlu0 %v9272_v43, %s8798_s0  ;;  %v9824_v38 = vld [vmem:[#allocation2 + $0x189] sm:$0xff] }
  0xa0   : > { %v1748_v48 = vadd.f32 %v9218_v50, %v1710_v41  ;;  %v1012_v6 = vadd.f32 %v980_v33, %v880_v51  ;;  %v1180_v4 = vmul.f32 %v9743_v1, %v9125_v25  ;;  %v1311_v35 = vadd.f32 %v1279_v54, %v1211_v0  ;;  %v700_v51 = vld [vmem:[%s9241_s29 + $0x90] sm:$0xff] }
  0xa1   : > { %8408 = vmatprep.mubr.msk.f32.mxu1 %vm718_vm0, %v1811_v30  ;;  %v1611_v5 = vadd.f32 %v1579_v55, %v1511_v57  ;;  %v1680_v40 = vmul.f32 %v9150_v45, %v9787_v23  ;;  %v1280_v50 = vmul.f32 %v9755_v15, %v9128_v29  ;;  %v881_v16 = vmul.f32 %v9721_v19, %v9098_v11  ;;  %v9808_v19 = vld [vmem:[#allocation2 + $0x187] sm:$0xff] }
  0xa2   : > { %v1780_v2 = vmax.f32 %v1748_v48, 0.0  ;;  %v1112_v52 = vadd.f32 %v1080_v56, %v1012_v6  ;;  %v981_v31 = vmul.f32 %v9729_v58, %v9101_v12  ;;  %3411 = vrot.lane.b32.xlu1 %v9354_v46, %s8798_s0  ;;  %v1411_v34 = vadd.f32 %v1379_v8, %v1311_v35 }
  0xa3   : > { %v1711_v27 = vadd.f32 %v1679_v7, %v1611_v5  ;;  %v1380_v9 = vmul.f32 %v9757_v47, %v9136_v36  ;;  %v1081_v59 = vmul.f32 %v1642_v62, %v9104_v13  ;;  %v1181_v55 = vmul.f32 %v9773_v32, %v9125_v25  ;;  %v9817_v7 = vld [vmem:[%s14747_s25] ss:$0 sm:$0xff]  ;;  %3409 = vrot.lane.b32.xlu0 %v9351_v18, %s8798_s0  ;;  %v9844_v5 = vld [vmem:[#allocation2 + $0x18f] sm:$0xff] }
  0xa4   : > { %v1812_v63 = vadd.f32 %v1780_v2, %v699_v10  ;;  %v1212_v61 = vadd.f32 %v1180_v4, %v1112_v52  ;;  %v1013_v58 = vadd.f32 %v981_v31, %v881_v16  ;;  %v1512_v20 = vadd.f32 %v1480_v3, %v1411_v34 }
  0xa5   : > { %v1749_v54 = vadd.f32 %v9817_v7, %v1711_v27  ;;  %v1481_v62 = vmul.f32 %v9139_v37, %v9808_v19  ;;  %v1581_v49 = vmul.f32 %v9145_v39, %v9810_v28  ;;  %v1681_v8 = vmul.f32 %v9150_v45, %v9824_v38 }
  0xa6   : > { %8409 = vmatmul.mubr.msk.f32.gmra.mrb[4].mxu1 %vm718_vm0, %v1812_v63  ;;  %v1312_v41 = vadd.f32 %v1280_v50, %v1212_v61  ;;  %v1113_v33 = vadd.f32 %v1081_v59, %v1013_v58  ;;  %v1281_v56 = vmul.f32 %v9782_v17, %v9128_v29  ;;  %v1612_v57 = vadd.f32 %v1580_v53, %v1512_v20  ;;  %v701_v59 = vld [vmem:[%s9241_s29 + $0x98] sm:$0xff] }
  0xa7   : > { %v1781_v30 = vmax.f32 %v1749_v54, 0.0  ;;  %v882_v0 = vmul.f32 %v9743_v1, %v9098_v11  ;;  %v982_v3 = vmul.f32 %v9755_v15, %v9101_v12  ;;  %3415 = vrot.lane.b32.xlu1 %v9370_v22, %s8798_s0  ;;  %v1381_v4 = vmul.f32 %v9787_v23, %v9136_v36  ;;  %v9846_v15 = vld [vmem:[#allocation2 + $0x190] sm:$0xff]  ;;  %3413 = vrot.lane.b32.xlu0 %v9367_v14, %s8798_s0 }
  0xa8   : > { %v1412_v48 = vadd.f32 %v1380_v9, %v1312_v41  ;;  %v1213_v6 = vadd.f32 %v1181_v55, %v1113_v33  ;;  %v1082_v53 = vmul.f32 %v9757_v47, %v9104_v13  ;;  %v1712_v1 = vadd.f32 %v1680_v40, %v1612_v57  ;;  %v9854_v47 = vld [vmem:[#allocation2 + $0x191] sm:$0xff]  ;;  %v9875_v41 = vld [vmem:[#allocation2 + $0x1a7] sm:$0xff] }
  0xa9   : > { %v1813_v10 = vadd.f32 %v1781_v30, %v700_v51  ;;  %v1014_v35 = vadd.f32 %v982_v3, %v882_v0  ;;  %v1182_v50 = vmul.f32 %v9808_v19, %v9125_v25  ;;  %v1482_v16 = vmul.f32 %v9139_v37, %v9844_v5 }
  0xaa   : > { %v1513_v2 = vadd.f32 %v1481_v62, %v1412_v48  ;;  %v1313_v52 = vadd.f32 %v1281_v56, %v1213_v6  ;;  %v1582_v31 = vmul.f32 %v9145_v39, %v9846_v15  ;;  %v1750_v40 = vadd.f32 %v9817_v7, %v1712_v1 }
  0xab   : > { %8411 = vmatprep.mubr.msk.f32.mxu1 %vm718_vm0, %v1813_v10  ;;  %v1682_v27 = vmul.f32 %v9150_v45, %v9854_v47  ;;  %v1114_v34 = vadd.f32 %v1082_v53, %v1014_v35  ;;  %v1282_v9 = vmul.f32 %v9810_v28, %v9128_v29  ;;  %v883_v58 = vmul.f32 %v9773_v32, %v9098_v11 }
  0xac   : > { %v1613_v63 = vadd.f32 %v1581_v49, %v1513_v2  ;;  %v1413_v61 = vadd.f32 %v1381_v4, %v1313_v52  ;;  %v983_v55 = vmul.f32 %v9782_v17, %v9101_v12  ;;  %v1782_v54 = vmax.f32 %v1750_v40, 0.0  ;;  %3419 = vrot.lane.b32.xlu1 %v9389_v21, %s8798_s0  ;;  %v9877_v17 = vld [vmem:[#allocation2 + $0x1a8] sm:$0xff]  ;;  %3417 = vrot.lane.b32.xlu0 %v9382_v24, %s8798_s0  ;;  %v702_v4 = vld [vmem:[%s9241_s29 + $0xa0] sm:$0xff] }
  0xad   : > { %v1214_v20 = vadd.f32 %v1182_v50, %v1114_v34  ;;  %v1382_v62 = vmul.f32 %v9824_v38, %v9136_v36  ;;  %v1083_v51 = vmul.f32 %v9787_v23, %v9104_v13  ;;  %v1183_v56 = vmul.f32 %v9844_v5, %v9125_v25  ;;  %v1647_v52 = vld [vmem:[#allocation2 + $0x1a9] sm:$0xff] }
  0xae   : > { %v1713_v49 = vadd.f32 %v1681_v8, %v1613_v63  ;;  %v1514_v32 = vadd.f32 %v1482_v16, %v1413_v61  ;;  %v1015_v33 = vadd.f32 %v983_v55, %v883_v58  ;;  %v1814_v30 = vadd.f32 %v1782_v54, %v701_v59  ;;  %v703_v58 = vld [vmem:[%s9241_s29 + $0xa8] sm:$0xff] }
  0xaf   : > { %v1314_v57 = vadd.f32 %v1282_v9, %v1214_v20  ;;  %v1483_v0 = vmul.f32 %v9139_v37, %v9875_v41  ;;  %v1583_v23 = vmul.f32 %v9145_v39, %v9877_v17  ;;  %v1283_v6 = vmul.f32 %v9846_v15, %v9128_v29  ;;  %v9903_v9 = vld [vmem:[#allocation2 + $0x1af] sm:$0xff] }
  0xb0   : > { %v1751_v8 = vadd.f32 %v9817_v7, %v1713_v49  ;;  %v1614_v3 = vadd.f32 %v1582_v31, %v1514_v32  ;;  %v1115_v48 = vadd.f32 %v1083_v51, %v1015_v33  ;;  %8412 = vmatmul.mubr.msk.f32.gmra.mrb[6].mxu1 %vm718_vm0, %v1814_v30  ;;  %v1383_v10 = vmul.f32 %v9854_v47, %v9136_v36  ;;  %v1648_v30 = vld [vmem:[#allocation2 + $0x1b1] sm:$0xff] }
  0xb1   : > { %v1414_v53 = vadd.f32 %v1382_v62, %v1314_v57  ;;  %v884_v1 = vmul.f32 %v9808_v19, %v9098_v11  ;;  %v984_v35 = vmul.f32 %v9810_v28, %v9101_v12  ;;  %v1084_v31 = vmul.f32 %v9824_v38, %v9104_v13  ;;  %3423 = vrot.lane.b32.xlu1 %v9405_v26, %s8798_s0  ;;  %v9910_v38 = vld [vmem:[#allocation2 + $0x1b0] sm:$0xff] }
  0xb2   : > { %v1783_v50 = vmax.f32 %v1751_v8, 0.0  ;;  %v1714_v2 = vadd.f32 %v1682_v27, %v1614_v3  ;;  %v1215_v16 = vadd.f32 %v1183_v56, %v1115_v48  ;;  %v1683_v34 = vmul.f32 %v9150_v45, %v1647_v52  ;;  %3421 = vrot.lane.b32.xlu0 %v9402_v42, %s8798_s0 }
  0xb3   : > { %v1515_v40 = vadd.f32 %v1483_v0, %v1414_v53  ;;  %v1016_v19 = vadd.f32 %v984_v35, %v884_v1  ;;  %v1184_v28 = vmul.f32 %v9875_v41, %v9125_v25  ;;  %v1484_v61 = vmul.f32 %v9139_v37, %v9903_v9  ;;  %v9925_v0 = vld [vmem:[#allocation2 + $0x1c7] sm:$0xff] }
  0xb4   : > { %v1815_v59 = vadd.f32 %v1783_v50, %v702_v4  ;;  %v1752_v27 = vadd.f32 %v9817_v7, %v1714_v2  ;;  %v1315_v63 = vadd.f32 %v1283_v6, %v1215_v16  ;;  %v1584_v54 = vmul.f32 %v9145_v39, %v9910_v38  ;;  %v14761_v4 = vld [vmem:[#allocation18_spill] sm:$0xff]  ;;  %v704_v50 = vld [vmem:[%s9241_s29 + $0xb0] sm:$0xff] }
  0xb5   : > { %v1615_v55 = vadd.f32 %v1583_v23, %v1515_v40  ;;  %v1116_v20 = vadd.f32 %v1084_v31, %v1016_v19  ;;  %v1284_v62 = vmul.f32 %v9877_v17, %v9128_v29  ;;  %v1384_v32 = vmul.f32 %v1647_v52, %v9136_v36  ;;  %3427 = vrot.lane.b32.xlu1 %v9421_v60, %s8798_s0  ;;  %v9937_v1 = vld [vmem:[#allocation2 + $0x1c8] sm:$0xff] }
  0xb6   : > { %8414 = vmatprep.mubr.msk.f32.mxu1 %vm718_vm0, %v1815_v59  ;;  %v1784_v51 = vmax.f32 %v1752_v27, 0.0  ;;  %v1415_v49 = vadd.f32 %v1383_v10, %v1315_v63  ;;  %v885_v33 = vmul.f32 %v9844_v5, %v9098_v11  ;;  %v985_v23 = vmul.f32 %v9846_v15, %v9101_v12  ;;  %3425 = vrot.lane.b32.xlu0 %v14761_v4, %s8798_s0  ;;  %v9939_v35 = vld [vmem:[#allocation2 + $0x1c9] sm:$0xff]  ;;  %s13404_s0 = scalar_lea.vmem %s14516_s20, %s9077_s27 }
  0xb7   : > { %v1715_v56 = vadd.f32 %v1683_v34, %v1615_v55  ;;  %v1216_v57 = vadd.f32 %v1184_v28, %v1116_v20  ;;  %v1085_v8 = vmul.f32 %v9854_v47, %v9104_v13  ;;  %v1684_v6 = vmul.f32 %v9150_v45, %v1648_v30 }
  0xb8   : > { %v1816_v3 = vadd.f32 %v1784_v51, %v703_v58  ;;  %v1516_v48 = vadd.f32 %v1484_v61, %v1415_v49  ;;  %v1485_v5 = vmul.f32 %v9139_v37, %v9925_v0  ;;  %v1017_v15 = vadd.f32 %v985_v23, %v885_v33  ;;  %v9954_v61 = vld [vmem:[#allocation2 + $0x1cf] sm:$0xff] }
  0xb9   : > { %v1753_v53 = vadd.f32 %v9817_v7, %v1715_v56  ;;  %v1316_v10 = vadd.f32 %v1284_v62, %v1216_v57  ;;  %v1185_v47 = vmul.f32 %v9903_v9, %v9125_v25  ;;  %v1585_v16 = vmul.f32 %v9145_v39, %v9937_v1  ;;  %v9961_v49 = vld [vmem:[#allocation2 + $0x1d0] sm:$0xff] }
  0xba   : > { %8415 = vmatmul.mubr.msk.f32.gmra.mrb[8].mxu1 %vm718_vm0, %v1816_v3  ;;  %v1616_v2 = vadd.f32 %v1584_v54, %v1516_v48  ;;  %v1685_v31 = vmul.f32 %v9150_v45, %v9939_v35  ;;  %v1285_v40 = vmul.f32 %v9910_v38, %v9128_v29  ;;  %v1117_v28 = vadd.f32 %v1085_v8, %v1017_v15  ;;  %v9966_v33 = vld [vmem:[#allocation2 + $0x1d1] sm:$0xff] }
  0xbb   : > { %v1785_v34 = vmax.f32 %v1753_v53, 0.0  ;;  %v1416_v19 = vadd.f32 %v1384_v32, %v1316_v10  ;;  %v886_v59 = vmul.f32 %v9875_v41, %v9098_v11  ;;  %v1385_v63 = vmul.f32 %v1648_v30, %v9136_v36 }
  0xbc   : > { %v1716_v27 = vadd.f32 %v1684_v6, %v1616_v2  ;;  %v986_v58 = vmul.f32 %v9877_v17, %v9101_v12  ;;  %v1086_v55 = vmul.f32 %v1647_v52, %v9104_v13  ;;  %v1217_v62 = vadd.f32 %v1185_v47, %v1117_v28  ;;  %v705_v52 = vld [vmem:[%s9241_s29 + $0xb8] sm:$0xff] }
  0xbd   : > { %v1817_v54 = vadd.f32 %v1785_v34, %v704_v50  ;;  %v1517_v20 = vadd.f32 %v1485_v5, %v1416_v19  ;;  %v1486_v51 = vmul.f32 %v9139_v37, %v9954_v61  ;;  %v1586_v32 = vmul.f32 %v9145_v39, %v9961_v49  ;;  %v9985_v34 = vld [vmem:[#allocation2 + $0x1e8] sm:$0xff] }
  0xbe   : > { %v1754_v41 = vadd.f32 %v9817_v7, %v1716_v27  ;;  %v1018_v56 = vadd.f32 %v986_v58, %v886_v59  ;;  %v1186_v17 = vmul.f32 %v9925_v0, %v9125_v25  ;;  %v1317_v23 = vadd.f32 %v1285_v40, %v1217_v62  ;;  %v9983_v40 = vld [vmem:[#allocation2 + $0x1e7] sm:$0xff] }
  0xbf   : > { %8417 = vmatprep.mubr.msk.f32.mxu1 %vm718_vm0, %v1817_v54  ;;  %v1617_v57 = vadd.f32 %v1585_v16, %v1517_v20  ;;  %v1686_v8 = vmul.f32 %v9150_v45, %v9966_v33  ;;  %v1286_v3 = vmul.f32 %v9937_v1, %v9128_v29  ;;  %v887_v5 = vmul.f32 %v9903_v9, %v9098_v11  ;;  %v706_v27 = vld [vmem:[%s9241_s29 + $0xc0] sm:$0xff] }
  0xc0   : > { %v1786_v48 = vmax.f32 %v1754_v41, 0.0  ;;  %v1118_v6 = vadd.f32 %v1086_v55, %v1018_v56  ;;  %v987_v53 = vmul.f32 %v9910_v38, %v9101_v12  ;;  %v1417_v15 = vadd.f32 %v1385_v63, %v1317_v23 }
  0xc1   : > { %v1717_v10 = vadd.f32 %v1685_v31, %v1617_v57  ;;  %v1386_v47 = vmul.f32 %v9939_v35, %v9136_v36  ;;  %v1087_v50 = vmul.f32 %v1648_v30, %v9104_v13  ;;  %v1187_v9 = vmul.f32 %v9954_v61, %v9125_v25  ;;  %v9994_v30 = vld [vmem:[#allocation2 + $0x1e9] sm:$0xff] }
  0xc2   : > { %v1818_v2 = vadd.f32 %v1786_v48, %v705_v52  ;;  %v1218_v16 = vadd.f32 %v1186_v17, %v1118_v6  ;;  %v1019_v19 = vadd.f32 %v987_v53, %v887_v5  ;;  %v1518_v31 = vadd.f32 %v1486_v51, %v1417_v15  ;;  %v10010_v48 = vld [vmem:[#allocation2 + $0x1ef] sm:$0xff] }
  0xc3   : > { %v1755_v38 = vadd.f32 %v9817_v7, %v1717_v10  ;;  %v1487_v28 = vmul.f32 %v9139_v37, %v9983_v40  ;;  %v1587_v59 = vmul.f32 %v9145_v39, %v9985_v34  ;;  %v1687_v58 = vmul.f32 %v9150_v45, %v9994_v30 }
  0xc4   : > { %8418 = vmatmul.mubr.msk.f32.gmra.mrb[10].mxu1 %vm718_vm0, %v1818_v2  ;;  %v1318_v63 = vadd.f32 %v1286_v3, %v1218_v16  ;;  %v1119_v55 = vadd.f32 %v1087_v50, %v1019_v19  ;;  %v1287_v54 = vmul.f32 %v9961_v49, %v9128_v29  ;;  %v1618_v62 = vadd.f32 %v1586_v32, %v1518_v31  ;;  %v10012_v32 = vld [vmem:[#allocation2 + $0x1f0] sm:$0xff]  ;;  %v707_v2 = vld [vmem:[%s9241_s29 + $0xc8] sm:$0xff] }
  0xc5   : > { %v1787_v20 = vmax.f32 %v1755_v38, 0.0  ;;  %v888_v51 = vmul.f32 %v9925_v0, %v9098_v11  ;;  %v988_v41 = vmul.f32 %v9937_v1, %v9101_v12  ;;  %v1387_v52 = vmul.f32 %v9966_v33, %v9136_v36  ;;  %v1553_v38 = vld [vmem:[#allocation2 + $0x208] sm:$0xff] }
  0xc6   : > { %v1418_v56 = vadd.f32 %v1386_v47, %v1318_v63  ;;  %v1219_v17 = vadd.f32 %v1187_v9, %v1119_v55  ;;  %v1088_v57 = vmul.f32 %v9939_v35, %v9104_v13  ;;  %v1718_v3 = vadd.f32 %v1686_v8, %v1618_v62  ;;  %v10020_v35 = vld [vmem:[#allocation2 + $0x1f1] sm:$0xff]  ;;  %v1453_v9 = vld [vmem:[#allocation2 + $0x207] sm:$0xff] }
  0xc7   : > { %v1819_v23 = vadd.f32 %v1787_v20, %v706_v27  ;;  %v1020_v6 = vadd.f32 %v988_v41, %v888_v51  ;;  %v1188_v0 = vmul.f32 %v9983_v40, %v9125_v25  ;;  %v1488_v53 = vmul.f32 %v9139_v37, %v10010_v48 }
  0xc8   : > { %v1519_v1 = vadd.f32 %v1487_v28, %v1418_v56  ;;  %v1319_v5 = vadd.f32 %v1287_v54, %v1219_v17  ;;  %v1588_v10 = vmul.f32 %v9145_v39, %v10012_v32  ;;  %v1756_v8 = vadd.f32 %v9817_v7, %v1718_v3 }
  0xc9   : > { %8420 = vmatprep.mubr.msk.f32.mxu1 %vm718_vm0, %v1819_v23  ;;  %v1688_v15 = vmul.f32 %v9150_v45, %v10020_v35  ;;  %v1120_v47 = vadd.f32 %v1088_v57, %v1020_v6  ;;  %v1288_v50 = vmul.f32 %v9985_v34, %v9128_v29  ;;  %v889_v31 = vmul.f32 %v9954_v61, %v9098_v11  ;;  %v1653_v57 = vld [vmem:[#allocation2 + $0x209] sm:$0xff] }
  0xca   : > { %v1619_v16 = vadd.f32 %v1587_v59, %v1519_v1  ;;  %v1419_v19 = vadd.f32 %v1387_v52, %v1319_v5  ;;  %v989_v28 = vmul.f32 %v9961_v49, %v9101_v12  ;;  %v1788_v27 = vmax.f32 %v1756_v8, 0.0 }
  0xcb   : > { %v1220_v63 = vadd.f32 %v1188_v0, %v1120_v47  ;;  %v1388_v55 = vmul.f32 %v9994_v30, %v9136_v36  ;;  %v1089_v54 = vmul.f32 %v9966_v33, %v9104_v13  ;;  %v1189_v51 = vmul.f32 %v10010_v48, %v9125_v25  ;;  %v1454_v0 = vld [vmem:[#allocation2 + $0x20f] sm:$0xff] }
  0xcc   : > { %v1719_v20 = vadd.f32 %v1687_v58, %v1619_v16  ;;  %v1520_v59 = vadd.f32 %v1488_v53, %v1419_v19  ;;  %v1021_v62 = vadd.f32 %v989_v28, %v889_v31  ;;  %v1820_v41 = vadd.f32 %v1788_v27, %v707_v2  ;;  %v708_v58 = vld [vmem:[%s9241_s29 + $0xd0] sm:$0xff] }
  0xcd   : > { %v1320_v61 = vadd.f32 %v1288_v50, %v1220_v63  ;;  %v1489_v56 = vmul.f32 %v9139_v37, %v1453_v9  ;;  %v1589_v49 = vmul.f32 %v9145_v39, %v1553_v38  ;;  %v1289_v33 = vmul.f32 %v10012_v32, %v9128_v29  ;;  %v1554_v47 = vld [vmem:[#allocation2 + $0x210] sm:$0xff] }
  0xce   : > { %v1757_v17 = vadd.f32 %v9817_v7, %v1719_v20  ;;  %v1620_v52 = vadd.f32 %v1588_v10, %v1520_v59  ;;  %v1121_v23 = vadd.f32 %v1089_v54, %v1021_v62  ;;  %8421 = vmatmul.mubr.msk.f32.gmra.mrb[12].mxu1 %vm718_vm0, %v1820_v41  ;;  %v1389_v6 = vmul.f32 %v10020_v35, %v9136_v36  ;;  %v1654_v54 = vld [vmem:[#allocation2 + $0x211] sm:$0xff]  ;;  %v1455_v59 = vld [vmem:[#allocation2 + $0x227] sm:$0xff] }
  0xcf   : > { %v1420_v3 = vadd.f32 %v1388_v55, %v1320_v61  ;;  %v890_v1 = vmul.f32 %v9983_v40, %v9098_v11  ;;  %v990_v5 = vmul.f32 %v9985_v34, %v9101_v12  ;;  %v1090_v50 = vmul.f32 %v9994_v30, %v9104_v13  ;;  %v709_v34 = vld [vmem:[%s9241_s29 + $0xd8] sm:$0xff] }
  0xd0   : > { %v1789_v53 = vmax.f32 %v1757_v17, 0.0  ;;  %v1720_v10 = vadd.f32 %v1688_v15, %v1620_v52  ;;  %v1221_v8 = vadd.f32 %v1189_v51, %v1121_v23  ;;  %v1689_v16 = vmul.f32 %v9150_v45, %v1653_v57 }
  0xd1   : > { %v1521_v2 = vadd.f32 %v1489_v56, %v1420_v3  ;;  %v1022_v19 = vadd.f32 %v990_v5, %v890_v1  ;;  %v1190_v31 = vmul.f32 %v1453_v9, %v9125_v25  ;;  %v1490_v63 = vmul.f32 %v9139_v37, %v1454_v0 }
  0xd2   : > { %v1821_v28 = vadd.f32 %v1789_v53, %v708_v58  ;;  %v1758_v27 = vadd.f32 %v9817_v7, %v1720_v10  ;;  %v1321_v40 = vadd.f32 %v1289_v33, %v1221_v8  ;;  %v1590_v15 = vmul.f32 %v9145_v39, %v1554_v47 }
  0xd3   : > { %v1621_v55 = vadd.f32 %v1589_v49, %v1521_v2  ;;  %v1122_v20 = vadd.f32 %v1090_v50, %v1022_v19  ;;  %v1290_v30 = vmul.f32 %v1553_v38, %v9128_v29  ;;  %v1390_v9 = vmul.f32 %v1653_v57, %v9136_v36  ;;  %v1555_v49 = vld [vmem:[#allocation2 + $0x228] sm:$0xff]  ;;  %v1556_v19 = vld [vmem:[#allocation2 + $0x230] sm:$0xff] }
  0xd4   : > { %8423 = vmatprep.mubr.msk.f32.mxu1 %vm718_vm0, %v1821_v28  ;;  %v1790_v62 = vmax.f32 %v1758_v27, 0.0  ;;  %v1421_v51 = vadd.f32 %v1389_v6, %v1321_v40  ;;  %v891_v41 = vmul.f32 %v10010_v48, %v9098_v11  ;;  %v991_v17 = vmul.f32 %v10012_v32, %v9101_v12  ;;  %v1655_v11 = vld [vmem:[#allocation2 + $0x229] sm:$0xff]  ;;  %v3494_v12 = vld [vmem:[%s14504_s8 + $0x4] sm:$0xf] }
  0xd5   : > { %v1721_v61 = vadd.f32 %v1689_v16, %v1621_v55  ;;  %v1222_v56 = vadd.f32 %v1190_v31, %v1122_v20  ;;  %v1091_v38 = vmul.f32 %v10020_v35, %v9104_v13  ;;  %v1690_v33 = vmul.f32 %v9150_v45, %v1654_v54  ;;  %v710_v13 = vld [vmem:[%s9241_s29 + $0xe0] sm:$0xff]  ;;  %8432 = vmatprep.subr.msk.mxu1 %vm3591_vm1, %v3494_v12  ;;  %v711_v31 = vld [vmem:[%s9241_s29 + $0xe8] sm:$0xff] }
  0xd6   : > { %v1822_v52 = vadd.f32 %v1790_v62, %v709_v34  ;;  %v1522_v23 = vadd.f32 %v1490_v63, %v1421_v51  ;;  %v1491_v58 = vmul.f32 %v9139_v37, %v1455_v59  ;;  %v1023_v48 = vadd.f32 %v991_v17, %v891_v41  ;;  %8433 = vmatpush3.msk.msra.mxu1 %vm3591_vm1, %v3494_v12  ;;  %v1656_v34 = vld [vmem:[#allocation2 + $0x231] sm:$0xff]  ;;  %v14764_v12 = vld [vmem:[#allocation5_spill] sm:$0xff] }
  0xd7   : > { %v1759_v57 = vadd.f32 %v9817_v7, %v1721_v61  ;;  %v1322_v3 = vadd.f32 %v1290_v30, %v1222_v56  ;;  %v1191_v6 = vmul.f32 %v1454_v0, %v9125_v25  ;;  %v10079_v35 = vmul.f32 %v9145_v39, %v1555_v49  ;;  %v10089_v0 = vld [vmem:[#allocation2 + $0x22f] sm:$0xff]  ;;  %v713_v49 = vld [vmem:[%s9241_s29 + $0xf8] sm:$0xff] }
  0xd8   : > { %8424 = vmatmul.mubr.msk.f32.gmra.mrb[14].mxu1 %vm718_vm0, %v1822_v52  ;;  %v1622_v32 = vadd.f32 %v1590_v15, %v1522_v23  ;;  %v10082_v1 = vmul.f32 %v1554_v47, %v9128_v29  ;;  %v1123_v10 = vadd.f32 %v1091_v38, %v1023_v48  ;;  %v10087_v25 = vmul.f32 %v9150_v45, %v1655_v11  ;;  %v712_v51 = vld [vmem:[%s9241_s29 + $0xf0] sm:$0xff] }
  0xd9   : > { %v1791_v5 = vmax.f32 %v1759_v57, 0.0  ;;  %v1422_v53 = vadd.f32 %v1390_v9, %v1322_v3  ;;  %v10099_v47 = vmul.f32 %v1654_v54, %v9136_v36  ;;  %v14762_v16 = vmov 0.0   ;;  %v10286_v57 = vld [vmem:[%s14501_s5] ss:$0 sm:$0xff] }
  0xda   : > { %v10084_v8 = vadd.f32 %v1690_v33, %v1622_v32  ;;  %v10096_v29 = vadd.f32 %v1191_v6, %v1123_v10  ;;  %2199 = vst.msk [vmem:[#allocation4 + $0x30] sm:$0xff] %vm2192_vm2, %v14762_v16  ;;  %2193 = vst.msk [vmem:[#allocation4] sm:$0xff] %vm2192_vm2, %v14762_v16  ;;  %v1492_v40 = vmul.f32 %v9139_v37, %v10089_v0  ;;  %v2188_v3 = vld [vmem:[%s14502_s6] sm:$0x7]  ;;  %v14765_v32 = vld [vmem:[#allocation6_spill] sm:$0xff] }
  0xdb   : > { %v10092_v50 = vadd.f32 %v1791_v5, %v710_v13  ;;  %v10094_v2 = vadd.f32 %v1491_v58, %v1422_v53  ;;  %2194 = vst.msk [vmem:[#allocation4 + $0x8] sm:$0xff] %vm2192_vm2, %v14762_v16  ;;  %2195 = vst.msk [vmem:[#allocation4 + $0x10] sm:$0xff] %vm2192_vm2, %v14762_v16  ;;  %v1592_v54 = vmul.f32 %v9145_v39, %v1556_v19  ;;  %v14767_v10 = vld [vmem:[#allocation7_spill] sm:$0xff] }
  0xdc   : > { %2196 = vst.msk [vmem:[#allocation4 + $0x18] sm:$0xff] %vm2192_vm2, %v14762_v16  ;;  %2197 = vst.msk [vmem:[#allocation4 + $0x20] sm:$0xff] %vm2192_vm2, %v14762_v16  ;;  %v1760_v36 = vadd.f32 %v9817_v7, %v10084_v8  ;;  %v1323_v27 = vadd.f32 %v10082_v1, %v10096_v29  ;;  %v1692_v62 = vmul.f32 %v9150_v45, %v1656_v34  ;;  %v2189_v29 = vld [vmem:[%s14502_s6 + $0x4] sm:$0x7] }
  0xdd   : > { %2198 = vst.msk [vmem:[#allocation4 + $0x28] sm:$0xff] %vm2192_vm2, %v14762_v16  ;;  %2200 = vst.msk [vmem:[#allocation4 + $0x38] sm:$0xff] %vm2192_vm2, %v14762_v16  ;;  %8426 = vmatprep.mubr.msk.f32.mxu1 %vm718_vm0, %v10092_v50  ;;  %v1623_v28 = vadd.f32 %v10079_v35, %v10094_v2  ;;  %v10295_v13 = vrot.slane %v2188_v3, %v14764_v12  ;;  %v10298_v35 = vrot.slane %v2188_v3, %v14765_v32 }
  0xde   : > { %2201 = vst.msk [vmem:[#allocation4 + $0x40] sm:$0xff] %vm2192_vm2, %v14762_v16  ;;  %2202 = vst.msk [vmem:[#allocation4 + $0x48] sm:$0xff] %vm2192_vm2, %v14762_v16  ;;  %v1792_v63 = vmax.f32 %v1760_v36, 0.0  ;;  %v1423_v15 = vadd.f32 %v10099_v47, %v1323_v27  ;;  %v10309_v8 = vrot.slane %v2188_v3, %v14767_v10  ;;  %v10330_v34 = vrot.slane %v2189_v29, %v14764_v12 }
  0xdf   : > { %2203 = vst.msk [vmem:[#allocation4 + $0x50] sm:$0xff] %vm2192_vm2, %v14762_v16  ;;  %2204 = vst.msk [vmem:[#allocation4 + $0x58] sm:$0xff] %vm2192_vm2, %v14762_v16  ;;  %v1723_v55 = vadd.f32 %v10087_v25, %v1623_v28 }
  0xe0   : > { %2205 = vst.msk [vmem:[#allocation4 + $0x60] sm:$0xff] %vm2192_vm2, %v14762_v16  ;;  %2206 = vst.msk [vmem:[#allocation4 + $0x68] sm:$0xff] %vm2192_vm2, %v14762_v16  ;;  %v1824_v20 = vadd.f32 %v1792_v63, %v711_v31  ;;  %v1524_v59 = vadd.f32 %v1492_v40, %v1423_v15 }
  0xe1   : > { %2207 = vst.msk [vmem:[#allocation4 + $0x70] sm:$0xff] %vm2192_vm2, %v14762_v16  ;;  %2208 = vst.msk [vmem:[#allocation4 + $0x78] sm:$0xff] %vm2192_vm2, %v14762_v16  ;;  %v1761_v30 = vadd.f32 %v9817_v7, %v1723_v55 }
  0xe2   : > { %2209 = vst.msk [vmem:[#allocation4 + $0x80] sm:$0xff] %vm2192_vm2, %v14762_v16  ;;  %2210 = vst.msk [vmem:[#allocation4 + $0x88] sm:$0xff] %vm2192_vm2, %v14762_v16  ;;  %8427 = vmatmul.mubr.msk.f32.gmra.mrb[16].mxu1 %vm718_vm0, %v1824_v20  ;;  %v1624_v37 = vadd.f32 %v1592_v54, %v1524_v59  ;;  %v2298_v38 = vld [vmem:[#allocation4 + $0x7] sm:$0xff]  ;;  %v2299_v23 = vld [vmem:[#allocation4 + $0xf] sm:$0xff] }
  0xe3   : > { %2211 = vst.msk [vmem:[#allocation4 + $0x90] sm:$0xff] %vm2192_vm2, %v14762_v16  ;;  %2212 = vst.msk [vmem:[#allocation4 + $0x98] sm:$0xff] %vm2192_vm2, %v14762_v16  ;;  %v1793_v9 = vmax.f32 %v1761_v30, 0.0  ;;  %v2398_v45 = vld [vmem:[#allocation4 + $0x8] sm:$0xff]  ;;  %v2399_v33 = vld [vmem:[#allocation4 + $0x10] sm:$0xff]  ;;  %v2334_v25 = vmul.f32 %v10295_v13, %v2298_v38  ;;  %v2335_v50 = vmul.f32 %v10295_v13, %v2299_v23  ;;  %v10335_v30 = vrot.slane %v2189_v29, %v14765_v32 }
  0xe4   : > { %2213 = vst.msk [vmem:[#allocation4 + $0xa0] sm:$0xff] %vm2192_vm2, %v14762_v16  ;;  %2214 = vst.msk [vmem:[#allocation4 + $0xa8] sm:$0xff] %vm2192_vm2, %v14762_v16  ;;  %v1724_v61 = vadd.f32 %v1692_v62, %v1624_v37  ;;  %v2498_v52 = vld [vmem:[#allocation4 + $0x9] sm:$0xff]  ;;  %v2499_v58 = vld [vmem:[#allocation4 + $0x11] sm:$0xff]  ;;  %v2434_v0 = vmul.f32 %v10298_v35, %v2398_v45  ;;  %v2435_v2 = vmul.f32 %v10298_v35, %v2399_v33 }
  0xe5   : > { %2215 = vst.msk [vmem:[#allocation4 + $0xb0] sm:$0xff] %vm2192_vm2, %v14762_v16  ;;  %2216 = vst.msk [vmem:[#allocation4 + $0xb8] sm:$0xff] %vm2192_vm2, %v14762_v16  ;;  %v1825_v41 = vadd.f32 %v1793_v9, %v712_v51  ;;  %v2534_v19 = vmul.f32 %v10309_v8, %v2498_v52  ;;  %v2535_v40 = vmul.f32 %v10309_v8, %v2499_v58  ;;  %v2190_v52 = vld [vmem:[%s14502_s6 + $0x8] sm:$0x7] }
  0xe6   : > { %2217 = vst.msk [vmem:[#allocation4 + $0xc0] sm:$0xff] %vm2192_vm2, %v14762_v16  ;;  %2218 = vst.msk [vmem:[#allocation4 + $0xc8] sm:$0xff] %vm2192_vm2, %v14762_v16  ;;  %v1762_v56 = vadd.f32 %v9817_v7, %v1724_v61  ;;  %v10279_v7 = vld [vmem:[%s14504_s8] sm:$0xf]  ;;  %v2466_v36 = vadd.f32 %v2434_v0, %v2334_v25  ;;  %v2467_v27 = vadd.f32 %v2435_v2, %v2335_v50 }
  0xe7   : > { %2219 = vst.msk [vmem:[#allocation4 + $0xd0] sm:$0xff] %vm2192_vm2, %v14762_v16  ;;  %2220 = vst.msk [vmem:[#allocation4 + $0xd8] sm:$0xff] %vm2192_vm2, %v14762_v16  ;;  %8429 = vmatprep.mubr.msk.f32.mxu1 %vm718_vm0, %v1825_v41  ;;  %8482 = vmatprep.subr.msk.mxu1 %vm3591_vm1, %v10279_v7 }
  0xe8   : > { %2221 = vst.msk [vmem:[#allocation4 + $0xe0] sm:$0xff] %vm2192_vm2, %v14762_v16  ;;  %2222 = vst.msk [vmem:[#allocation4 + $0xe8] sm:$0xff] %vm2192_vm2, %v14762_v16  ;;  %v1794_v17 = vmax.f32 %v1762_v56, 0.0  ;;  %v2566_v51 = vadd.f32 %v2534_v19, %v2466_v36  ;;  %v2567_v56 = vadd.f32 %v2535_v40, %v2467_v27 }
  0xe9   : > { %2223 = vst.msk [vmem:[#allocation4 + $0xf0] sm:$0xff] %vm2192_vm2, %v14762_v16  ;;  %2224 = vst.msk [vmem:[#allocation4 + $0xf8] sm:$0xff] %vm2192_vm2, %v14762_v16 }
  0xea   : > { %2225 = vst.msk [vmem:[#allocation4 + $0x100] sm:$0xff] %vm2192_vm2, %v14762_v16  ;;  %2226 = vst.msk [vmem:[#allocation4 + $0x108] sm:$0xff] %vm2192_vm2, %v14762_v16  ;;  %v1826_v39 = vadd.f32 %v1794_v17, %v713_v49 }
  0xeb   : > { %2227 = vst.msk [vmem:[#allocation4 + $0x110] sm:$0xff] %vm2192_vm2, %v14762_v16  ;;  %2228 = vst.msk [vmem:[#allocation4 + $0x118] sm:$0xff] %vm2192_vm2, %v14762_v16 }
  0xec   : > { %2229 = vst.msk [vmem:[#allocation4 + $0x120] sm:$0xff] %vm2192_vm2, %v14762_v16  ;;  %2230 = vst.msk [vmem:[#allocation4 + $0x128] sm:$0xff] %vm2192_vm2, %v14762_v16  ;;  %8430 = vmatmul.mubr.msk.f32.gmra.mrb[18].mxu1 %vm718_vm0, %v1826_v39  ;;  %v10356_v39 = vrot.slane %v2189_v29, %v14767_v10 }
  0xed   : > { %2231 = vst.msk [vmem:[#allocation4 + $0x130] sm:$0xff] %vm2192_vm2, %v14762_v16  ;;  %2232 = vst.msk [vmem:[#allocation4 + $0x138] sm:$0xff] %vm2192_vm2, %v14762_v16 }
  0xee   : > { %2233 = vst.msk [vmem:[#allocation4 + $0x140] sm:$0xff] %vm2192_vm2, %v14762_v16  ;;  %2234 = vst.msk [vmem:[#allocation4 + $0x148] sm:$0xff] %vm2192_vm2, %v14762_v16 }
  0xef   : > { %2235 = vst.msk [vmem:[#allocation4 + $0x150] sm:$0xff] %vm2192_vm2, %v14762_v16  ;;  %2236 = vst.msk [vmem:[#allocation4 + $0x158] sm:$0xff] %vm2192_vm2, %v14762_v16 }
  0xf0   : > { %2237 = vst.msk [vmem:[#allocation4 + $0x160] sm:$0xff] %vm2192_vm2, %v14762_v16  ;;  %2238 = vst.msk [vmem:[#allocation4 + $0x168] sm:$0xff] %vm2192_vm2, %v14762_v16 }
  0xf1   : > { %2239 = vst.msk [vmem:[#allocation4 + $0x170] sm:$0xff] %vm2192_vm2, %v14762_v16  ;;  %2240 = vst.msk [vmem:[#allocation4 + $0x178] sm:$0xff] %vm2192_vm2, %v14762_v16 }
  0xf2   : > { %2241 = vst.msk [vmem:[#allocation4 + $0x180] sm:$0xff] %vm2192_vm2, %v14762_v16  ;;  %2242 = vst.msk [vmem:[#allocation4 + $0x188] sm:$0xff] %vm2192_vm2, %v14762_v16 }
  0xf3   : > { %2243 = vst.msk [vmem:[#allocation4 + $0x190] sm:$0xff] %vm2192_vm2, %v14762_v16  ;;  %2244 = vst.msk [vmem:[#allocation4 + $0x198] sm:$0xff] %vm2192_vm2, %v14762_v16 }
  0xf4   : > { %2245 = vst.msk [vmem:[#allocation4 + $0x1a0] sm:$0xff] %vm2192_vm2, %v14762_v16  ;;  %2246 = vst.msk [vmem:[#allocation4 + $0x1a8] sm:$0xff] %vm2192_vm2, %v14762_v16 }
  0xf5   : > { %2247 = vst.msk [vmem:[#allocation4 + $0x1b0] sm:$0xff] %vm2192_vm2, %v14762_v16  ;;  %2248 = vst.msk [vmem:[#allocation4 + $0x1b8] sm:$0xff] %vm2192_vm2, %v14762_v16 }
  0xf6   : > { %2249 = vst.msk [vmem:[#allocation4 + $0x1c0] sm:$0xff] %vm2192_vm2, %v14762_v16  ;;  %2250 = vst.msk [vmem:[#allocation4 + $0x1c8] sm:$0xff] %vm2192_vm2, %v14762_v16 }
  0xf7   : > { %2251 = vst.msk [vmem:[#allocation4 + $0x1d0] sm:$0xff] %vm2192_vm2, %v14762_v16  ;;  %2252 = vst.msk [vmem:[#allocation4 + $0x1d8] sm:$0xff] %vm2192_vm2, %v14762_v16 }
  0xf8   : > { %2253 = vst.msk [vmem:[#allocation4 + $0x1e0] sm:$0xff] %vm2192_vm2, %v14762_v16  ;;  %2254 = vst.msk [vmem:[#allocation4 + $0x1e8] sm:$0xff] %vm2192_vm2, %v14762_v16 }
  0xf9   : > { %2255 = vst.msk [vmem:[#allocation4 + $0x1f0] sm:$0xff] %vm2192_vm2, %v14762_v16  ;;  %2256 = vst.msk [vmem:[#allocation4 + $0x1f8] sm:$0xff] %vm2192_vm2, %v14762_v16 }
  0xfa   : > { %2257 = vst.msk [vmem:[#allocation4 + $0x200] sm:$0xff] %vm2192_vm2, %v14762_v16  ;;  %2258 = vst.msk [vmem:[#allocation4 + $0x208] sm:$0xff] %vm2192_vm2, %v14762_v16 }
  0xfb   : > { %2259 = vst.msk [vmem:[#allocation4 + $0x210] sm:$0xff] %vm2192_vm2, %v14762_v16  ;;  %2260 = vst.msk [vmem:[#allocation4 + $0x218] sm:$0xff] %vm2192_vm2, %v14762_v16 }
  0xfc   : > { %2261 = vst.msk [vmem:[#allocation4 + $0x220] sm:$0xff] %vm2192_vm2, %v14762_v16  ;;  %2262 = vst.msk [vmem:[#allocation4 + $0x228] sm:$0xff] %vm2192_vm2, %v14762_v16 }
  0xfd   : > { %2263 = vst.msk [vmem:[#allocation4 + $0x230] sm:$0xff] %vm2192_vm2, %v14762_v16  ;;  %2264 = vst.msk [vmem:[#allocation4 + $0x238] sm:$0xff] %vm2192_vm2, %v14762_v16 }
  0xfe   : > { %6552 = vst.msk [vmem:[#allocation4] sm:$0xff] %vm2192_vm2, %v14762_v16  ;;  %6553 = vst.msk [vmem:[#allocation4 + $0x8] sm:$0xff] %vm2192_vm2, %v14762_v16 }
  0xff   : > { %6554 = vst.msk [vmem:[#allocation4 + $0x10] sm:$0xff] %vm2192_vm2, %v14762_v16  ;;  %6555 = vst.msk [vmem:[#allocation4 + $0x18] sm:$0xff] %vm2192_vm2, %v14762_v16 }
 0x104   : > { %v10706_v14 = vld [vmem:[#allocation4 + $0x22f] sm:$0xff] }
 0x105   : > { %v10708_v46 = vld [vmem:[#allocation4 + $0x230] sm:$0xff] }
 0x12a   : > { %v8386_v11 = vpop.f32.mrb[0].mxu0 }
 0x12b   : > { %v10292_v48 = vadd.f32 %v8386_v11, %v10286_v57  ;;  %v1997_v6 = vpop.f32.mrb[1].mxu0 }
 0x12c   : > { %v10301_v1 = vadd.f32 %v10286_v57, %v1997_v6 }
 0x12d   : > { %14763 = vst [vmem:[#allocation20_spill] sm:$0xff] %v10292_v48  ;;  %v14534_v5 = vmax.f32 %v10292_v48, 0.0 }
 0x12e   : > { %14766 = vst [vmem:[#allocation21_spill] sm:$0xff] %v10301_v1  ;;  %v14535_v53 = vmax.f32 %v10301_v1, 0.0 }
 0x12f   : > { %2267 = vst.msk [vmem:[#allocation4 + $0x30] sm:$0xff] %vm2192_vm2, %v14534_v5 }
 0x130   : > { %2266 = vst.msk [vmem:[#allocation4 + $0x28] sm:$0xff] %vm2192_vm2, %v14535_v53 }
 0x132   : > { %v8389_v47 = vpop.f32.mrb[2].mxu0 }
 0x133   : > { %v10323_v31 = vadd.f32 %v8389_v47, %v10286_v57  ;;  %v2007_v28 = vpop.f32.mrb[3].mxu0  ;;  %v10370_v47 = vrot.slane %v2190_v52, %v14764_v12 }
 0x134   : > { %v10327_v63 = vadd.f32 %v10286_v57, %v2007_v28 }
 0x135   : > { %14768 = vst [vmem:[#allocation22_spill] sm:$0xff] %v10323_v31  ;;  %v14531_v55 = vmax.f32 %v10323_v31, 0.0 }
 0x136   : > { %14769 = vst [vmem:[#allocation23_spill] sm:$0xff] %v10327_v63  ;;  %v2401_v15 = vld [vmem:[#allocation4 + $0x30] sm:$0xff]  ;;  %v14532_v20 = vmax.f32 %v10327_v63, 0.0 }
 0x137   : > { %v2501_v54 = vld [vmem:[#allocation4 + $0x31] sm:$0xff]  ;;  %v2300_v59 = vld [vmem:[#allocation4 + $0x27] sm:$0xff]  ;;  %2269 = vst.msk [vmem:[#allocation4 + $0x50] sm:$0xff] %vm2192_vm2, %v14531_v55  ;;  %v2437_v17 = vmul.f32 %v10298_v35, %v2401_v15  ;;  %v2735_v11 = vmul.f32 %v10335_v30, %v2401_v15 }
 0x138   : > { %v2400_v62 = vld [vmem:[#allocation4 + $0x28] sm:$0xff]  ;;  %6559 = vst.msk [vmem:[#allocation4 + $0x38] sm:$0xff] %vm2192_vm2, %v14762_v16  ;;  %v2336_v9 = vmul.f32 %v10295_v13, %v2300_v59  ;;  %6556 = vst.msk [vmem:[#allocation4 + $0x20] sm:$0xff] %vm2192_vm2, %v14762_v16  ;;  %v2634_v49 = vmul.f32 %v10330_v34, %v2300_v59  ;;  %v2537_v40 = vmul.f32 %v10309_v8, %v2501_v54 }
 0x139   : > { %v2436_v37 = vmul.f32 %v10298_v35, %v2400_v62  ;;  %v2500_v41 = vld [vmem:[#allocation4 + $0x29] sm:$0xff]  ;;  %2268 = vst.msk [vmem:[#allocation4 + $0x48] sm:$0xff] %vm2192_vm2, %v14532_v20  ;;  %v2734_v58 = vmul.f32 %v10335_v30, %v2400_v62  ;;  %v2835_v62 = vmul.f32 %v10356_v39, %v2501_v54 }
 0x13a   : > { %v2301_v61 = vld [vmem:[#allocation4 + $0x2f] sm:$0xff]  ;;  %v2666_v33 = vadd.f32 %v2634_v49, %v2566_v51  ;;  %v2536_v25 = vmul.f32 %v10309_v8, %v2500_v41  ;;  %v2834_v36 = vmul.f32 %v10356_v39, %v2500_v41 }
 0x13b   : > { %6557 = vst.msk [vmem:[#allocation4 + $0x28] sm:$0xff] %vm2192_vm2, %v14762_v16  ;;  %6558 = vst.msk [vmem:[#allocation4 + $0x30] sm:$0xff] %vm2192_vm2, %v14762_v16  ;;  %v2337_v38 = vmul.f32 %v10295_v13, %v2301_v61  ;;  %v2635_v45 = vmul.f32 %v10330_v34, %v2301_v61  ;;  %v2468_v23 = vadd.f32 %v2436_v37, %v2336_v9 }
 0x13c   : > { %v8392_v6 = vpop.f32.mrb[4].mxu0  ;;  %v2766_v0 = vadd.f32 %v2734_v58, %v2666_v33  ;;  %v10380_v9 = vrot.slane %v2190_v52, %v14765_v32 }
 0x13d   : > { %v2667_v3 = vadd.f32 %v2635_v45, %v2567_v56  ;;  %v2469_v50 = vadd.f32 %v2437_v17, %v2337_v38  ;;  %v10367_v2 = vadd.f32 %v8392_v6, %v10286_v57  ;;  %v2017_v29 = vpop.f32.mrb[5].mxu0  ;;  %v2568_v27 = vadd.f32 %v2536_v25, %v2468_v23 }
 0x13e   : > { %v10374_v28 = vadd.f32 %v10286_v57, %v2017_v29  ;;  %v2701_v15 = vld [vmem:[#allocation4 + $0x50] sm:$0xff]  ;;  %v2866_v41 = vadd.f32 %v2834_v36, %v2766_v0  ;;  %v10392_v23 = vrot.slane %v2190_v52, %v14767_v10 }
 0x13f   : > { %14770 = vst [vmem:[#allocation24_spill] sm:$0xff] %v10367_v2  ;;  %v2767_v19 = vadd.f32 %v2735_v11, %v2667_v3  ;;  %v2801_v59 = vld [vmem:[#allocation4 + $0x51] sm:$0xff]  ;;  %v14529_v51 = vmax.f32 %v10367_v2, 0.0  ;;  %v2569_v54 = vadd.f32 %v2537_v40, %v2469_v50  ;;  %v2737_v3 = vmul.f32 %v10335_v30, %v2701_v15 }
 0x140   : > { %14771 = vst [vmem:[#allocation25_spill] sm:$0xff] %v10374_v28  ;;  %v2600_v37 = vld [vmem:[#allocation4 + $0x47] sm:$0xff]  ;;  %6563 = vst.msk [vmem:[#allocation4 + $0x58] sm:$0xff] %vm2192_vm2, %v14762_v16  ;;  %v14530_v49 = vmax.f32 %v10374_v28, 0.0  ;;  %v2601_v38 = vld [vmem:[#allocation4 + $0x4f] sm:$0xff]  ;;  %v3036_v29 = vmul.f32 %v10380_v9, %v2701_v15 }
 0x141   : > { %v2700_v61 = vld [vmem:[#allocation4 + $0x48] sm:$0xff]  ;;  %v2636_v17 = vmul.f32 %v10330_v34, %v2600_v37  ;;  %6560 = vst.msk [vmem:[#allocation4 + $0x40] sm:$0xff] %vm2192_vm2, %v14762_v16  ;;  %v2867_v45 = vadd.f32 %v2835_v62, %v2767_v19  ;;  %2271 = vst.msk [vmem:[#allocation4 + $0x70] sm:$0xff] %vm2192_vm2, %v14529_v51  ;;  %v2935_v58 = vmul.f32 %v10370_v47, %v2600_v37 }
 0x142   : > { %v2800_v56 = vld [vmem:[#allocation4 + $0x49] sm:$0xff]  ;;  %v2736_v33 = vmul.f32 %v10335_v30, %v2700_v61  ;;  %2270 = vst.msk [vmem:[#allocation4 + $0x68] sm:$0xff] %vm2192_vm2, %v14530_v49  ;;  %v2637_v6 = vmul.f32 %v10330_v34, %v2601_v38  ;;  %v2936_v25 = vmul.f32 %v10370_v47, %v2601_v38  ;;  %v3035_v50 = vmul.f32 %v10380_v9, %v2700_v61 }
 0x143   : > { %6561 = vst.msk [vmem:[#allocation4 + $0x48] sm:$0xff] %vm2192_vm2, %v14762_v16  ;;  %6562 = vst.msk [vmem:[#allocation4 + $0x50] sm:$0xff] %vm2192_vm2, %v14762_v16  ;;  %v2668_v11 = vadd.f32 %v2636_v17, %v2568_v27  ;;  %v2836_v52 = vmul.f32 %v10356_v39, %v2800_v56  ;;  %v2967_v0 = vadd.f32 %v2935_v58, %v2866_v41  ;;  %v10417_v41 = vld [vmem:[%s14503_s7] ss:$0 sm:$0xff] }
 0x144   : > { %v2339_v36 = vmul.f32 %v2601_v38, %v10295_v13  ;;  %v2669_v40 = vadd.f32 %v2637_v6, %v2569_v54  ;;  %v2968_v62 = vadd.f32 %v2936_v25, %v2867_v45  ;;  %v2439_v51 = vmul.f32 %v2701_v15, %v10298_v35 }
 0x145   : > { %v2768_v19 = vadd.f32 %v2736_v33, %v2668_v11  ;;  %v3067_v49 = vadd.f32 %v3035_v50, %v2967_v0  ;;  %v3135_v27 = vmul.f32 %v10392_v23, %v2800_v56  ;;  %v2338_v17 = vmul.f32 %v2600_v37, %v10295_v13 }
 0x146   : > { %v2438_v55 = vmul.f32 %v2700_v61, %v10298_v35  ;;  %v2769_v58 = vadd.f32 %v2737_v3, %v2669_v40  ;;  %v3068_v20 = vadd.f32 %v3036_v29, %v2968_v62  ;;  %v3136_v38 = vmul.f32 %v10392_v23, %v2801_v59  ;;  %v3366_v61 = vpop.permute.xlu0 %3365 }
 0x147   : > { %v2471_v54 = vadd.f32 %v2439_v51, %v2339_v36  ;;  %v3167_v33 = vadd.f32 %v3135_v27, %v3067_v49  ;;  %v2837_v15 = vmul.f32 %v10356_v39, %v2801_v59  ;;  %v2868_v6 = vadd.f32 %v2836_v52, %v2768_v19 }
 0x148   : > { %v8395_v45 = vpop.f32.mrb[6].mxu0  ;;  %v10424_v25 = vld [vmem:[#allocation4 + $0x71] sm:$0xff]  ;;  %v3168_v0 = vadd.f32 %v3136_v38, %v3068_v20  ;;  %v2539_v50 = vmul.f32 %v2801_v59, %v10309_v8  ;;  %v2470_v52 = vadd.f32 %v2438_v55, %v2338_v17  ;;  %v2538_v38 = vmul.f32 %v2800_v56, %v10309_v8 }
 0x149   : > { %v10422_v11 = vadd.f32 %v8395_v45, %v10286_v57  ;;  %v2027_v37 = vpop.f32.mrb[7].mxu0  ;;  %v10427_v3 = vld [vmem:[#allocation4 + $0x67] sm:$0xff]  ;;  %v3205_v49 = vadd.f32 %v10417_v41, %v3167_v33  ;;  %v2869_v36 = vadd.f32 %v2837_v15, %v2769_v58  ;;  %v3002_v40 = vld [vmem:[#allocation4 + $0x70] sm:$0xff]  ;;  %6567 = vst.msk [vmem:[#allocation4 + $0x78] sm:$0xff] %vm2192_vm2, %v14762_v16  ;;  %v3138_v12 = vmul.f32 %v10392_v23, %v10424_v25 }
 0x14a   : > { %v10430_v29 = vadd.f32 %v10286_v57, %v2027_v37  ;;  %v10432_v51 = vld [vmem:[#allocation4 + $0x68] sm:$0xff]  ;;  %v2937_v20 = vmul.f32 %v10370_v47, %v10427_v3  ;;  %v2571_v27 = vadd.f32 %v2539_v50, %v2471_v54  ;;  %6564 = vst.msk [vmem:[#allocation4 + $0x60] sm:$0xff] %vm2192_vm2, %v14762_v16  ;;  %v3206_v55 = vadd.f32 %v10417_v41, %v3168_v0 }
 0x14b   : > { %14772 = vst [vmem:[#allocation26_spill] sm:$0xff] %v10422_v11  ;;  %v14533_v19 = vmax.f32 %v10422_v11, 0.0  ;;  %v10440_v59 = vld [vmem:[#allocation4 + $0x69] sm:$0xff]  ;;  %v3237_v45 = vmax.f32 %v3205_v49, 0.0  ;;  %v3037_v17 = vmul.f32 %v10380_v9, %v10432_v51  ;;  %v3038_v54 = vmul.f32 %v10380_v9, %v3002_v40 }
 0x14c   : > { %14773 = vst [vmem:[#allocation27_spill] sm:$0xff] %v10430_v29  ;;  %v2902_v62 = vld [vmem:[#allocation4 + $0x6f] sm:$0xff]  ;;  %v14539_v58 = vmax.f32 %v10430_v29, 0.0  ;;  %v2969_v56 = vadd.f32 %v2937_v20, %v2868_v6  ;;  %v3137_v37 = vmul.f32 %v10392_v23, %v10440_v59  ;;  %v3238_v49 = vmax.f32 %v3206_v55, 0.0  ;;  %v3368_v6 = vpop.permute.xlu0 %3367 }
 0x14d   : > { %v2938_v33 = vmul.f32 %v10370_v47, %v2902_v62  ;;  %6565 = vst.msk [vmem:[#allocation4 + $0x68] sm:$0xff] %vm2192_vm2, %v14762_v16  ;;  %6566 = vst.msk [vmem:[#allocation4 + $0x70] sm:$0xff] %vm2192_vm2, %v14762_v16  ;;  %v2639_v15 = vmul.f32 %v2902_v62, %v10330_v34  ;;  %v10464_v0 = vadd.f32 %v3366_v61, %v3237_v45 }
 0x14e   : > { %2273 = vst.msk [vmem:[#allocation4 + $0x90] sm:$0xff] %vm2192_vm2, %v14533_v19  ;;  %2272 = vst.msk [vmem:[#allocation4 + $0x88] sm:$0xff] %vm2192_vm2, %v14539_v58  ;;  %v3069_v19 = vadd.f32 %v3037_v17, %v2969_v56  ;;  %v2739_v5 = vmul.f32 %v3002_v40, %v10335_v30  ;;  %v2570_v53 = vadd.f32 %v2538_v38, %v2470_v52 }
 0x14f   : > { %14774 = vst [vmem:[#allocation28_spill] sm:$0xff] %v10464_v0  ;;  %v2970_v50 = vadd.f32 %v2938_v33, %v2869_v36  ;;  %v2671_v20 = vadd.f32 %v2639_v15, %v2571_v27  ;;  %v10469_v32 = vadd.f32 %v3368_v6, %v3238_v49  ;;  %v2638_v58 = vmul.f32 %v10330_v34, %v10427_v3  ;;  %v3370_v36 = vpop.permute.xlu1 %3369 }
 0x150   : > { %8434 = vmatprep.mubr.msk.f32.mxu1 %vm2192_vm2, %v10464_v0  ;;  %v3169_v45 = vadd.f32 %v3137_v37, %v3069_v19  ;;  %v2839_v27 = vmul.f32 %v10424_v25, %v10356_v39  ;;  %v2738_v52 = vmul.f32 %v10432_v51, %v10335_v30  ;;  %v2341_v37 = vmul.f32 %v2902_v62, %v10295_v13 }
 0x151   : > { %v3070_v10 = vadd.f32 %v3038_v54, %v2970_v50  ;;  %14775 = vst [vmem:[#allocation29_spill] sm:$0xff] %v10469_v32  ;;  %v8398_v61 = vpop.f32.mrb[8].mxu0  ;;  %v2771_v33 = vadd.f32 %v2739_v5, %v2671_v20  ;;  %v2670_v17 = vadd.f32 %v2638_v58, %v2570_v53  ;;  %v2838_v54 = vmul.f32 %v10440_v59, %v10356_v39 }
 0x152   : > { %v10480_v38 = vadd.f32 %v8398_v61, %v10286_v57  ;;  %v2037_v55 = vpop.f32.mrb[9].mxu0  ;;  %8435 = vmatmul.mubr.msk.f32.vlgmr.msra.gmra.mrb[20].mxu1 %vm2192_vm2, %v10469_v32  ;;  %v3207_v19 = vadd.f32 %v10417_v41, %v3169_v45  ;;  %v2441_v50 = vmul.f32 %v3002_v40, %v10298_v35 }
 0x153   : > { %v3170_v56 = vadd.f32 %v3138_v12, %v3070_v10  ;;  %v10487_v5 = vadd.f32 %v10286_v57, %v2037_v55  ;;  %v2871_v15 = vadd.f32 %v2839_v27, %v2771_v33  ;;  %8483 = vmatpush3.msk.msra.mxu1 %vm3591_vm1, %v10279_v7  ;;  %v2770_v58 = vadd.f32 %v2738_v52, %v2670_v17  ;;  %v3372_v55 = vpop.permute.xlu1 %3371 }
 0x154   : > { %14776 = vst [vmem:[#allocation30_spill] sm:$0xff] %v10480_v38  ;;  %v14540_v12 = vmax.f32 %v10480_v38, 0.0  ;;  %v3239_v20 = vmax.f32 %v3207_v19, 0.0 }
 0x155   : > { %14777 = vst [vmem:[#allocation31_spill] sm:$0xff] %v10487_v5  ;;  %v3208_v53 = vadd.f32 %v10417_v41, %v3170_v56  ;;  %v10495_v10 = vld [vmem:[#allocation4 + $0x91] sm:$0xff]  ;;  %v10498_v49 = vld [vmem:[#allocation4 + $0x87] sm:$0xff]  ;;  %v14541_v6 = vmax.f32 %v10487_v5, 0.0  ;;  %v2870_v62 = vadd.f32 %v2838_v54, %v2770_v58 }
 0x156   : > { %v10501_v61 = vld [vmem:[#allocation4 + $0x8f] sm:$0xff]  ;;  %6571 = vst.msk [vmem:[#allocation4 + $0x98] sm:$0xff] %vm2192_vm2, %v14762_v16  ;;  %2275 = vst.msk [vmem:[#allocation4 + $0xb0] sm:$0xff] %vm2192_vm2, %v14540_v12  ;;  %v10521_v52 = vadd.f32 %v3370_v36, %v3239_v20  ;;  %v2939_v56 = vmul.f32 %v10370_v47, %v10498_v49  ;;  %v2541_v20 = vmul.f32 %v10424_v25, %v10309_v8 }
 0x157   : > { %v10503_v45 = vld [vmem:[#allocation4 + $0x90] sm:$0xff]  ;;  %v3240_v7 = vmax.f32 %v3208_v53, 0.0  ;;  %v2940_v40 = vmul.f32 %v10370_v47, %v10501_v61  ;;  %v10512_v33 = vld [vmem:[#allocation4 + $0x88] sm:$0xff]  ;;  %6568 = vst.msk [vmem:[#allocation4 + $0x80] sm:$0xff] %vm2192_vm2, %v14762_v16  ;;  %2274 = vst.msk [vmem:[#allocation4 + $0xa8] sm:$0xff] %vm2192_vm2, %v14541_v6  ;;  %v2473_v53 = vadd.f32 %v2441_v50, %v2341_v37  ;;  %v2641_v12 = vmul.f32 %v10501_v61, %v10330_v34 }
 0x158   : > { %v10514_v27 = vld [vmem:[#allocation4 + $0x89] sm:$0xff]  ;;  %14778 = vst [vmem:[#allocation32_spill] sm:$0xff] %v10521_v52  ;;  %v3040_v19 = vmul.f32 %v10380_v9, %v10503_v45  ;;  %v2971_v58 = vadd.f32 %v2939_v56, %v2870_v62  ;;  %v3039_v36 = vmul.f32 %v10380_v9, %v10512_v33  ;;  %8437 = vmatprep.mubr.msk.f32.mxu1 %vm2192_vm2, %v10521_v52 }
 0x159   : > { %6569 = vst.msk [vmem:[#allocation4 + $0x88] sm:$0xff] %vm2192_vm2, %v14762_v16  ;;  %6570 = vst.msk [vmem:[#allocation4 + $0x90] sm:$0xff] %vm2192_vm2, %v14762_v16  ;;  %v10529_v17 = vadd.f32 %v3372_v55, %v3240_v7  ;;  %v2972_v54 = vadd.f32 %v2940_v40, %v2871_v15  ;;  %v3140_v15 = vmul.f32 %v10392_v23, %v10495_v10 }
 0x15a   : > { %v3139_v37 = vmul.f32 %v10392_v23, %v10514_v27  ;;  %v3071_v40 = vadd.f32 %v3039_v36, %v2971_v58  ;;  %v2573_v62 = vadd.f32 %v2541_v20, %v2473_v53  ;;  %v2340_v25 = vmul.f32 %v10295_v13, %v10427_v3 }
 0x15b   : > { %14779 = vst [vmem:[#allocation33_spill] sm:$0xff] %v10529_v17  ;;  %v3072_v7 = vadd.f32 %v3040_v19, %v2972_v54  ;;  %8438 = vmatmul.mubr.msk.f32.gmra.mrb[22].mxu1 %vm2192_vm2, %v10529_v17  ;;  %v8404_v50 = vpop.f32.mrb[0].mxu1  ;;  %v2440_v55 = vmul.f32 %v10432_v51, %v10298_v35  ;;  %v2741_v6 = vmul.f32 %v10503_v45, %v10335_v30 }
 0x15c   : > { %v10552_v56 = vadd.f32 %v8404_v50, %v10286_v57  ;;  %v2057_v54 = vpop.f32.mrb[1].mxu1  ;;  %v3171_v17 = vadd.f32 %v3139_v37, %v3071_v40  ;;  %v2673_v58 = vadd.f32 %v2641_v12, %v2573_v62  ;;  %v2841_v62 = vmul.f32 %v10495_v10, %v10356_v39 }
 0x15d   : > { %v3172_v19 = vadd.f32 %v3140_v15, %v3072_v7  ;;  %v10557_v52 = vadd.f32 %v10286_v57, %v2057_v54  ;;  %v10559_v53 = vld [vmem:[#allocation4 + $0xb1] sm:$0xff]  ;;  %v2472_v36 = vadd.f32 %v2440_v55, %v2340_v25  ;;  %v2540_v7 = vmul.f32 %v10440_v59, %v10309_v8 }
 0x15e   : > { %14780 = vst [vmem:[#allocation34_spill] sm:$0xff] %v10552_v56  ;;  %v10561_v3 = vld [vmem:[#allocation4 + $0xa7] sm:$0xff]  ;;  %v14546_v51 = vmax.f32 %v10552_v56, 0.0  ;;  %v10565_v50 = vld [vmem:[#allocation4 + $0xaf] sm:$0xff]  ;;  %v2640_v15 = vmul.f32 %v10330_v34, %v10498_v49  ;;  %6575 = vst.msk [vmem:[#allocation4 + $0xb8] sm:$0xff] %vm2192_vm2, %v14762_v16  ;;  %v3209_v37 = vadd.f32 %v10417_v41, %v3171_v17  ;;  %v2773_v40 = vadd.f32 %v2741_v6, %v2673_v58  ;;  %v3376_v6 = vpop.permute.xlu1 %3375 }
 0x15f   : > { %14781 = vst [vmem:[#allocation35_spill] sm:$0xff] %v10557_v52  ;;  %v3210_v20 = vadd.f32 %v10417_v41, %v3172_v19  ;;  %v14548_v12 = vmax.f32 %v10557_v52, 0.0  ;;  %v10577_v25 = vld [vmem:[#allocation4 + $0xb0] sm:$0xff]  ;;  %v10579_v55 = vld [vmem:[#allocation4 + $0xa8] sm:$0xff]  ;;  %6572 = vst.msk [vmem:[#allocation4 + $0xa0] sm:$0xff] %vm2192_vm2, %v14762_v16  ;;  %v2572_v19 = vadd.f32 %v2540_v7, %v2472_v36  ;;  %v2942_v32 = vmul.f32 %v10370_v47, %v10565_v50 }
 0x160   : > { %v10581_v54 = vld [vmem:[#allocation4 + $0xa9] sm:$0xff]  ;;  %2279 = vst.msk [vmem:[#allocation4 + $0xf0] sm:$0xff] %vm2192_vm2, %v14546_v51  ;;  %v3241_v17 = vmax.f32 %v3209_v37, 0.0  ;;  %v2873_v58 = vadd.f32 %v2841_v62, %v2773_v40  ;;  %v2740_v7 = vmul.f32 %v10512_v33, %v10335_v30  ;;  %v3042_v4 = vmul.f32 %v10380_v9, %v10577_v25 }
 0x161   : > { %v3242_v59 = vmax.f32 %v3210_v20, 0.0  ;;  %6573 = vst.msk [vmem:[#allocation4 + $0xa8] sm:$0xff] %vm2192_vm2, %v14762_v16  ;;  %6574 = vst.msk [vmem:[#allocation4 + $0xb0] sm:$0xff] %vm2192_vm2, %v14762_v16  ;;  %v3374_v20 = vpop.permute.xlu0 %3373  ;;  %v2672_v36 = vadd.f32 %v2640_v15, %v2572_v19  ;;  %v2343_v37 = vmul.f32 %v10501_v61, %v10295_v13  ;;  %v2840_v62 = vmul.f32 %v10514_v27, %v10356_v39 }
 0x162   : > { %2278 = vst.msk [vmem:[#allocation4 + $0xe8] sm:$0xff] %vm2192_vm2, %v14548_v12  ;;  %v10601_v51 = vadd.f32 %v3374_v20, %v3241_v17  ;;  %v2974_v60 = vadd.f32 %v2942_v32, %v2873_v58  ;;  %v3142_v19 = vmul.f32 %v10392_v23, %v10559_v53  ;;  %v2941_v32 = vmul.f32 %v10370_v47, %v10561_v3 }
 0x163   : > { %v10597_v0 = vadd.f32 %v3376_v6, %v3242_v59  ;;  %v2772_v40 = vadd.f32 %v2740_v7, %v2672_v36  ;;  %v2443_v59 = vmul.f32 %v10503_v45, %v10298_v35  ;;  %v2543_v6 = vmul.f32 %v10495_v10, %v10309_v8 }
 0x164   : > { %14783 = vst [vmem:[#allocation37_spill] sm:$0xff] %v10601_v51  ;;  %v3074_v15 = vadd.f32 %v3042_v4, %v2974_v60  ;;  %8440 = vmatprep.mubr.msk.f32.mxu1 %vm2192_vm2, %v10601_v51  ;;  %v2643_v20 = vmul.f32 %v10565_v50, %v10330_v34  ;;  %v2342_v60 = vmul.f32 %v10295_v13, %v10498_v49 }
 0x165   : > { %14782 = vst [vmem:[#allocation36_spill] sm:$0xff] %v10597_v0  ;;  %v8401_v61 = vpop.f32.mrb[10].mxu0  ;;  %v2872_v17 = vadd.f32 %v2840_v62, %v2772_v40  ;;  %v2475_v58 = vadd.f32 %v2443_v59, %v2343_v37  ;;  %8441 = vmatmul.mubr.msk.f32.gmra.mrb[24].mxu1 %vm2192_vm2, %v10597_v0  ;;  %v3041_v36 = vmul.f32 %v10380_v9, %v10579_v55 }
 0x166   : > { %v10626_v4 = vadd.f32 %v8401_v61, %v10286_v57  ;;  %v2047_v45 = vpop.f32.mrb[11].mxu0  ;;  %v3174_v10 = vadd.f32 %v3142_v19, %v3074_v15  ;;  %v2442_v7 = vmul.f32 %v10512_v33, %v10298_v35  ;;  %v2542_v61 = vmul.f32 %v10514_v27, %v10309_v8 }
 0x167   : > { %v10632_v37 = vld [vmem:[#allocation4 + $0xf1] sm:$0xff]  ;;  %v10637_v49 = vadd.f32 %v10286_v57, %v2047_v45  ;;  %v2973_v62 = vadd.f32 %v2941_v32, %v2872_v17  ;;  %v2575_v59 = vadd.f32 %v2543_v6, %v2475_v58  ;;  %v2642_v45 = vmul.f32 %v10330_v34, %v10561_v3 }
 0x168   : > { %14784 = vst [vmem:[#allocation38_spill] sm:$0xff] %v10626_v4  ;;  %v10643_v15 = vld [vmem:[#allocation4 + $0xf0] sm:$0xff]  ;;  %6583 = vst.msk [vmem:[#allocation4 + $0xf8] sm:$0xff] %vm2192_vm2, %v14762_v16  ;;  %v14553_v33 = vmax.f32 %v10626_v4, 0.0  ;;  %v3212_v19 = vadd.f32 %v10417_v41, %v3174_v10  ;;  %v2474_v51 = vadd.f32 %v2442_v7, %v2342_v60  ;;  %v3141_v0 = vmul.f32 %v10392_v23, %v10581_v54 }
 0x169   : > { %v10634_v40 = vld [vmem:[#allocation4 + $0xe7] sm:$0xff]  ;;  %14785 = vst [vmem:[#allocation39_spill] sm:$0xff] %v10637_v49  ;;  %v10641_v12 = vld [vmem:[#allocation4 + $0xef] sm:$0xff]  ;;  %v14556_v17 = vmax.f32 %v10637_v49, 0.0  ;;  %v3073_v58 = vadd.f32 %v3041_v36, %v2973_v62  ;;  %v2675_v26 = vadd.f32 %v2643_v20, %v2575_v59  ;;  %v2743_v60 = vmul.f32 %v10577_v25, %v10335_v30 }
 0x16a   : > { %v10651_v32 = vld [vmem:[#allocation4 + $0xe8] sm:$0xff]  ;;  %2277 = vst.msk [vmem:[#allocation4 + $0xd0] sm:$0xff] %vm2192_vm2, %v14553_v33  ;;  %v2574_v10 = vadd.f32 %v2542_v61, %v2474_v51  ;;  %v2345_v20 = vmul.f32 %v10565_v50, %v10295_v13  ;;  %v2445_v7 = vmul.f32 %v10577_v25, %v10298_v35  ;;  %v3244_v62 = vmax.f32 %v3212_v19, 0.0  ;;  %v3380_v19 = vpop.permute.xlu1 %3379 }
 0x16b   : > { %v10653_v6 = vld [vmem:[#allocation4 + $0xe9] sm:$0xff]  ;;  %2276 = vst.msk [vmem:[#allocation4 + $0xc8] sm:$0xff] %vm2192_vm2, %v14556_v17  ;;  %v3173_v36 = vadd.f32 %v3141_v0, %v3073_v58  ;;  %v2775_v59 = vadd.f32 %v2743_v60, %v2675_v26  ;;  %v2742_v33 = vmul.f32 %v10579_v55, %v10335_v30  ;;  %v2843_v50 = vmul.f32 %v10559_v53, %v10356_v39 }
 0x16c   : > { %v10655_v27 = vld [vmem:[#allocation4 + $0xe7] sm:$0xff]  ;;  %6582 = vst.msk [vmem:[#allocation4 + $0xf0] sm:$0xff] %vm2192_vm2, %v14762_v16  ;;  %v2674_v42 = vadd.f32 %v2642_v45, %v2574_v10  ;;  %v2477_v24 = vadd.f32 %v2445_v7, %v2345_v20  ;;  %v2344_v0 = vmul.f32 %v10295_v13, %v10561_v3  ;;  %v2842_v60 = vmul.f32 %v10581_v54, %v10356_v39 }
 0x16d   : > { %6580 = vst.msk [vmem:[#allocation4 + $0xe0] sm:$0xff] %vm2192_vm2, %v14762_v16  ;;  %6581 = vst.msk [vmem:[#allocation4 + $0xe8] sm:$0xff] %vm2192_vm2, %v14762_v16  ;;  %v3211_v21 = vadd.f32 %v10417_v41, %v3173_v36  ;;  %v10685_v58 = vld [vmem:[#allocation4 + $0x227] sm:$0xff]  ;;  %v2444_v10 = vmul.f32 %v10579_v55, %v10298_v35  ;;  %v10699_v3 = vadd.f32 %v3380_v19, %v3244_v62 }
 0x16e   : > { %v2774_v61 = vadd.f32 %v2742_v33, %v2674_v42  ;;  %14786 = vst [vmem:[#allocation40_spill] sm:$0xff] %v10685_v58  ;;  %6620 = vst.msk [vmem:[#allocation4 + $0x220] sm:$0xff] %vm2192_vm2, %v14762_v16  ;;  %v3378_v33 = vpop.permute.xlu0 %3377  ;;  %v2875_v20 = vadd.f32 %v2843_v50, %v2775_v59  ;;  %v2545_v36 = vmul.f32 %v10559_v53, %v10309_v8 }
 0x16f   : > { %v8407_v51 = vpop.f32.mrb[2].mxu1  ;;  %v3243_v45 = vmax.f32 %v3211_v21, 0.0  ;;  %14789 = vst [vmem:[#allocation43_spill] sm:$0xff] %v10699_v3  ;;  %v2476_v22 = vadd.f32 %v2444_v10, %v2344_v0 }
 0x170   : > { %v10688_v25 = vadd.f32 %v8407_v51, %v10286_v57  ;;  %v2067_v26 = vpop.f32.mrb[3].mxu1  ;;  %v2874_v55 = vadd.f32 %v2842_v60, %v2774_v61  ;;  %v2577_v19 = vadd.f32 %v2545_v36, %v2477_v24  ;;  %v10721_v61 = vmul.f32 %v10380_v9, %v10643_v15  ;;  %v10742_v36 = vld [vmem:[#allocation4 + $0x228] sm:$0xff] }
 0x171   : > { %v10697_v42 = vadd.f32 %v10286_v57, %v2067_v26  ;;  %v10704_v7 = vadd.f32 %v3378_v33, %v3243_v45  ;;  %v3008_v51 = vld [vmem:[#allocation4 + $0xd0] sm:$0xff]  ;;  %v2946_v45 = vmul.f32 %v10370_v47, %v10641_v12  ;;  %v2544_v33 = vmul.f32 %v10581_v54, %v10309_v8  ;;  %14791 = vst [vmem:[#allocation45_spill] sm:$0xff] %v10742_v36 }
 0x172   : > { %14787 = vst [vmem:[#allocation41_spill] sm:$0xff] %v10688_v25  ;;  %v14560_v21 = vmax.f32 %v10688_v25, 0.0  ;;  %v3108_v17 = vld [vmem:[#allocation4 + $0xd1] sm:$0xff]  ;;  %v10712_v62 = vld [vmem:[#allocation4 + $0xc7] sm:$0xff]  ;;  %v3044_v24 = vmul.f32 %v10380_v9, %v3008_v51  ;;  %v2745_v43 = vmul.f32 %v3008_v51, %v10335_v30 }
 0x173   : > { %14788 = vst [vmem:[#allocation42_spill] sm:$0xff] %v10697_v42  ;;  %14790 = vst [vmem:[#allocation44_spill] sm:$0xff] %v10704_v7  ;;  %v10710_v26 = vld [vmem:[#allocation4 + $0x231] sm:$0xff]  ;;  %v14564_v59 = vmax.f32 %v10697_v42, 0.0  ;;  %v10715_v53 = vld [vmem:[#allocation4 + $0xc8] sm:$0xff]  ;;  %v2943_v60 = vmul.f32 %v10370_v47, %v10712_v62  ;;  %8443 = vmatprep.mubr.msk.f32.mxu1 %vm2192_vm2, %v10704_v7  ;;  %v3144_v18 = vmul.f32 %v10392_v23, %v3108_v17 }
 0x174   : > { %v2908_v50 = vld [vmem:[#allocation4 + $0xcf] sm:$0xff]  ;;  %6579 = vst.msk [vmem:[#allocation4 + $0xd8] sm:$0xff] %vm2192_vm2, %v14762_v16  ;;  %6623 = vst.msk [vmem:[#allocation4 + $0x238] sm:$0xff] %vm2192_vm2, %v14762_v16  ;;  %v3043_v44 = vmul.f32 %v10380_v9, %v10715_v53  ;;  %8444 = vmatmul.mubr.msk.f32.gmra.mrb[26].mxu1 %vm2192_vm2, %v10699_v3  ;;  %v2576_v42 = vadd.f32 %v2544_v33, %v2476_v22  ;;  %v2845_v3 = vmul.f32 %v3108_v17, %v10356_v39 }
 0x175   : > { %2281 = vst.msk [vmem:[#allocation4 + $0x110] sm:$0xff] %vm2192_vm2, %v14560_v21  ;;  %v2944_v0 = vmul.f32 %v10370_v47, %v2908_v50  ;;  %v10734_v10 = vld [vmem:[#allocation4 + $0xc9] sm:$0xff]  ;;  %6576 = vst.msk [vmem:[#allocation4 + $0xc0] sm:$0xff] %vm2192_vm2, %v14762_v16  ;;  %v2645_v54 = vmul.f32 %v2908_v50, %v10330_v34  ;;  %v2975_v7 = vadd.f32 %v2943_v60, %v2874_v55 }
 0x176   : > { %v10744_v21 = vld [vmem:[#allocation4 + $0x229] sm:$0xff]  ;;  %2280 = vst.msk [vmem:[#allocation4 + $0x108] sm:$0xff] %vm2192_vm2, %v14564_v59  ;;  %6577 = vst.msk [vmem:[#allocation4 + $0xc8] sm:$0xff] %vm2192_vm2, %v14762_v16  ;;  %v3143_v25 = vmul.f32 %v10392_v23, %v10734_v10  ;;  %v2644_v52 = vmul.f32 %v10330_v34, %v10712_v62  ;;  %v2744_v4 = vmul.f32 %v10715_v53, %v10335_v30 }
 0x177   : > { %14792 = vst [vmem:[#allocation46_spill] sm:$0xff] %v10744_v21  ;;  %6578 = vst.msk [vmem:[#allocation4 + $0xd0] sm:$0xff] %vm2192_vm2, %v14762_v16  ;;  %v2976_v59 = vadd.f32 %v2944_v0, %v2875_v20  ;;  %v2677_v56 = vadd.f32 %v2645_v54, %v2577_v19  ;;  %v3075_v38 = vadd.f32 %v3043_v44, %v2975_v7 }
 0x178   : > { %6621 = vst.msk [vmem:[#allocation4 + $0x228] sm:$0xff] %vm2192_vm2, %v14762_v16  ;;  %6622 = vst.msk [vmem:[#allocation4 + $0x230] sm:$0xff] %vm2192_vm2, %v14762_v16  ;;  %v2844_v5 = vmul.f32 %v10734_v10, %v10356_v39  ;;  %v2347_v20 = vmul.f32 %v2908_v50, %v10295_v13  ;;  %v2676_v60 = vadd.f32 %v2644_v52, %v2576_v42 }
 0x179   : > { %v3076_v49 = vadd.f32 %v3044_v24, %v2976_v59  ;;  %v8410_v55 = vpop.f32.mrb[4].mxu1  ;;  %v2777_v0 = vadd.f32 %v2745_v43, %v2677_v56  ;;  %v2447_v22 = vmul.f32 %v3008_v51, %v10298_v35  ;;  %v2547_v19 = vmul.f32 %v3108_v17, %v10309_v8 }
 0x17a   : > { %v10777_v33 = vadd.f32 %v8410_v55, %v10286_v57  ;;  %v2077_v54 = vpop.f32.mrb[5].mxu1  ;;  %v3175_v29 = vadd.f32 %v3143_v25, %v3075_v38  ;;  %v2647_v44 = vmul.f32 %v10641_v12, %v10330_v34  ;;  %v2776_v50 = vadd.f32 %v2744_v4, %v2676_v60  ;;  %v3384_v60 = vpop.permute.xlu1 %3383 }
 0x17b   : > { %v3176_v11 = vadd.f32 %v3144_v18, %v3076_v49  ;;  %v10782_v7 = vadd.f32 %v10286_v57, %v2077_v54  ;;  %v2877_v59 = vadd.f32 %v2845_v3, %v2777_v0  ;;  %v2479_v43 = vadd.f32 %v2447_v22, %v2347_v20  ;;  %v3382_v22 = vpop.permute.xlu0 %3381 }
 0x17c   : > { %14793 = vst [vmem:[#allocation47_spill] sm:$0xff] %v10777_v33  ;;  %v10784_v52 = vld [vmem:[#allocation4 + $0x111] sm:$0xff]  ;;  %v14577_v17 = vmax.f32 %v10777_v33, 0.0  ;;  %v3213_v18 = vadd.f32 %v10417_v41, %v3175_v29  ;;  %v2945_v38 = vmul.f32 %v10370_v47, %v10634_v40  ;;  %v2876_v51 = vadd.f32 %v2844_v5, %v2776_v50 }
 0x17d   : > { %14794 = vst [vmem:[#allocation48_spill] sm:$0xff] %v10782_v7  ;;  %v10786_v56 = vld [vmem:[#allocation4 + $0x107] sm:$0xff]  ;;  %v3214_v42 = vadd.f32 %v10417_v41, %v3176_v11  ;;  %v10793_v49 = vld [vmem:[#allocation4 + $0x110] sm:$0xff]  ;;  %6587 = vst.msk [vmem:[#allocation4 + $0x118] sm:$0xff] %vm2192_vm2, %v14762_v16  ;;  %v14580_v4 = vmax.f32 %v10782_v7, 0.0  ;;  %v2978_v3 = vadd.f32 %v2946_v45, %v2877_v59  ;;  %v2579_v24 = vadd.f32 %v2547_v19, %v2479_v43 }
 0x17e   : > { %v10795_v25 = vld [vmem:[#allocation4 + $0x107] sm:$0xff]  ;;  %v10800_v20 = vld [vmem:[#allocation4 + $0x10f] sm:$0xff]  ;;  %2283 = vst.msk [vmem:[#allocation4 + $0x130] sm:$0xff] %vm2192_vm2, %v14577_v17  ;;  %v3245_v0 = vmax.f32 %v3213_v18, 0.0  ;;  %v3146_v45 = vmul.f32 %v10392_v23, %v10632_v37  ;;  %v3045_v5 = vmul.f32 %v10380_v9, %v10651_v32  ;;  %v2977_v54 = vadd.f32 %v2945_v38, %v2876_v51 }
 0x17f   : > { %v10802_v11 = vld [vmem:[#allocation4 + $0x108] sm:$0xff]  ;;  %6584 = vst.msk [vmem:[#allocation4 + $0x100] sm:$0xff] %vm2192_vm2, %v14762_v16  ;;  %v3246_v55 = vmax.f32 %v3214_v42, 0.0  ;;  %2282 = vst.msk [vmem:[#allocation4 + $0x128] sm:$0xff] %vm2192_vm2, %v14580_v4  ;;  %v3078_v19 = vadd.f32 %v10721_v61, %v2978_v3  ;;  %v2679_v59 = vadd.f32 %v2647_v44, %v2579_v24  ;;  %v2747_v50 = vmul.f32 %v10643_v15, %v10335_v30 }
 0x180   : > { %v10804_v29 = vld [vmem:[#allocation4 + $0x109] sm:$0xff]  ;;  %v10827_v42 = vadd.f32 %v3382_v22, %v3245_v0  ;;  %v3145_v18 = vmul.f32 %v10392_v23, %v10653_v6  ;;  %v3077_v33 = vadd.f32 %v3045_v5, %v2977_v54  ;;  %v2847_v4 = vmul.f32 %v10632_v37, %v10356_v39 }
 0x181   : > { %6585 = vst.msk [vmem:[#allocation4 + $0x108] sm:$0xff] %vm2192_vm2, %v14762_v16  ;;  %6586 = vst.msk [vmem:[#allocation4 + $0x110] sm:$0xff] %vm2192_vm2, %v14762_v16  ;;  %v10825_v43 = vadd.f32 %v3384_v60, %v3246_v55  ;;  %v3178_v17 = vadd.f32 %v3146_v45, %v3078_v19  ;;  %v2779_v7 = vadd.f32 %v2747_v50, %v2679_v59 }
 0x182   : > { %14796 = vst [vmem:[#allocation50_spill] sm:$0xff] %v10827_v42  ;;  %v2346_v61 = vmul.f32 %v10295_v13, %v10712_v62  ;;  %v2446_v44 = vmul.f32 %v10715_v53, %v10298_v35  ;;  %8446 = vmatprep.mubr.msk.f32.mxu1 %vm2192_vm2, %v10827_v42  ;;  %v3177_v3 = vadd.f32 %v3145_v18, %v3077_v33  ;;  %v3388_v18 = vpop.permute.xlu1 %3387 }
 0x183   : > { %14795 = vst [vmem:[#allocation49_spill] sm:$0xff] %v10825_v43  ;;  %v3216_v38 = vadd.f32 %v10417_v41, %v3178_v17  ;;  %v2879_v51 = vadd.f32 %v2847_v4, %v2779_v7  ;;  %v2948_v24 = vmul.f32 %v10370_v47, %v10800_v20  ;;  %8447 = vmatmul.mubr.msk.f32.gmra.mrb[28].mxu1 %vm2192_vm2, %v10825_v43  ;;  %v8413_v55 = vpop.f32.mrb[6].mxu1 }
 0x184   : > { %v3048_v62 = vmul.f32 %v10380_v9, %v10793_v49  ;;  %v2478_v0 = vadd.f32 %v2446_v44, %v2346_v61  ;;  %v2546_v53 = vmul.f32 %v10734_v10, %v10309_v8  ;;  %v2646_v45 = vmul.f32 %v10330_v34, %v10655_v27  ;;  %v2087_v7 = vpop.f32.mrb[7].mxu1 }
 0x185   : > { %v10851_v33 = vadd.f32 %v8413_v55, %v10286_v57  ;;  %v3248_v17 = vmax.f32 %v3216_v38, 0.0  ;;  %v3215_v4 = vadd.f32 %v10417_v41, %v3177_v3  ;;  %v2980_v5 = vadd.f32 %v2948_v24, %v2879_v51  ;;  %v10854_v60 = vld [vmem:[#allocation4 + $0x131] sm:$0xff] }
 0x186   : > { %v10856_v22 = vld [vmem:[#allocation4 + $0x127] sm:$0xff]  ;;  %v10859_v19 = vadd.f32 %v10286_v57, %v2087_v7  ;;  %v3148_v10 = vmul.f32 %v10392_v23, %v10784_v52  ;;  %v2578_v54 = vadd.f32 %v2546_v53, %v2478_v0  ;;  %v10863_v27 = vld [vmem:[#allocation4 + $0x130] sm:$0xff]  ;;  %6591 = vst.msk [vmem:[#allocation4 + $0x138] sm:$0xff] %vm2192_vm2, %v14762_v16  ;;  %v2746_v38 = vmul.f32 %v10651_v32, %v10335_v30  ;;  %v3386_v53 = vpop.permute.xlu0 %3385 }
 0x187   : > { %14797 = vst [vmem:[#allocation51_spill] sm:$0xff] %v10851_v33  ;;  %v10865_v59 = vld [vmem:[#allocation4 + $0x127] sm:$0xff]  ;;  %v14581_v50 = vmax.f32 %v10851_v33, 0.0  ;;  %v3247_v61 = vmax.f32 %v3215_v4, 0.0  ;;  %v3080_v44 = vadd.f32 %v3048_v62, %v2980_v5  ;;  %v10872_v3 = vld [vmem:[#allocation4 + $0x12f] sm:$0xff]  ;;  %v10881_v0 = vadd.f32 %v3388_v18, %v3248_v17 }
 0x188   : > { %14798 = vst [vmem:[#allocation52_spill] sm:$0xff] %v10859_v19  ;;  %v10874_v51 = vld [vmem:[#allocation4 + $0x128] sm:$0xff]  ;;  %6588 = vst.msk [vmem:[#allocation4 + $0x120] sm:$0xff] %vm2192_vm2, %v14762_v16  ;;  %v14582_v55 = vmax.f32 %v10859_v19, 0.0  ;;  %v2678_v7 = vadd.f32 %v2646_v45, %v2578_v54  ;;  %v2349_v62 = vmul.f32 %v10641_v12, %v10295_v13  ;;  %v2846_v12 = vmul.f32 %v10653_v6, %v10356_v39 }
 0x189   : > { %v10876_v24 = vld [vmem:[#allocation4 + $0x129] sm:$0xff]  ;;  %14799 = vst [vmem:[#allocation53_spill] sm:$0xff] %v10881_v0  ;;  %2285 = vst.msk [vmem:[#allocation4 + $0x150] sm:$0xff] %vm2192_vm2, %v14581_v50  ;;  %v10892_v4 = vadd.f32 %v3386_v53, %v3247_v61  ;;  %v3180_v5 = vadd.f32 %v3148_v10, %v3080_v44  ;;  %v2449_v17 = vmul.f32 %v10643_v15, %v10298_v35 }
 0x18a   : > { %6589 = vst.msk [vmem:[#allocation4 + $0x128] sm:$0xff] %vm2192_vm2, %v14762_v16  ;;  %6590 = vst.msk [vmem:[#allocation4 + $0x130] sm:$0xff] %vm2192_vm2, %v14762_v16  ;;  %v2778_v45 = vadd.f32 %v2746_v38, %v2678_v7  ;;  %v2549_v54 = vmul.f32 %v10632_v37, %v10309_v8  ;;  %v2947_v18 = vmul.f32 %v10370_v47, %v10795_v25 }
 0x18b   : > { %14800 = vst [vmem:[#allocation54_spill] sm:$0xff] %v10892_v4  ;;  %2284 = vst.msk [vmem:[#allocation4 + $0x148] sm:$0xff] %vm2192_vm2, %v14582_v55  ;;  %8449 = vmatprep.mubr.msk.f32.mxu1 %vm2192_vm2, %v10892_v4  ;;  %v3047_v61 = vmul.f32 %v10380_v9, %v10802_v11  ;;  %v2481_v44 = vadd.f32 %v2449_v17, %v2349_v62  ;;  %v2649_v38 = vmul.f32 %v10800_v20, %v10330_v34 }
 0x18c   : > { %v2878_v10 = vadd.f32 %v2846_v12, %v2778_v45  ;;  %8450 = vmatmul.mubr.msk.f32.gmra.mrb[30].mxu1 %vm2192_vm2, %v10881_v0  ;;  %v3218_v37 = vadd.f32 %v10417_v41, %v3180_v5  ;;  %v3147_v53 = vmul.f32 %v10392_v23, %v10804_v29  ;;  %v2749_v7 = vmul.f32 %v10793_v49, %v10335_v30 }
 0x18d   : > { %v8416_v15 = vpop.f32.mrb[8].mxu1  ;;  %v2348_v45 = vmul.f32 %v10295_v13, %v10634_v40  ;;  %v2581_v50 = vadd.f32 %v2549_v54, %v2481_v44  ;;  %v2448_v55 = vmul.f32 %v10651_v32, %v10298_v35  ;;  %v2849_v4 = vmul.f32 %v10784_v52, %v10356_v39 }
 0x18e   : > { %v10921_v62 = vadd.f32 %v8416_v15, %v10286_v57  ;;  %v2097_v12 = vpop.f32.mrb[9].mxu1  ;;  %v2979_v17 = vadd.f32 %v2947_v18, %v2878_v10  ;;  %v2548_v0 = vmul.f32 %v10653_v6, %v10309_v8  ;;  %v2648_v40 = vmul.f32 %v10795_v25, %v10330_v34 }
 0x18f   : > { %v10926_v5 = vadd.f32 %v10286_v57, %v2097_v12  ;;  %v2681_v18 = vadd.f32 %v2649_v38, %v2581_v50  ;;  %v2480_v54 = vadd.f32 %v2448_v55, %v2348_v45  ;;  %v3250_v44 = vmax.f32 %v3218_v37, 0.0 }
 0x190   : > { %14801 = vst [vmem:[#allocation55_spill] sm:$0xff] %v10921_v62  ;;  %v14587_v15 = vmax.f32 %v10921_v62, 0.0  ;;  %v3079_v42 = vadd.f32 %v3047_v61, %v2979_v17  ;;  %v10935_v10 = vld [vmem:[#allocation4 + $0x151] sm:$0xff]  ;;  %v2950_v12 = vmul.f32 %v10370_v47, %v10872_v3  ;;  %v2748_v61 = vmul.f32 %v10802_v11, %v10335_v30 }
 0x191   : > { %14802 = vst [vmem:[#allocation56_spill] sm:$0xff] %v10926_v5  ;;  %v14588_v57 = vmax.f32 %v10926_v5, 0.0  ;;  %v10942_v43 = vld [vmem:[#allocation4 + $0x150] sm:$0xff]  ;;  %6595 = vst.msk [vmem:[#allocation4 + $0x158] sm:$0xff] %vm2192_vm2, %v14762_v16  ;;  %v2781_v50 = vadd.f32 %v2749_v7, %v2681_v18  ;;  %v2580_v55 = vadd.f32 %v2548_v0, %v2480_v54  ;;  %v3150_v0 = vmul.f32 %v10392_v23, %v10854_v60  ;;  %v3392_v7 = vpop.permute.xlu1 %3391 }
 0x192   : > { %v10937_v32 = vld [vmem:[#allocation4 + $0x147] sm:$0xff]  ;;  %2287 = vst.msk [vmem:[#allocation4 + $0x170] sm:$0xff] %vm2192_vm2, %v14587_v15  ;;  %v3179_v25 = vadd.f32 %v3147_v53, %v3079_v42  ;;  %v10953_v38 = vld [vmem:[#allocation4 + $0x14f] sm:$0xff]  ;;  %v3050_v42 = vmul.f32 %v10380_v9, %v10863_v27  ;;  %v2848_v53 = vmul.f32 %v10804_v29, %v10356_v39  ;;  %v2351_v15 = vmul.f32 %v10800_v20, %v10295_v13 }
 0x193   : > { %v10944_v6 = vld [vmem:[#allocation4 + $0x147] sm:$0xff]  ;;  %2286 = vst.msk [vmem:[#allocation4 + $0x168] sm:$0xff] %vm2192_vm2, %v14588_v57  ;;  %v2881_v18 = vadd.f32 %v2849_v4, %v2781_v50  ;;  %v2680_v54 = vadd.f32 %v2648_v40, %v2580_v55  ;;  %v10977_v57 = vadd.f32 %v3392_v7, %v3250_v44  ;;  %v2949_v62 = vmul.f32 %v10370_v47, %v10865_v59 }
 0x194   : > { %v10955_v37 = vld [vmem:[#allocation4 + $0x148] sm:$0xff]  ;;  %6592 = vst.msk [vmem:[#allocation4 + $0x140] sm:$0xff] %vm2192_vm2, %v14762_v16  ;;  %v3217_v17 = vadd.f32 %v10417_v41, %v3179_v25  ;;  %v2451_v5 = vmul.f32 %v10793_v49, %v10298_v35  ;;  %v2551_v33 = vmul.f32 %v10784_v52, %v10309_v8  ;;  %v3049_v4 = vmul.f32 %v10380_v9, %v10874_v51  ;;  %v3390_v25 = vpop.permute.xlu0 %3389  ;;  %v10996_v52 = vld [vmem:[%s14501_s5] ss:$0 sm:$0xff] }
 0x195   : > { %v10957_v45 = vld [vmem:[#allocation4 + $0x149] sm:$0xff]  ;;  %14803 = vst [vmem:[#allocation57_spill] sm:$0xff] %v10977_v57  ;;  %v2982_v2 = vadd.f32 %v2950_v12, %v2881_v18  ;;  %v2780_v28 = vadd.f32 %v2748_v61, %v2680_v54  ;;  %v3149_v20 = vmul.f32 %v10392_v23, %v10876_v24  ;;  %v2651_v50 = vmul.f32 %v10872_v3, %v10330_v34 }
 0x196   : > { %6593 = vst.msk [vmem:[#allocation4 + $0x148] sm:$0xff] %vm2192_vm2, %v14762_v16  ;;  %6594 = vst.msk [vmem:[#allocation4 + $0x150] sm:$0xff] %vm2192_vm2, %v14762_v16  ;;  %v3249_v19 = vmax.f32 %v3217_v17, 0.0  ;;  %v2483_v44 = vadd.f32 %v2451_v5, %v2351_v15  ;;  %v2751_v49 = vmul.f32 %v10863_v27, %v10335_v30  ;;  %v2350_v18 = vmul.f32 %v10295_v13, %v10786_v56 }
 0x197   : > { %v8419_v40 = vpop.f32.mrb[10].mxu1  ;;  %v3082_v7 = vadd.f32 %v3050_v42, %v2982_v2  ;;  %v2880_v17 = vadd.f32 %v2848_v53, %v2780_v28  ;;  %v2450_v54 = vmul.f32 %v10802_v11, %v10298_v35  ;;  %v2851_v2 = vmul.f32 %v10854_v60, %v10356_v39 }
 0x198   : > { %v10999_v12 = vadd.f32 %v10996_v52, %v8419_v40  ;;  %v2107_v55 = vpop.f32.mrb[11].mxu1  ;;  %v11001_v61 = vadd.f32 %v3390_v25, %v3249_v19  ;;  %v2583_v15 = vadd.f32 %v2551_v33, %v2483_v44 }
 0x199   : > { %v11004_v5 = vadd.f32 %v10996_v52, %v2107_v55  ;;  %v11010_v31 = vld [vmem:[#allocation4 + $0x171] sm:$0xff]  ;;  %v3182_v19 = vadd.f32 %v3150_v0, %v3082_v7  ;;  %v2981_v25 = vadd.f32 %v2949_v62, %v2880_v17  ;;  %v2482_v42 = vadd.f32 %v2450_v54, %v2350_v18 }
 0x19a   : > { %14804 = vst [vmem:[#allocation58_spill] sm:$0xff] %v10999_v12  ;;  %14805 = vst [vmem:[#allocation59_spill] sm:$0xff] %v11001_v61  ;;  %v11012_v63 = vld [vmem:[#allocation4 + $0x167] sm:$0xff]  ;;  %v14597_v40 = vmax.f32 %v10999_v12, 0.0  ;;  %8452 = vmatprep.mubr.msk.f32.mxu1 %vm2192_vm2, %v11001_v61  ;;  %v11019_v28 = vld [vmem:[#allocation4 + $0x16f] sm:$0xff]  ;;  %v2683_v33 = vadd.f32 %v2651_v50, %v2583_v15  ;;  %v2550_v62 = vmul.f32 %v10804_v29, %v10309_v8 }
 0x19b   : > { %14806 = vst [vmem:[#allocation60_spill] sm:$0xff] %v11004_v5  ;;  %v11021_v56 = vld [vmem:[#allocation4 + $0x170] sm:$0xff]  ;;  %6599 = vst.msk [vmem:[#allocation4 + $0x178] sm:$0xff] %vm2192_vm2, %v14762_v16  ;;  %v14598_v11 = vmax.f32 %v11004_v5, 0.0  ;;  %8453 = vmatmul.mubr.msk.f32.gmra.mrb[32].mxu1 %vm2192_vm2, %v10977_v57  ;;  %v11030_v0 = vld [vmem:[#allocation4 + $0x168] sm:$0xff]  ;;  %v3220_v55 = vadd.f32 %v10417_v41, %v3182_v19  ;;  %v3081_v50 = vadd.f32 %v3049_v4, %v2981_v25 }
 0x19c   : > { %v11032_v53 = vld [vmem:[#allocation4 + $0x169] sm:$0xff]  ;;  %2289 = vst.msk [vmem:[#allocation4 + $0x190] sm:$0xff] %vm2192_vm2, %v14597_v40  ;;  %v2650_v7 = vmul.f32 %v10865_v59, %v10330_v34  ;;  %v2783_v29 = vadd.f32 %v2751_v49, %v2683_v33  ;;  %v2952_v4 = vmul.f32 %v10370_v47, %v10953_v38  ;;  %v2582_v17 = vadd.f32 %v2550_v62, %v2482_v42  ;;  %v3394_v62 = vpop.permute.xlu0 %3393 }
 0x19d   : > { %v11034_v44 = vld [vmem:[#allocation4 + $0x167] sm:$0xff]  ;;  %6598 = vst.msk [vmem:[#allocation4 + $0x170] sm:$0xff] %vm2192_vm2, %v14762_v16  ;;  %2288 = vst.msk [vmem:[#allocation4 + $0x188] sm:$0xff] %vm2192_vm2, %v14598_v11  ;;  %v2750_v59 = vmul.f32 %v10874_v51, %v10335_v30  ;;  %v3181_v15 = vadd.f32 %v3149_v20, %v3081_v50  ;;  %v3052_v18 = vmul.f32 %v10380_v9, %v10942_v43  ;;  %v3252_v49 = vmax.f32 %v3220_v55, 0.0 }
 0x19e   : > { %6596 = vst.msk [vmem:[#allocation4 + $0x160] sm:$0xff] %vm2192_vm2, %v14762_v16  ;;  %6597 = vst.msk [vmem:[#allocation4 + $0x168] sm:$0xff] %vm2192_vm2, %v14762_v16  ;;  %v2883_v54 = vadd.f32 %v2851_v2, %v2783_v29  ;;  %v3152_v19 = vmul.f32 %v10392_v23, %v10935_v10  ;;  %v2682_v25 = vadd.f32 %v2650_v7, %v2582_v17  ;;  %v3396_v17 = vpop.permute.xlu1 %3395 }
 0x19f   : > { %v2850_v40 = vmul.f32 %v10876_v24, %v10356_v39  ;;  %v3219_v33 = vadd.f32 %v10417_v41, %v3181_v15  ;;  %v2353_v42 = vmul.f32 %v10872_v3, %v10295_v13  ;;  %v2453_v20 = vmul.f32 %v10863_v27, %v10298_v35 }
 0x1a0   : > { %v2984_v50 = vadd.f32 %v2952_v4, %v2883_v54  ;;  %v2782_v11 = vadd.f32 %v2750_v59, %v2682_v25  ;;  %v2951_v2 = vmul.f32 %v10370_v47, %v10944_v6  ;;  %v2553_v7 = vmul.f32 %v10854_v60, %v10309_v8 }
 0x1a1   : > { %v8422_v29 = vpop.f32.mrb[12].mxu1  ;;  %v3251_v55 = vmax.f32 %v3219_v33, 0.0  ;;  %v3051_v41 = vmul.f32 %v10380_v9, %v10955_v37  ;;  %v2485_v15 = vadd.f32 %v2453_v20, %v2353_v42  ;;  %v2653_v3 = vmul.f32 %v10953_v38, %v10330_v34 }
 0x1a2   : > { %v11075_v27 = vadd.f32 %v10996_v52, %v8422_v29  ;;  %v2117_v4 = vpop.f32.mrb[13].mxu1  ;;  %v3084_v59 = vadd.f32 %v3052_v18, %v2984_v50  ;;  %v2882_v54 = vadd.f32 %v2850_v40, %v2782_v11  ;;  %v3151_v25 = vmul.f32 %v10392_v23, %v10957_v45 }
 0x1a3   : > { %v11079_v60 = vld [vmem:[#allocation4 + $0x191] sm:$0xff]  ;;  %v11084_v33 = vadd.f32 %v10996_v52, %v2117_v4  ;;  %v11086_v42 = vadd.f32 %v3394_v62, %v3251_v55  ;;  %v2585_v20 = vadd.f32 %v2553_v7, %v2485_v15  ;;  %v2753_v29 = vmul.f32 %v10942_v43, %v10335_v30 }
 0x1a4   : > { %14807 = vst [vmem:[#allocation61_spill] sm:$0xff] %v11075_v27  ;;  %v11081_v61 = vld [vmem:[#allocation4 + $0x187] sm:$0xff]  ;;  %v11090_v57 = vld [vmem:[#allocation4 + $0x18f] sm:$0xff]  ;;  %6603 = vst.msk [vmem:[#allocation4 + $0x198] sm:$0xff] %vm2192_vm2, %v14762_v16  ;;  %v14603_v40 = vmax.f32 %v11075_v27, 0.0  ;;  %v11097_v11 = vadd.f32 %v3396_v17, %v3252_v49  ;;  %v3184_v50 = vadd.f32 %v3152_v19, %v3084_v59  ;;  %v2983_v4 = vadd.f32 %v2951_v2, %v2882_v54 }
 0x1a5   : > { %14808 = vst [vmem:[#allocation62_spill] sm:$0xff] %v11084_v33  ;;  %14809 = vst [vmem:[#allocation63_spill] sm:$0xff] %v11086_v42  ;;  %v11092_v18 = vld [vmem:[#allocation4 + $0x190] sm:$0xff]  ;;  %v11099_v12 = vld [vmem:[#allocation4 + $0x188] sm:$0xff]  ;;  %v14604_v55 = vmax.f32 %v11084_v33, 0.0  ;;  %v2685_v15 = vadd.f32 %v2653_v3, %v2585_v20  ;;  %v2853_v5 = vmul.f32 %v10935_v10, %v10356_v39  ;;  %8455 = vmatprep.mubr.msk.f32.mxu1 %vm2192_vm2, %v11086_v42 }
 0x1a6   : > { %14810 = vst [vmem:[#allocation64_spill] sm:$0xff] %v11097_v11  ;;  %v11101_v62 = vld [vmem:[#allocation4 + $0x189] sm:$0xff]  ;;  %2291 = vst.msk [vmem:[#allocation4 + $0x1b0] sm:$0xff] %vm2192_vm2, %v14603_v40  ;;  %v11122_v19 = vld [vmem:[%s14503_s7] ss:$0 sm:$0xff]  ;;  %v3083_v2 = vadd.f32 %v3051_v41, %v2983_v4  ;;  %v2352_v17 = vmul.f32 %v10295_v13, %v10856_v22  ;;  %8456 = vmatmul.mubr.msk.f32.gmra.mrb[34].mxu1 %vm2192_vm2, %v11097_v11  ;;  %v2954_v59 = vmul.f32 %v10370_v47, %v11019_v28 }
 0x1a7   : > { %v11103_v7 = vld [vmem:[#allocation4 + $0x187] sm:$0xff]  ;;  %6602 = vst.msk [vmem:[#allocation4 + $0x190] sm:$0xff] %vm2192_vm2, %v14762_v16  ;;  %v3222_v49 = vadd.f32 %v11122_v19, %v3184_v50  ;;  %2290 = vst.msk [vmem:[#allocation4 + $0x1a8] sm:$0xff] %vm2192_vm2, %v14604_v55  ;;  %v2785_v3 = vadd.f32 %v2753_v29, %v2685_v15  ;;  %v2452_v54 = vmul.f32 %v10874_v51, %v10298_v35 }
 0x1a8   : > { %6600 = vst.msk [vmem:[#allocation4 + $0x180] sm:$0xff] %vm2192_vm2, %v14762_v16  ;;  %6601 = vst.msk [vmem:[#allocation4 + $0x188] sm:$0xff] %vm2192_vm2, %v14762_v16  ;;  %v2552_v41 = vmul.f32 %v10876_v24, %v10309_v8  ;;  %v3183_v20 = vadd.f32 %v3151_v25, %v3083_v2  ;;  %v3054_v22 = vmul.f32 %v10380_v9, %v11021_v56  ;;  %v3398_v25 = vpop.permute.xlu0 %3397 }
 0x1a9   : > { %v2885_v50 = vadd.f32 %v2853_v5, %v2785_v3  ;;  %v2484_v4 = vadd.f32 %v2452_v54, %v2352_v17  ;;  %v2652_v40 = vmul.f32 %v10944_v6, %v10330_v34  ;;  %v3254_v29 = vmax.f32 %v3222_v49, 0.0  ;;  %v3400_v3 = vpop.permute.xlu1 %3399 }
 0x1aa   : > { %v3221_v15 = vadd.f32 %v11122_v19, %v3183_v20  ;;  %v3154_v42 = vmul.f32 %v10392_v23, %v11010_v31  ;;  %v2752_v51 = vmul.f32 %v10955_v37, %v10335_v30  ;;  %v2355_v6 = vmul.f32 %v10953_v38, %v10295_v13 }
 0x1ab   : > { %v8425_v55 = vpop.f32.mrb[14].mxu1  ;;  %v2986_v2 = vadd.f32 %v2954_v59, %v2885_v50  ;;  %v2584_v17 = vadd.f32 %v2552_v41, %v2484_v4  ;;  %v2852_v20 = vmul.f32 %v10957_v45, %v10356_v39  ;;  %v2455_v11 = vmul.f32 %v10942_v43, %v10298_v35 }
 0x1ac   : > { %v11148_v24 = vadd.f32 %v10996_v52, %v8425_v55  ;;  %v2127_v5 = vpop.f32.mrb[15].mxu1  ;;  %v3253_v54 = vmax.f32 %v3221_v15, 0.0  ;;  %v2555_v59 = vmul.f32 %v10935_v10, %v10309_v8 }
 0x1ad   : > { %v11153_v49 = vadd.f32 %v10996_v52, %v2127_v5  ;;  %v3086_v27 = vadd.f32 %v3054_v22, %v2986_v2  ;;  %v2684_v33 = vadd.f32 %v2652_v40, %v2584_v17  ;;  %v11162_v41 = vld [vmem:[#allocation4 + $0x1b1] sm:$0xff]  ;;  %v2487_v15 = vadd.f32 %v2455_v11, %v2355_v6  ;;  %v3404_v48 = vpop.permute.xlu1 %3403 }
 0x1ae   : > { %14811 = vst [vmem:[#allocation65_spill] sm:$0xff] %v11148_v24  ;;  %v11164_v38 = vld [vmem:[#allocation4 + $0x1a7] sm:$0xff]  ;;  %v11167_v4 = vadd.f32 %v3398_v25, %v3253_v54  ;;  %v2655_v5 = vmul.f32 %v11019_v28, %v10330_v34  ;;  %v11171_v43 = vld [vmem:[#allocation4 + $0x1af] sm:$0xff]  ;;  %6607 = vst.msk [vmem:[#allocation4 + $0x1b8] sm:$0xff] %vm2192_vm2, %v14762_v16  ;;  %v14814_v10 = vmax.f32 %v11148_v24, 0.0  ;;  %v11180_v40 = vadd.f32 %v3400_v3, %v3254_v29 }
 0x1af   : > { %14812 = vst [vmem:[#allocation66_spill] sm:$0xff] %v11153_v49  ;;  %v14609_v50 = vmax.f32 %v11153_v49, 0.0  ;;  %v11173_v55 = vld [vmem:[#allocation4 + $0x1b0] sm:$0xff]  ;;  %v3186_v22 = vadd.f32 %v3154_v42, %v3086_v27  ;;  %v2784_v25 = vadd.f32 %v2752_v51, %v2684_v33  ;;  %v2953_v11 = vmul.f32 %v10370_v47, %v11012_v63  ;;  %v11184_v2 = vld [vmem:[#allocation4 + $0x1a8] sm:$0xff] }
 0x1b0   : > { %14813 = vst [vmem:[#allocation67_spill] sm:$0xff] %v11167_v4  ;;  %2293 = vst.msk [vmem:[#allocation4 + $0x1d0] sm:$0xff] %vm2192_vm2, %v14814_v10  ;;  %v11186_v17 = vld [vmem:[#allocation4 + $0x1a9] sm:$0xff]  ;;  %v2587_v54 = vadd.f32 %v2555_v59, %v2487_v15  ;;  %v2755_v29 = vmul.f32 %v11021_v56, %v10335_v30  ;;  %8458 = vmatprep.mubr.msk.f32.mxu1 %vm2192_vm2, %v11167_v4  ;;  %v3053_v33 = vmul.f32 %v10380_v9, %v11030_v0 }
 0x1b1   : > { %14815 = vst [vmem:[#allocation68_spill] sm:$0xff] %v11180_v40  ;;  %v11188_v6 = vld [vmem:[#allocation4 + $0x1a7] sm:$0xff]  ;;  %2292 = vst.msk [vmem:[#allocation4 + $0x1c8] sm:$0xff] %vm2192_vm2, %v14609_v50  ;;  %v2884_v27 = vadd.f32 %v2852_v20, %v2784_v25  ;;  %8459 = vmatmul.mubr.msk.f32.gmra.mrb[36].mxu1 %vm2192_vm2, %v11180_v40  ;;  %v2855_v51 = vmul.f32 %v11010_v31, %v10356_v39  ;;  %v2354_v3 = vmul.f32 %v10295_v13, %v10937_v32 }
 0x1b2   : > { %6604 = vst.msk [vmem:[#allocation4 + $0x1a0] sm:$0xff] %vm2192_vm2, %v14762_v16  ;;  %6605 = vst.msk [vmem:[#allocation4 + $0x1a8] sm:$0xff] %vm2192_vm2, %v14762_v16  ;;  %v2687_v42 = vadd.f32 %v2655_v5, %v2587_v54  ;;  %v2454_v59 = vmul.f32 %v10955_v37, %v10298_v35  ;;  %v3224_v15 = vadd.f32 %v11122_v19, %v3186_v22 }
 0x1b3   : > { %6606 = vst.msk [vmem:[#allocation4 + $0x1b0] sm:$0xff] %vm2192_vm2, %v14762_v16  ;;  %v2985_v10 = vadd.f32 %v2953_v11, %v2884_v27  ;;  %v3153_v20 = vmul.f32 %v10392_v23, %v11032_v53  ;;  %v2554_v25 = vmul.f32 %v10957_v45, %v10309_v8  ;;  %v2956_v54 = vmul.f32 %v10370_v47, %v11090_v57 }
 0x1b4   : > { %v2787_v5 = vadd.f32 %v2755_v29, %v2687_v42  ;;  %v2486_v4 = vadd.f32 %v2454_v59, %v2354_v3  ;;  %v2654_v32 = vmul.f32 %v10330_v34, %v11034_v44  ;;  %v3056_v27 = vmul.f32 %v10380_v9, %v11092_v18 }
 0x1b5   : > { %v8428_v50 = vpop.f32.mrb[16].mxu1  ;;  %v3085_v11 = vadd.f32 %v3053_v33, %v2985_v10  ;;  %v3156_v45 = vmul.f32 %v10392_v23, %v11079_v60  ;;  %v2754_v3 = vmul.f32 %v11030_v0, %v10335_v30  ;;  %v3256_v59 = vmax.f32 %v3224_v15, 0.0 }
 0x1b6   : > { %v11223_v37 = vadd.f32 %v10996_v52, %v8428_v50  ;;  %v2137_v22 = vpop.f32.mrb[17].mxu1  ;;  %v2887_v42 = vadd.f32 %v2855_v51, %v2787_v5  ;;  %v2586_v40 = vadd.f32 %v2554_v25, %v2486_v4  ;;  %v2854_v24 = vmul.f32 %v11032_v53, %v10356_v39 }
 0x1b7   : > { %v11230_v29 = vadd.f32 %v10996_v52, %v2137_v22  ;;  %v11234_v44 = vld [vmem:[#allocation4 + $0x1d1] sm:$0xff]  ;;  %v3185_v10 = vadd.f32 %v3153_v20, %v3085_v11  ;;  %v2357_v5 = vmul.f32 %v11019_v28, %v10295_v13  ;;  %v3402_v28 = vpop.permute.xlu0 %3401 }
 0x1b8   : > { %14816 = vst [vmem:[#allocation69_spill] sm:$0xff] %v11223_v37  ;;  %v11236_v50 = vld [vmem:[#allocation4 + $0x1c7] sm:$0xff]  ;;  %v11241_v49 = vld [vmem:[#allocation4 + $0x1cf] sm:$0xff]  ;;  %6611 = vst.msk [vmem:[#allocation4 + $0x1d8] sm:$0xff] %vm2192_vm2, %v14762_v16  ;;  %v2988_v51 = vadd.f32 %v2956_v54, %v2887_v42  ;;  %v2686_v25 = vadd.f32 %v2654_v32, %v2586_v40  ;;  %v14818_v11 = vmax.f32 %v11223_v37, 0.0  ;;  %v2457_v54 = vmul.f32 %v11021_v56, %v10298_v35 }
 0x1b9   : > { %14817 = vst [vmem:[#allocation70_spill] sm:$0xff] %v11230_v29  ;;  %v11243_v22 = vld [vmem:[#allocation4 + $0x1d0] sm:$0xff]  ;;  %v14618_v4 = vmax.f32 %v11230_v29, 0.0  ;;  %v11250_v33 = vld [vmem:[#allocation4 + $0x1c8] sm:$0xff]  ;;  %v3223_v1 = vadd.f32 %v11122_v19, %v3185_v10  ;;  %v2557_v40 = vmul.f32 %v11010_v31, %v10309_v8  ;;  %v2955_v56 = vmul.f32 %v10370_v47, %v11081_v61 }
 0x1ba   : > { %v11252_v15 = vld [vmem:[#allocation4 + $0x1c9] sm:$0xff]  ;;  %2295 = vst.msk [vmem:[#allocation4 + $0x1f0] sm:$0xff] %vm2192_vm2, %v14818_v11  ;;  %v3088_v32 = vadd.f32 %v3056_v27, %v2988_v51  ;;  %v2786_v42 = vadd.f32 %v2754_v3, %v2686_v25  ;;  %v2489_v10 = vadd.f32 %v2457_v54, %v2357_v5  ;;  %v2657_v11 = vmul.f32 %v11090_v57, %v10330_v34 }
 0x1bb   : > { %v11254_v20 = vld [vmem:[#allocation4 + $0x1c7] sm:$0xff]  ;;  %6610 = vst.msk [vmem:[#allocation4 + $0x1d0] sm:$0xff] %vm2192_vm2, %v14762_v16  ;;  %2294 = vst.msk [vmem:[#allocation4 + $0x1e8] sm:$0xff] %vm2192_vm2, %v14618_v4  ;;  %v3255_v31 = vmax.f32 %v3223_v1, 0.0  ;;  %v11277_v37 = vadd.f32 %v3404_v48, %v3256_v59  ;;  %v3055_v29 = vmul.f32 %v10380_v9, %v11099_v12  ;;  %v2757_v27 = vmul.f32 %v11092_v18, %v10335_v30 }
 0x1bc   : > { %6608 = vst.msk [vmem:[#allocation4 + $0x1c0] sm:$0xff] %vm2192_vm2, %v14762_v16  ;;  %6609 = vst.msk [vmem:[#allocation4 + $0x1c8] sm:$0xff] %vm2192_vm2, %v14762_v16  ;;  %v3188_v21 = vadd.f32 %v3156_v45, %v3088_v32  ;;  %v2886_v36 = vadd.f32 %v2854_v24, %v2786_v42  ;;  %v2589_v4 = vadd.f32 %v2557_v40, %v2489_v10 }
 0x1bd   : > { %14819 = vst [vmem:[#allocation71_spill] sm:$0xff] %v11277_v37  ;;  %v11281_v58 = vadd.f32 %v3402_v28, %v3255_v31  ;;  %v2356_v1 = vmul.f32 %v10295_v13, %v11012_v63  ;;  %v3155_v51 = vmul.f32 %v10392_v23, %v11101_v62  ;;  %v2456_v48 = vmul.f32 %v11030_v0, %v10298_v35 }
 0x1be   : > { %v2987_v3 = vadd.f32 %v2955_v56, %v2886_v36  ;;  %v2556_v24 = vmul.f32 %v11032_v53, %v10309_v8  ;;  %v3226_v59 = vadd.f32 %v11122_v19, %v3188_v21  ;;  %v2689_v25 = vadd.f32 %v2657_v11, %v2589_v4 }
 0x1bf   : > { %14820 = vst [vmem:[#allocation72_spill] sm:$0xff] %v11281_v58  ;;  %v8431_v45 = vpop.f32.mrb[18].mxu1  ;;  %v2857_v5 = vmul.f32 %v11079_v60, %v10356_v39  ;;  %8461 = vmatprep.mubr.msk.f32.mxu1 %vm2192_vm2, %v11281_v58  ;;  %v2488_v40 = vadd.f32 %v2456_v48, %v2356_v1  ;;  %v2656_v0 = vmul.f32 %v10330_v34, %v11103_v7 }
 0x1c0   : > { %v11299_v63 = vadd.f32 %v10996_v52, %v8431_v45  ;;  %v2147_v36 = vpop.f32.mrb[19].mxu1  ;;  %v3087_v54 = vadd.f32 %v3055_v29, %v2987_v3  ;;  %8462 = vmatmul.mubr.msk.f32.gmra.mrb[38].mxu1 %vm2192_vm2, %v11277_v37  ;;  %v2789_v28 = vadd.f32 %v2757_v27, %v2689_v25  ;;  %v2958_v32 = vmul.f32 %v10370_v47, %v11171_v43 }
 0x1c1   : > { %v11305_v21 = vld [vmem:[#allocation4 + $0x1f1] sm:$0xff]  ;;  %v11310_v4 = vadd.f32 %v10996_v52, %v2147_v36  ;;  %v2588_v31 = vadd.f32 %v2556_v24, %v2488_v40  ;;  %v2756_v10 = vmul.f32 %v11099_v12, %v10335_v30  ;;  %v3058_v48 = vmul.f32 %v10380_v9, %v11173_v55  ;;  %v3406_v36 = vpop.permute.xlu0 %3405 }
 0x1c2   : > { %v11307_v53 = vld [vmem:[#allocation4 + $0x1e7] sm:$0xff]  ;;  %v11314_v42 = vld [vmem:[#allocation4 + $0x1ef] sm:$0xff]  ;;  %6615 = vst.msk [vmem:[#allocation4 + $0x1f8] sm:$0xff] %vm2192_vm2, %v14762_v16  ;;  %v14619_v7 = vmax.f32 %v11299_v63, 0.0  ;;  %v3187_v56 = vadd.f32 %v3155_v51, %v3087_v54  ;;  %v2889_v3 = vadd.f32 %v2857_v5, %v2789_v28  ;;  %v3258_v51 = vmax.f32 %v3226_v59, 0.0  ;;  %v3408_v5 = vpop.permute.xlu1 %3407 }
 0x1c3   : > { %v11316_v29 = vld [vmem:[#allocation4 + $0x1f0] sm:$0xff]  ;;  %v11323_v52 = vld [vmem:[#allocation4 + $0x1e8] sm:$0xff]  ;;  %v14620_v1 = vmax.f32 %v11310_v4, 0.0  ;;  %v2688_v45 = vadd.f32 %v2656_v0, %v2588_v31  ;;  %v2856_v25 = vmul.f32 %v11101_v62, %v10356_v39  ;;  %v3158_v40 = vmul.f32 %v10392_v23, %v11162_v41 }
 0x1c4   : > { %v11325_v11 = vld [vmem:[#allocation4 + $0x1e9] sm:$0xff]  ;;  %2297 = vst.msk [vmem:[#allocation4 + $0x210] sm:$0xff] %vm2192_vm2, %v14619_v7  ;;  %v3225_v24 = vadd.f32 %v11122_v19, %v3187_v56  ;;  %v2990_v54 = vadd.f32 %v2958_v32, %v2889_v3  ;;  %v2359_v28 = vmul.f32 %v11090_v57, %v10295_v13  ;;  %v2459_v59 = vmul.f32 %v11092_v18, %v10298_v35 }
 0x1c5   : > { %v11327_v27 = vld [vmem:[#allocation4 + $0x1e7] sm:$0xff]  ;;  %6614 = vst.msk [vmem:[#allocation4 + $0x1f0] sm:$0xff] %vm2192_vm2, %v14762_v16  ;;  %2296 = vst.msk [vmem:[#allocation4 + $0x208] sm:$0xff] %vm2192_vm2, %v14620_v1  ;;  %v2788_v56 = vadd.f32 %v2756_v10, %v2688_v45  ;;  %v2957_v31 = vmul.f32 %v10370_v47, %v11164_v38  ;;  %v2559_v7 = vmul.f32 %v11079_v60, %v10309_v8 }
 0x1c6   : > { %6612 = vst.msk [vmem:[#allocation4 + $0x1e0] sm:$0xff] %vm2192_vm2, %v14762_v16  ;;  %6613 = vst.msk [vmem:[#allocation4 + $0x1e8] sm:$0xff] %vm2192_vm2, %v14762_v16  ;;  %v3257_v0 = vmax.f32 %v3225_v24, 0.0  ;;  %v3090_v1 = vadd.f32 %v3058_v48, %v2990_v54  ;;  %v2491_v58 = vadd.f32 %v2459_v59, %v2359_v28  ;;  %v2659_v32 = vmul.f32 %v11171_v43, %v10330_v34 }
 0x1c7   : > { %v11359_v3 = vadd.f32 %v3408_v5, %v3258_v51  ;;  %v2888_v57 = vadd.f32 %v2856_v25, %v2788_v56  ;;  %v3057_v18 = vmul.f32 %v10380_v9, %v11184_v2  ;;  %v2759_v45 = vmul.f32 %v11173_v55, %v10335_v30 }
 0x1c8   : > { %v11361_v37 = vadd.f32 %v3406_v36, %v3257_v0  ;;  %v3190_v10 = vadd.f32 %v3158_v40, %v3090_v1  ;;  %v2591_v24 = vadd.f32 %v2559_v7, %v2491_v58  ;;  %v2358_v60 = vmul.f32 %v10295_v13, %v11081_v61 }
 0x1c9   : > { %14821 = vst [vmem:[#allocation73_spill] sm:$0xff] %v11359_v3  ;;  %v2989_v48 = vadd.f32 %v2957_v31, %v2888_v57  ;;  %v3157_v54 = vmul.f32 %v10392_v23, %v11186_v17  ;;  %v2458_v51 = vmul.f32 %v11099_v12, %v10298_v35  ;;  %v2558_v25 = vmul.f32 %v11101_v62, %v10309_v8 }
 0x1ca   : > { %14822 = vst [vmem:[#allocation74_spill] sm:$0xff] %v11361_v37  ;;  %8464 = vmatprep.mubr.msk.f32.mxu1 %vm2192_vm2, %v11361_v37  ;;  %v2691_v58 = vadd.f32 %v2659_v32, %v2591_v24  ;;  %v2859_v7 = vmul.f32 %v11162_v41, %v10356_v39  ;;  %v2960_v5 = vmul.f32 %v10370_v47, %v11241_v49  ;;  %v3412_v37 = vpop.permute.xlu1 %3411 }
 0x1cb   : > { %8465 = vmatmul.mubr.msk.f32.gmra.mrb[40].mxu1 %vm2192_vm2, %v11359_v3  ;;  %v11381_v61 = vld [vmem:[#allocation4 + $0x211] sm:$0xff]  ;;  %v3089_v1 = vadd.f32 %v3057_v18, %v2989_v48  ;;  %v2490_v12 = vadd.f32 %v2458_v51, %v2358_v60  ;;  %v2658_v62 = vmul.f32 %v10330_v34, %v11188_v6  ;;  %v3228_v28 = vadd.f32 %v11122_v19, %v3190_v10 }
 0x1cc   : > { %v11387_v36 = vld [vmem:[#allocation4 + $0x210] sm:$0xff]  ;;  %v11389_v40 = vld [vmem:[#allocation4 + $0x207] sm:$0xff]  ;;  %6619 = vst.msk [vmem:[#allocation4 + $0x218] sm:$0xff] %vm2192_vm2, %v14762_v16  ;;  %v2791_v59 = vadd.f32 %v2759_v45, %v2691_v58  ;;  %v3060_v0 = vmul.f32 %v10380_v9, %v11243_v22  ;;  %v2758_v56 = vmul.f32 %v11184_v2, %v10335_v30  ;;  %v2361_v10 = vmul.f32 %v11171_v43, %v10295_v13 }
 0x1cd   : > { %v11398_v31 = vld [vmem:[#allocation4 + $0x20f] sm:$0xff]  ;;  %6616 = vst.msk [vmem:[#allocation4 + $0x200] sm:$0xff] %vm2192_vm2, %v14762_v16  ;;  %v3189_v57 = vadd.f32 %v3157_v54, %v3089_v1  ;;  %v2590_v18 = vadd.f32 %v2558_v25, %v2490_v12  ;;  %v2461_v24 = vmul.f32 %v11173_v55, %v10298_v35  ;;  %v3160_v60 = vmul.f32 %v10392_v23, %v11234_v44  ;;  %v3410_v1 = vpop.permute.xlu0 %3409 }
 0x1ce   : > { %v11400_v32 = vld [vmem:[#allocation4 + $0x208] sm:$0xff]  ;;  %v2891_v45 = vadd.f32 %v2859_v7, %v2791_v59  ;;  %v2858_v48 = vmul.f32 %v11186_v17, %v10356_v39  ;;  %v2561_v54 = vmul.f32 %v11162_v41, %v10309_v8  ;;  %v2661_v25 = vmul.f32 %v11241_v49, %v10330_v34 }
 0x1cf   : > { %v11402_v6 = vld [vmem:[#allocation4 + $0x209] sm:$0xff]  ;;  %v3227_v43 = vadd.f32 %v11122_v19, %v3189_v57  ;;  %v2690_v51 = vadd.f32 %v2658_v62, %v2590_v18  ;;  %v2493_v55 = vadd.f32 %v2461_v24, %v2361_v10  ;;  %v3260_v58 = vmax.f32 %v3228_v28, 0.0 }
 0x1d0   : > { %6617 = vst.msk [vmem:[#allocation4 + $0x208] sm:$0xff] %vm2192_vm2, %v14762_v16  ;;  %6618 = vst.msk [vmem:[#allocation4 + $0x210] sm:$0xff] %vm2192_vm2, %v14762_v16  ;;  %v2992_v12 = vadd.f32 %v2960_v5, %v2891_v45  ;;  %v2959_v7 = vmul.f32 %v10370_v47, %v11236_v50  ;;  %v3059_v59 = vmul.f32 %v10380_v9, %v11250_v33 }
 0x1d1   : > { %v3259_v3 = vmax.f32 %v3227_v43, 0.0  ;;  %v2790_v16 = vadd.f32 %v2758_v56, %v2690_v51  ;;  %v2593_v41 = vadd.f32 %v2561_v54, %v2493_v55  ;;  %v2761_v62 = vmul.f32 %v11243_v22, %v10335_v30 }
 0x1d2   : > { %v3092_v57 = vadd.f32 %v3060_v0, %v2992_v12  ;;  %v2861_v18 = vmul.f32 %v11234_v44, %v10356_v39  ;;  %v2360_v5 = vmul.f32 %v10295_v13, %v11164_v38  ;;  %v2460_v28 = vmul.f32 %v11184_v2, %v10298_v35 }
 0x1d3   : > { %v11435_v10 = vadd.f32 %v3410_v1, %v3259_v3  ;;  %v2890_v24 = vadd.f32 %v2858_v48, %v2790_v16  ;;  %v2693_v45 = vadd.f32 %v2661_v25, %v2593_v41  ;;  %v2560_v56 = vmul.f32 %v11186_v17, %v10309_v8 }
 0x1d4   : > { %v11439_v54 = vadd.f32 %v3412_v37, %v3260_v58  ;;  %v3192_v43 = vadd.f32 %v3160_v60, %v3092_v57  ;;  %v2492_v0 = vadd.f32 %v2460_v28, %v2360_v5  ;;  %v2660_v51 = vmul.f32 %v10330_v34, %v11254_v20 }
 0x1d5   : > { %14823 = vst [vmem:[#allocation75_spill] sm:$0xff] %v11435_v10  ;;  %v2991_v55 = vadd.f32 %v2959_v7, %v2890_v24  ;;  %v3159_v38 = vmul.f32 %v10392_v23, %v11252_v15  ;;  %v2793_v12 = vadd.f32 %v2761_v62, %v2693_v45  ;;  %v2962_v2 = vmul.f32 %v10370_v47, %v11314_v42 }
 0x1d6   : > { %14824 = vst [vmem:[#allocation76_spill] sm:$0xff] %v11439_v54  ;;  %8467 = vmatprep.mubr.msk.f32.mxu1 %vm2192_vm2, %v11435_v10  ;;  %v3062_v16 = vmul.f32 %v10380_v9, %v11316_v29  ;;  %v2592_v17 = vadd.f32 %v2560_v56, %v2492_v0  ;;  %v2760_v37 = vmul.f32 %v11250_v33, %v10335_v30  ;;  %v3414_v56 = vpop.permute.xlu0 %3413 }
 0x1d7   : > { %8468 = vmatmul.mubr.msk.f32.gmra.mrb[42].mxu1 %vm2192_vm2, %v11439_v54  ;;  %v3091_v20 = vadd.f32 %v3059_v59, %v2991_v55  ;;  %v2893_v3 = vadd.f32 %v2861_v18, %v2793_v12  ;;  %v2860_v60 = vmul.f32 %v11252_v15, %v10356_v39  ;;  %v2363_v48 = vmul.f32 %v11241_v49, %v10295_v13  ;;  %v3416_v55 = vpop.permute.xlu1 %3415 }
 0x1d8   : > { %v3230_v25 = vadd.f32 %v11122_v19, %v3192_v43  ;;  %v2692_v58 = vadd.f32 %v2660_v51, %v2592_v17  ;;  %v2463_v1 = vmul.f32 %v11243_v22, %v10298_v35  ;;  %v2563_v7 = vmul.f32 %v11234_v44, %v10309_v8 }
 0x1d9   : > { %v3191_v41 = vadd.f32 %v3159_v38, %v3091_v20  ;;  %v2994_v62 = vadd.f32 %v2962_v2, %v2893_v3  ;;  %v3162_v59 = vmul.f32 %v10392_v23, %v11305_v21  ;;  %v2961_v18 = vmul.f32 %v10370_v47, %v11307_v53 }
 0x1da   : > { %v2792_v57 = vadd.f32 %v2760_v37, %v2692_v58  ;;  %v2495_v5 = vadd.f32 %v2463_v1, %v2363_v48  ;;  %v2663_v49 = vmul.f32 %v11314_v42, %v10330_v34  ;;  %v3061_v22 = vmul.f32 %v10380_v9, %v11323_v52 }
 0x1db   : > { %v3229_v28 = vadd.f32 %v11122_v19, %v3191_v41  ;;  %v3094_v24 = vadd.f32 %v3062_v16, %v2994_v62  ;;  %v3161_v44 = vmul.f32 %v10392_v23, %v11325_v11  ;;  %v3262_v45 = vmax.f32 %v3230_v25, 0.0 }
 0x1dc   : > { %v2892_v43 = vadd.f32 %v2860_v60, %v2792_v57  ;;  %v2595_v0 = vadd.f32 %v2563_v7, %v2495_v5  ;;  %v2763_v51 = vmul.f32 %v11316_v29, %v10335_v30  ;;  %v2362_v2 = vmul.f32 %v10295_v13, %v11236_v50 }
 0x1dd   : > { %v3261_v38 = vmax.f32 %v3229_v28, 0.0  ;;  %v3194_v12 = vadd.f32 %v3162_v59, %v3094_v24  ;;  %v2462_v16 = vmul.f32 %v11250_v33, %v10298_v35  ;;  %v2863_v20 = vmul.f32 %v11305_v21, %v10356_v39  ;;  %v3420_v28 = vpop.permute.xlu1 %3419 }
 0x1de   : > { %v2993_v17 = vadd.f32 %v2961_v18, %v2892_v43  ;;  %v2695_v37 = vadd.f32 %v2663_v49, %v2595_v0  ;;  %v2562_v3 = vmul.f32 %v11252_v15, %v10309_v8  ;;  %v2662_v58 = vmul.f32 %v10330_v34, %v11327_v27 }
 0x1df   : > { %v11485_v60 = vadd.f32 %v3414_v56, %v3261_v38  ;;  %v3232_v48 = vadd.f32 %v11122_v19, %v3194_v12  ;;  %v2494_v25 = vadd.f32 %v2462_v16, %v2362_v2  ;;  %v11490_v50 = vadd.f32 %v3416_v55, %v3262_v45  ;;  %v3418_v56 = vpop.permute.xlu0 %3417 }
 0x1e0   : > { %v3093_v1 = vadd.f32 %v3061_v22, %v2993_v17  ;;  %v2795_v33 = vadd.f32 %v2763_v51, %v2695_v37  ;;  %v2964_v7 = vmul.f32 %v10370_v47, %v11398_v31  ;;  %v2762_v62 = vmul.f32 %v11323_v52, %v10335_v30 }
 0x1e1   : > { %14825 = vst [vmem:[#allocation77_spill] sm:$0xff] %v11485_v60  ;;  %14826 = vst [vmem:[#allocation78_spill] sm:$0xff] %v11490_v50  ;;  %v2594_v41 = vadd.f32 %v2562_v3, %v2494_v25  ;;  %8470 = vmatprep.mubr.msk.f32.mxu1 %vm2192_vm2, %v11485_v60  ;;  %v3064_v57 = vmul.f32 %v10380_v9, %v11387_v36  ;;  %v3264_v27 = vmax.f32 %v3232_v48, 0.0 }
 0x1e2   : > { %v3193_v15 = vadd.f32 %v3161_v44, %v3093_v1  ;;  %v2895_v59 = vadd.f32 %v2863_v20, %v2795_v33  ;;  %8471 = vmatmul.mubr.msk.f32.gmra.mrb[44].mxu1 %vm2192_vm2, %v11490_v50  ;;  %v3164_v18 = vmul.f32 %v10392_v23, %v11381_v61  ;;  %v2862_v49 = vmul.f32 %v11325_v11, %v10356_v39 }
 0x1e3   : > { %v2694_v5 = vadd.f32 %v2662_v58, %v2594_v41  ;;  %v2365_v44 = vmul.f32 %v11314_v42, %v10295_v13  ;;  %v2465_v45 = vmul.f32 %v11316_v29, %v10298_v35  ;;  %v2963_v0 = vmul.f32 %v10370_v47, %v11389_v40 }
 0x1e4   : > { %v3231_v24 = vadd.f32 %v11122_v19, %v3193_v15  ;;  %v2996_v22 = vadd.f32 %v2964_v7, %v2895_v59  ;;  %v2565_v51 = vmul.f32 %v11305_v21, %v10309_v8  ;;  %v2665_v2 = vmul.f32 %v11398_v31, %v10330_v34 }
 0x1e5   : > { %v2794_v43 = vadd.f32 %v2762_v62, %v2694_v5  ;;  %v2497_v12 = vadd.f32 %v2465_v45, %v2365_v44  ;;  %v11517_v16 = vadd.f32 %v3420_v28, %v3264_v27  ;;  %v3063_v29 = vmul.f32 %v10380_v9, %v11400_v32  ;;  %v14833_v45 = vld [vmem:[#allocation46_spill] sm:$0xff] }
 0x1e6   : > { %v3263_v55 = vmax.f32 %v3231_v24, 0.0  ;;  %v3096_v38 = vadd.f32 %v3064_v57, %v2996_v22  ;;  %v3163_v17 = vmul.f32 %v10392_v23, %v11402_v6  ;;  %v2765_v21 = vmul.f32 %v11387_v36, %v10335_v30  ;;  %v3422_v57 = vpop.permute.xlu0 %3421  ;;  %v14831_v24 = vld [vmem:[#allocation45_spill] sm:$0xff] }
 0x1e7   : > { %14827 = vst [vmem:[#allocation79_spill] sm:$0xff] %v11517_v16  ;;  %v2894_v42 = vadd.f32 %v2862_v49, %v2794_v43  ;;  %v2597_v3 = vadd.f32 %v2565_v51, %v2497_v12  ;;  %v2364_v31 = vmul.f32 %v10295_v13, %v11307_v53  ;;  %v2464_v25 = vmul.f32 %v11323_v52, %v10298_v35  ;;  %v14829_v49 = vld [vmem:[#allocation40_spill] sm:$0xff] }
 0x1e8   : > { %v11523_v37 = vadd.f32 %v3418_v56, %v3263_v55  ;;  %v3196_v20 = vadd.f32 %v3164_v18, %v3096_v38  ;;  %v2564_v58 = vmul.f32 %v11325_v11, %v10309_v8  ;;  %v2865_v33 = vmul.f32 %v11381_v61, %v10356_v39  ;;  %v3424_v18 = vpop.permute.xlu1 %3423 }
 0x1e9   : > { %v2995_v48 = vadd.f32 %v2963_v0, %v2894_v42  ;;  %v2697_v1 = vadd.f32 %v2665_v2, %v2597_v3  ;;  %v2496_v41 = vadd.f32 %v2464_v25, %v2364_v31  ;;  %v2664_v36 = vmul.f32 %v11389_v40, %v10330_v34  ;;  %v8765_v42 = vld [vmem:[%s9092_s30] sm:$0xff]  ;;  %v14839_v3 = vld [vmem:[#allocation20_spill] sm:$0xff]  ;;  %v8767_v31 = vld [vmem:[%s9092_s30 + $0x10] sm:$0xff] }
 0x1ea   : > { %14828 = vst [vmem:[#allocation80_spill] sm:$0xff] %v11523_v37  ;;  %8473 = vmatprep.mubr.msk.f32.mxu1 %vm2192_vm2, %v11523_v37  ;;  %v3234_v13 = vadd.f32 %v11122_v19, %v3196_v20  ;;  %v2966_v35 = vmul.f32 %v10370_v47, %v10706_v14  ;;  %v2764_v11 = vmul.f32 %v11400_v32, %v10335_v30  ;;  %v3426_v55 = vpop.permute.xlu0 %3425  ;;  %v14842_v25 = vld [vmem:[#allocation23_spill] sm:$0xff] }
 0x1eb   : > { %v3095_v7 = vadd.f32 %v3063_v29, %v2995_v48  ;;  %8474 = vmatmul.mubr.msk.f32.gmra.mrb[46].mxu1 %vm2192_vm2, %v11517_v16  ;;  %v2797_v8 = vadd.f32 %v2765_v21, %v2697_v1  ;;  %v2596_v52 = vadd.f32 %v2564_v58, %v2496_v41  ;;  %v3066_v61 = vmul.f32 %v10380_v9, %v10708_v46  ;;  %v14836_v29 = vld [vmem:[#allocation21_spill] sm:$0xff] }
 0x1ec   : > { %v2864_v15 = vmul.f32 %v11402_v6, %v10356_v39  ;;  %v3266_v59 = vmax.f32 %v3234_v13, 0.0  ;;  %v3166_v14 = vmul.f32 %v10392_v23, %v10710_v26  ;;  %v2965_v30 = vmul.f32 %v10370_v47, %v14829_v49  ;;  %v3428_v38 = vpop.permute.xlu1 %3427  ;;  %v8769_v13 = vld [vmem:[%s9092_s30 + $0x20] sm:$0xff]  ;;  %v14860_v49 = vld [vmem:[#allocation31_spill] sm:$0xff] }
 0x1ed   : > { %v3195_v53 = vadd.f32 %v3163_v17, %v3095_v7  ;;  %v2897_v62 = vadd.f32 %v2865_v33, %v2797_v8  ;;  %v2696_v40 = vadd.f32 %v2664_v36, %v2596_v52  ;;  %v3065_v22 = vmul.f32 %v10380_v9, %v14831_v24  ;;  %v8768_v33 = vld [vmem:[%s9092_s30 + $0x18] sm:$0xff]  ;;  %v14845_v7 = vld [vmem:[#allocation22_spill] sm:$0xff] }
 0x1ee   : > { %v11559_v39 = vadd.f32 %v3424_v18, %v3266_v59  ;;  %v3165_v26 = vmul.f32 %v10392_v23, %v14833_v45  ;;  %v14837_v17 = vmax.f32 %v14836_v29, 0.0  ;;  %v14840_v21 = vmax.f32 %v14839_v3, 0.0  ;;  %v8770_v52 = vld [vmem:[%s9092_s30 + $0x28] sm:$0xff]  ;;  %v14866_v45 = vld [vmem:[#allocation39_spill] sm:$0xff] }
 0x1ef   : > { %v3233_v34 = vadd.f32 %v11122_v19, %v3195_v53  ;;  %v2998_v27 = vadd.f32 %v2966_v35, %v2897_v62  ;;  %v2796_v32 = vadd.f32 %v2764_v11, %v2696_v40  ;;  %v14843_v58 = vmax.f32 %v14842_v25, 0.0  ;;  %v14848_v35 = vld [vmem:[#allocation25_spill] sm:$0xff]  ;;  %v14851_v11 = vld [vmem:[#allocation24_spill] sm:$0xff]  ;;  %v14854_v40 = vld [vmem:[#allocation27_spill] sm:$0xff] }
 0x1f0   : > { %14832 = vst [vmem:[#allocation45_spill] sm:$0xff] %v11559_v39  ;;  %v11576_v20 = vadd.f32 %v8765_v42, %v14837_v17  ;;  %v14846_v41 = vmax.f32 %v14845_v7, 0.0  ;;  %v14849_v8 = vmax.f32 %v14848_v35, 0.0  ;;  %v14863_v24 = vld [vmem:[#allocation30_spill] sm:$0xff]  ;;  %v8779_v3 = vld [vmem:[%s9092_s30 + $0x70] sm:$0xff]  ;;  %v14884_v35 = vld [vmem:[#allocation48_spill] sm:$0xff] }
 0x1f1   : > { %v3265_v5 = vmax.f32 %v3233_v34, 0.0  ;;  %v3098_v46 = vadd.f32 %v3066_v61, %v2998_v27  ;;  %v2896_v44 = vadd.f32 %v2864_v15, %v2796_v32  ;;  %v11592_v1 = vadd.f32 %v8767_v31, %v14843_v58  ;;  %v8771_v34 = vld [vmem:[%s9092_s30 + $0x30] sm:$0xff]  ;;  %v8778_v42 = vld [vmem:[%s9092_s30 + $0x68] sm:$0xff]  ;;  %v8780_v58 = vld [vmem:[%s9092_s30 + $0x78] sm:$0xff] }
 0x1f2   : > { %14838 = vst [vmem:[#allocation21_spill] sm:$0xff] %v11576_v20  ;;  %v11601_v36 = vadd.f32 %v8768_v33, %v14846_v41  ;;  %v11606_v53 = vadd.f32 %v8769_v13, %v14849_v8  ;;  %v14852_v61 = vmax.f32 %v14851_v11, 0.0  ;;  %v14855_v15 = vmax.f32 %v14854_v40, 0.0  ;;  %v14875_v29 = vld [vmem:[#allocation34_spill] sm:$0xff]  ;;  %v14881_v33 = vld [vmem:[#allocation41_spill] sm:$0xff] }
 0x1f3   : > { %v11555_v28 = vadd.f32 %v3422_v57, %v3265_v5  ;;  %v3198_v6 = vadd.f32 %v3166_v14, %v3098_v46  ;;  %v2997_v56 = vadd.f32 %v2965_v30, %v2896_v44  ;;  %14844 = vst [vmem:[#allocation23_spill] sm:$0xff] %v11592_v1  ;;  %v8772_v57 = vld [vmem:[%s9092_s30 + $0x38] sm:$0xff]  ;;  %v14857_v14 = vld [vmem:[#allocation26_spill] sm:$0xff]  ;;  %v8773_v5 = vld [vmem:[%s9092_s30 + $0x40] sm:$0xff]  ;;  %v14861_v30 = vmax.f32 %v14860_v49, 0.0 }
 0x1f4   : > { %14847 = vst [vmem:[#allocation22_spill] sm:$0xff] %v11601_v36  ;;  %14850 = vst [vmem:[#allocation25_spill] sm:$0xff] %v11606_v53  ;;  %v11615_v62 = vadd.f32 %v8770_v52, %v14852_v61  ;;  %v11620_v59 = vadd.f32 %v8771_v34, %v14855_v15  ;;  %v14858_v27 = vmax.f32 %v14857_v14, 0.0  ;;  %v8774_v46 = vld [vmem:[%s9092_s30 + $0x48] sm:$0xff]  ;;  %v14876_v17 = vmax.f32 %v14875_v29, 0.0  ;;  %v8781_v13 = vld [vmem:[%s9092_s30 + $0x80] sm:$0xff] }
 0x1f5   : > { %14830 = vst [vmem:[#allocation40_spill] sm:$0xff] %v11555_v28  ;;  %8476 = vmatprep.mubr.msk.f32.mxu1 %vm2192_vm2, %v11555_v28  ;;  %v3097_v47 = vadd.f32 %v3065_v22, %v2997_v56  ;;  %v3236_v43 = vadd.f32 %v11122_v19, %v3198_v6  ;;  %v11634_v32 = vadd.f32 %v8773_v5, %v14861_v30  ;;  %v14864_v22 = vmax.f32 %v14863_v24, 0.0  ;;  %v8775_v6 = vld [vmem:[%s9092_s30 + $0x50] sm:$0xff]  ;;  %v8782_v11 = vld [vmem:[%s9092_s30 + $0x88] sm:$0xff]  ;;  %v8784_v5 = vld [vmem:[%s9092_s30 + $0x98] sm:$0xff] }
 0x1f6   : > { %8477 = vmatmul.mubr.msk.f32.gmra.mrb[48].mxu1 %vm2192_vm2, %v11559_v39  ;;  %14853 = vst [vmem:[#allocation24_spill] sm:$0xff] %v11615_v62  ;;  %14856 = vst [vmem:[#allocation27_spill] sm:$0xff] %v11620_v59  ;;  %v11629_v18 = vadd.f32 %v8772_v57, %v14858_v27  ;;  %v14882_v7 = vmax.f32 %v14881_v33, 0.0  ;;  %v14885_v8 = vmax.f32 %v14884_v35, 0.0  ;;  %v14887_v61 = vld [vmem:[#allocation47_spill] sm:$0xff]  ;;  %v14890_v57 = vld [vmem:[#allocation52_spill] sm:$0xff] }
 0x1f7   : > { %v3197_v9 = vadd.f32 %v3165_v26, %v3097_v47  ;;  %v3268_v51 = vmax.f32 %v3236_v43, 0.0  ;;  %14862 = vst [vmem:[#allocation31_spill] sm:$0xff] %v11634_v32  ;;  %v11643_v44 = vadd.f32 %v8774_v46, %v14864_v22  ;;  %v14867_v26 = vmax.f32 %v14866_v45, 0.0  ;;  %v8776_v47 = vld [vmem:[%s9092_s30 + $0x58] sm:$0xff]  ;;  %v14869_v43 = vld [vmem:[#allocation38_spill] sm:$0xff]  ;;  %v8783_v15 = vld [vmem:[%s9092_s30 + $0x90] sm:$0xff] }
 0x1f8   : > { %14859 = vst [vmem:[#allocation26_spill] sm:$0xff] %v11629_v18  ;;  %v11685_v41 = vadd.f32 %v8780_v58, %v14882_v7  ;;  %v11690_v52 = vadd.f32 %v8781_v13, %v14885_v8  ;;  %v14888_v34 = vmax.f32 %v14887_v61, 0.0  ;;  %v14891_v14 = vmax.f32 %v14890_v57, 0.0  ;;  %v14893_v49 = vld [vmem:[#allocation51_spill] sm:$0xff]  ;;  %v14896_v24 = vld [vmem:[#allocation8_spill] sm:$0xff]  ;;  %v14913_v58 = vld [vmem:[#allocation62_spill] sm:$0xff] }
 0x1f9   : > { %v3235_v0 = vadd.f32 %v11122_v19, %v3197_v9  ;;  %v11571_v2 = vadd.f32 %v3428_v38, %v3268_v51  ;;  %v8766_v19 = vld [vmem:[%s9092_s30 + $0x8] sm:$0xff]  ;;  %14865 = vst [vmem:[#allocation30_spill] sm:$0xff] %v11643_v44  ;;  %v11648_v56 = vadd.f32 %v8775_v6, %v14867_v26  ;;  %v14870_v9 = vmax.f32 %v14869_v43, 0.0  ;;  %v8777_v51 = vld [vmem:[%s9092_s30 + $0x60] sm:$0xff]  ;;  %v14897_v22 = vld [vmem:[#allocation56_spill] sm:$0xff] }
 0x1fa   : > { %v11587_v48 = vadd.f32 %v8766_v19, %v14840_v21  ;;  %v11671_v19 = vadd.f32 %v8778_v42, %v14876_v17  ;;  %v14878_v21 = vld [vmem:[#allocation42_spill] sm:$0xff]  ;;  %14883 = vst [vmem:[#allocation41_spill] sm:$0xff] %v11685_v41  ;;  %14886 = vst [vmem:[#allocation48_spill] sm:$0xff] %v11690_v52  ;;  %v11699_v40 = vadd.f32 %v8782_v11, %v14888_v34  ;;  %v14894_v30 = vmax.f32 %v14893_v49, 0.0  ;;  %v14900_v26 = vld [vmem:[#allocation9_spill] sm:$0xff] }
 0x1fb   : > { %v3267_v23 = vmax.f32 %v3235_v0, 0.0  ;;  %14835 = vst [vmem:[#allocation81_spill] sm:$0xff] %v11571_v2  ;;  %14868 = vst [vmem:[#allocation39_spill] sm:$0xff] %v11648_v56  ;;  %v11657_v0 = vadd.f32 %v8776_v47, %v14870_v9  ;;  %v14879_v31 = vmax.f32 %v14878_v21, 0.0  ;;  %v11704_v27 = vadd.f32 %v8783_v15, %v14891_v14  ;;  %v14901_v47 = vld [vmem:[#allocation55_spill] sm:$0xff]  ;;  %v14909_v17 = vld [vmem:[#allocation58_spill] sm:$0xff] }
 0x1fc   : > { %14841 = vst [vmem:[#allocation20_spill] sm:$0xff] %v11587_v48  ;;  %14877 = vst [vmem:[#allocation34_spill] sm:$0xff] %v11671_v19  ;;  %v11713_v46 = vadd.f32 %v8784_v5, %v14894_v30  ;;  %v14898_v6 = vmax.f32 %v14897_v22, 0.0  ;;  %v14902_v43 = vmax.f32 %v14901_v47, 0.0  ;;  %v14908_v29 = vld [vmem:[#allocation11_spill] sm:$0xff]  ;;  %v14914_v33 = vmax.f32 %v14913_v58, 0.0 }
 0x1fd   : > { %v11569_v12 = vadd.f32 %v3426_v55, %v3267_v23  ;;  %14871 = vst [vmem:[#allocation38_spill] sm:$0xff] %v11657_v0  ;;  %v14872_v55 = vld [vmem:[#allocation35_spill] sm:$0xff]  ;;  %v11676_v25 = vadd.f32 %v8779_v3, %v14879_v31  ;;  %14889 = vst [vmem:[#allocation47_spill] sm:$0xff] %v11699_v40  ;;  %v14910_v3 = vmax.f32 %v14909_v17, 0.0  ;;  %v14912_v31 = vld [vmem:[#allocation12_spill] sm:$0xff] }
 0x1fe   : > { %v14873_v38 = vmax.f32 %v14872_v55, 0.0  ;;  %14892 = vst [vmem:[#allocation52_spill] sm:$0xff] %v11704_v27  ;;  %14895 = vst [vmem:[#allocation51_spill] sm:$0xff] %v11713_v46  ;;  %v11718_v45 = vadd.f32 %v14898_v6, %v14896_v24  ;;  %v11727_v9 = vadd.f32 %v14902_v43, %v14900_v26  ;;  %v14905_v55 = vld [vmem:[#allocation60_spill] sm:$0xff]  ;;  %v11746_v7 = vadd.f32 %v14914_v33, %v14912_v31  ;;  %v14916_v13 = vld [vmem:[#allocation13_spill] sm:$0xff] }
 0x1ff   : > { %14834 = vst [vmem:[#allocation46_spill] sm:$0xff] %v11569_v12  ;;  %8479 = vmatprep.mubr.msk.f32.mxu1 %vm2192_vm2, %v11569_v12  ;;  %14880 = vst [vmem:[#allocation42_spill] sm:$0xff] %v11676_v25  ;;  %v11741_v21 = vadd.f32 %v14910_v3, %v14908_v29  ;;  %v14917_v35 = vld [vmem:[#allocation61_spill] sm:$0xff]  ;;  %v14920_v61 = vld [vmem:[#allocation14_spill] sm:$0xff]  ;;  %v14937_v29 = vmax.f32 %v11310_v4, 0.0  ;;  %v14940_v31 = vmax.f32 %v11299_v63, 0.0 }
 0x200   : > { %8480 = vmatmul.mubr.msk.f32.gmra.mrb[50].mxu1 %vm2192_vm2, %v11571_v2  ;;  %v11662_v23 = vadd.f32 %v8777_v51, %v14873_v38  ;;  %14899 = vst [vmem:[#allocation8_spill] sm:$0xff] %v11718_v45  ;;  %14903 = vst [vmem:[#allocation56_spill] sm:$0xff] %v11727_v9  ;;  %v14904_v51 = vld [vmem:[#allocation10_spill] sm:$0xff]  ;;  %v14906_v38 = vmax.f32 %v14905_v55, 0.0  ;;  %v14918_v8 = vmax.f32 %v14917_v35, 0.0  ;;  %v14924_v14 = vld [vmem:[#allocation15_spill] sm:$0xff] }
 0x201   : > { %8484 = vmatprep.mubr.msk.f32.mxu1 %vm2192_vm2, %v11576_v20  ;;  %14911 = vst [vmem:[#allocation55_spill] sm:$0xff] %v11741_v21  ;;  %14915 = vst [vmem:[#allocation10_spill] sm:$0xff] %v11746_v7  ;;  %v14921_v34 = vld [vmem:[#allocation66_spill] sm:$0xff]  ;;  %v14925_v5 = vld [vmem:[#allocation65_spill] sm:$0xff]  ;;  %v14942_v33 = vmov 0.0  }
 0x202   : > { %14874 = vst [vmem:[#allocation35_spill] sm:$0xff] %v11662_v23  ;;  %v11732_v42 = vadd.f32 %v14906_v38, %v14904_v51  ;;  %v11755_v11 = vadd.f32 %v14918_v8, %v14916_v13  ;;  %v14922_v15 = vmax.f32 %v14921_v34, 0.0  ;;  %v14926_v49 = vmax.f32 %v14925_v5, 0.0  ;;  %v14928_v24 = vld [vmem:[#allocation16_spill] sm:$0xff]  ;;  %v14929_v22 = vld [vmem:[#allocation70_spill] sm:$0xff]  ;;  %v14932_v47 = vld [vmem:[#allocation17_spill] sm:$0xff] }
 0x203   : > { %v14930_v6 = vmax.f32 %v14929_v22, 0.0  ;;  %v14933_v43 = vld [vmem:[#allocation69_spill] sm:$0xff]  ;;  %v14936_v38 = vld [vmem:[#allocation18_spill] sm:$0xff]  ;;  %v14939_v3 = vld [vmem:[#allocation19_spill] sm:$0xff]  ;;  %4226 = vst.msk [vmem:[#allocation3 + $0x30] sm:$0xff] %vm4219_vm3, %v14942_v33 }
 0x204   : > { %8485 = vmatmul.mubr.msk.f32.vlgmr.msra.gmra.mrb[20].mxu1 %vm2192_vm2, %v11587_v48  ;;  %14907 = vst [vmem:[#allocation9_spill] sm:$0xff] %v11732_v42  ;;  %14919 = vst [vmem:[#allocation60_spill] sm:$0xff] %v11755_v11  ;;  %v11760_v57 = vadd.f32 %v14922_v15, %v14920_v61  ;;  %v11769_v30 = vadd.f32 %v14926_v49, %v14924_v14  ;;  %v14934_v51 = vmax.f32 %v14933_v43, 0.0  ;;  %v4215_v63 = vld [vmem:[%s14506_s10] sm:$0x7]  ;;  %v14943_v35 = vld [vmem:[#allocation6_spill] sm:$0xff] }
 0x205   : > { %8487 = vmatprep.mubr.msk.f32.mxu1 %vm2192_vm2, %v11592_v1  ;;  %v11774_v26 = vadd.f32 %v14930_v6, %v14928_v24  ;;  %v11788_v17 = vadd.f32 %v14937_v29, %v14936_v38  ;;  %v11797_v58 = vadd.f32 %v14940_v31, %v14939_v3  ;;  %4227 = vst.msk [vmem:[#allocation3 + $0x38] sm:$0xff] %vm4219_vm3, %v14942_v33  ;;  %4220 = vst.msk [vmem:[#allocation3] sm:$0xff] %vm4219_vm3, %v14942_v33  ;;  %v11951_v4 = vld [vmem:[%s14505_s9] ss:$0 sm:$0xff]  ;;  %v14946_v43 = vld [vmem:[#allocation7_spill] sm:$0xff] }
 0x206   : > { %14923 = vst [vmem:[#allocation11_spill] sm:$0xff] %v11760_v57  ;;  %14927 = vst [vmem:[#allocation58_spill] sm:$0xff] %v11769_v30  ;;  %v11783_v55 = vadd.f32 %v14934_v51, %v14932_v47  ;;  %v11954_v8 = vrot.slane %v4215_v63, %v14943_v35  ;;  %v14944_v61 = vld [vmem:[#allocation5_spill] sm:$0xff]  ;;  %v11964_v51 = vrot.slane %v4215_v63, %v14946_v43 }
 0x207   : > { %14931 = vst [vmem:[#allocation12_spill] sm:$0xff] %v11774_v26  ;;  %14938 = vst [vmem:[#allocation13_spill] sm:$0xff] %v11788_v17  ;;  %v11957_v34 = vrot.slane %v4215_v63, %v14944_v61 }
 0x208   : > { %8488 = vmatmul.mubr.msk.f32.gmra.mrb[22].mxu1 %vm2192_vm2, %v11601_v36  ;;  %14935 = vst [vmem:[#allocation62_spill] sm:$0xff] %v11783_v55  ;;  %14941 = vst [vmem:[#allocation61_spill] sm:$0xff] %v11797_v58 }
 0x209   : > { %8490 = vmatprep.mubr.msk.f32.mxu1 %vm2192_vm2, %v11606_v53  ;;  %4221 = vst.msk [vmem:[#allocation3 + $0x8] sm:$0xff] %vm4219_vm3, %v14942_v33  ;;  %4222 = vst.msk [vmem:[#allocation3 + $0x10] sm:$0xff] %vm4219_vm3, %v14942_v33 }
 0x20a   : > { %4223 = vst.msk [vmem:[#allocation3 + $0x18] sm:$0xff] %vm4219_vm3, %v14942_v33  ;;  %4224 = vst.msk [vmem:[#allocation3 + $0x20] sm:$0xff] %vm4219_vm3, %v14942_v33 }
 0x20b   : > { %4225 = vst.msk [vmem:[#allocation3 + $0x28] sm:$0xff] %vm4219_vm3, %v14942_v33  ;;  %4228 = vst.msk [vmem:[#allocation3 + $0x40] sm:$0xff] %vm4219_vm3, %v14942_v33 }
 0x20c   : > { %8491 = vmatmul.mubr.msk.f32.gmra.mrb[24].mxu1 %vm2192_vm2, %v11615_v62  ;;  %4229 = vst.msk [vmem:[#allocation3 + $0x48] sm:$0xff] %vm4219_vm3, %v14942_v33  ;;  %4230 = vst.msk [vmem:[#allocation3 + $0x50] sm:$0xff] %vm4219_vm3, %v14942_v33 }
 0x20d   : > { %8493 = vmatprep.mubr.msk.f32.mxu1 %vm2192_vm2, %v11620_v59  ;;  %4231 = vst.msk [vmem:[#allocation3 + $0x58] sm:$0xff] %vm4219_vm3, %v14942_v33  ;;  %4232 = vst.msk [vmem:[#allocation3 + $0x60] sm:$0xff] %vm4219_vm3, %v14942_v33 }
 0x20e   : > { %4233 = vst.msk [vmem:[#allocation3 + $0x68] sm:$0xff] %vm4219_vm3, %v14942_v33  ;;  %4234 = vst.msk [vmem:[#allocation3 + $0x70] sm:$0xff] %vm4219_vm3, %v14942_v33 }
 0x20f   : > { %4235 = vst.msk [vmem:[#allocation3 + $0x78] sm:$0xff] %vm4219_vm3, %v14942_v33  ;;  %4236 = vst.msk [vmem:[#allocation3 + $0x80] sm:$0xff] %vm4219_vm3, %v14942_v33 }
 0x210   : > { %8494 = vmatmul.mubr.msk.f32.gmra.mrb[26].mxu1 %vm2192_vm2, %v11629_v18  ;;  %4237 = vst.msk [vmem:[#allocation3 + $0x88] sm:$0xff] %vm4219_vm3, %v14942_v33  ;;  %4238 = vst.msk [vmem:[#allocation3 + $0x90] sm:$0xff] %vm4219_vm3, %v14942_v33  ;;  %v4325_v5 = vld [vmem:[#allocation3 + $0x7] sm:$0xff]  ;;  %v4326_v22 = vld [vmem:[#allocation3 + $0xf] sm:$0xff] }
 0x211   : > { %8496 = vmatprep.mubr.msk.f32.mxu1 %vm2192_vm2, %v11634_v32  ;;  %4239 = vst.msk [vmem:[#allocation3 + $0x98] sm:$0xff] %vm4219_vm3, %v14942_v33  ;;  %4240 = vst.msk [vmem:[#allocation3 + $0xa0] sm:$0xff] %vm4219_vm3, %v14942_v33  ;;  %v4425_v49 = vld [vmem:[#allocation3 + $0x8] sm:$0xff]  ;;  %v4426_v6 = vld [vmem:[#allocation3 + $0x10] sm:$0xff]  ;;  %v4361_v29 = vmul.f32 %v11957_v34, %v4325_v5 }
 0x212   : > { %4241 = vst.msk [vmem:[#allocation3 + $0xa8] sm:$0xff] %vm4219_vm3, %v14942_v33  ;;  %4242 = vst.msk [vmem:[#allocation3 + $0xb0] sm:$0xff] %vm4219_vm3, %v14942_v33  ;;  %v4461_v3 = vmul.f32 %v11954_v8, %v4425_v49  ;;  %v4525_v12 = vld [vmem:[#allocation3 + $0x9] sm:$0xff]  ;;  %v4526_v63 = vld [vmem:[#allocation3 + $0x11] sm:$0xff] }
 0x213   : > { %4243 = vst.msk [vmem:[#allocation3 + $0xb8] sm:$0xff] %vm4219_vm3, %v14942_v33  ;;  %4244 = vst.msk [vmem:[#allocation3 + $0xc0] sm:$0xff] %vm4219_vm3, %v14942_v33  ;;  %v4216_v49 = vld [vmem:[%s14506_s10 + $0x4] sm:$0x7]  ;;  %v4562_v37 = vmul.f32 %v11964_v51, %v4526_v63 }
 0x214   : > { %8497 = vmatmul.mubr.msk.f32.gmra.mrb[28].mxu1 %vm2192_vm2, %v11643_v44  ;;  %4245 = vst.msk [vmem:[#allocation3 + $0xc8] sm:$0xff] %vm4219_vm3, %v14942_v33  ;;  %4246 = vst.msk [vmem:[#allocation3 + $0xd0] sm:$0xff] %vm4219_vm3, %v14942_v33  ;;  %v4493_v28 = vadd.f32 %v4461_v3, %v4361_v29 }
 0x215   : > { %8499 = vmatprep.mubr.msk.f32.mxu1 %vm2192_vm2, %v11648_v56  ;;  %4247 = vst.msk [vmem:[#allocation3 + $0xd8] sm:$0xff] %vm4219_vm3, %v14942_v33  ;;  %4248 = vst.msk [vmem:[#allocation3 + $0xe0] sm:$0xff] %vm4219_vm3, %v14942_v33 }
 0x216   : > { %4249 = vst.msk [vmem:[#allocation3 + $0xe8] sm:$0xff] %vm4219_vm3, %v14942_v33  ;;  %4250 = vst.msk [vmem:[#allocation3 + $0xf0] sm:$0xff] %vm4219_vm3, %v14942_v33 }
 0x217   : > { %4251 = vst.msk [vmem:[#allocation3 + $0xf8] sm:$0xff] %vm4219_vm3, %v14942_v33  ;;  %4252 = vst.msk [vmem:[#allocation3 + $0x100] sm:$0xff] %vm4219_vm3, %v14942_v33 }
 0x218   : > { %8500 = vmatmul.mubr.msk.f32.gmra.mrb[30].mxu1 %vm2192_vm2, %v11657_v0  ;;  %4253 = vst.msk [vmem:[#allocation3 + $0x108] sm:$0xff] %vm4219_vm3, %v14942_v33  ;;  %4254 = vst.msk [vmem:[#allocation3 + $0x110] sm:$0xff] %vm4219_vm3, %v14942_v33 }
 0x219   : > { %8502 = vmatprep.mubr.msk.f32.mxu1 %vm2192_vm2, %v11662_v23  ;;  %4255 = vst.msk [vmem:[#allocation3 + $0x118] sm:$0xff] %vm4219_vm3, %v14942_v33  ;;  %4256 = vst.msk [vmem:[#allocation3 + $0x120] sm:$0xff] %vm4219_vm3, %v14942_v33 }
 0x21a   : > { %4257 = vst.msk [vmem:[#allocation3 + $0x128] sm:$0xff] %vm4219_vm3, %v14942_v33  ;;  %4258 = vst.msk [vmem:[#allocation3 + $0x130] sm:$0xff] %vm4219_vm3, %v14942_v33 }
 0x21b   : > { %4259 = vst.msk [vmem:[#allocation3 + $0x138] sm:$0xff] %vm4219_vm3, %v14942_v33  ;;  %4260 = vst.msk [vmem:[#allocation3 + $0x140] sm:$0xff] %vm4219_vm3, %v14942_v33 }
 0x21c   : > { %8503 = vmatmul.mubr.msk.f32.gmra.mrb[32].mxu1 %vm2192_vm2, %v11671_v19  ;;  %4261 = vst.msk [vmem:[#allocation3 + $0x148] sm:$0xff] %vm4219_vm3, %v14942_v33  ;;  %4262 = vst.msk [vmem:[#allocation3 + $0x150] sm:$0xff] %vm4219_vm3, %v14942_v33 }
 0x21d   : > { %8505 = vmatprep.mubr.msk.f32.mxu1 %vm2192_vm2, %v11676_v25  ;;  %4263 = vst.msk [vmem:[#allocation3 + $0x158] sm:$0xff] %vm4219_vm3, %v14942_v33  ;;  %4264 = vst.msk [vmem:[#allocation3 + $0x160] sm:$0xff] %vm4219_vm3, %v14942_v33 }
 0x21e   : > { %4265 = vst.msk [vmem:[#allocation3 + $0x168] sm:$0xff] %vm4219_vm3, %v14942_v33  ;;  %4266 = vst.msk [vmem:[#allocation3 + $0x170] sm:$0xff] %vm4219_vm3, %v14942_v33 }
 0x21f   : > { %4267 = vst.msk [vmem:[#allocation3 + $0x178] sm:$0xff] %vm4219_vm3, %v14942_v33  ;;  %4268 = vst.msk [vmem:[#allocation3 + $0x180] sm:$0xff] %vm4219_vm3, %v14942_v33 }
 0x220   : > { %8506 = vmatmul.mubr.msk.f32.gmra.mrb[34].mxu1 %vm2192_vm2, %v11685_v41  ;;  %4269 = vst.msk [vmem:[#allocation3 + $0x188] sm:$0xff] %vm4219_vm3, %v14942_v33  ;;  %4270 = vst.msk [vmem:[#allocation3 + $0x190] sm:$0xff] %vm4219_vm3, %v14942_v33 }
 0x221   : > { %8508 = vmatprep.mubr.msk.f32.mxu1 %vm2192_vm2, %v11690_v52  ;;  %4271 = vst.msk [vmem:[#allocation3 + $0x198] sm:$0xff] %vm4219_vm3, %v14942_v33  ;;  %4272 = vst.msk [vmem:[#allocation3 + $0x1a0] sm:$0xff] %vm4219_vm3, %v14942_v33 }
 0x222   : > { %4273 = vst.msk [vmem:[#allocation3 + $0x1a8] sm:$0xff] %vm4219_vm3, %v14942_v33  ;;  %4274 = vst.msk [vmem:[#allocation3 + $0x1b0] sm:$0xff] %vm4219_vm3, %v14942_v33 }
 0x223   : > { %4275 = vst.msk [vmem:[#allocation3 + $0x1b8] sm:$0xff] %vm4219_vm3, %v14942_v33  ;;  %4276 = vst.msk [vmem:[#allocation3 + $0x1c0] sm:$0xff] %vm4219_vm3, %v14942_v33 }
 0x224   : > { %8509 = vmatmul.mubr.msk.f32.gmra.mrb[36].mxu1 %vm2192_vm2, %v11699_v40  ;;  %4277 = vst.msk [vmem:[#allocation3 + $0x1c8] sm:$0xff] %vm4219_vm3, %v14942_v33  ;;  %4278 = vst.msk [vmem:[#allocation3 + $0x1d0] sm:$0xff] %vm4219_vm3, %v14942_v33 }
 0x225   : > { %8511 = vmatprep.mubr.msk.f32.mxu1 %vm2192_vm2, %v11704_v27  ;;  %4279 = vst.msk [vmem:[#allocation3 + $0x1d8] sm:$0xff] %vm4219_vm3, %v14942_v33  ;;  %4280 = vst.msk [vmem:[#allocation3 + $0x1e0] sm:$0xff] %vm4219_vm3, %v14942_v33 }
 0x226   : > { %4281 = vst.msk [vmem:[#allocation3 + $0x1e8] sm:$0xff] %vm4219_vm3, %v14942_v33  ;;  %4282 = vst.msk [vmem:[#allocation3 + $0x1f0] sm:$0xff] %vm4219_vm3, %v14942_v33 }
 0x227   : > { %4283 = vst.msk [vmem:[#allocation3 + $0x1f8] sm:$0xff] %vm4219_vm3, %v14942_v33  ;;  %4284 = vst.msk [vmem:[#allocation3 + $0x200] sm:$0xff] %vm4219_vm3, %v14942_v33 }
 0x228   : > { %8512 = vmatmul.mubr.msk.f32.gmra.mrb[38].mxu1 %vm2192_vm2, %v11713_v46  ;;  %4285 = vst.msk [vmem:[#allocation3 + $0x208] sm:$0xff] %vm4219_vm3, %v14942_v33  ;;  %4286 = vst.msk [vmem:[#allocation3 + $0x210] sm:$0xff] %vm4219_vm3, %v14942_v33 }
 0x229   : > { %8514 = vmatprep.mubr.msk.f32.mxu1 %vm2192_vm2, %v11718_v45  ;;  %4287 = vst.msk [vmem:[#allocation3 + $0x218] sm:$0xff] %vm4219_vm3, %v14942_v33  ;;  %4288 = vst.msk [vmem:[#allocation3 + $0x220] sm:$0xff] %vm4219_vm3, %v14942_v33 }
 0x22a   : > { %4289 = vst.msk [vmem:[#allocation3 + $0x228] sm:$0xff] %vm4219_vm3, %v14942_v33  ;;  %4290 = vst.msk [vmem:[#allocation3 + $0x230] sm:$0xff] %vm4219_vm3, %v14942_v33 }
 0x22b   : > { %4291 = vst.msk [vmem:[#allocation3 + $0x238] sm:$0xff] %vm4219_vm3, %v14942_v33 }
 0x22c   : > { %8515 = vmatmul.mubr.msk.f32.gmra.mrb[40].mxu1 %vm2192_vm2, %v11727_v9 }
 0x22d   : > { %8517 = vmatprep.mubr.msk.f32.mxu1 %vm2192_vm2, %v11732_v42 }
 0x230   : > { %8518 = vmatmul.mubr.msk.f32.gmra.mrb[42].mxu1 %vm2192_vm2, %v11741_v21 }
 0x231   : > { %8520 = vmatprep.mubr.msk.f32.mxu1 %vm2192_vm2, %v11746_v7 }
 0x234   : > { %8521 = vmatmul.mubr.msk.f32.gmra.mrb[44].mxu1 %vm2192_vm2, %v11755_v11 }
 0x235   : > { %8523 = vmatprep.mubr.msk.f32.mxu1 %vm2192_vm2, %v11760_v57 }
 0x238   : > { %8524 = vmatmul.mubr.msk.f32.gmra.mrb[46].mxu1 %vm2192_vm2, %v11769_v30 }
 0x239   : > { %8526 = vmatprep.mubr.msk.f32.mxu1 %vm2192_vm2, %v11774_v26 }
 0x23c   : > { %8527 = vmatmul.mubr.msk.f32.gmra.mrb[48].mxu1 %vm2192_vm2, %v11783_v55 }
 0x23d   : > { %8529 = vmatprep.mubr.msk.f32.mxu1 %vm2192_vm2, %v11788_v17  ;;  %v11991_v17 = vrot.slane %v4216_v49, %v14944_v61 }
 0x240   : > { %8530 = vmatmul.mubr.msk.f32.gmra.mrb[50].mxu1 %vm2192_vm2, %v11797_v58  ;;  %v12010_v58 = vrot.slane %v4216_v49, %v14946_v43 }
 0x2d7   : > { %v8486_v13 = vpop.f32.mrb[20].mxu1 }
 0x2d8   : > { %v4152_v15 = vadd.f32 %v8486_v13, %v11951_v4  ;;  %v3985_v14 = vpop.f32.mrb[21].mxu1  ;;  %v4362_v13 = vmul.f32 %v11957_v34, %v4326_v22  ;;  %v4561_v22 = vmul.f32 %v11964_v51, %v4525_v12 }
 0x2d9   : > { %v4151_v24 = vadd.f32 %v11951_v4, %v3985_v14  ;;  %v4462_v14 = vmul.f32 %v11954_v8, %v4426_v6 }
 0x2da   : > { %v11961_v47 = vmax.f32 %v4152_v15, 0.0 }
 0x2db   : > { %v11966_v38 = vmax.f32 %v4151_v24, 0.0  ;;  %v8489_v31 = vpop.f32.mrb[22].mxu1 }
 0x2dc   : > { %14945 = vst [vmem:[#allocation14_spill] sm:$0xff] %v11961_v47  ;;  %4294 = vst.msk [vmem:[#allocation3 + $0x30] sm:$0xff] %vm4219_vm3, %v11961_v47  ;;  %v4154_v15 = vadd.f32 %v8489_v31, %v11951_v4  ;;  %v3995_v2 = vpop.f32.mrb[23].mxu1  ;;  %v4494_v31 = vadd.f32 %v4462_v14, %v4362_v13  ;;  %v11999_v13 = vrot.slane %v4216_v49, %v14943_v35 }
 0x2dd   : > { %14947 = vst [vmem:[#allocation66_spill] sm:$0xff] %v11966_v38  ;;  %4293 = vst.msk [vmem:[#allocation3 + $0x28] sm:$0xff] %vm4219_vm3, %v11966_v38  ;;  %v4153_v5 = vadd.f32 %v11951_v4, %v3995_v2  ;;  %v4593_v14 = vadd.f32 %v4561_v22, %v4493_v28  ;;  %v5296_v11 = vsel %vm4219_vm3, %v11966_v38, 0.0 }
 0x2de   : > { %v11981_v24 = vmax.f32 %v4154_v15, 0.0  ;;  %v4594_v55 = vadd.f32 %v4562_v37, %v4494_v31  ;;  %v5297_v37 = vsel %vm4219_vm3, %v11961_v47, 0.0 }
 0x2df   : > { %v11984_v6 = vmax.f32 %v4153_v5, 0.0  ;;  %v8492_v39 = vpop.f32.mrb[24].mxu1 }
 0x2e0   : > { %14948 = vst [vmem:[#allocation15_spill] sm:$0xff] %v11981_v24  ;;  %4296 = vst.msk [vmem:[#allocation3 + $0x50] sm:$0xff] %vm4219_vm3, %v11981_v24  ;;  %v4156_v2 = vadd.f32 %v8492_v39, %v11951_v4  ;;  %v4005_v16 = vpop.f32.mrb[25].mxu1  ;;  %v4217_v39 = vld [vmem:[%s14506_s10 + $0x8] sm:$0x7] }
 0x2e1   : > { %14949 = vst [vmem:[#allocation65_spill] sm:$0xff] %v11984_v6  ;;  %4295 = vst.msk [vmem:[#allocation3 + $0x48] sm:$0xff] %vm4219_vm3, %v11984_v6  ;;  %v4155_v12 = vadd.f32 %v11951_v4, %v4005_v16  ;;  %v12028_v42 = vrot.slane %v4217_v39, %v14943_v35  ;;  %v12036_v41 = vrot.slane %v4217_v39, %v14944_v61 }
 0x2e2   : > { %v11996_v29 = vmax.f32 %v4156_v2, 0.0 }
 0x2e3   : > { %v4428_v3 = vld [vmem:[#allocation3 + $0x30] sm:$0xff]  ;;  %v12004_v15 = vmax.f32 %v4155_v12, 0.0  ;;  %v12006_v63 = vpop.f32.mrb[26].mxu1 }
 0x2e4   : > { %14950 = vst [vmem:[#allocation16_spill] sm:$0xff] %v11996_v29  ;;  %v4464_v5 = vmul.f32 %v11954_v8, %v4428_v3  ;;  %v4327_v16 = vld [vmem:[#allocation3 + $0x27] sm:$0xff]  ;;  %v4328_v2 = vld [vmem:[#allocation3 + $0x2f] sm:$0xff]  ;;  %4298 = vst.msk [vmem:[#allocation3 + $0x70] sm:$0xff] %vm4219_vm3, %v11996_v29  ;;  %v12014_v28 = vpop.f32.mrb[27].mxu1  ;;  %v4762_v46 = vmul.f32 %v11999_v13, %v4428_v3 }
 0x2e5   : > { %14951 = vst [vmem:[#allocation70_spill] sm:$0xff] %v12004_v15  ;;  %v4427_v26 = vld [vmem:[#allocation3 + $0x28] sm:$0xff]  ;;  %v4363_v22 = vmul.f32 %v11957_v34, %v4327_v16  ;;  %v4364_v12 = vmul.f32 %v11957_v34, %v4328_v2  ;;  %v4661_v7 = vmul.f32 %v11991_v17, %v4327_v16  ;;  %4297 = vst.msk [vmem:[#allocation3 + $0x68] sm:$0xff] %vm4219_vm3, %v12004_v15  ;;  %v4528_v49 = vld [vmem:[#allocation3 + $0x31] sm:$0xff] }
 0x2e6   : > { %v4463_v57 = vmul.f32 %v11954_v8, %v4427_v26  ;;  %v4527_v30 = vld [vmem:[#allocation3 + $0x29] sm:$0xff]  ;;  %v4662_v31 = vmul.f32 %v11991_v17, %v4328_v2  ;;  %v4761_v16 = vmul.f32 %v11999_v13, %v4427_v26  ;;  %v5298_v26 = vadd.f32 %v5297_v37, %v5296_v11 }
 0x2e7   : > { %v4496_v45 = vadd.f32 %v4464_v5, %v4364_v12  ;;  %v4693_v9 = vadd.f32 %v4661_v7, %v4593_v14  ;;  %v12031_v27 = vpop.f32.mrb[28].mxu1  ;;  %v4563_v52 = vmul.f32 %v11964_v51, %v4527_v30  ;;  %v4861_v7 = vmul.f32 %v12010_v58, %v4527_v30  ;;  %v4430_v19 = vld [vmem:[#allocation3 + $0x50] sm:$0xff] }
 0x2e8   : > { %v4495_v21 = vadd.f32 %v4463_v57, %v4363_v22  ;;  %v4694_v40 = vadd.f32 %v4662_v31, %v4594_v55  ;;  %v4329_v25 = vld [vmem:[#allocation3 + $0x47] sm:$0xff]  ;;  %v12038_v23 = vpop.f32.mrb[29].mxu1  ;;  %v4564_v57 = vmul.f32 %v11964_v51, %v4528_v49  ;;  %v4330_v14 = vld [vmem:[#allocation3 + $0x4f] sm:$0xff]  ;;  %v4862_v22 = vmul.f32 %v12010_v58, %v4528_v49 }
 0x2e9   : > { %v4429_v2 = vld [vmem:[#allocation3 + $0x48] sm:$0xff]  ;;  %v4793_v5 = vadd.f32 %v4761_v16, %v4693_v9  ;;  %v5299_v55 = vsel %vm4219_vm3, %v11984_v6, 0.0  ;;  %v4365_v56 = vmul.f32 %v11957_v34, %v4329_v25  ;;  %v12050_v9 = vrot.slane %v4217_v39, %v14946_v43  ;;  %v4530_v30 = vld [vmem:[#allocation3 + $0x51] sm:$0xff] }
 0x2ea   : > { %v4595_v3 = vadd.f32 %v4563_v52, %v4495_v21  ;;  %v4794_v12 = vadd.f32 %v4762_v46, %v4694_v40  ;;  %v4465_v0 = vmul.f32 %v11954_v8, %v4429_v2  ;;  %v4596_v35 = vadd.f32 %v4564_v57, %v4496_v45  ;;  %v4529_v16 = vld [vmem:[#allocation3 + $0x49] sm:$0xff] }
 0x2eb   : > { %v4893_v31 = vadd.f32 %v4861_v7, %v4793_v5  ;;  %v12047_v32 = vpop.f32.mrb[30].mxu1  ;;  %v12054_v11 = vsel %vm4219_vm3, %v11981_v24, 0.0  ;;  %v4663_v52 = vmul.f32 %v11991_v17, %v4329_v25  ;;  %v4664_v40 = vmul.f32 %v11991_v17, %v4330_v14 }
 0x2ec   : > { %v12058_v46 = vpop.f32.mrb[31].mxu1  ;;  %v4466_v21 = vmul.f32 %v11954_v8, %v4430_v19  ;;  %v4894_v49 = vadd.f32 %v4862_v22, %v4794_v12  ;;  %v4962_v45 = vmul.f32 %v12036_v41, %v4329_v25  ;;  %v12062_v37 = vadd.f32 %v5299_v55, %v5298_v26  ;;  %v4331_v55 = vld [vmem:[#allocation3 + $0x67] sm:$0xff]  ;;  %v4332_v62 = vld [vmem:[#allocation3 + $0x6f] sm:$0xff] }
 0x2ed   : > { %v4366_v39 = vmul.f32 %v11957_v34, %v4330_v14  ;;  %v4695_v57 = vadd.f32 %v4663_v52, %v4595_v3  ;;  %v4763_v5 = vmul.f32 %v11999_v13, %v4429_v2  ;;  %v4963_v7 = vmul.f32 %v12036_v41, %v4330_v14 }
 0x2ee   : > { %v4497_v43 = vadd.f32 %v4465_v0, %v4365_v56  ;;  %v4696_v44 = vadd.f32 %v4664_v40, %v4596_v35  ;;  %v4994_v59 = vadd.f32 %v4962_v45, %v4893_v31  ;;  %v5062_v18 = vmul.f32 %v12028_v42, %v4429_v2  ;;  %v4432_v2 = vld [vmem:[#allocation3 + $0x70] sm:$0xff]  ;;  %v4431_v31 = vld [vmem:[#allocation3 + $0x68] sm:$0xff] }
 0x2ef   : > { %v12068_v53 = vpop.f32.mrb[32].mxu1  ;;  %v4566_v22 = vmul.f32 %v11964_v51, %v4530_v30  ;;  %v5063_v25 = vmul.f32 %v12028_v42, %v4430_v19  ;;  %v4995_v26 = vadd.f32 %v4963_v7, %v4894_v49  ;;  %v12074_v12 = vsel %vm4219_vm3, %v11996_v29, 0.0  ;;  %v12083_v7 = vld [vmem:[#allocation3 + $0x71] sm:$0xff] }
 0x2f0   : > { %v12076_v3 = vpop.f32.mrb[33].mxu1  ;;  %v4764_v14 = vmul.f32 %v11999_v13, %v4430_v19  ;;  %v4565_v56 = vmul.f32 %v11964_v51, %v4529_v16  ;;  %v4795_v0 = vadd.f32 %v4763_v5, %v4695_v57  ;;  %v5094_v35 = vadd.f32 %v5062_v18, %v4994_v59 }
 0x2f1   : > { %v4864_v52 = vmul.f32 %v12010_v58, %v4530_v30  ;;  %v5163_v40 = vmul.f32 %v12050_v9, %v4530_v30  ;;  %v5095_v49 = vadd.f32 %v5063_v25, %v4995_v26  ;;  %v5162_v45 = vmul.f32 %v12050_v9, %v4529_v16  ;;  %v12091_v25 = vld [vmem:[#allocation3 + $0x69] sm:$0xff] }
 0x2f2   : > { %v4498_v1 = vadd.f32 %v4466_v21, %v4366_v39  ;;  %v4597_v36 = vadd.f32 %v4565_v56, %v4497_v43  ;;  %v4796_v19 = vadd.f32 %v4764_v14, %v4696_v44  ;;  %v4863_v20 = vmul.f32 %v12010_v58, %v4529_v16  ;;  %v12098_v43 = vld [vmem:[%s14507_s11] ss:$0 sm:$0xff] }
 0x2f3   : > { %v12086_v57 = vpop.f32.mrb[34].mxu1  ;;  %v5194_v59 = vadd.f32 %v5162_v45, %v5094_v35  ;;  %v4468_v18 = vmul.f32 %v11954_v8, %v4432_v2  ;;  %v4367_v5 = vmul.f32 %v11957_v34, %v4331_v55  ;;  %v4467_v30 = vmul.f32 %v11954_v8, %v4431_v31 }
 0x2f4   : > { %v12093_v26 = vpop.f32.mrb[35].mxu1  ;;  %v4895_v44 = vadd.f32 %v4863_v20, %v4795_v0  ;;  %v5195_v21 = vadd.f32 %v5163_v40, %v5095_v49  ;;  %v12102_v39 = vmul.f32 %v11964_v51, %v12083_v7  ;;  %v4368_v16 = vmul.f32 %v11957_v34, %v4332_v62 }
 0x2f5   : > { %v4766_v14 = vmul.f32 %v11999_v13, %v4432_v2  ;;  %v5065_v56 = vmul.f32 %v12028_v42, %v4432_v2  ;;  %v5165_v35 = vmul.f32 %v12050_v9, %v12083_v7  ;;  %v4665_v45 = vmul.f32 %v11991_v17, %v4331_v55 }
 0x2f6   : > { %v12112_v48 = vmul.f32 %v11964_v51, %v12091_v25  ;;  %v4598_v20 = vadd.f32 %v4566_v22, %v4498_v1  ;;  %v4896_v0 = vadd.f32 %v4864_v52, %v4796_v19  ;;  %v4964_v40 = vmul.f32 %v12036_v41, %v4331_v55 }
 0x2f7   : > { %v12115_v49 = vpop.f32.mrb[36].mxu1  ;;  %v12118_v60 = vadd.f32 %v12098_v43, %v5194_v59  ;;  %v12120_v50 = vadd.f32 %v4467_v30, %v4367_v5  ;;  %v4666_v2 = vmul.f32 %v11991_v17, %v4332_v62  ;;  %v4965_v10 = vmul.f32 %v12036_v41, %v4332_v62 }
 0x2f8   : > { %v12124_v54 = vpop.f32.mrb[37].mxu1  ;;  %v12127_v29 = vadd.f32 %v12098_v43, %v5195_v21  ;;  %v12129_v1 = vadd.f32 %v4468_v18, %v4368_v16  ;;  %v4996_v22 = vadd.f32 %v4964_v40, %v4895_v44  ;;  %v5064_v55 = vmul.f32 %v12028_v42, %v4431_v31 }
 0x2f9   : > { %14952 = vst [vmem:[#allocation17_spill] sm:$0xff] %v12118_v60  ;;  %v4697_v52 = vadd.f32 %v4665_v45, %v4597_v36  ;;  %v4765_v19 = vmul.f32 %v11999_v13, %v4431_v31  ;;  %v4997_v59 = vadd.f32 %v4965_v10, %v4896_v0  ;;  %v5302_v5 = vadd.f32 %v12054_v11, %v12062_v37 }
 0x2fa   : > { %14953 = vst [vmem:[#allocation69_spill] sm:$0xff] %v12127_v29  ;;  %v5096_v30 = vadd.f32 %v5064_v55, %v4996_v22  ;;  %v5164_v62 = vmul.f32 %v12050_v9, %v12091_v25  ;;  %v5303_v21 = vsel %vm4219_vm3, %v12004_v15, 0.0  ;;  %v4158_v18 = vadd.f32 %v12006_v63, %v11951_v4 }
 0x2fb   : > { %v12141_v44 = vpop.f32.mrb[38].mxu1  ;;  %v14673_v36 = vmax.f32 %v12118_v60, 0.0  ;;  %v5097_v16 = vadd.f32 %v5065_v56, %v4997_v59  ;;  %v5304_v31 = vadd.f32 %v5303_v21, %v5302_v5  ;;  %v4157_v10 = vadd.f32 %v11951_v4, %v12014_v28 }
 0x2fc   : > { %v12146_v11 = vpop.f32.mrb[39].mxu1  ;;  %v14672_v37 = vmax.f32 %v12127_v29, 0.0  ;;  %v5196_v45 = vadd.f32 %v5164_v62, %v5096_v30  ;;  %v12149_v0 = vmax.f32 %v4158_v18, 0.0  ;;  %v4160_v40 = vadd.f32 %v12031_v27, %v11951_v4 }
 0x2fd   : > { %v5197_v63 = vadd.f32 %v5165_v35, %v5097_v16  ;;  %v12153_v22 = vmax.f32 %v4157_v10, 0.0  ;;  %v5306_v55 = vadd.f32 %v12074_v12, %v5304_v31  ;;  %v4159_v56 = vadd.f32 %v11951_v4, %v12038_v23 }
 0x2fe   : > { %14954 = vst [vmem:[#allocation18_spill] sm:$0xff] %v12149_v0  ;;  %v4698_v59 = vadd.f32 %v4666_v2, %v4598_v20  ;;  %v12159_v28 = vadd.f32 %v12098_v43, %v5196_v45  ;;  %4300 = vst.msk [vmem:[#allocation3 + $0x90] sm:$0xff] %vm4219_vm3, %v12149_v0  ;;  %v12163_v5 = vmax.f32 %v4160_v40, 0.0  ;;  %v4162_v27 = vadd.f32 %v12047_v32, %v11951_v4 }
 0x2ff   : > { %14955 = vst [vmem:[#allocation19_spill] sm:$0xff] %v12153_v22  ;;  %v12167_v35 = vpop.f32.mrb[40].mxu1  ;;  %v12170_v30 = vadd.f32 %v12098_v43, %v5197_v63  ;;  %4299 = vst.msk [vmem:[#allocation3 + $0x88] sm:$0xff] %vm4219_vm3, %v12153_v22  ;;  %v5307_v23 = vsel %vm4219_vm3, %v12153_v22, 0.0  ;;  %v12176_v12 = vmax.f32 %v4159_v56, 0.0  ;;  %v4161_v20 = vadd.f32 %v11951_v4, %v12058_v46 }
 0x300   : > { %14956 = vst [vmem:[#allocation82_spill] sm:$0xff] %v12159_v28  ;;  %14957 = vst [vmem:[#allocation83_spill] sm:$0xff] %v12163_v5  ;;  %v12180_v2 = vpop.f32.mrb[41].mxu1  ;;  %v4797_v62 = vadd.f32 %v4765_v19, %v4697_v52  ;;  %v14671_v32 = vmax.f32 %v12159_v28, 0.0  ;;  %v5308_v21 = vadd.f32 %v5307_v23, %v5306_v55  ;;  %v12185_v18 = vmax.f32 %v4162_v27, 0.0 }
 0x301   : > { %14958 = vst [vmem:[#allocation84_spill] sm:$0xff] %v12170_v30  ;;  %14959 = vst [vmem:[#allocation85_spill] sm:$0xff] %v12176_v12  ;;  %v5367_v16 = vsel %vm4219_vm3, %v14673_v36, 0.0  ;;  %v5368_v31 = vsel %vm4219_vm3, %v14672_v37, 0.0  ;;  %v12195_v46 = vmax.f32 %v4161_v20, 0.0  ;;  %v4164_v52 = vadd.f32 %v12068_v53, %v11951_v4 }
 0x302   : > { %4302 = vst.msk [vmem:[#allocation3 + $0xb0] sm:$0xff] %vm4219_vm3, %v12163_v5  ;;  %14960 = vst [vmem:[#allocation86_spill] sm:$0xff] %v12185_v18  ;;  %v4798_v19 = vadd.f32 %v4766_v14, %v4698_v59  ;;  %v4865_v10 = vmul.f32 %v12010_v58, %v12091_v25  ;;  %v5309_v45 = vsel %vm4219_vm3, %v12149_v0, 0.0  ;;  %v4163_v40 = vadd.f32 %v11951_v4, %v12076_v3 }
 0x303   : > { %4301 = vst.msk [vmem:[#allocation3 + $0xa8] sm:$0xff] %vm4219_vm3, %v12176_v12  ;;  %14961 = vst [vmem:[#allocation87_spill] sm:$0xff] %v12195_v46  ;;  %v12207_v63 = vpop.f32.mrb[42].mxu1  ;;  %v14674_v55 = vmax.f32 %v12170_v30, 0.0  ;;  %v5370_v53 = vsel %vm4219_vm3, %v14671_v32, 0.0  ;;  %v5310_v14 = vadd.f32 %v5309_v45, %v5308_v21  ;;  %v12215_v25 = vmax.f32 %v4164_v52, 0.0 }
 0x304   : > { %4304 = vst.msk [vmem:[#allocation3 + $0xd0] sm:$0xff] %vm4219_vm3, %v12185_v18  ;;  %4303 = vst.msk [vmem:[#allocation3 + $0xc8] sm:$0xff] %vm4219_vm3, %v12195_v46  ;;  %v12217_v56 = vpop.f32.mrb[43].mxu1  ;;  %v5369_v59 = vadd.f32 %v5368_v31, %v5367_v16  ;;  %v4866_v3 = vmul.f32 %v12010_v58, %v12083_v7  ;;  %v5311_v27 = vsel %vm4219_vm3, %v12176_v12, 0.0  ;;  %v12223_v23 = vmax.f32 %v4163_v40, 0.0 }
 0x305   : > { %14962 = vst [vmem:[#allocation88_spill] sm:$0xff] %v12215_v25  ;;  %v4599_v20 = vadd.f32 %v12112_v48, %v12120_v50  ;;  %v4897_v21 = vadd.f32 %v4865_v10, %v4797_v62  ;;  %v4434_v45 = vld [vmem:[#allocation3 + $0x90] sm:$0xff]  ;;  %v4600_v52 = vadd.f32 %v12102_v39, %v12129_v1  ;;  %4306 = vst.msk [vmem:[#allocation3 + $0xf0] sm:$0xff] %vm4219_vm3, %v12215_v25  ;;  %v12233_v40 = vsel %vm4219_vm3, %v12163_v5, 0.0 }
 0x306   : > { %14963 = vst [vmem:[#allocation89_spill] sm:$0xff] %v12223_v23  ;;  %v5371_v16 = vadd.f32 %v5370_v53, %v5369_v59  ;;  %v4333_v31 = vld [vmem:[#allocation3 + $0x87] sm:$0xff]  ;;  %v4334_v32 = vld [vmem:[#allocation3 + $0x8f] sm:$0xff]  ;;  %v4898_v37 = vadd.f32 %v4866_v3, %v4798_v19  ;;  %v12237_v50 = vsel %vm4219_vm3, %v12185_v18, 0.0  ;;  %4305 = vst.msk [vmem:[#allocation3 + $0xe8] sm:$0xff] %vm4219_vm3, %v12223_v23  ;;  %v5372_v1 = vsel %vm4219_vm3, %v14674_v55, 0.0 }
 0x307   : > { %v4433_v7 = vld [vmem:[#allocation3 + $0x88] sm:$0xff]  ;;  %v12241_v48 = vpop.f32.mrb[44].mxu1  ;;  %v4369_v39 = vmul.f32 %v11957_v34, %v4333_v31  ;;  %v12247_v62 = vadd.f32 %v5311_v27, %v5310_v14  ;;  %v12251_v19 = vsel %vm4219_vm3, %v12195_v46, 0.0  ;;  %v4667_v59 = vmul.f32 %v11991_v17, %v4333_v31  ;;  %v4534_v15 = vld [vmem:[#allocation3 + $0x91] sm:$0xff] }
 0x308   : > { %v12253_v10 = vpop.f32.mrb[45].mxu1  ;;  %v4469_v53 = vmul.f32 %v11954_v8, %v4433_v7  ;;  %v4668_v3 = vmul.f32 %v11991_v17, %v4334_v32  ;;  %v12260_v36 = vadd.f32 %v12086_v57, %v11951_v4  ;;  %v4470_v55 = vmul.f32 %v11954_v8, %v4434_v45  ;;  %v4533_v46 = vld [vmem:[#allocation3 + $0x89] sm:$0xff] }
 0x309   : > { %v4370_v14 = vmul.f32 %v11957_v34, %v4334_v32  ;;  %v4966_v27 = vmul.f32 %v12036_v41, %v4333_v31  ;;  %v12267_v18 = vadd.f32 %v11951_v4, %v12093_v26  ;;  %v4699_v5 = vadd.f32 %v4667_v59, %v4599_v20 }
 0x30a   : > { %v4967_v12 = vmul.f32 %v12036_v41, %v4334_v32  ;;  %v12270_v0 = vadd.f32 %v5372_v1, %v5371_v16  ;;  %v12274_v57 = vsel %vm4219_vm3, %v12215_v25, 0.0  ;;  %v4501_v24 = vadd.f32 %v4469_v53, %v4369_v39  ;;  %v4335_v39 = vld [vmem:[#allocation3 + $0xa7] sm:$0xff] }
 0x30b   : > { %v12276_v22 = vpop.f32.mrb[46].mxu1  ;;  %v4700_v6 = vadd.f32 %v4668_v3, %v4600_v52  ;;  %v4998_v31 = vadd.f32 %v4966_v27, %v4897_v21  ;;  %v5066_v47 = vmul.f32 %v12028_v42, %v4433_v7  ;;  %v4768_v20 = vmul.f32 %v11999_v13, %v4434_v45  ;;  %v4336_v27 = vld [vmem:[#allocation3 + $0xaf] sm:$0xff] }
 0x30c   : > { %v12279_v26 = vpop.f32.mrb[47].mxu1  ;;  %v5067_v32 = vmul.f32 %v12028_v42, %v4434_v45  ;;  %v4767_v16 = vmul.f32 %v11999_v13, %v4433_v7  ;;  %v4999_v1 = vadd.f32 %v4967_v12, %v4898_v37  ;;  %v4502_v59 = vadd.f32 %v4470_v55, %v4370_v14  ;;  %v4435_v28 = vld [vmem:[#allocation3 + $0xa8] sm:$0xff]  ;;  %v4436_v7 = vld [vmem:[#allocation3 + $0xb0] sm:$0xff] }
 0x30d   : > { %14964 = vst [vmem:[#allocation90_spill] sm:$0xff] %v12279_v26  ;;  %v4569_v25 = vmul.f32 %v11964_v51, %v4533_v46  ;;  %v5098_v38 = vadd.f32 %v5066_v47, %v4998_v31  ;;  %v5166_v30 = vmul.f32 %v12050_v9, %v4533_v46  ;;  %v4570_v21 = vmul.f32 %v11964_v51, %v4534_v15 }
 0x30e   : > { %v5167_v52 = vmul.f32 %v12050_v9, %v4534_v15  ;;  %v4799_v53 = vadd.f32 %v4767_v16, %v4699_v5  ;;  %v5099_v3 = vadd.f32 %v5067_v32, %v4999_v1  ;;  %v4868_v45 = vmul.f32 %v12010_v58, %v4534_v15 }
 0x30f   : > { %v12288_v29 = vpop.f32.mrb[48].mxu1  ;;  %v4601_v37 = vadd.f32 %v4569_v25, %v4501_v24  ;;  %v4800_v12 = vadd.f32 %v4768_v20, %v4700_v6  ;;  %v5198_v55 = vadd.f32 %v5166_v30, %v5098_v38  ;;  %v4867_v14 = vmul.f32 %v12010_v58, %v4533_v46 }
 0x310   : > { %14965 = vst [vmem:[#allocation91_spill] sm:$0xff] %v12288_v29  ;;  %v12291_v47 = vpop.f32.mrb[49].mxu1  ;;  %v5199_v31 = vadd.f32 %v5167_v52, %v5099_v3  ;;  %v4371_v60 = vmul.f32 %v11957_v34, %v4335_v39  ;;  %v4669_v5 = vmul.f32 %v11991_v17, %v4335_v39  ;;  %v4471_v16 = vmul.f32 %v11954_v8, %v4435_v28  ;;  %v4337_v29 = vld [vmem:[#allocation3 + $0xc7] sm:$0xff] }
 0x311   : > { %14966 = vst [vmem:[#allocation92_spill] sm:$0xff] %v12291_v47  ;;  %v12297_v32 = vadd.f32 %v12098_v43, %v5198_v55  ;;  %v4602_v1 = vadd.f32 %v4570_v21, %v4502_v59  ;;  %v4670_v24 = vmul.f32 %v11991_v17, %v4336_v27  ;;  %v4899_v6 = vadd.f32 %v4867_v14, %v4799_v53  ;;  %v4536_v59 = vld [vmem:[#allocation3 + $0xb1] sm:$0xff]  ;;  %v4535_v55 = vld [vmem:[#allocation3 + $0xa9] sm:$0xff] }
 0x312   : > { %v4472_v38 = vmul.f32 %v11954_v8, %v4436_v7  ;;  %v12304_v15 = vadd.f32 %v12115_v49, %v11951_v4  ;;  %v12308_v30 = vadd.f32 %v11951_v4, %v12124_v54  ;;  %v12313_v25 = vadd.f32 %v12098_v43, %v5199_v31 }
 0x313   : > { %14967 = vst [vmem:[#allocation93_spill] sm:$0xff] %v12297_v32  ;;  %v12310_v46 = vpop.f32.mrb[50].mxu1  ;;  %v4701_v21 = vadd.f32 %v4669_v5, %v4601_v37  ;;  %v4900_v52 = vadd.f32 %v4868_v45, %v4800_v12  ;;  %v4770_v3 = vmul.f32 %v11999_v13, %v4436_v7  ;;  %v4372_v49 = vmul.f32 %v11957_v34, %v4336_v27 }
 0x314   : > { %14968 = vst [vmem:[#allocation94_spill] sm:$0xff] %v12310_v46  ;;  %14969 = vst [vmem:[#allocation95_spill] sm:$0xff] %v12313_v25  ;;  %v12316_v53 = vpop.f32.mrb[51].mxu1  ;;  %v4968_v54 = vmul.f32 %v12036_v41, %v4335_v39  ;;  %v4969_v14 = vmul.f32 %v12036_v41, %v4336_v27  ;;  %v5069_v61 = vmul.f32 %v12028_v42, %v4436_v7  ;;  %v14971_v46 = vmax.f32 %v12297_v32, 0.0 }
 0x315   : > { %14970 = vst [vmem:[#allocation96_spill] sm:$0xff] %v12316_v53  ;;  %v4503_v31 = vadd.f32 %v4471_v16, %v4371_v60  ;;  %v4702_v33 = vadd.f32 %v4670_v24, %v4602_v1  ;;  %v4769_v20 = vmul.f32 %v11999_v13, %v4435_v28  ;;  %v5169_v37 = vmul.f32 %v12050_v9, %v4536_v59  ;;  %v4438_v24 = vld [vmem:[#allocation3 + $0xd0] sm:$0xff] }
 0x316   : > { %v5000_v45 = vadd.f32 %v4968_v54, %v4899_v6  ;;  %v5001_v12 = vadd.f32 %v4969_v14, %v4900_v52  ;;  %v5068_v5 = vmul.f32 %v12028_v42, %v4435_v28  ;;  %v5374_v39 = vsel %vm4219_vm3, %v14971_v46, 0.0  ;;  %v4437_v14 = vld [vmem:[#allocation3 + $0xc8] sm:$0xff] }
 0x317   : > { %v4571_v27 = vmul.f32 %v11964_v51, %v4535_v55  ;;  %v4801_v47 = vadd.f32 %v4769_v20, %v4701_v21  ;;  %v4504_v7 = vadd.f32 %v4472_v38, %v4372_v49  ;;  %v5168_v1 = vmul.f32 %v12050_v9, %v4535_v55  ;;  %v4338_v38 = vld [vmem:[#allocation3 + $0xcf] sm:$0xff] }
 0x318   : > { %v5100_v60 = vadd.f32 %v5068_v5, %v5000_v45  ;;  %v5101_v16 = vadd.f32 %v5069_v61, %v5001_v12  ;;  %v4572_v6 = vmul.f32 %v11964_v51, %v4536_v59  ;;  %v4802_v28 = vadd.f32 %v4770_v3, %v4702_v33  ;;  %v4538_v12 = vld [vmem:[#allocation3 + $0xd1] sm:$0xff] }
 0x319   : > { %v4603_v52 = vadd.f32 %v4571_v27, %v4503_v31  ;;  %v4869_v54 = vmul.f32 %v12010_v58, %v4535_v55  ;;  %v5375_v53 = vadd.f32 %v5374_v39, %v12270_v0  ;;  %v4870_v46 = vmul.f32 %v12010_v58, %v4536_v59 }
 0x31a   : > { %v5200_v32 = vadd.f32 %v5168_v1, %v5100_v60  ;;  %v5201_v20 = vadd.f32 %v5169_v37, %v5101_v16  ;;  %v14972_v61 = vmax.f32 %v12313_v25, 0.0  ;;  %v4474_v45 = vmul.f32 %v11954_v8, %v4438_v24 }
 0x31b   : > { %v4901_v21 = vadd.f32 %v4869_v54, %v4801_v47  ;;  %v4671_v33 = vmul.f32 %v11991_v17, %v4337_v29  ;;  %v4373_v0 = vmul.f32 %v11957_v34, %v4337_v29  ;;  %v4473_v59 = vmul.f32 %v11954_v8, %v4437_v14  ;;  %v4537_v54 = vld [vmem:[#allocation3 + $0xc9] sm:$0xff] }
 0x31c   : > { %v5376_v49 = vsel %vm4219_vm3, %v14972_v61, 0.0  ;;  %v12342_v3 = vadd.f32 %v12098_v43, %v5200_v32  ;;  %v4604_v55 = vadd.f32 %v4572_v6, %v4504_v7  ;;  %v12347_v31 = vadd.f32 %v12098_v43, %v5201_v20 }
 0x31d   : > { %v4672_v47 = vmul.f32 %v11991_v17, %v4338_v38  ;;  %v4703_v37 = vadd.f32 %v4671_v33, %v4603_v52  ;;  %v4902_v5 = vadd.f32 %v4870_v46, %v4802_v28  ;;  %v5377_v27 = vadd.f32 %v5376_v49, %v5375_v53 }
 0x31e   : > { %14973 = vst [vmem:[#allocation97_spill] sm:$0xff] %v12342_v3  ;;  %v14696_v39 = vmax.f32 %v12342_v3, 0.0  ;;  %v4574_v60 = vmul.f32 %v11964_v51, %v4538_v12  ;;  %v4970_v32 = vmul.f32 %v12036_v41, %v4337_v29  ;;  %v5071_v16 = vmul.f32 %v12028_v42, %v4438_v24 }
 0x31f   : > { %v4374_v1 = vmul.f32 %v11957_v34, %v4338_v38  ;;  %v4771_v7 = vmul.f32 %v11999_v13, %v4437_v14  ;;  %v4971_v6 = vmul.f32 %v12036_v41, %v4338_v38  ;;  %v4505_v28 = vadd.f32 %v4473_v59, %v4373_v0  ;;  %v4439_v59 = vld [vmem:[#allocation3 + $0xe8] sm:$0xff] }
 0x320   : > { %v5378_v52 = vsel %vm4219_vm3, %v14696_v39, 0.0  ;;  %v5002_v46 = vadd.f32 %v4970_v32, %v4901_v21  ;;  %v5070_v53 = vmul.f32 %v12028_v42, %v4437_v14  ;;  %v14697_v20 = vmax.f32 %v12347_v31, 0.0  ;;  %v4339_v14 = vld [vmem:[#allocation3 + $0xe7] sm:$0xff] }
 0x321   : > { %v4704_v29 = vadd.f32 %v4672_v47, %v4604_v55  ;;  %v4803_v61 = vadd.f32 %v4771_v7, %v4703_v37  ;;  %v5003_v49 = vadd.f32 %v4971_v6, %v4902_v5  ;;  %v4772_v33 = vmul.f32 %v11999_v13, %v4438_v24  ;;  %v4440_v5 = vld [vmem:[#allocation3 + $0xf0] sm:$0xff] }
 0x322   : > { %v5102_v25 = vadd.f32 %v5070_v53, %v5002_v46  ;;  %v5170_v26 = vmul.f32 %v12050_v9, %v4537_v54  ;;  %v5314_v38 = vadd.f32 %v12233_v40, %v12247_v62  ;;  %v5379_v3 = vadd.f32 %v5378_v52, %v5377_v27  ;;  %v12373_v62 = vld [vmem:[#allocation3 + $0xf1] sm:$0xff] }
 0x323   : > { %v4573_v39 = vmul.f32 %v11964_v51, %v4537_v54  ;;  %v4871_v21 = vmul.f32 %v12010_v58, %v4537_v54  ;;  %v5103_v0 = vadd.f32 %v5071_v16, %v5003_v49  ;;  %v4872_v55 = vmul.f32 %v12010_v58, %v4538_v12  ;;  %v4340_v27 = vld [vmem:[#allocation3 + $0xef] sm:$0xff] }
 0x324   : > { %v5171_v47 = vmul.f32 %v12050_v9, %v4538_v12  ;;  %v4506_v37 = vadd.f32 %v4474_v45, %v4374_v1  ;;  %v5202_v24 = vadd.f32 %v5170_v26, %v5102_v25  ;;  %v4804_v7 = vadd.f32 %v4772_v33, %v4704_v29  ;;  %v4539_v45 = vld [vmem:[#allocation3 + $0xe9] sm:$0xff] }
 0x325   : > { %v4605_v32 = vadd.f32 %v4573_v39, %v4505_v28  ;;  %v4903_v6 = vadd.f32 %v4871_v21, %v4803_v61  ;;  %v5380_v40 = vsel %vm4219_vm3, %v14697_v20, 0.0  ;;  %v5316_v54 = vadd.f32 %v12251_v19, %v5314_v38 }
 0x326   : > { %v5203_v16 = vadd.f32 %v5171_v47, %v5103_v0  ;;  %v4375_v52 = vmul.f32 %v11957_v34, %v4339_v14  ;;  %v4475_v12 = vmul.f32 %v11954_v8, %v4439_v59  ;;  %v12379_v26 = vadd.f32 %v12098_v43, %v5202_v24 }
 0x327   : > { %v5381_v25 = vadd.f32 %v5380_v40, %v5379_v3  ;;  %v4476_v39 = vmul.f32 %v11954_v8, %v4440_v5  ;;  %v4673_v1 = vmul.f32 %v11991_v17, %v4339_v14  ;;  %v4774_v28 = vmul.f32 %v11999_v13, %v4440_v5 }
 0x328   : > { %v5073_v46 = vmul.f32 %v12028_v42, %v4440_v5  ;;  %v5173_v19 = vmul.f32 %v12050_v9, %v12373_v62  ;;  %v4376_v53 = vmul.f32 %v11957_v34, %v4340_v27  ;;  %v4575_v29 = vmul.f32 %v11964_v51, %v4539_v45 }
 0x329   : > { %v4606_v61 = vadd.f32 %v4574_v60, %v4506_v37  ;;  %v4904_v49 = vadd.f32 %v4872_v55, %v4804_v7  ;;  %v4972_v33 = vmul.f32 %v12036_v41, %v4339_v14  ;;  %v12391_v3 = vadd.f32 %v12098_v43, %v5203_v16 }
 0x32a   : > { %v4507_v38 = vadd.f32 %v4475_v12, %v4375_v52  ;;  %v4674_v21 = vmul.f32 %v11991_v17, %v4340_v27  ;;  %v4973_v0 = vmul.f32 %v12036_v41, %v4340_v27  ;;  %v14700_v47 = vmax.f32 %v12379_v26, 0.0 }
 0x32b   : > { %v4705_v24 = vadd.f32 %v4673_v1, %v4605_v32  ;;  %v5004_v5 = vadd.f32 %v4972_v33, %v4903_v6  ;;  %v5072_v40 = vmul.f32 %v12028_v42, %v4439_v59  ;;  %v4773_v20 = vmul.f32 %v11999_v13, %v4439_v59 }
 0x32c   : > { %v5005_v60 = vadd.f32 %v4973_v0, %v4904_v49  ;;  %v5318_v55 = vadd.f32 %v12237_v50, %v5316_v54  ;;  %v5319_v14 = vsel %vm4219_vm3, %v12223_v23, 0.0  ;;  %v5172_v7 = vmul.f32 %v12050_v9, %v4539_v45 }
 0x32d   : > { %v5104_v37 = vadd.f32 %v5072_v40, %v5004_v5  ;;  %v12403_v16 = vmax.f32 %v12260_v36, 0.0  ;;  %v12406_v27 = vmax.f32 %v12267_v18, 0.0  ;;  %v14699_v32 = vmax.f32 %v12391_v3, 0.0 }
 0x32e   : > { %v4706_v6 = vadd.f32 %v4674_v21, %v4606_v61  ;;  %v5105_v52 = vadd.f32 %v5073_v46, %v5005_v60  ;;  %v5320_v59 = vadd.f32 %v5319_v14, %v5318_v55  ;;  %v5382_v50 = vsel %vm4219_vm3, %v14700_v47, 0.0 }
 0x32f   : > { %14974 = vst [vmem:[#allocation98_spill] sm:$0xff] %v12403_v16  ;;  %14975 = vst [vmem:[#allocation99_spill] sm:$0xff] %v12406_v27  ;;  %v4805_v54 = vadd.f32 %v4773_v20, %v4705_v24  ;;  %v5204_v12 = vadd.f32 %v5172_v7, %v5104_v37  ;;  %v5323_v36 = vsel %vm4219_vm3, %v12406_v27, 0.0  ;;  %v12420_v46 = vmax.f32 %v12304_v15, 0.0 }
 0x330   : > { %4308 = vst.msk [vmem:[#allocation3 + $0x110] sm:$0xff] %vm4219_vm3, %v12403_v16  ;;  %4307 = vst.msk [vmem:[#allocation3 + $0x108] sm:$0xff] %vm4219_vm3, %v12406_v27  ;;  %v5205_v18 = vadd.f32 %v5173_v19, %v5105_v52  ;;  %v5322_v1 = vadd.f32 %v12274_v57, %v5320_v59  ;;  %v12423_v61 = vmax.f32 %v12308_v30, 0.0  ;;  %v4170_v49 = vadd.f32 %v12141_v44, %v11951_v4 }
 0x331   : > { %14976 = vst [vmem:[#allocation100_spill] sm:$0xff] %v12420_v46  ;;  %v12426_v20 = vadd.f32 %v12098_v43, %v5204_v12  ;;  %v4169_v33 = vadd.f32 %v11951_v4, %v12146_v11  ;;  %v4172_v19 = vadd.f32 %v12167_v35, %v11951_v4  ;;  %v5383_v21 = vadd.f32 %v5382_v50, %v5381_v25 }
 0x332   : > { %14977 = vst [vmem:[#allocation101_spill] sm:$0xff] %v12423_v61  ;;  %v4508_v57 = vadd.f32 %v4476_v39, %v4376_v53  ;;  %v4806_v0 = vadd.f32 %v4774_v28, %v4706_v6  ;;  %v4873_v15 = vmul.f32 %v12010_v58, %v4539_v45  ;;  %4310 = vst.msk [vmem:[#allocation3 + $0x130] sm:$0xff] %vm4219_vm3, %v12420_v46  ;;  %v12440_v44 = vmax.f32 %v4170_v49, 0.0 }
 0x333   : > { %14978 = vst [vmem:[#allocation102_spill] sm:$0xff] %v12426_v20  ;;  %4309 = vst.msk [vmem:[#allocation3 + $0x128] sm:$0xff] %vm4219_vm3, %v12423_v61  ;;  %v14698_v30 = vmax.f32 %v12426_v20, 0.0  ;;  %v12442_v24 = vmax.f32 %v4169_v33, 0.0  ;;  %v12444_v11 = vmax.f32 %v4172_v19, 0.0  ;;  %v4576_v35 = vmul.f32 %v11964_v51, %v12373_v62 }
 0x334   : > { %14979 = vst [vmem:[#allocation103_spill] sm:$0xff] %v12440_v44  ;;  %v12449_v25 = vadd.f32 %v12098_v43, %v5205_v18  ;;  %v5324_v45 = vadd.f32 %v5323_v36, %v5322_v1  ;;  %v4171_v39 = vadd.f32 %v11951_v4, %v12180_v2  ;;  %v4874_v28 = vmul.f32 %v12010_v58, %v12373_v62 }
 0x335   : > { %14980 = vst [vmem:[#allocation104_spill] sm:$0xff] %v12442_v24  ;;  %14981 = vst [vmem:[#allocation105_spill] sm:$0xff] %v12444_v11  ;;  %v4607_v53 = vadd.f32 %v4575_v29, %v4507_v38  ;;  %v4905_v5 = vadd.f32 %v4873_v15, %v4805_v54  ;;  %v5384_v40 = vsel %vm4219_vm3, %v14699_v32, 0.0  ;;  %v5325_v2 = vsel %vm4219_vm3, %v12403_v16, 0.0 }
 0x336   : > { %14982 = vst [vmem:[#allocation106_spill] sm:$0xff] %v12449_v25  ;;  %4312 = vst.msk [vmem:[#allocation3 + $0x150] sm:$0xff] %vm4219_vm3, %v12440_v44  ;;  %v5385_v60 = vadd.f32 %v5384_v40, %v5383_v21  ;;  %v4608_v29 = vadd.f32 %v4576_v35, %v4508_v57  ;;  %v12466_v38 = vmax.f32 %v4171_v39, 0.0  ;;  %v5386_v55 = vsel %vm4219_vm3, %v14698_v30, 0.0 }
 0x337   : > { %4311 = vst.msk [vmem:[#allocation3 + $0x148] sm:$0xff] %vm4219_vm3, %v12442_v24  ;;  %4314 = vst.msk [vmem:[#allocation3 + $0x170] sm:$0xff] %vm4219_vm3, %v12444_v11  ;;  %v4341_v62 = vld [vmem:[#allocation3 + $0x107] sm:$0xff]  ;;  %v4342_v14 = vld [vmem:[#allocation3 + $0x10f] sm:$0xff]  ;;  %v4906_v7 = vadd.f32 %v4874_v28, %v4806_v0  ;;  %v12473_v6 = vsel %vm4219_vm3, %v12420_v46, 0.0  ;;  %v5327_v52 = vsel %vm4219_vm3, %v12423_v61, 0.0  ;;  %v5326_v12 = vadd.f32 %v5325_v2, %v5324_v45 }
 0x338   : > { %14983 = vst [vmem:[#allocation107_spill] sm:$0xff] %v12466_v38  ;;  %v4441_v37 = vld [vmem:[#allocation3 + $0x108] sm:$0xff]  ;;  %v14702_v59 = vmax.f32 %v12449_v25, 0.0  ;;  %v4442_v50 = vld [vmem:[#allocation3 + $0x110] sm:$0xff]  ;;  %v4377_v54 = vmul.f32 %v11957_v34, %v4341_v62  ;;  %4313 = vst.msk [vmem:[#allocation3 + $0x168] sm:$0xff] %vm4219_vm3, %v12466_v38  ;;  %v12483_v36 = vadd.f32 %v12207_v63, %v11951_v4  ;;  %v4675_v1 = vmul.f32 %v11991_v17, %v4341_v62 }
 0x339   : > { %v4477_v18 = vmul.f32 %v11954_v8, %v4441_v37  ;;  %v4676_v49 = vmul.f32 %v11991_v17, %v4342_v14  ;;  %v12490_v33 = vsel %vm4219_vm3, %v12440_v44, 0.0  ;;  %v5387_v19 = vadd.f32 %v5386_v55, %v5385_v60  ;;  %v4541_v15 = vld [vmem:[#allocation3 + $0x109] sm:$0xff]  ;;  %v4542_v2 = vld [vmem:[#allocation3 + $0x111] sm:$0xff] }
 0x33a   : > { %v4974_v21 = vmul.f32 %v12036_v41, %v4341_v62  ;;  %v12495_v57 = vsel %vm4219_vm3, %v12442_v24, 0.0  ;;  %v12499_v4 = vsel %vm4219_vm3, %v12444_v11, 0.0  ;;  %v4478_v63 = vmul.f32 %v11954_v8, %v4442_v50 }
 0x33b   : > { %v4378_v0 = vmul.f32 %v11957_v34, %v4342_v14  ;;  %v4707_v35 = vadd.f32 %v4675_v1, %v4607_v53  ;;  %v4975_v45 = vmul.f32 %v12036_v41, %v4342_v14  ;;  %v4509_v39 = vadd.f32 %v4477_v18, %v4377_v54 }
 0x33c   : > { %v4708_v28 = vadd.f32 %v4676_v49, %v4608_v29  ;;  %v5006_v40 = vadd.f32 %v4974_v21, %v4905_v5  ;;  %v5074_v60 = vmul.f32 %v12028_v42, %v4441_v37  ;;  %v5075_v62 = vmul.f32 %v12028_v42, %v4442_v50  ;;  %v4343_v5 = vld [vmem:[#allocation3 + $0x127] sm:$0xff] }
 0x33d   : > { %v4775_v55 = vmul.f32 %v11999_v13, %v4441_v37  ;;  %v5007_v30 = vadd.f32 %v4975_v45, %v4906_v7  ;;  %v5388_v32 = vsel %vm4219_vm3, %v14702_v59, 0.0  ;;  %v4776_v47 = vmul.f32 %v11999_v13, %v4442_v50  ;;  %v4443_v49 = vld [vmem:[#allocation3 + $0x128] sm:$0xff] }
 0x33e   : > { %v4577_v53 = vmul.f32 %v11964_v51, %v4541_v15  ;;  %v5106_v14 = vadd.f32 %v5074_v60, %v5006_v40  ;;  %v5174_v29 = vmul.f32 %v12050_v9, %v4541_v15  ;;  %v4510_v54 = vadd.f32 %v4478_v63, %v4378_v0  ;;  %v4344_v59 = vld [vmem:[#allocation3 + $0x12f] sm:$0xff]  ;;  %v4345_v46 = vld [vmem:[#allocation3 + $0x147] sm:$0xff] }
 0x33f   : > { %v4807_v18 = vadd.f32 %v4775_v55, %v4707_v35  ;;  %v5107_v1 = vadd.f32 %v5075_v62, %v5007_v30  ;;  %v12513_v21 = vadd.f32 %v5327_v52, %v5326_v12  ;;  %v5175_v37 = vmul.f32 %v12050_v9, %v4542_v2  ;;  %v4444_v60 = vld [vmem:[#allocation3 + $0x130] sm:$0xff] }
 0x340   : > { %v4609_v7 = vadd.f32 %v4577_v53, %v4509_v39  ;;  %v4808_v45 = vadd.f32 %v4776_v47, %v4708_v28  ;;  %v5206_v11 = vadd.f32 %v5174_v29, %v5106_v14  ;;  %v4578_v50 = vmul.f32 %v11964_v51, %v4542_v2  ;;  %v4544_v14 = vld [vmem:[#allocation3 + $0x131] sm:$0xff]  ;;  %v4543_v29 = vld [vmem:[#allocation3 + $0x129] sm:$0xff] }
 0x341   : > { %v4876_v44 = vmul.f32 %v12010_v58, %v4542_v2  ;;  %v4875_v40 = vmul.f32 %v12010_v58, %v4541_v15  ;;  %v4379_v63 = vmul.f32 %v11957_v34, %v4343_v5  ;;  %v5207_v0 = vadd.f32 %v5175_v37, %v5107_v1 }
 0x342   : > { %v12521_v30 = vadd.f32 %v12098_v43, %v5206_v11  ;;  %v4479_v52 = vmul.f32 %v11954_v8, %v4443_v49  ;;  %v4677_v12 = vmul.f32 %v11991_v17, %v4343_v5  ;;  %v5389_v35 = vadd.f32 %v5388_v32, %v5387_v19  ;;  %v12535_v32 = vld [vmem:[%s14510_s14] sm:$0xff] }
 0x343   : > { %v4907_v47 = vadd.f32 %v4875_v40, %v4807_v18  ;;  %v4610_v39 = vadd.f32 %v4578_v50, %v4510_v54  ;;  %v4678_v28 = vmul.f32 %v11991_v17, %v4344_v59  ;;  %v4480_v2 = vmul.f32 %v11954_v8, %v4444_v60  ;;  %5672 = vrot.lane.b32.xlu0 %v12535_v32, %s8799_s21 }
 0x344   : > { %14984 = vst [vmem:[#allocation108_spill] sm:$0xff] %v12521_v30  ;;  %v4380_v15 = vmul.f32 %v11957_v34, %v4344_v59  ;;  %v4709_v62 = vadd.f32 %v4677_v12, %v4609_v7  ;;  %v4908_v55 = vadd.f32 %v4876_v44, %v4808_v45  ;;  %v14706_v53 = vmax.f32 %v12521_v30, 0.0 }
 0x345   : > { %v4778_v11 = vmul.f32 %v11999_v13, %v4444_v60  ;;  %v4976_v1 = vmul.f32 %v12036_v41, %v4343_v5  ;;  %v4977_v18 = vmul.f32 %v12036_v41, %v4344_v59  ;;  %v12538_v19 = vadd.f32 %v12098_v43, %v5207_v0 }
 0x346   : > { %v5077_v44 = vmul.f32 %v12028_v42, %v4444_v60  ;;  %v4511_v54 = vadd.f32 %v4479_v52, %v4379_v63  ;;  %v4777_v37 = vmul.f32 %v11999_v13, %v4443_v49  ;;  %v4710_v5 = vadd.f32 %v4678_v28, %v4610_v39 }
 0x347   : > { %14985 = vst [vmem:[#allocation109_spill] sm:$0xff] %v12538_v19  ;;  %v5008_v7 = vadd.f32 %v4976_v1, %v4907_v47  ;;  %v5009_v59 = vadd.f32 %v4977_v18, %v4908_v55  ;;  %v5076_v45 = vmul.f32 %v12028_v42, %v4443_v49  ;;  %v5177_v50 = vmul.f32 %v12050_v9, %v4544_v14 }
 0x348   : > { %v4512_v40 = vadd.f32 %v4480_v2, %v4380_v15  ;;  %v4579_v0 = vmul.f32 %v11964_v51, %v4543_v29  ;;  %v4809_v12 = vadd.f32 %v4777_v37, %v4709_v62  ;;  %v5390_v60 = vsel %vm4219_vm3, %v14706_v53, 0.0  ;;  %v4346_v2 = vld [vmem:[#allocation3 + $0x14f] sm:$0xff] }
 0x349   : > { %v5108_v63 = vadd.f32 %v5076_v45, %v5008_v7  ;;  %v5109_v52 = vadd.f32 %v5077_v44, %v5009_v59  ;;  %v5176_v24 = vmul.f32 %v12050_v9, %v4543_v29  ;;  %v4580_v39 = vmul.f32 %v11964_v51, %v4544_v14  ;;  %v4445_v15 = vld [vmem:[#allocation3 + $0x148] sm:$0xff]  ;;  %v4446_v37 = vld [vmem:[#allocation3 + $0x150] sm:$0xff] }
 0x34a   : > { %v4611_v49 = vadd.f32 %v4579_v0, %v4511_v54  ;;  %v4877_v28 = vmul.f32 %v12010_v58, %v4543_v29  ;;  %v4878_v62 = vmul.f32 %v12010_v58, %v4544_v14  ;;  %v4810_v55 = vadd.f32 %v4778_v11, %v4710_v5  ;;  %v4546_v7 = vld [vmem:[#allocation3 + $0x151] sm:$0xff] }
 0x34b   : > { %v5208_v1 = vadd.f32 %v5176_v24, %v5108_v63  ;;  %v5209_v18 = vadd.f32 %v5177_v50, %v5109_v52  ;;  %v5391_v44 = vadd.f32 %v5390_v60, %v5389_v35  ;;  %v4381_v45 = vmul.f32 %v11957_v34, %v4345_v46 }
 0x34c   : > { %v4909_v59 = vadd.f32 %v4877_v28, %v4809_v12  ;;  %v4679_v53 = vmul.f32 %v11991_v17, %v4345_v46  ;;  %v4481_v29 = vmul.f32 %v11954_v8, %v4445_v15  ;;  %v4612_v54 = vadd.f32 %v4580_v39, %v4512_v40  ;;  %v4545_v39 = vld [vmem:[#allocation3 + $0x149] sm:$0xff] }
 0x34d   : > { %v12558_v47 = vadd.f32 %v12098_v43, %v5208_v1  ;;  %v4680_v0 = vmul.f32 %v11991_v17, %v4346_v2  ;;  %v14987_v14 = vmax.f32 %v12538_v19, 0.0  ;;  %v4482_v11 = vmul.f32 %v11954_v8, %v4446_v37 }
 0x34e   : > { %v4582_v35 = vmul.f32 %v11964_v51, %v4546_v7  ;;  %v4711_v5 = vadd.f32 %v4679_v53, %v4611_v49  ;;  %v12568_v50 = vadd.f32 %v12098_v43, %v5209_v18  ;;  %v4779_v60 = vmul.f32 %v11999_v13, %v4445_v15 }
 0x34f   : > { %14986 = vst [vmem:[#allocation110_spill] sm:$0xff] %v12558_v47  ;;  %v5392_v24 = vsel %vm4219_vm3, %v14987_v14, 0.0  ;;  %v14710_v12 = vmax.f32 %v12558_v47, 0.0  ;;  %v4910_v63 = vadd.f32 %v4878_v62, %v4810_v55  ;;  %v5079_v52 = vmul.f32 %v12028_v42, %v4446_v37 }
 0x350   : > { %14988 = vst [vmem:[#allocation111_spill] sm:$0xff] %v12568_v50  ;;  %v5393_v40 = vadd.f32 %v5392_v24, %v5391_v44  ;;  %v4978_v28 = vmul.f32 %v12036_v41, %v4345_v46  ;;  %v4979_v1 = vmul.f32 %v12036_v41, %v4346_v2  ;;  %v4382_v14 = vmul.f32 %v11957_v34, %v4346_v2  ;;  %v4448_v24 = vld [vmem:[#allocation3 + $0x170] sm:$0xff] }
 0x351   : > { %v4513_v61 = vadd.f32 %v4481_v29, %v4381_v45  ;;  %v4712_v53 = vadd.f32 %v4680_v0, %v4612_v54  ;;  %v4811_v49 = vadd.f32 %v4779_v60, %v4711_v5  ;;  %v5394_v18 = vsel %vm4219_vm3, %v14710_v12, 0.0 }
 0x352   : > { %v5010_v16 = vadd.f32 %v4978_v28, %v4909_v59  ;;  %v5011_v27 = vadd.f32 %v4979_v1, %v4910_v63  ;;  %v5078_v62 = vmul.f32 %v12028_v42, %v4445_v15  ;;  %v4780_v44 = vmul.f32 %v11999_v13, %v4446_v37  ;;  %v4347_v63 = vld [vmem:[#allocation3 + $0x167] sm:$0xff]  ;;  %v4348_v37 = vld [vmem:[#allocation3 + $0x16f] sm:$0xff] }
 0x353   : > { %v4581_v46 = vmul.f32 %v11964_v51, %v4545_v39  ;;  %v5330_v2 = vadd.f32 %v12473_v6, %v12513_v21  ;;  %v4879_v45 = vmul.f32 %v12010_v58, %v4545_v39  ;;  %v5178_v0 = vmul.f32 %v12050_v9, %v4545_v39  ;;  %v4447_v28 = vld [vmem:[#allocation3 + $0x168] sm:$0xff]  ;;  %v12594_v39 = vld [vmem:[#allocation3 + $0x171] sm:$0xff] }
 0x354   : > { %v5110_v29 = vadd.f32 %v5078_v62, %v5010_v16  ;;  %v5111_v54 = vadd.f32 %v5079_v52, %v5011_v27  ;;  %v5395_v59 = vadd.f32 %v5394_v18, %v5393_v40  ;;  %v4880_v5 = vmul.f32 %v12010_v58, %v4546_v7 }
 0x355   : > { %v5179_v15 = vmul.f32 %v12050_v9, %v4546_v7  ;;  %v4514_v60 = vadd.f32 %v4482_v11, %v4382_v14  ;;  %v4613_v1 = vadd.f32 %v4581_v46, %v4513_v61  ;;  %v4812_v12 = vadd.f32 %v4780_v44, %v4712_v53  ;;  %v4547_v53 = vld [vmem:[#allocation3 + $0x169] sm:$0xff] }
 0x356   : > { %v4911_v55 = vadd.f32 %v4879_v45, %v4811_v49  ;;  %v5210_v6 = vadd.f32 %v5178_v0, %v5110_v29  ;;  %v5332_v16 = vadd.f32 %v12495_v57, %v5330_v2  ;;  %v14989_v27 = vmax.f32 %v12568_v50, 0.0 }
 0x357   : > { %v5211_v21 = vadd.f32 %v5179_v15, %v5111_v54  ;;  %v4484_v40 = vmul.f32 %v11954_v8, %v4448_v24  ;;  %v4383_v11 = vmul.f32 %v11957_v34, %v4347_v63  ;;  %v4384_v61 = vmul.f32 %v11957_v34, %v4348_v37 }
 0x358   : > { %v5396_v52 = vsel %vm4219_vm3, %v14989_v27, 0.0  ;;  %v12597_v7 = vadd.f32 %v12098_v43, %v5210_v6  ;;  %v4483_v14 = vmul.f32 %v11954_v8, %v4447_v28  ;;  %v4782_v57 = vmul.f32 %v11999_v13, %v4448_v24 }
 0x359   : > { %v5397_v49 = vadd.f32 %v5396_v52, %v5395_v59  ;;  %v5081_v18 = vmul.f32 %v12028_v42, %v4448_v24  ;;  %v4681_v62 = vmul.f32 %v11991_v17, %v4347_v63  ;;  %v5181_v44 = vmul.f32 %v12050_v9, %v12594_v39 }
 0x35a   : > { %14990 = vst [vmem:[#allocation112_spill] sm:$0xff] %v12597_v7  ;;  %v4614_v46 = vadd.f32 %v4582_v35, %v4514_v60  ;;  %v4682_v2 = vmul.f32 %v11991_v17, %v4348_v37  ;;  %v4912_v45 = vadd.f32 %v4880_v5, %v4812_v12  ;;  %v12609_v29 = vadd.f32 %v12098_v43, %v5211_v21 }
 0x35b   : > { %v4583_v54 = vmul.f32 %v11964_v51, %v4547_v53  ;;  %v4980_v0 = vmul.f32 %v12036_v41, %v4347_v63  ;;  %v4981_v59 = vmul.f32 %v12036_v41, %v4348_v37  ;;  %v14712_v24 = vmax.f32 %v12597_v7, 0.0  ;;  %v12625_v63 = vld [vmem:[%s14505_s9] ss:$0 sm:$0xff] }
 0x35c   : > { %14991 = vst [vmem:[#allocation113_spill] sm:$0xff] %v12609_v29  ;;  %v4515_v15 = vadd.f32 %v4483_v14, %v4383_v11  ;;  %v4516_v6 = vadd.f32 %v4484_v40, %v4384_v61  ;;  %v5334_v27 = vadd.f32 %v12490_v33, %v5332_v16  ;;  %v4713_v52 = vadd.f32 %v4681_v62, %v4613_v1 }
 0x35d   : > { %v5012_v35 = vadd.f32 %v4980_v0, %v4911_v55  ;;  %v5013_v60 = vadd.f32 %v4981_v59, %v4912_v45  ;;  %v5080_v12 = vmul.f32 %v12028_v42, %v4447_v28  ;;  %v4714_v5 = vadd.f32 %v4682_v2, %v4614_v46  ;;  %v14994_v45 = vld [vmem:[#allocation90_spill] sm:$0xff] }
 0x35e   : > { %v5335_v43 = vsel %vm4219_vm3, %v12466_v38, 0.0  ;;  %v12620_v21 = vmax.f32 %v12483_v36, 0.0  ;;  %v4173_v33 = vadd.f32 %v12625_v63, %v12217_v56  ;;  %v5180_v1 = vmul.f32 %v12050_v9, %v4547_v53 }
 0x35f   : > { %v5112_v37 = vadd.f32 %v5080_v12, %v5012_v35  ;;  %v5113_v55 = vadd.f32 %v5081_v18, %v5013_v60  ;;  %v5336_v16 = vadd.f32 %v5335_v43, %v5334_v27  ;;  %v14711_v40 = vmax.f32 %v12609_v29, 0.0  ;;  %v15000_v60 = vld [vmem:[#allocation91_spill] sm:$0xff] }
 0x360   : > { %14992 = vst [vmem:[#allocation114_spill] sm:$0xff] %v12620_v21  ;;  %v5398_v36 = vsel %vm4219_vm3, %v14712_v24, 0.0  ;;  %v4781_v11 = vmul.f32 %v11999_v13, %v4447_v28  ;;  %4316 = vst.msk [vmem:[#allocation3 + $0x190] sm:$0xff] %vm4219_vm3, %v12620_v21  ;;  %v12637_v61 = vmax.f32 %v4173_v33, 0.0  ;;  %v4176_v62 = vadd.f32 %v12625_v63, %v12241_v48  ;;  %v12655_v48 = vld [vmem:[%s14507_s11] ss:$0 sm:$0xff] }
 0x361   : > { %v5212_v14 = vadd.f32 %v5180_v1, %v5112_v37  ;;  %v5213_v56 = vadd.f32 %v5181_v44, %v5113_v55  ;;  %v5338_v18 = vadd.f32 %v12499_v4, %v5336_v16  ;;  %v4175_v28 = vadd.f32 %v12625_v63, %v12253_v10  ;;  %v15003_v24 = vld [vmem:[#allocation92_spill] sm:$0xff] }
 0x362   : > { %14993 = vst [vmem:[#allocation115_spill] sm:$0xff] %v12637_v61  ;;  %4315 = vst.msk [vmem:[#allocation3 + $0x188] sm:$0xff] %vm4219_vm3, %v12637_v61  ;;  %v5339_v46 = vsel %vm4219_vm3, %v12637_v61, 0.0  ;;  %v4178_v2 = vadd.f32 %v12625_v63, %v12276_v22  ;;  %v4177_v44 = vadd.f32 %v12625_v63, %v14994_v45  ;;  %v5399_v0 = vadd.f32 %v5398_v36, %v5397_v49 }
 0x363   : > { %v4813_v4 = vadd.f32 %v4781_v11, %v4713_v52  ;;  %v12658_v59 = vadd.f32 %v12655_v48, %v5212_v14  ;;  %v12660_v27 = vmax.f32 %v4176_v62, 0.0  ;;  %v12662_v35 = vmax.f32 %v4175_v28, 0.0 }
 0x364   : > { %v12664_v10 = vmax.f32 %v4178_v2, 0.0  ;;  %v12666_v22 = vmax.f32 %v4177_v44, 0.0  ;;  %v4180_v49 = vadd.f32 %v12625_v63, %v15000_v60  ;;  %v4814_v52 = vadd.f32 %v4782_v57, %v4714_v5 }
 0x365   : > { %14995 = vst [vmem:[#allocation90_spill] sm:$0xff] %v12658_v59  ;;  %14996 = vst [vmem:[#allocation116_spill] sm:$0xff] %v12660_v27  ;;  %v4881_v12 = vmul.f32 %v12010_v58, %v4547_v53  ;;  %v12672_v43 = vadd.f32 %v12655_v48, %v5213_v56  ;;  %v5340_v33 = vadd.f32 %v5339_v46, %v5338_v18  ;;  %v5400_v1 = vsel %vm4219_vm3, %v14711_v40, 0.0 }
 0x366   : > { %14997 = vst [vmem:[#allocation117_spill] sm:$0xff] %v12662_v35  ;;  %14998 = vst [vmem:[#allocation118_spill] sm:$0xff] %v12664_v10  ;;  %v4584_v37 = vmul.f32 %v11964_v51, %v12594_v39  ;;  %v12684_v53 = vmax.f32 %v4180_v49, 0.0  ;;  %v4882_v57 = vmul.f32 %v12010_v58, %v12594_v39  ;;  %v4615_v5 = vadd.f32 %v4583_v54, %v4515_v15 }
 0x367   : > { %14999 = vst [vmem:[#allocation119_spill] sm:$0xff] %v12666_v22  ;;  %15001 = vst [vmem:[#allocation91_spill] sm:$0xff] %v12672_v43  ;;  %v4913_v55 = vadd.f32 %v4881_v12, %v4813_v4  ;;  %v14715_v16 = vmax.f32 %v12658_v59, 0.0  ;;  %v5401_v36 = vadd.f32 %v5400_v1, %v5399_v0  ;;  %v4450_v11 = vld [vmem:[#allocation3 + $0x190] sm:$0xff]  ;;  %v5341_v14 = vsel %vm4219_vm3, %v12620_v21, 0.0 }
 0x368   : > { %4318 = vst.msk [vmem:[#allocation3 + $0x1b0] sm:$0xff] %vm4219_vm3, %v12660_v27  ;;  %4317 = vst.msk [vmem:[#allocation3 + $0x1a8] sm:$0xff] %vm4219_vm3, %v12662_v35  ;;  %v4616_v56 = vadd.f32 %v4584_v37, %v4516_v6  ;;  %v4914_v62 = vadd.f32 %v4882_v57, %v4814_v52  ;;  %v5345_v46 = vsel %vm4219_vm3, %v12660_v27, 0.0  ;;  %v5342_v28 = vadd.f32 %v5341_v14, %v5340_v33 }
 0x369   : > { %4320 = vst.msk [vmem:[#allocation3 + $0x1d0] sm:$0xff] %vm4219_vm3, %v12664_v10  ;;  %4319 = vst.msk [vmem:[#allocation3 + $0x1c8] sm:$0xff] %vm4219_vm3, %v12666_v22  ;;  %v4349_v39 = vld [vmem:[#allocation3 + $0x187] sm:$0xff]  ;;  %v4350_v54 = vld [vmem:[#allocation3 + $0x18f] sm:$0xff]  ;;  %v5343_v6 = vsel %vm4219_vm3, %v12662_v35, 0.0  ;;  %v4486_v0 = vmul.f32 %v11954_v8, %v4450_v11  ;;  %v12709_v49 = vsel %vm4219_vm3, %v12664_v10, 0.0  ;;  %v12722_v18 = vadd.f32 %v12625_v63, %v15003_v24 }
 0x36a   : > { %15002 = vst [vmem:[#allocation120_spill] sm:$0xff] %v12684_v53  ;;  %4322 = vst.msk [vmem:[#allocation3 + $0x1f0] sm:$0xff] %vm4219_vm3, %v12684_v53  ;;  %v4449_v15 = vld [vmem:[#allocation3 + $0x188] sm:$0xff]  ;;  %v4385_v2 = vmul.f32 %v11957_v34, %v4349_v39  ;;  %v4683_v44 = vmul.f32 %v11991_v17, %v4349_v39  ;;  %v4386_v4 = vmul.f32 %v11957_v34, %v4350_v54  ;;  %v5402_v52 = vsel %vm4219_vm3, %v14715_v16, 0.0  ;;  %v4550_v10 = vld [vmem:[#allocation3 + $0x191] sm:$0xff] }
 0x36b   : > { %v4485_v45 = vmul.f32 %v11954_v8, %v4449_v15  ;;  %v4684_v60 = vmul.f32 %v11991_v17, %v4350_v54  ;;  %v4549_v12 = vld [vmem:[#allocation3 + $0x189] sm:$0xff]  ;;  %v4982_v37 = vmul.f32 %v12036_v41, %v4349_v39  ;;  %v12717_v57 = vsel %vm4219_vm3, %v12666_v22, 0.0 }
 0x36c   : > { %v4715_v33 = vadd.f32 %v4683_v44, %v4615_v5  ;;  %v4983_v14 = vmul.f32 %v12036_v41, %v4350_v54  ;;  %v5344_v40 = vadd.f32 %v5343_v6, %v5342_v28  ;;  %v4783_v16 = vmul.f32 %v11999_v13, %v4449_v15 }
 0x36d   : > { %v4517_v1 = vadd.f32 %v4485_v45, %v4385_v2  ;;  %v4716_v27 = vadd.f32 %v4684_v60, %v4616_v56  ;;  %v5014_v35 = vadd.f32 %v4982_v37, %v4913_v55  ;;  %v5082_v5 = vmul.f32 %v12028_v42, %v4449_v15  ;;  %v15004_v37 = vld [vmem:[#allocation94_spill] sm:$0xff] }
 0x36e   : > { %v4784_v39 = vmul.f32 %v11999_v13, %v4450_v11  ;;  %v4518_v44 = vadd.f32 %v4486_v0, %v4386_v4  ;;  %v4585_v22 = vmul.f32 %v11964_v51, %v4549_v12  ;;  %v5015_v2 = vadd.f32 %v4983_v14, %v4914_v62 }
 0x36f   : > { %v4351_v45 = vld [vmem:[#allocation3 + $0x1a7] sm:$0xff]  ;;  %v5083_v54 = vmul.f32 %v12028_v42, %v4450_v11  ;;  %v4815_v28 = vadd.f32 %v4783_v16, %v4715_v33  ;;  %v5114_v6 = vadd.f32 %v5082_v5, %v5014_v35  ;;  %v5182_v24 = vmul.f32 %v12050_v9, %v4549_v12  ;;  %v4352_v21 = vld [vmem:[#allocation3 + $0x1af] sm:$0xff] }
 0x370   : > { %v4451_v56 = vld [vmem:[#allocation3 + $0x1a8] sm:$0xff]  ;;  %v4586_v60 = vmul.f32 %v11964_v51, %v4550_v10  ;;  %v4617_v55 = vadd.f32 %v4585_v22, %v4517_v1  ;;  %v4883_v15 = vmul.f32 %v12010_v58, %v4549_v12  ;;  %v12734_v0 = vadd.f32 %v12625_v63, %v15004_v37  ;;  %v4452_v61 = vld [vmem:[#allocation3 + $0x1b0] sm:$0xff] }
 0x371   : > { %v4816_v4 = vadd.f32 %v4784_v39, %v4716_v27  ;;  %v5115_v62 = vadd.f32 %v5083_v54, %v5015_v2  ;;  %v5214_v14 = vadd.f32 %v5182_v24, %v5114_v6  ;;  %v4387_v16 = vmul.f32 %v11957_v34, %v4351_v45  ;;  %v4552_v35 = vld [vmem:[#allocation3 + $0x1b1] sm:$0xff] }
 0x372   : > { %v4487_v11 = vmul.f32 %v11954_v8, %v4451_v56  ;;  %v4618_v33 = vadd.f32 %v4586_v60, %v4518_v44  ;;  %v4685_v5 = vmul.f32 %v11991_v17, %v4351_v45  ;;  %v4686_v22 = vmul.f32 %v11991_v17, %v4352_v21  ;;  %v4551_v60 = vld [vmem:[#allocation3 + $0x1a9] sm:$0xff] }
 0x373   : > { %v12740_v1 = vadd.f32 %v5402_v52, %v5401_v36  ;;  %v4884_v12 = vmul.f32 %v12010_v58, %v4550_v10  ;;  %v4915_v37 = vadd.f32 %v4883_v15, %v4815_v28  ;;  %v12744_v27 = vadd.f32 %v12655_v48, %v5214_v14  ;;  %v4354_v59 = vld [vmem:[#allocation3 + $0x1cf] sm:$0xff] }
 0x374   : > { %v5183_v39 = vmul.f32 %v12050_v9, %v4550_v10  ;;  %v4488_v2 = vmul.f32 %v11954_v8, %v4452_v61  ;;  %v4717_v54 = vadd.f32 %v4685_v5, %v4617_v55  ;;  %v5346_v6 = vadd.f32 %v5345_v46, %v5344_v40 }
 0x375   : > { %15005 = vst [vmem:[#allocation92_spill] sm:$0xff] %v12744_v27  ;;  %v4588_v44 = vmul.f32 %v11964_v51, %v4552_v35  ;;  %v4388_v24 = vmul.f32 %v11957_v34, %v4352_v21  ;;  %v4916_v38 = vadd.f32 %v4884_v12, %v4816_v4  ;;  %v4984_v36 = vmul.f32 %v12036_v41, %v4351_v45  ;;  %v4353_v45 = vld [vmem:[#allocation3 + $0x1c7] sm:$0xff] }
 0x376   : > { %v5215_v52 = vadd.f32 %v5183_v39, %v5115_v62  ;;  %v4519_v23 = vadd.f32 %v4487_v11, %v4387_v16  ;;  %v4718_v28 = vadd.f32 %v4686_v22, %v4618_v33  ;;  %v4785_v15 = vmul.f32 %v11999_v13, %v4451_v56  ;;  %v4454_v22 = vld [vmem:[#allocation3 + $0x1d0] sm:$0xff]  ;;  %v4453_v39 = vld [vmem:[#allocation3 + $0x1c8] sm:$0xff] }
 0x377   : > { %v4786_v10 = vmul.f32 %v11999_v13, %v4452_v61  ;;  %v4985_v55 = vmul.f32 %v12036_v41, %v4352_v21  ;;  %v5016_v40 = vadd.f32 %v4984_v36, %v4915_v37  ;;  %v4886_v46 = vmul.f32 %v12010_v58, %v4552_v35 }
 0x378   : > { %v5085_v5 = vmul.f32 %v12028_v42, %v4452_v61  ;;  %v4587_v4 = vmul.f32 %v11964_v51, %v4551_v60  ;;  %v4817_v12 = vadd.f32 %v4785_v15, %v4717_v54  ;;  %v5185_v62 = vmul.f32 %v12050_v9, %v4552_v35  ;;  %v4554_v61 = vld [vmem:[#allocation3 + $0x1d1] sm:$0xff] }
 0x379   : > { %v4520_v16 = vadd.f32 %v4488_v2, %v4388_v24  ;;  %v5017_v11 = vadd.f32 %v4985_v55, %v4916_v38  ;;  %v5084_v33 = vmul.f32 %v12028_v42, %v4451_v56  ;;  %v12761_v14 = vadd.f32 %v12655_v48, %v5215_v52 }
 0x37a   : > { %v4619_v21 = vadd.f32 %v4587_v4, %v4519_v23  ;;  %v4818_v37 = vadd.f32 %v4786_v10, %v4718_v28  ;;  %v4885_v36 = vmul.f32 %v12010_v58, %v4551_v60  ;;  %v15006_v54 = vmax.f32 %v12744_v27, 0.0 }
 0x37b   : > { %v5116_v35 = vadd.f32 %v5084_v33, %v5016_v40  ;;  %v5184_v38 = vmul.f32 %v12050_v9, %v4551_v60  ;;  %v4687_v56 = vmul.f32 %v11991_v17, %v4353_v45  ;;  %v4490_v24 = vmul.f32 %v11954_v8, %v4454_v22  ;;  %v4553_v40 = vld [vmem:[#allocation3 + $0x1c9] sm:$0xff] }
 0x37c   : > { %v12767_v15 = vsel %vm4219_vm3, %v15006_v54, 0.0  ;;  %v4917_v2 = vadd.f32 %v4885_v36, %v4817_v12  ;;  %v4389_v23 = vmul.f32 %v11957_v34, %v4353_v45  ;;  %v4489_v52 = vmul.f32 %v11954_v8, %v4453_v39 }
 0x37d   : > { %v5117_v28 = vadd.f32 %v5085_v5, %v5017_v11  ;;  %v12775_v10 = vmul.f32 %v11964_v51, %v4554_v61  ;;  %v4788_v55 = vmul.f32 %v11999_v13, %v4454_v22  ;;  %v4390_v4 = vmul.f32 %v11957_v34, %v4354_v59 }
 0x37e   : > { %v4620_v33 = vadd.f32 %v4588_v44, %v4520_v16  ;;  %v4688_v60 = vmul.f32 %v11991_v17, %v4354_v59  ;;  %v4918_v54 = vadd.f32 %v4886_v46, %v4818_v37  ;;  %v4986_v12 = vmul.f32 %v12036_v41, %v4353_v45 }
 0x37f   : > { %v5216_v36 = vadd.f32 %v5184_v38, %v5116_v35  ;;  %v4888_v27 = vmul.f32 %v12010_v58, %v4554_v61  ;;  %v5087_v29 = vmul.f32 %v12028_v42, %v4454_v22  ;;  %v4719_v5 = vadd.f32 %v4687_v56, %v4619_v21 }
 0x380   : > { %v4521_v11 = vadd.f32 %v4489_v52, %v4389_v23  ;;  %v4987_v7 = vmul.f32 %v12036_v41, %v4354_v59  ;;  %v5018_v50 = vadd.f32 %v4986_v12, %v4917_v2  ;;  %v5348_v47 = vadd.f32 %v12717_v57, %v5346_v6  ;;  %v5439_v59 = vld [vmem:[%s14508_s12 + $0x10] sm:$0xff]  ;;  %v5440_v57 = vld [vmem:[%s14508_s12 + $0x18] sm:$0xff] }
 0x381   : > { %v12785_v19 = vadd.f32 %v5185_v62, %v5117_v28  ;;  %v5187_v44 = vmul.f32 %v12050_v9, %v4554_v61  ;;  %v4589_v46 = vmul.f32 %v11964_v51, %v4553_v40  ;;  %v4787_v45 = vmul.f32 %v11999_v13, %v4453_v39  ;;  %v4456_v2 = vld [vmem:[#allocation3 + $0x1f0] sm:$0xff]  ;;  %v15009_v52 = vld [vmem:[#allocation96_spill] sm:$0xff] }
 0x382   : > { %v4522_v16 = vadd.f32 %v4490_v24, %v4390_v4  ;;  %v4720_v37 = vadd.f32 %v4688_v60, %v4620_v33  ;;  %v5019_v35 = vadd.f32 %v4987_v7, %v4918_v54  ;;  %v5086_v22 = vmul.f32 %v12028_v42, %v4453_v39  ;;  %v4556_v24 = vld [vmem:[#allocation3 + $0x1f1] sm:$0xff] }
 0x383   : > { %v12798_v6 = vadd.f32 %v12655_v48, %v5216_v36  ;;  %v4819_v62 = vadd.f32 %v4787_v45, %v4719_v5  ;;  %v4887_v21 = vmul.f32 %v12010_v58, %v4553_v40  ;;  %v12802_v61 = vmax.f32 %v12722_v18, 0.0  ;;  %v4957_v5 = vld [vmem:[#allocation3 + $0x22f] sm:$0xff] }
 0x384   : > { %v12804_v7 = vadd.f32 %v4589_v46, %v4521_v11  ;;  %v5118_v39 = vadd.f32 %v5086_v22, %v5018_v50  ;;  %v5350_v38 = vadd.f32 %v12709_v49, %v5348_v47  ;;  %v12808_v56 = vmax.f32 %v12734_v0, 0.0  ;;  %v5056_v11 = vld [vmem:[#allocation3 + $0x228] sm:$0xff]  ;;  %v5057_v46 = vld [vmem:[#allocation3 + $0x230] sm:$0xff] }
 0x385   : > { %15007 = vst [vmem:[#allocation94_spill] sm:$0xff] %v12798_v6  ;;  %15008 = vst [vmem:[#allocation121_spill] sm:$0xff] %v12802_v61  ;;  %v5351_v23 = vsel %vm4219_vm3, %v12802_v61, 0.0  ;;  %v4181_v18 = vadd.f32 %v12625_v63, %v15009_v52  ;;  %v8661_v28 = vpack.c.bf16 %v5440_v57, %v5439_v59  ;;  %v4820_v4 = vadd.f32 %v4788_v55, %v4720_v37  ;;  %v4956_v63 = vld [vmem:[#allocation3 + $0x227] sm:$0xff] }
 0x386   : > { %4321 = vst.msk [vmem:[#allocation3 + $0x1e8] sm:$0xff] %vm4219_vm3, %v12802_v61  ;;  %v5119_v33 = vadd.f32 %v5087_v29, %v5019_v35  ;;  %v5186_v50 = vmul.f32 %v12050_v9, %v4553_v40  ;;  %4324 = vst.msk [vmem:[#allocation3 + $0x210] sm:$0xff] %vm4219_vm3, %v12808_v56  ;;  %v8800_v47 = vmov 0.0|0.0   ;;  %v4919_v0 = vadd.f32 %v4887_v21, %v4819_v62  ;;  %v5156_v59 = vld [vmem:[#allocation3 + $0x229] sm:$0xff] }
 0x387   : > { %8660 = vmatprep.subr.bf16.mxu0 %v8800_v47  ;;  %v5352_v60 = vadd.f32 %v5351_v23, %v5350_v38  ;;  %v12820_v54 = vmax.f32 %v4181_v18, 0.0  ;;  %v15010_v12 = vmov 0.0   ;;  %v4492_v55 = vmul.f32 %v11954_v8, %v4456_v2 }
 0x388   : > { %8662 = vmatpush3.bf16.msra.mxu0 %v8661_v28  ;;  %8536 = vmatprep.mubr.msk.f32.mxu0 %vm8801_vm4, %v15010_v12  ;;  %v5218_v29 = vadd.f32 %v5186_v50, %v5118_v39  ;;  %v12826_v40 = vmul.f32 %v11964_v51, %v4556_v24  ;;  %v12829_v36 = vmul.f32 %v11999_v13, %v4456_v2  ;;  %v5353_v22 = vsel %vm4219_vm3, %v12684_v53, 0.0 }
 0x389   : > { %8663 = vmatprep.subr.bf16.mxu0 %v8800_v47  ;;  %v12832_v45 = vmul.f32 %v12010_v58, %v4556_v24  ;;  %v12835_v37 = vmul.f32 %v12028_v42, %v4456_v2  ;;  %v12838_v35 = vmul.f32 %v12050_v9, %v4556_v24  ;;  %4323 = vst.msk [vmem:[#allocation3 + $0x208] sm:$0xff] %vm4219_vm3, %v12820_v54 }
 0x38a   : > { %v4622_v57 = vadd.f32 %v12775_v10, %v4522_v16  ;;  %v4920_v62 = vadd.f32 %v4888_v27, %v4820_v4  ;;  %v12846_v21 = vmul.f32 %v12036_v41, %v4956_v63  ;;  %v5219_v39 = vadd.f32 %v5187_v44, %v5119_v33 }
 0x38b   : > { %v12848_v38 = vadd.f32 %v5353_v22, %v5352_v60  ;;  %v12851_v2 = vmul.f32 %v12036_v41, %v4957_v5  ;;  %v12854_v24 = vmul.f32 %v12028_v42, %v5056_v11  ;;  %v12857_v23 = vmul.f32 %v12028_v42, %v5057_v46 }
 0x38c   : > { %v12860_v27 = vmul.f32 %v12050_v9, %v5156_v59  ;;  %v12864_v10 = vadd.f32 %v12655_v48, %v12785_v19  ;;  %v12867_v44 = vadd.f32 %v12655_v48, %v5218_v29  ;;  %v12877_v19 = vadd.f32 %v12655_v48, %v5219_v39 }
 0x38d   : > { %v4355_v52 = vld [vmem:[#allocation3 + $0x1e7] sm:$0xff]  ;;  %v4356_v18 = vld [vmem:[#allocation3 + $0x1ef] sm:$0xff]  ;;  %v15011_v29 = vmax.f32 %v12672_v43, 0.0  ;;  %v15012_v39 = vmax.f32 %v12798_v6, 0.0 }
 0x38e   : > { %v4455_v28 = vld [vmem:[#allocation3 + $0x1e8] sm:$0xff]  ;;  %v4391_v4 = vmul.f32 %v11957_v34, %v4355_v52  ;;  %v4392_v33 = vmul.f32 %v11957_v34, %v4356_v18  ;;  %v4689_v60 = vmul.f32 %v11991_v17, %v4355_v52  ;;  %v4690_v5 = vmul.f32 %v11991_v17, %v4356_v18 }
 0x38f   : > { %v4491_v50 = vmul.f32 %v11954_v8, %v4455_v28  ;;  %v4555_v47 = vld [vmem:[#allocation3 + $0x1e9] sm:$0xff]  ;;  %v5404_v11 = vsel %vm4219_vm3, %v15011_v29, 0.0  ;;  %v4789_v34 = vmul.f32 %v11999_v13, %v4455_v28  ;;  %v4988_v8 = vmul.f32 %v12036_v41, %v4355_v52 }
 0x390   : > { %v4591_v63 = vmul.f32 %v11964_v51, %v4555_v47  ;;  %v4721_v22 = vadd.f32 %v4689_v60, %v12804_v7  ;;  %v4524_v59 = vadd.f32 %v4492_v55, %v4392_v33  ;;  %v4889_v16 = vmul.f32 %v12010_v58, %v4555_v47  ;;  %v4655_v49 = vld [vmem:[#allocation3 + $0x207] sm:$0xff]  ;;  %v4656_v53 = vld [vmem:[#allocation3 + $0x20f] sm:$0xff] }
 0x391   : > { %v4523_v46 = vadd.f32 %v4491_v50, %v4391_v4  ;;  %v4989_v51 = vmul.f32 %v12036_v41, %v4356_v18  ;;  %v5410_v61 = vsel %vm4219_vm3, %v15012_v39, 0.0  ;;  %v4722_v29 = vadd.f32 %v4690_v5, %v4622_v57  ;;  %v4755_v7 = vld [vmem:[#allocation3 + $0x208] sm:$0xff]  ;;  %v4756_v18 = vld [vmem:[#allocation3 + $0x210] sm:$0xff] }
 0x392   : > { %v4821_v4 = vadd.f32 %v4789_v34, %v4721_v22  ;;  %v5020_v50 = vadd.f32 %v4988_v8, %v4919_v0  ;;  %v5088_v30 = vmul.f32 %v12028_v42, %v4455_v28  ;;  %v4691_v55 = vmul.f32 %v11991_v17, %v4655_v49  ;;  %v4855_v20 = vld [vmem:[#allocation3 + $0x209] sm:$0xff]  ;;  %v4856_v28 = vld [vmem:[#allocation3 + $0x211] sm:$0xff] }
 0x393   : > { %v4623_v43 = vadd.f32 %v4591_v63, %v4523_v46  ;;  %v5021_v60 = vadd.f32 %v4989_v51, %v4920_v62  ;;  %v5287_v52 = vmax.f32 %v12864_v10, 0.0  ;;  %v4692_v25 = vmul.f32 %v11991_v17, %v4656_v53 }
 0x394   : > { %v4921_v33 = vadd.f32 %v4889_v16, %v4821_v4  ;;  %v4990_v6 = vmul.f32 %v12036_v41, %v4655_v49  ;;  %v5405_v63 = vadd.f32 %v5404_v11, %v12740_v1  ;;  %v5120_v57 = vadd.f32 %v5088_v30, %v5020_v50 }
 0x395   : > { %v5188_v0 = vmul.f32 %v12050_v9, %v4555_v47  ;;  %v4723_v5 = vadd.f32 %v4691_v55, %v4623_v43  ;;  %v4791_v62 = vmul.f32 %v11999_v13, %v4755_v7  ;;  %v5090_v46 = vmul.f32 %v12028_v42, %v4755_v7 }
 0x396   : > { %v4624_v22 = vadd.f32 %v12826_v40, %v4524_v59  ;;  %v4822_v16 = vadd.f32 %v12829_v36, %v4722_v29  ;;  %v5022_v34 = vadd.f32 %v4990_v6, %v4921_v33  ;;  %v4792_v17 = vmul.f32 %v11999_v13, %v4756_v18  ;;  %v5157_v29 = vld [vmem:[#allocation3 + $0x231] sm:$0xff] }
 0x397   : > { %v4891_v49 = vmul.f32 %v12010_v58, %v4855_v20  ;;  %v4823_v8 = vadd.f32 %v4791_v62, %v4723_v5  ;;  %v5121_v30 = vadd.f32 %v12835_v37, %v5021_v60  ;;  %v4991_v1 = vmul.f32 %v12036_v41, %v4656_v53 }
 0x398   : > { %v4724_v43 = vadd.f32 %v4692_v25, %v4624_v22  ;;  %v4922_v47 = vadd.f32 %v12832_v45, %v4822_v16  ;;  %v5122_v11 = vadd.f32 %v5090_v46, %v5022_v34  ;;  %v4892_v51 = vmul.f32 %v12010_v58, %v4856_v28 }
 0x399   : > { %v4923_v39 = vadd.f32 %v4891_v49, %v4823_v8  ;;  %v5190_v40 = vmul.f32 %v12050_v9, %v4855_v20  ;;  %v5220_v36 = vadd.f32 %v5188_v0, %v5120_v57  ;;  %v5091_v13 = vmul.f32 %v12028_v42, %v4756_v18 }
 0x39a   : > { %v4824_v6 = vadd.f32 %v4792_v17, %v4724_v43  ;;  %v5023_v59 = vadd.f32 %v4991_v1, %v4922_v47  ;;  %v5221_v4 = vadd.f32 %v12838_v35, %v5121_v30  ;;  %v5407_v53 = vadd.f32 %v12767_v15, %v5405_v63 }
 0x39b   : > { %v5024_v37 = vadd.f32 %v12846_v21, %v4923_v39  ;;  %v5222_v41 = vadd.f32 %v5190_v40, %v5122_v11  ;;  %v12912_v25 = vadd.f32 %v12655_v48, %v5220_v36  ;;  %v5288_v20 = vmax.f32 %v12867_v44, 0.0 }
 0x39c   : > { %v4924_v58 = vadd.f32 %v4892_v51, %v4824_v6  ;;  %v5123_v45 = vadd.f32 %v5091_v13, %v5023_v59  ;;  %v15013_v50 = vmax.f32 %v12761_v14, 0.0  ;;  %v5355_v42 = vsel %vm4219_vm3, %v12820_v54, 0.0 }
 0x39d   : > { %v5124_v35 = vadd.f32 %v12854_v24, %v5024_v37  ;;  %v5193_v21 = vmul.f32 %v12050_v9, %v5157_v29  ;;  %v5191_v15 = vmul.f32 %v12050_v9, %v4856_v28  ;;  %v12926_v33 = vadd.f32 %v12655_v48, %v5221_v4 }
 0x39e   : > { %v5408_v7 = vsel %vm4219_vm3, %v15013_v50, 0.0  ;;  %v5025_v55 = vadd.f32 %v12851_v2, %v4924_v58  ;;  %v5289_v18 = vmax.f32 %v12877_v19, 0.0  ;;  %v12930_v63 = vadd.f32 %v12655_v48, %v5222_v41 }
 0x39f   : > { %v5409_v60 = vadd.f32 %v5408_v7, %v5407_v53  ;;  %v5290_v57 = vmax.f32 %v12912_v25, 0.0  ;;  %v5412_v24 = vsel %vm4219_vm3, %v5287_v52, 0.0  ;;  %v5223_v2 = vadd.f32 %v5191_v15, %v5123_v45 }
 0x3a0   : > { %v5125_v5 = vadd.f32 %v12857_v23, %v5025_v55  ;;  %v5224_v9 = vadd.f32 %v12860_v27, %v5124_v35  ;;  %v5414_v62 = vsel %vm4219_vm3, %v5288_v20, 0.0  ;;  %v5356_v46 = vadd.f32 %v5355_v42, %v12848_v38  ;;  %v5438_v55 = vld [vmem:[%s14508_s12 + $0x8] sm:$0xff] }
 0x3a1   : > { %v5411_v0 = vadd.f32 %v5410_v61, %v5409_v60  ;;  %v5291_v22 = vmax.f32 %v12926_v33, 0.0  ;;  %v5292_v61 = vmax.f32 %v12930_v63, 0.0  ;;  %v5416_v34 = vsel %vm4219_vm3, %v5289_v18, 0.0  ;;  %v5437_v60 = vld [vmem:[%s14508_s12] sm:$0xff] }
 0x3a2   : > { %v5225_v23 = vadd.f32 %v5193_v21, %v5125_v5  ;;  %v12948_v17 = vadd.f32 %v12655_v48, %v5223_v2  ;;  %v12951_v27 = vadd.f32 %v12655_v48, %v5224_v9  ;;  %v5418_v38 = vsel %vm4219_vm3, %v5290_v57, 0.0 }
 0x3a3   : > { %v5413_v28 = vadd.f32 %v5412_v24, %v5411_v0  ;;  %v5357_v8 = vsel %vm4219_vm3, %v12808_v56, 0.0  ;;  %v5420_v43 = vsel %vm4219_vm3, %v5291_v22, 0.0  ;;  %v5422_v39 = vsel %vm4219_vm3, %v5292_v61, 0.0 }
 0x3a4   : > { %v5358_v30 = vadd.f32 %v5357_v8, %v5356_v46  ;;  %v12962_v47 = vadd.f32 %v12655_v48, %v5225_v23  ;;  %v5293_v11 = vmax.f32 %v12948_v17, 0.0  ;;  %v5294_v51 = vmax.f32 %v12951_v27, 0.0  ;;  %v15060_v27 = vld [vmem:[#allocation15_spill] sm:$0xff] }
 0x3a5   : > { %v5415_v16 = vadd.f32 %v5414_v62, %v5413_v28  ;;  %v8664_v24 = vpack.c.bf16 %v5438_v55, %v5437_v60  ;;  %v5591_v62 = vld [vmem:[%s14511_s15] sm:$0x1] }
 0x3a6   : > { %v5359_v36 = vrot.slane %v5358_v30, 4  ;;  %v5295_v59 = vmax.f32 %v12962_v47, 0.0  ;;  %v5424_v13 = vsel %vm4219_vm3, %v5293_v11, 0.0  ;;  %v5426_v48 = vsel %vm4219_vm3, %v5294_v51, 0.0  ;;  %v15014_v28 = vld [vmem:[#allocation5_spill] sm:$0xff] }
 0x3a7   : > { %v5417_v49 = vadd.f32 %v5416_v34, %v5415_v16  ;;  %v5679_v46 = vrot.slane %v5591_v62, %v15014_v28  ;;  %v15017_v60 = vld [vmem:[#allocation69_spill] sm:$0xff] }
 0x3a8   : > { %v5360_v4 = vadd.f32 %v5359_v36, %v5358_v30  ;;  %v5428_v41 = vsel %vm4219_vm3, %v5295_v59, 0.0  ;;  %v5831_v36 = vld [vmem:[%s14512_s16] sm:$0xff]  ;;  %v15018_v55 = vmax.f32 %v15017_v60, 0.0  ;;  %v15042_v60 = vld [vmem:[#allocation111_spill] sm:$0xff] }
 0x3a9   : > { %v5419_v1 = vadd.f32 %v5418_v38, %v5417_v49  ;;  %5680 = vrot.lane.b32.xlu1 %v5679_v46, %s8799_s21 }
 0x3aa   : > { %v5361_v58 = vrot.slane %v5360_v4, 2 }
 0x3ab   : > { %v5421_v40 = vadd.f32 %v5420_v43, %v5419_v1  ;;  %v5833_v43 = vld [vmem:[%s14512_s16 + $0x10] sm:$0xff] }
 0x3ac   : > { %v5362_v7 = vadd.f32 %v5361_v58, %v5360_v4 }
 0x3ad   : > { %v5423_v6 = vadd.f32 %v5422_v39, %v5421_v40  ;;  %v5834_v39 = vld [vmem:[%s14512_s16 + $0x18] sm:$0xff] }
 0x3ae   : > { %v5363_v15 = vrot.slane %v5362_v7, 1  ;;  %v8666_v40 = vpack.c.bf16 %v5834_v39, %v5833_v43  ;;  %v15029_v43 = vmax.f32 %v12347_v31, 0.0 }
 0x3af   : > { %v5425_v29 = vadd.f32 %v5424_v13, %v5423_v6 }
 0x3b0   : > { %v5364_v2 = vadd.f32 %v5363_v15, %v5362_v7 }
 0x3b1   : > { %v5427_v37 = vadd.f32 %v5426_v48, %v5425_v29 }
 0x3b2   : > { %v5366_v9 = vmul.f32 0.00390625, %v5364_v2  ;;  %v15021_v2 = vld [vmem:[#allocation84_spill] sm:$0xff] }
 0x3b3   : > { %v5429_v53 = vadd.f32 %v5428_v41, %v5427_v37 }
 0x3b5   : > { %v5430_v45 = vrot.slane %v5429_v53, 4  ;;  %v5673_v1 = vpop.permute.xlu0 %5672 }
 0x3b7   : > { %v5431_v50 = vadd.f32 %v5430_v45, %v5429_v53 }
 0x3b9   : > { %v5432_v42 = vrot.slane %v5431_v50, 2 }
 0x3bb   : > { %v5433_v35 = vadd.f32 %v5432_v42, %v5431_v50  ;;  %v15015_v42 = vld [vmem:[#allocation17_spill] sm:$0xff] }
 0x3bd   : > { %v5434_v21 = vrot.slane %v5433_v35, 1 }
 0x3bf   : > { %v5435_v0 = vadd.f32 %v5434_v21, %v5433_v35  ;;  %v15016_v35 = vmax.f32 %v15015_v42, 0.0 }
 0x3c1   : > { %v5436_v5 = vmul.f32 0.00390625, %v5435_v0  ;;  %v15019_v0 = vld [vmem:[#allocation82_spill] sm:$0xff] }
 0x3c3   : > { %8537 = vmatmul.mubr.msk.f32.vlgmr.msra.gmra.mrb[12].mxu0 %vm4219_vm3, %v5436_v5 }
 0x3c4   : > { %8665 = vmatpush3.bf16.msra.mxu0 %v8664_v24  ;;  %8543 = vmatprep.mubr.msk.f32.mxu0 %vm8801_vm4, %v15010_v12  ;;  %v15020_v24 = vmax.f32 %v15019_v0, 0.0  ;;  %v15044_v0 = vld [vmem:[#allocation112_spill] sm:$0xff] }
 0x3c5   : > { %8546 = vmatprep.subr.mxu0 %v15010_v12 }
 0x3c7   : > { %8544 = vmatmul.mubr.msk.f32.vlgmr.msra.gmra.mrb[14].mxu0 %vm4219_vm3, %v5366_v9  ;;  %v15022_v9 = vmax.f32 %v15021_v2, 0.0  ;;  %v15046_v2 = vld [vmem:[#allocation113_spill] sm:$0xff] }
 0x3c8   : > { %8547 = vmatpush3.msra.mxu0 %v12535_v32  ;;  %8548 = vmatprep.mubr.msk.f32.mxu0 %vm8801_vm4, %v15010_v12  ;;  %v5587_v32 = vld [vmem:[%s14509_s13] sm:$0x1] }
 0x3c9   : > { %8551 = vmatprep.subr.mxu0 %v15010_v12 }
 0x41b   : > { %v5681_v29 = vpop.permute.xlu1 %5680 }
 0x496   : > { %v5510_v16 = vpop.f32.mrb[12].mxu0 }
 0x497   : > { %v8538_v34 = vpop.f32.mrb[13].mxu0 }
 0x49a   : > { %v5583_v23 = vpop.f32.mrb[14].mxu0 }
 0x49b   : > { %v5584_v38 = vadd.f32 %v5583_v23, %v5510_v16  ;;  %v8545_v49 = vpop.f32.mrb[15].mxu0  ;;  %v15023_v16 = vld [vmem:[#allocation93_spill] sm:$0xff] }
 0x49c   : > { %v15024_v34 = vmax.f32 %v15023_v16, 0.0  ;;  %v15048_v16 = vld [vmem:[#allocation90_spill] sm:$0xff] }
 0x49d   : > { %v5588_v8 = vadd.f32 %v5587_v32, %v5584_v38  ;;  %v15025_v32 = vld [vmem:[#allocation95_spill] sm:$0xff] }
 0x49e   : > { %v15026_v38 = vmax.f32 %v15025_v32, 0.0  ;;  %v15050_v32 = vld [vmem:[#allocation91_spill] sm:$0xff] }
 0x49f   : > { %v5589_v30 = vmax.f32 %v5588_v8, 0.0  ;;  %v15027_v8 = vld [vmem:[#allocation97_spill] sm:$0xff] }
 0x4a1   : > { %8549 = vmatmul.mubr.msk.f32.vlgmr.msra.gmra.mrb[16].mxu0 %vm718_vm0, %v5589_v30 }
 0x4a2   : > { %8552 = vmatpush3.msra.mxu0 %v5673_v1  ;;  %8553 = vmatprep.mubr.msk.f32.mxu0 %vm8801_vm4, %v15010_v12  ;;  %v5832_v12 = vld [vmem:[%s14512_s16 + $0x8] sm:$0xff] }
 0x4a3   : > { %8667 = vmatprep.subr.bf16.mxu0 %v8666_v40  ;;  %v8670_v6 = vpack.c.bf16 %v5832_v12, %v5831_v36  ;;  %v15031_v12 = vmax.f32 %v12391_v3, 0.0 }
 0x4a5   : > { %8554 = vmatmul.mubr.msk.f32.vlgmr.msra.gmra.mrb[18].mxu0 %vm718_vm0, %v5589_v30  ;;  %v15028_v30 = vmax.f32 %v15027_v8, 0.0 }
 0x4a6   : > { %8669 = vmatpush3.bf16.msra.mxu0 %v8666_v40  ;;  %v15030_v40 = vmax.f32 %v12379_v26, 0.0  ;;  %v15034_v26 = vld [vmem:[#allocation106_spill] sm:$0xff] }
 0x4a7   : > { %8671 = vmatprep.subr.bf16.mxu0 %v8670_v6 }
 0x574   : > { %v5661_v13 = vpop.f32.mrb[16].mxu0 }
 0x575   : > { %v8550_v48 = vpop.f32.mrb[17].mxu0  ;;  %v5662_v31 = vadd.f32 %v5661_v13, %v5591_v62  ;;  %v15040_v62 = vld [vmem:[#allocation110_spill] sm:$0xff] }
 0x576   : > { %v15032_v48 = vld [vmem:[#allocation102_spill] sm:$0xff]  ;;  %v15041_v13 = vmax.f32 %v15040_v62, 0.0 }
 0x577   : > { %v8131_v3 = vmul.f32 -1.442695, %v5662_v31  ;;  %v15068_v62 = vld [vmem:[#allocation86_spill] sm:$0xff] }
 0x578   : > { %v5749_v4 = vpop.f32.mrb[18].mxu0 }
 0x579   : > { %v5750_v37 = vadd.f32 %v5749_v4, %v5681_v29  ;;  %v8555_v41 = vpop.f32.mrb[19].mxu0  ;;  %v15033_v29 = vmax.f32 %v15032_v48, 0.0 }
 0x57b   : > { %v8133_v53 = vmul.f32 -1.442695, %v5750_v37  ;;  %v15035_v37 = vmax.f32 %v15034_v26, 0.0  ;;  %v15063_v26 = vld [vmem:[#allocation19_spill] sm:$0xff] }
 0x57d   : > { %8754 = vpow2.f32 %v8133_v53  ;;  %v15036_v53 = vld [vmem:[#allocation108_spill] sm:$0xff] }
 0x587   : > { %v8755_v58 = vpop.eup %8754 }
 0x588   : > { %v5756_v45 = vadd.f32 1.0, %v8755_v58  ;;  %v15037_v58 = vmax.f32 %v15036_v53, 0.0 }
 0x58a   : > { %8756 = vrcp.f32 %v5756_v45 }
 0x58b   : > { %8758 = vpow2.f32 %v8131_v3  ;;  %v15066_v3 = vld [vmem:[#allocation83_spill] sm:$0xff] }
 0x594   : > { %v8757_v50 = vpop.eup %8756 }
 0x595   : > { %v13019_v7 = vrot.slane %v8757_v50, %v15014_v28  ;;  %v15038_v50 = vld [vmem:[#allocation109_spill] sm:$0xff]  ;;  %v8759_v8 = vpop.eup %8758 }
 0x596   : > { %v15039_v42 = vmax.f32 %v15038_v50, 0.0 }
 0x597   : > { %v5799_v21 = vmul.f32 %v13019_v7, %v15016_v35  ;;  %v5800_v15 = vmul.f32 %v13019_v7, %v15018_v55  ;;  %v5801_v5 = vmul.f32 %v13019_v7, %v15020_v24  ;;  %v5802_v46 = vmul.f32 %v13019_v7, %v15022_v9 }
 0x598   : > { %v5803_v23 = vmul.f32 %v13019_v7, %v15024_v34  ;;  %v5804_v49 = vmul.f32 %v13019_v7, %v15026_v38  ;;  %v5805_v1 = vmul.f32 %v13019_v7, %v15028_v30  ;;  %v5806_v39 = vmul.f32 %v13019_v7, %v15029_v43  ;;  %v15052_v30 = vld [vmem:[#allocation92_spill] sm:$0xff] }
 0x599   : > { %8560 = vmatprep.mubr.msk.f32.mxu0 %vm4219_vm3, %v5799_v21  ;;  %v5807_v36 = vmul.f32 %v13019_v7, %v15030_v40  ;;  %v5809_v4 = vmul.f32 %v13019_v7, %v15033_v29  ;;  %v5810_v41 = vmul.f32 %v13019_v7, %v15035_v37  ;;  %v5811_v45 = vmul.f32 %v13019_v7, %v15037_v58  ;;  %v15065_v58 = vld [vmem:[#allocation85_spill] sm:$0xff] }
 0x59a   : > { %8561 = vmatmul.mubr.msk.f32.vlgmr.msra.gmra.mrb[20].mxu0 %vm4219_vm3, %v5800_v15  ;;  %v5812_v35 = vmul.f32 %v13019_v7, %v15039_v42  ;;  %v5813_v21 = vmul.f32 %v13019_v7, %v15041_v13  ;;  %v15043_v55 = vmax.f32 %v15042_v60, 0.0  ;;  %v15045_v24 = vmax.f32 %v15044_v0, 0.0  ;;  %v15067_v42 = vld [vmem:[#allocation87_spill] sm:$0xff] }
 0x59b   : > { %8673 = vmatpush3.bf16.msra.mxu0 %v8670_v6  ;;  %8563 = vmatprep.mubr.msk.f32.mxu0 %vm4219_vm3, %v5801_v5  ;;  %v5808_v6 = vmul.f32 %v13019_v7, %v15031_v12  ;;  %v15047_v9 = vmax.f32 %v15046_v2, 0.0  ;;  %v15049_v34 = vmax.f32 %v15048_v16, 0.0  ;;  %v15051_v38 = vmax.f32 %v15050_v32, 0.0  ;;  %v15055_v12 = vld [vmem:[#allocation94_spill] sm:$0xff]  ;;  %v15071_v0 = vld [vmem:[#allocation99_spill] sm:$0xff]  ;;  %v15074_v16 = vld [vmem:[#allocation100_spill] sm:$0xff] }
 0x59c   : > { %v5814_v15 = vmul.f32 %v13019_v7, %v15043_v55  ;;  %v5815_v5 = vmul.f32 %v13019_v7, %v15045_v24  ;;  %v15054_v40 = vmax.f32 %v12761_v14, 0.0  ;;  %v5822_v29 = vmul.f32 %v13019_v7, %v5287_v52  ;;  %v15070_v55 = vld [vmem:[#allocation88_spill] sm:$0xff] }
 0x59d   : > { %v5824_v14 = vmul.f32 %v13019_v7, %v5289_v18  ;;  %v5825_v31 = vmul.f32 %v13019_v7, %v5290_v57  ;;  %v5826_v10 = vmul.f32 %v13019_v7, %v5291_v22  ;;  %v5827_v44 = vmul.f32 %v13019_v7, %v5292_v61  ;;  %v15057_v18 = vld [vmem:[#allocation66_spill] sm:$0xff]  ;;  %v15059_v61 = vld [vmem:[#allocation65_spill] sm:$0xff] }
 0x59e   : > { %8564 = vmatmul.mubr.msk.f32.gmra.mrb[22].mxu0 %vm4219_vm3, %v5802_v46  ;;  %v5816_v46 = vmul.f32 %v13019_v7, %v15047_v9  ;;  %v5828_v19 = vmul.f32 %v13019_v7, %v5293_v11  ;;  %v5830_v33 = vmul.f32 %v13019_v7, %v5295_v59  ;;  %v15058_v57 = vld [vmem:[#allocation14_spill] sm:$0xff]  ;;  %v15062_v59 = vld [vmem:[#allocation16_spill] sm:$0xff]  ;;  %v15073_v9 = vld [vmem:[#allocation101_spill] sm:$0xff] }
 0x59f   : > { %8566 = vmatprep.mubr.msk.f32.mxu0 %vm4219_vm3, %v5803_v23  ;;  %v5817_v23 = vmul.f32 %v13019_v7, %v15049_v34  ;;  %v15061_v11 = vld [vmem:[#allocation70_spill] sm:$0xff] }
 0x5a2   : > { %8567 = vmatmul.mubr.msk.f32.gmra.mrb[24].mxu0 %vm4219_vm3, %v5804_v49  ;;  %v5818_v49 = vmul.f32 %v13019_v7, %v15051_v38  ;;  %v15076_v38 = vld [vmem:[#allocation103_spill] sm:$0xff] }
 0x5a3   : > { %8569 = vmatprep.mubr.msk.f32.mxu0 %vm4219_vm3, %v5805_v1  ;;  %v15053_v1 = vmax.f32 %v15052_v30, 0.0 }
 0x5a5   : > { %v5819_v43 = vmul.f32 %v13019_v7, %v15053_v1  ;;  %v15078_v1 = vld [vmem:[#allocation105_spill] sm:$0xff] }
 0x5a6   : > { %8570 = vmatmul.mubr.msk.f32.gmra.mrb[26].mxu0 %vm4219_vm3, %v5806_v39  ;;  %v5668_v39 = vadd.f32 1.0, %v8759_v8  ;;  %v15077_v8 = vld [vmem:[#allocation107_spill] sm:$0xff] }
 0x5a7   : > { %8572 = vmatprep.mubr.msk.f32.mxu0 %vm4219_vm3, %v5807_v36  ;;  %v5820_v36 = vmul.f32 %v13019_v7, %v15054_v40 }
 0x5a8   : > { %8760 = vrcp.f32 %v5668_v39  ;;  %v15079_v39 = vld [vmem:[#allocation115_spill] sm:$0xff] }
 0x5aa   : > { %8573 = vmatmul.mubr.msk.f32.gmra.mrb[28].mxu0 %vm4219_vm3, %v5808_v6  ;;  %v15056_v6 = vmax.f32 %v15055_v12, 0.0 }
 0x5ab   : > { %8575 = vmatprep.mubr.msk.f32.mxu0 %vm4219_vm3, %v5809_v4  ;;  %v5823_v4 = vmul.f32 %v13019_v7, %v5288_v20  ;;  %v5829_v20 = vmul.f32 %v13019_v7, %v5294_v51 }
 0x5ac   : > { %v5821_v48 = vmul.f32 %v13019_v7, %v15056_v6  ;;  %v15081_v6 = vld [vmem:[#allocation117_spill] sm:$0xff] }
 0x5ae   : > { %8576 = vmatmul.mubr.msk.f32.gmra.mrb[30].mxu0 %vm4219_vm3, %v5810_v41  ;;  %v15064_v41 = vld [vmem:[#allocation18_spill] sm:$0xff] }
 0x5af   : > { %8578 = vmatprep.mubr.msk.f32.mxu0 %vm4219_vm3, %v5811_v45 }
 0x5b2   : > { %8579 = vmatmul.mubr.msk.f32.gmra.mrb[32].mxu0 %vm4219_vm3, %v5812_v35  ;;  %v8761_v52 = vpop.eup %8760 }
 0x5b3   : > { %8581 = vmatprep.mubr.msk.f32.mxu0 %vm4219_vm3, %v5813_v21  ;;  %v13141_v25 = vrot.slane %v8761_v52, %v15014_v28  ;;  %v15069_v21 = vld [vmem:[#allocation89_spill] sm:$0xff] }
 0x5b4   : > { %v15085_v52 = vld [vmem:[#allocation121_spill] sm:$0xff] }
 0x5b5   : > { %v5763_v63 = vmul.f32 %v13141_v25, %v15057_v18  ;;  %v5764_v22 = vmul.f32 %v13141_v25, %v15058_v57  ;;  %v5765_v17 = vmul.f32 %v13141_v25, %v15059_v61  ;;  %v5766_v47 = vmul.f32 %v13141_v25, %v15060_v27  ;;  %v15087_v57 = vld [vmem:[#allocation28_spill] sm:$0xff]  ;;  %v15088_v61 = vld [vmem:[#allocation29_spill] sm:$0xff] }
 0x5b6   : > { %8582 = vmatmul.mubr.msk.f32.gmra.mrb[34].mxu0 %vm4219_vm3, %v5814_v15  ;;  %v5767_v51 = vmul.f32 %v13141_v25, %v15061_v11  ;;  %v5768_v7 = vmul.f32 %v13141_v25, %v15062_v59  ;;  %v5769_v37 = vmul.f32 %v13141_v25, %v15063_v26  ;;  %v5770_v53 = vmul.f32 %v13141_v25, %v15064_v41  ;;  %v15089_v27 = vld [vmem:[#allocation32_spill] sm:$0xff]  ;;  %v15090_v11 = vld [vmem:[#allocation33_spill] sm:$0xff] }
 0x5b7   : > { %8584 = vmatprep.mubr.msk.f32.mxu0 %vm4219_vm3, %v5815_v5  ;;  %v5771_v45 = vmul.f32 %v13141_v25, %v15065_v58  ;;  %v5772_v50 = vmul.f32 %v13141_v25, %v15066_v3  ;;  %v5773_v35 = vmul.f32 %v13141_v25, %v15067_v42  ;;  %v5774_v13 = vmul.f32 %v13141_v25, %v15068_v62  ;;  %v15072_v5 = vld [vmem:[#allocation98_spill] sm:$0xff] }
 0x5b8   : > { %v5775_v60 = vmul.f32 %v13141_v25, %v15069_v21  ;;  %v5776_v15 = vmul.f32 %v13141_v25, %v15070_v55  ;;  %v5777_v24 = vmul.f32 %v13141_v25, %v15071_v0  ;;  %v5778_v2 = vmul.f32 %v13141_v25, %v15072_v5 }
 0x5b9   : > { %v5780_v34 = vmul.f32 %v13141_v25, %v15074_v16  ;;  %v5783_v30 = vmul.f32 %v13141_v25, %v15077_v8  ;;  %v5785_v40 = vmul.f32 %v13141_v25, %v15079_v39  ;;  %v5793_v18 = vmul.f32 %v13141_v25, %v12820_v54 }
 0x5ba   : > { %8585 = vmatmul.mubr.msk.f32.gmra.mrb[36].mxu0 %vm4219_vm3, %v5816_v46  ;;  %v5779_v46 = vmul.f32 %v13141_v25, %v15073_v9  ;;  %v13258_v54 = vmul.f32 2.0, %v15090_v11  ;;  %v15140_v11 = vld [vmem:[#allocation26_spill] sm:$0xff] }
 0x5bb   : > { %8587 = vmatprep.mubr.msk.f32.mxu0 %vm4219_vm3, %v5817_v23  ;;  %v15075_v23 = vld [vmem:[#allocation104_spill] sm:$0xff] }
 0x5bc   : > { %v5781_v32 = vmul.f32 %v13141_v25, %v15075_v23 }
 0x5be   : > { %8588 = vmatmul.mubr.msk.f32.gmra.mrb[38].mxu0 %vm4219_vm3, %v5818_v49  ;;  %v5782_v49 = vmul.f32 %v13141_v25, %v15076_v38 }
 0x5bf   : > { %8590 = vmatprep.mubr.msk.f32.mxu0 %vm4219_vm3, %v5819_v43  ;;  %v5784_v43 = vmul.f32 %v13141_v25, %v15078_v1 }
 0x5c2   : > { %8591 = vmatmul.mubr.msk.f32.gmra.mrb[40].mxu0 %vm4219_vm3, %v5820_v36  ;;  %v15080_v36 = vld [vmem:[#allocation114_spill] sm:$0xff] }
 0x5c3   : > { %8593 = vmatprep.mubr.msk.f32.mxu0 %vm4219_vm3, %v5821_v48  ;;  %v5786_v12 = vmul.f32 %v13141_v25, %v15080_v36  ;;  %v5787_v48 = vmul.f32 %v13141_v25, %v15081_v6 }
 0x5c6   : > { %8594 = vmatmul.mubr.msk.f32.gmra.mrb[42].mxu0 %vm4219_vm3, %v5822_v29  ;;  %v15082_v29 = vld [vmem:[#allocation116_spill] sm:$0xff] }
 0x5c7   : > { %8596 = vmatprep.mubr.msk.f32.mxu0 %vm4219_vm3, %v5823_v4  ;;  %v5788_v4 = vmul.f32 %v13141_v25, %v15082_v29 }
 0x5ca   : > { %8597 = vmatmul.mubr.msk.f32.gmra.mrb[44].mxu0 %vm4219_vm3, %v5824_v14  ;;  %v15083_v14 = vld [vmem:[#allocation119_spill] sm:$0xff] }
 0x5cb   : > { %8599 = vmatprep.mubr.msk.f32.mxu0 %vm4219_vm3, %v5825_v31  ;;  %v5789_v31 = vmul.f32 %v13141_v25, %v15083_v14  ;;  %v15134_v14 = vld [vmem:[#allocation20_spill] sm:$0xff] }
 0x5ce   : > { %8600 = vmatmul.mubr.msk.f32.gmra.mrb[46].mxu0 %vm4219_vm3, %v5826_v10  ;;  %v15084_v10 = vld [vmem:[#allocation118_spill] sm:$0xff] }
 0x5cf   : > { %8602 = vmatprep.mubr.msk.f32.mxu0 %vm4219_vm3, %v5827_v44  ;;  %v5790_v44 = vmul.f32 %v13141_v25, %v15084_v10  ;;  %v15135_v10 = vld [vmem:[#allocation21_spill] sm:$0xff] }
 0x5d2   : > { %8603 = vmatmul.mubr.msk.f32.gmra.mrb[48].mxu0 %vm4219_vm3, %v5828_v19  ;;  %v5791_v19 = vmul.f32 %v13141_v25, %v15085_v52  ;;  %v15136_v52 = vld [vmem:[#allocation22_spill] sm:$0xff] }
 0x5d3   : > { %8605 = vmatprep.mubr.msk.f32.mxu0 %vm4219_vm3, %v5829_v20  ;;  %v15086_v20 = vld [vmem:[#allocation120_spill] sm:$0xff] }
 0x5d6   : > { %8606 = vmatmul.mubr.msk.f32.gmra.mrb[50].mxu0 %vm4219_vm3, %v5830_v33  ;;  %v5792_v33 = vmul.f32 %v13141_v25, %v15086_v20  ;;  %v15137_v20 = vld [vmem:[#allocation23_spill] sm:$0xff] }
 0x5d7   : > { %8612 = vmatprep.mubr.msk.f32.mxu0 %vm4219_vm3, %v5763_v63  ;;  %v5794_v63 = vmul.f32 %v13141_v25, %v12808_v56  ;;  %v15094_v56 = vld [vmem:[#allocation43_spill] sm:$0xff] }
 0x5d8   : > { %v13267_v25 = vmul.f32 2.0, %v15094_v56 }
 0x5da   : > { %8613 = vmatmul.mubr.msk.f32.vlgmr.msra.gmra.mrb[20].mxu0 %vm4219_vm3, %v5764_v22  ;;  %v13249_v22 = vmul.f32 2.0, %v15087_v57  ;;  %15095 = vst [vmem:[#allocation5_spill] sm:$0xff] %v13267_v25 }
 0x5db   : > { %8615 = vmatprep.mubr.msk.f32.mxu0 %vm4219_vm3, %v5765_v17  ;;  %v13252_v17 = vmul.f32 2.0, %v15088_v61  ;;  %v15139_v61 = vld [vmem:[#allocation25_spill] sm:$0xff] }
 0x5de   : > { %8616 = vmatmul.mubr.msk.f32.gmra.mrb[22].mxu0 %vm4219_vm3, %v5766_v47  ;;  %v13255_v47 = vmul.f32 2.0, %v15089_v27  ;;  %v13346_v27 = vmul.f32 2.0, %v15139_v61  ;;  %v6656_v61 = vld [vmem:[#allocation4 + $0x7] sm:$0xff] }
 0x5df   : > { %8618 = vmatprep.mubr.msk.f32.mxu0 %vm4219_vm3, %v5767_v51  ;;  %v15091_v51 = vld [vmem:[#allocation36_spill] sm:$0xff] }
 0x5e0   : > { %v13261_v59 = vmul.f32 2.0, %v15091_v51  ;;  %v13349_v51 = vmul.f32 2.0, %v15140_v11  ;;  %v6756_v11 = vld [vmem:[#allocation4 + $0x8] sm:$0xff] }
 0x5e2   : > { %8619 = vmatmul.mubr.msk.f32.gmra.mrb[24].mxu0 %vm4219_vm3, %v5768_v7  ;;  %v15092_v7 = vld [vmem:[#allocation37_spill] sm:$0xff] }
 0x5e3   : > { %8621 = vmatprep.mubr.msk.f32.mxu0 %vm4219_vm3, %v5769_v37  ;;  %v13264_v26 = vmul.f32 2.0, %v15092_v7  ;;  %v15096_v37 = vld [vmem:[#allocation44_spill] sm:$0xff]  ;;  %v15141_v7 = vld [vmem:[#allocation27_spill] sm:$0xff] }
 0x5e4   : > { %v13270_v41 = vmul.f32 2.0, %v15096_v37  ;;  %v13352_v56 = vmul.f32 2.0, %v15141_v7  ;;  %v15142_v37 = vld [vmem:[#allocation30_spill] sm:$0xff] }
 0x5e5   : > { %15093 = vst [vmem:[#allocation96_spill] sm:$0xff] %v13264_v26 }
 0x5e6   : > { %8622 = vmatmul.mubr.msk.f32.gmra.mrb[26].mxu0 %vm4219_vm3, %v5770_v53  ;;  %15097 = vst [vmem:[#allocation17_spill] sm:$0xff] %v13270_v41  ;;  %v15098_v53 = vld [vmem:[#allocation49_spill] sm:$0xff] }
 0x5e7   : > { %8624 = vmatprep.mubr.msk.f32.mxu0 %vm4219_vm3, %v5771_v45  ;;  %v13273_v58 = vmul.f32 2.0, %v15098_v53  ;;  %v15100_v45 = vld [vmem:[#allocation50_spill] sm:$0xff]  ;;  %v13355_v53 = vmul.f32 2.0, %v15142_v37  ;;  %v15151_v37 = vld [vmem:[#allocation47_spill] sm:$0xff] }
 0x5e8   : > { %v13276_v3 = vmul.f32 2.0, %v15100_v45  ;;  %v15143_v45 = vld [vmem:[#allocation31_spill] sm:$0xff] }
 0x5e9   : > { %15099 = vst [vmem:[#allocation69_spill] sm:$0xff] %v13273_v58 }
 0x5ea   : > { %8625 = vmatmul.mubr.msk.f32.gmra.mrb[28].mxu0 %vm4219_vm3, %v5772_v50  ;;  %15101 = vst [vmem:[#allocation82_spill] sm:$0xff] %v13276_v3  ;;  %v15102_v50 = vld [vmem:[#allocation53_spill] sm:$0xff] }
 0x5eb   : > { %8627 = vmatprep.mubr.msk.f32.mxu0 %vm4219_vm3, %v5773_v35  ;;  %v13279_v42 = vmul.f32 2.0, %v15102_v50  ;;  %v15104_v35 = vld [vmem:[#allocation54_spill] sm:$0xff]  ;;  %v13358_v50 = vmul.f32 2.0, %v15143_v45  ;;  %v13387_v45 = vmul.f32 2.0, %v15151_v37 }
 0x5ec   : > { %v13282_v62 = vmul.f32 2.0, %v15104_v35 }
 0x5ed   : > { %15103 = vst [vmem:[#allocation84_spill] sm:$0xff] %v13279_v42 }
 0x5ee   : > { %8628 = vmatmul.mubr.msk.f32.gmra.mrb[30].mxu0 %vm4219_vm3, %v5774_v13  ;;  %15105 = vst [vmem:[#allocation93_spill] sm:$0xff] %v13282_v62  ;;  %v15106_v13 = vld [vmem:[#allocation57_spill] sm:$0xff] }
 0x5ef   : > { %8630 = vmatprep.mubr.msk.f32.mxu0 %vm4219_vm3, %v5775_v60  ;;  %v13285_v21 = vmul.f32 2.0, %v15106_v13  ;;  %v15108_v60 = vld [vmem:[#allocation59_spill] sm:$0xff]  ;;  %v15144_v13 = vld [vmem:[#allocation6_spill] sm:$0xff] }
 0x5f0   : > { %v13288_v55 = vmul.f32 2.0, %v15108_v60 }
 0x5f1   : > { %15107 = vst [vmem:[#allocation95_spill] sm:$0xff] %v13285_v21 }
 0x5f2   : > { %8631 = vmatmul.mubr.msk.f32.gmra.mrb[32].mxu0 %vm4219_vm3, %v5776_v15  ;;  %15109 = vst [vmem:[#allocation97_spill] sm:$0xff] %v13288_v55  ;;  %v15110_v15 = vld [vmem:[#allocation64_spill] sm:$0xff]  ;;  %v15161_v55 = vld [vmem:[#allocation10_spill] sm:$0xff] }
 0x5f3   : > { %8633 = vmatprep.mubr.msk.f32.mxu0 %vm4219_vm3, %v5777_v24  ;;  %v13291_v0 = vmul.f32 2.0, %v15110_v15  ;;  %v15112_v24 = vld [vmem:[#allocation63_spill] sm:$0xff] }
 0x5f4   : > { %v13294_v5 = vmul.f32 2.0, %v15112_v24  ;;  %v15145_v24 = vld [vmem:[#allocation38_spill] sm:$0xff] }
 0x5f5   : > { %15111 = vst [vmem:[#allocation102_spill] sm:$0xff] %v13291_v0 }
 0x5f6   : > { %8634 = vmatmul.mubr.msk.f32.gmra.mrb[34].mxu0 %vm4219_vm3, %v5778_v2  ;;  %15113 = vst [vmem:[#allocation106_spill] sm:$0xff] %v13294_v5  ;;  %v15114_v2 = vld [vmem:[#allocation68_spill] sm:$0xff] }
 0x5f7   : > { %8636 = vmatprep.mubr.msk.f32.mxu0 %vm4219_vm3, %v5779_v46  ;;  %v13297_v9 = vmul.f32 2.0, %v15114_v2  ;;  %v15116_v46 = vld [vmem:[#allocation67_spill] sm:$0xff]  ;;  %v13367_v2 = vmul.f32 2.0, %v15145_v24  ;;  %v15152_v24 = vld [vmem:[#allocation48_spill] sm:$0xff] }
 0x5f8   : > { %v13300_v16 = vmul.f32 2.0, %v15116_v46  ;;  %v15146_v46 = vld [vmem:[#allocation39_spill] sm:$0xff]  ;;  %v15160_v5 = vld [vmem:[#allocation60_spill] sm:$0xff] }
 0x5f9   : > { %15115 = vst [vmem:[#allocation108_spill] sm:$0xff] %v13297_v9 }
 0x5fa   : > { %8637 = vmatmul.mubr.msk.f32.gmra.mrb[36].mxu0 %vm4219_vm3, %v5780_v34  ;;  %15117 = vst [vmem:[#allocation109_spill] sm:$0xff] %v13300_v16  ;;  %v15118_v34 = vld [vmem:[#allocation71_spill] sm:$0xff] }
 0x5fb   : > { %8639 = vmatprep.mubr.msk.f32.mxu0 %vm4219_vm3, %v5781_v32  ;;  %v13303_v23 = vmul.f32 2.0, %v15118_v34  ;;  %v15120_v32 = vld [vmem:[#allocation72_spill] sm:$0xff]  ;;  %v13370_v34 = vmul.f32 2.0, %v15146_v46  ;;  %v13390_v46 = vmul.f32 2.0, %v15152_v24 }
 0x5fc   : > { %v13306_v38 = vmul.f32 2.0, %v15120_v32  ;;  %v15147_v32 = vld [vmem:[#allocation34_spill] sm:$0xff]  ;;  %v6857_v24 = vld [vmem:[#allocation4 + $0x11] sm:$0xff] }
 0x5fd   : > { %15119 = vst [vmem:[#allocation110_spill] sm:$0xff] %v13303_v23 }
 0x5fe   : > { %8640 = vmatmul.mubr.msk.f32.gmra.mrb[38].mxu0 %vm4219_vm3, %v5782_v49  ;;  %15121 = vst [vmem:[#allocation111_spill] sm:$0xff] %v13306_v38  ;;  %v15122_v49 = vld [vmem:[#allocation73_spill] sm:$0xff]  ;;  %v15157_v38 = vld [vmem:[#allocation8_spill] sm:$0xff] }
 0x5ff   : > { %8642 = vmatprep.mubr.msk.f32.mxu0 %vm4219_vm3, %v5783_v30  ;;  %v13309_v8 = vmul.f32 2.0, %v15122_v49  ;;  %v15124_v30 = vld [vmem:[#allocation74_spill] sm:$0xff]  ;;  %v13373_v49 = vmul.f32 2.0, %v15147_v32  ;;  %v13417_v23 = vmul.f32 2.0, %v15157_v38 }
 0x600   : > { %v13312_v1 = vmul.f32 2.0, %v15124_v30  ;;  %v6657_v30 = vld [vmem:[#allocation4 + $0xf] sm:$0xff] }
 0x601   : > { %15123 = vst [vmem:[#allocation112_spill] sm:$0xff] %v13309_v8  ;;  %v15156_v8 = vld [vmem:[#allocation56_spill] sm:$0xff] }
 0x602   : > { %8643 = vmatmul.mubr.msk.f32.gmra.mrb[40].mxu0 %vm4219_vm3, %v5784_v43  ;;  %15125 = vst [vmem:[#allocation113_spill] sm:$0xff] %v13312_v1  ;;  %v15126_v43 = vld [vmem:[#allocation76_spill] sm:$0xff]  ;;  %v6856_v1 = vld [vmem:[#allocation4 + $0x9] sm:$0xff] }
 0x603   : > { %8645 = vmatprep.mubr.msk.f32.mxu0 %vm4219_vm3, %v5785_v40  ;;  %v13315_v39 = vmul.f32 2.0, %v15126_v43  ;;  %v15128_v40 = vld [vmem:[#allocation75_spill] sm:$0xff] }
 0x604   : > { %v13318_v36 = vmul.f32 2.0, %v15128_v40  ;;  %v6757_v43 = vld [vmem:[#allocation4 + $0x10] sm:$0xff] }
 0x605   : > { %15127 = vst [vmem:[#allocation90_spill] sm:$0xff] %v13315_v39 }
 0x606   : > { %8646 = vmatmul.mubr.msk.f32.gmra.mrb[42].mxu0 %vm4219_vm3, %v5786_v12  ;;  %15129 = vst [vmem:[#allocation91_spill] sm:$0xff] %v13318_v36  ;;  %v15130_v12 = vld [vmem:[#allocation78_spill] sm:$0xff] }
 0x607   : > { %8648 = vmatprep.mubr.msk.f32.mxu0 %vm4219_vm3, %v5787_v48  ;;  %v13321_v6 = vmul.f32 2.0, %v15130_v12  ;;  %v15132_v48 = vld [vmem:[#allocation77_spill] sm:$0xff] }
 0x608   : > { %v13324_v29 = vmul.f32 2.0, %v15132_v48  ;;  %v15148_v48 = vld [vmem:[#allocation35_spill] sm:$0xff] }
 0x609   : > { %15131 = vst [vmem:[#allocation92_spill] sm:$0xff] %v13321_v6 }
 0x60a   : > { %8649 = vmatmul.mubr.msk.f32.gmra.mrb[44].mxu0 %vm4219_vm3, %v5788_v4  ;;  %15133 = vst [vmem:[#allocation94_spill] sm:$0xff] %v13324_v29  ;;  %v6548_v4 = vld [vmem:[%s14514_s18] sm:$0x7] }
 0x60b   : > { %8651 = vmatprep.mubr.msk.f32.mxu0 %vm4219_vm3, %v5789_v31  ;;  %v7627_v31 = vmul.f32 2.0, %v15134_v14  ;;  %v13361_v35 = vrot.slane %v6548_v4, %v15014_v28  ;;  %v13364_v60 = vrot.slane %v6548_v4, %v15144_v13  ;;  %v13377_v14 = vmul.f32 2.0, %v15148_v48 }
 0x60d   : > { %v6793_v29 = vmul.f32 %v13364_v60, %v6757_v43  ;;  %v6692_v36 = vmul.f32 %v13361_v35, %v6656_v61 }
 0x60e   : > { %8652 = vmatmul.mubr.msk.f32.gmra.mrb[46].mxu0 %vm4219_vm3, %v5790_v44  ;;  %v7626_v44 = vmul.f32 2.0, %v15135_v10  ;;  %v15149_v10 = vld [vmem:[#allocation41_spill] sm:$0xff] }
 0x60f   : > { %8654 = vmatprep.mubr.msk.f32.mxu0 %vm4219_vm3, %v5791_v19  ;;  %v13332_v19 = vmul.f32 2.0, %v15136_v52  ;;  %v13380_v52 = vmul.f32 2.0, %v15149_v10  ;;  %v6693_v10 = vmul.f32 %v13361_v35, %v6657_v30 }
 0x611   : > { %v6825_v38 = vadd.f32 %v6793_v29, %v6693_v10  ;;  %v6550_v10 = vld [vmem:[%s14514_s18 + $0x8] sm:$0x7] }
 0x612   : > { %8655 = vmatmul.mubr.msk.f32.gmra.mrb[48].mxu0 %vm4219_vm3, %v5792_v33  ;;  %v13335_v33 = vmul.f32 2.0, %v15137_v20  ;;  %v15150_v20 = vld [vmem:[#allocation42_spill] sm:$0xff] }
 0x613   : > { %8657 = vmatprep.mubr.msk.f32.mxu0 %vm4219_vm3, %v5793_v18  ;;  %v13340_v18 = vld [vmem:[%s14513_s17] ss:$0 sm:$0xff] }
 0x616   : > { %8658 = vmatmul.mubr.msk.f32.gmra.mrb[50].mxu0 %vm4219_vm3, %v5794_v63  ;;  %v15138_v63 = vld [vmem:[#allocation24_spill] sm:$0xff] }
 0x617   : > { %v13343_v57 = vmul.f32 2.0, %v15138_v63  ;;  %v13383_v63 = vmul.f32 2.0, %v15150_v20  ;;  %v15154_v20 = vld [vmem:[#allocation7_spill] sm:$0xff] }
 0x618   : > { %v13398_v6 = vrot.slane %v6548_v4, %v15154_v20 }
 0x61a   : > { %v6893_v9 = vmul.f32 %v13398_v6, %v6857_v24 }
 0x6ad   : > { %v8614_v15 = vpop.f32.mrb[20].mxu0 }
 0x6ae   : > { %v6485_v40 = vadd.f32 %v8614_v15, %v13340_v18  ;;  %v6318_v12 = vpop.f32.mrb[21].mxu0  ;;  %v15153_v15 = vld [vmem:[#allocation51_spill] sm:$0xff] }
 0x6af   : > { %v6484_v7 = vadd.f32 %v13340_v18, %v6318_v12  ;;  %v13393_v32 = vmul.f32 2.0, %v15153_v15  ;;  %v15155_v15 = vld [vmem:[#allocation52_spill] sm:$0xff] }
 0x6b0   : > { %v6517_v48 = vmax.f32 %v6485_v40, 0.0  ;;  %v6792_v40 = vmul.f32 %v13364_v60, %v6756_v11  ;;  %v13409_v30 = vmul.f32 2.0, %v15155_v15  ;;  %v15159_v15 = vld [vmem:[#allocation9_spill] sm:$0xff] }
 0x6b1   : > { %v6516_v12 = vmax.f32 %v6484_v7, 0.0  ;;  %v8617_v37 = vpop.f32.mrb[22].mxu0  ;;  %v13414_v7 = vmul.f32 2.0, %v15156_v8  ;;  %v13428_v16 = vmul.f32 2.0, %v15159_v15  ;;  %v13440_v15 = vmul.f32 2.0, %v15161_v55 }
 0x6b2   : > { %6625 = vst.msk [vmem:[#allocation4 + $0x30] sm:$0xff] %vm2192_vm2, %v6517_v48  ;;  %v7659_v4 = vadd.f32 %v7627_v31, %v6517_v48  ;;  %v6487_v43 = vadd.f32 %v8617_v37, %v13340_v18  ;;  %v6328_v39 = vpop.f32.mrb[23].mxu0  ;;  %v6549_v31 = vld [vmem:[%s14514_s18 + $0x4] sm:$0x7]  ;;  %v15158_v48 = vld [vmem:[#allocation55_spill] sm:$0xff]  ;;  %v6824_v0 = vadd.f32 %v6792_v40, %v6692_v36  ;;  %v15163_v36 = vld [vmem:[#allocation58_spill] sm:$0xff] }
 0x6b3   : > { %6624 = vst.msk [vmem:[#allocation4 + $0x28] sm:$0xff] %vm2192_vm2, %v6516_v12  ;;  %v7658_v61 = vadd.f32 %v7626_v44, %v6516_v12  ;;  %v6486_v11 = vadd.f32 %v13340_v18, %v6328_v39  ;;  %v13425_v37 = vmul.f32 2.0, %v15158_v48  ;;  %v13434_v44 = vmul.f32 2.0, %v15160_v5  ;;  %15162 = vst [vmem:[#allocation66_spill] sm:$0xff] %v13440_v15 }
 0x6b4   : > { %7691 = vst.msk [vmem:[%s13404_s0 + $0x8] sm:$0xff] %vm2192_vm2, %v7659_v4  ;;  %v6519_v8 = vmax.f32 %v6487_v43, 0.0  ;;  %v6892_v48 = vmul.f32 %v13398_v6, %v6856_v1  ;;  %v13449_v24 = vrot.slane %v6549_v31, %v15144_v13  ;;  %v13452_v1 = vmul.f32 2.0, %v15163_v36  ;;  %v15165_v43 = vld [vmem:[#allocation11_spill] sm:$0xff]  ;;  %v15167_v36 = vld [vmem:[#allocation62_spill] sm:$0xff] }
 0x6b5   : > { %7690 = vst.msk [vmem:[%s13404_s0] sm:$0xff] %vm2192_vm2, %v7658_v61  ;;  %v6518_v39 = vmax.f32 %v6486_v11, 0.0  ;;  %v8620_v12 = vpop.f32.mrb[24].mxu0  ;;  %v13458_v40 = vrot.slane %v6549_v31, %v15014_v28  ;;  %v13461_v61 = vmul.f32 2.0, %v15165_v43  ;;  %v13469_v21 = vmul.f32 2.0, %v15167_v36 }
 0x6b6   : > { %v7661_v4 = vadd.f32 %v13332_v19, %v6519_v8  ;;  %6627 = vst.msk [vmem:[#allocation4 + $0x50] sm:$0xff] %vm2192_vm2, %v6519_v8  ;;  %v6489_v29 = vadd.f32 %v8620_v12, %v13340_v18  ;;  %v6338_v5 = vpop.f32.mrb[25].mxu0  ;;  %15164 = vst [vmem:[#allocation14_spill] sm:$0xff] %v13452_v1  ;;  %v6925_v8 = vadd.f32 %v6893_v9, %v6825_v38 }
 0x6b7   : > { %v7660_v55 = vadd.f32 %v13335_v33, %v6518_v39  ;;  %6626 = vst.msk [vmem:[#allocation4 + $0x48] sm:$0xff] %vm2192_vm2, %v6518_v39  ;;  %v6488_v19 = vadd.f32 %v13340_v18, %v6338_v5  ;;  %15166 = vst [vmem:[#allocation65_spill] sm:$0xff] %v13461_v61  ;;  %v13466_v12 = vrot.slane %v6549_v31, %v15154_v20 }
 0x6b8   : > { %7693 = vst.msk [vmem:[%s13404_s0 + $0x18] sm:$0xff] %vm2192_vm2, %v7661_v4  ;;  %v6521_v11 = vmax.f32 %v6489_v29, 0.0  ;;  %15168 = vst [vmem:[#allocation15_spill] sm:$0xff] %v13469_v21  ;;  %v13476_v43 = vrot.slane %v6550_v10, %v15144_v13  ;;  %v13479_v4 = vrot.slane %v6550_v10, %v15154_v20  ;;  %v6924_v9 = vadd.f32 %v6892_v48, %v6824_v0 }
 0x6b9   : > { %7692 = vst.msk [vmem:[%s13404_s0 + $0x10] sm:$0xff] %vm2192_vm2, %v7660_v55  ;;  %v6520_v33 = vmax.f32 %v6488_v19, 0.0  ;;  %v8623_v39 = vpop.f32.mrb[26].mxu0  ;;  %v7057_v5 = vld [vmem:[#allocation4 + $0x30] sm:$0xff]  ;;  %v13486_v36 = vrot.slane %v6550_v10, %v15014_v28 }
 0x6ba   : > { %v13473_v62 = vld [vmem:[#allocation4 + $0x31] sm:$0xff]  ;;  %v7663_v31 = vadd.f32 %v13343_v57, %v6521_v11  ;;  %6629 = vst.msk [vmem:[#allocation4 + $0x70] sm:$0xff] %vm2192_vm2, %v6521_v11  ;;  %v6491_v38 = vadd.f32 %v8623_v39, %v13340_v18  ;;  %v6348_v29 = vpop.f32.mrb[27].mxu0  ;;  %v7093_v19 = vmul.f32 %v13449_v24, %v7057_v5  ;;  %v13488_v13 = vld [vmem:[#allocation4 + $0x27] sm:$0xff] }
 0x6bb   : > { %v6957_v55 = vld [vmem:[#allocation4 + $0x2f] sm:$0xff]  ;;  %v7662_v0 = vadd.f32 %v13346_v27, %v6520_v33  ;;  %6628 = vst.msk [vmem:[#allocation4 + $0x68] sm:$0xff] %vm2192_vm2, %v6520_v33  ;;  %v6490_v57 = vadd.f32 %v13340_v18, %v6348_v29  ;;  %v6992_v11 = vmul.f32 %v13458_v40, %v13488_v13  ;;  %v7193_v10 = vmul.f32 %v13466_v12, %v13473_v62 }
 0x6bc   : > { %v13490_v20 = vld [vmem:[#allocation4 + $0x28] sm:$0xff]  ;;  %v6993_v48 = vmul.f32 %v13458_v40, %v6957_v55  ;;  %7695 = vst.msk [vmem:[%s13404_s0 + $0x28] sm:$0xff] %vm2192_vm2, %v7663_v31  ;;  %v6523_v28 = vmax.f32 %v6491_v38, 0.0  ;;  %v6695_v33 = vmul.f32 %v6957_v55, %v13361_v35  ;;  %v6795_v31 = vmul.f32 %v7057_v5, %v13364_v60 }
 0x6bd   : > { %v13498_v39 = vld [vmem:[#allocation4 + $0x29] sm:$0xff]  ;;  %v7092_v27 = vmul.f32 %v13449_v24, %v13490_v20  ;;  %7694 = vst.msk [vmem:[%s13404_s0 + $0x20] sm:$0xff] %vm2192_vm2, %v7662_v0  ;;  %v6522_v29 = vmax.f32 %v6490_v57, 0.0  ;;  %v8626_v42 = vpop.f32.mrb[28].mxu0  ;;  %v13511_v58 = vld [vmem:[#allocation4 + $0x51] sm:$0xff]  ;;  %v7024_v41 = vadd.f32 %v6992_v11, %v6924_v9 }
 0x6be   : > { %v7025_v3 = vadd.f32 %v6993_v48, %v6925_v8  ;;  %v13509_v21 = vld [vmem:[#allocation4 + $0x50] sm:$0xff]  ;;  %v7665_v38 = vadd.f32 %v13349_v51, %v6523_v28  ;;  %6631 = vst.msk [vmem:[#allocation4 + $0x90] sm:$0xff] %vm2192_vm2, %v6523_v28  ;;  %v6493_v61 = vadd.f32 %v8626_v42, %v13340_v18  ;;  %v6358_v55 = vpop.f32.mrb[29].mxu0  ;;  %v7192_v57 = vmul.f32 %v13466_v12, %v13498_v39  ;;  %v13523_v9 = vld [vmem:[#allocation4 + $0x47] sm:$0xff] }
 0x6bf   : > { %v13517_v0 = vld [vmem:[#allocation4 + $0x4f] sm:$0xff]  ;;  %v7393_v8 = vmul.f32 %v13476_v43, %v13509_v21  ;;  %v7664_v51 = vadd.f32 %v13352_v56, %v6522_v29  ;;  %6630 = vst.msk [vmem:[#allocation4 + $0x88] sm:$0xff] %vm2192_vm2, %v6522_v29  ;;  %v6492_v42 = vadd.f32 %v13340_v18, %v6358_v55  ;;  %v7493_v11 = vmul.f32 %v13479_v4, %v13511_v58 }
 0x6c0   : > { %v13525_v48 = vld [vmem:[#allocation4 + $0x48] sm:$0xff]  ;;  %v7125_v5 = vadd.f32 %v7093_v19, %v7025_v3  ;;  %7697 = vst.msk [vmem:[%s13404_s0 + $0x38] sm:$0xff] %vm2192_vm2, %v7665_v38  ;;  %v6525_v28 = vmax.f32 %v6493_v61, 0.0  ;;  %v7293_v1 = vmul.f32 %v13486_v36, %v13517_v0  ;;  %v7124_v25 = vadd.f32 %v7092_v27, %v7024_v41 }
 0x6c1   : > { %v7292_v26 = vmul.f32 %v13486_v36, %v13523_v9  ;;  %7696 = vst.msk [vmem:[%s13404_s0 + $0x30] sm:$0xff] %vm2192_vm2, %v7664_v51  ;;  %v6524_v56 = vmax.f32 %v6492_v42, 0.0  ;;  %v8629_v29 = vpop.f32.mrb[30].mxu0  ;;  %v7392_v3 = vmul.f32 %v13476_v43, %v13525_v48  ;;  %v13542_v19 = vld [vmem:[#allocation4 + $0x49] sm:$0xff]  ;;  %v6827_v38 = vadd.f32 %v6795_v31, %v6695_v33 }
 0x6c2   : > { %v7225_v55 = vadd.f32 %v7193_v10, %v7125_v5  ;;  %v7667_v61 = vadd.f32 %v13355_v53, %v6525_v28  ;;  %6633 = vst.msk [vmem:[#allocation4 + $0xb0] sm:$0xff] %vm2192_vm2, %v6525_v28  ;;  %v6495_v41 = vadd.f32 %v8629_v29, %v13340_v18  ;;  %v6368_v27 = vpop.f32.mrb[31].mxu0  ;;  %v7224_v15 = vadd.f32 %v7192_v57, %v7124_v25  ;;  %v13558_v28 = vld [vmem:[#allocation4 + $0x6f] sm:$0xff] }
 0x6c3   : > { %v6895_v51 = vmul.f32 %v13473_v62, %v13398_v6  ;;  %v7666_v10 = vadd.f32 %v13358_v50, %v6524_v56  ;;  %6632 = vst.msk [vmem:[#allocation4 + $0xa8] sm:$0xff] %vm2192_vm2, %v6524_v56  ;;  %v6494_v42 = vadd.f32 %v13340_v18, %v6368_v27  ;;  %v6995_v53 = vmul.f32 %v13517_v0, %v13458_v40 }
 0x6c4   : > { %v7325_v5 = vadd.f32 %v7293_v1, %v7225_v55  ;;  %7699 = vst.msk [vmem:[%s13404_s0 + $0x48] sm:$0xff] %vm2192_vm2, %v7667_v61  ;;  %v6527_v33 = vmax.f32 %v6495_v41, 0.0  ;;  %v7324_v31 = vadd.f32 %v7292_v26, %v7224_v15  ;;  %v7492_v25 = vmul.f32 %v13479_v4, %v13542_v19  ;;  %v13566_v55 = vld [vmem:[#allocation4 + $0x70] sm:$0xff] }
 0x6c5   : > { %v6927_v57 = vadd.f32 %v6895_v51, %v6827_v38  ;;  %7698 = vst.msk [vmem:[%s13404_s0 + $0x40] sm:$0xff] %vm2192_vm2, %v7666_v10  ;;  %v6526_v62 = vmax.f32 %v6494_v42, 0.0  ;;  %v8632_v50 = vpop.f32.mrb[32].mxu0  ;;  %v7095_v1 = vmul.f32 %v13509_v21, %v13449_v24  ;;  %v7195_v29 = vmul.f32 %v13511_v58, %v13466_v12 }
 0x6c6   : > { %v7425_v56 = vadd.f32 %v7393_v8, %v7325_v5  ;;  %v7669_v26 = vadd.f32 %v13367_v2, %v6527_v33  ;;  %6635 = vst.msk [vmem:[#allocation4 + $0xd0] sm:$0xff] %vm2192_vm2, %v6527_v33  ;;  %v6497_v15 = vadd.f32 %v8632_v50, %v13340_v18  ;;  %v6378_v38 = vpop.f32.mrb[33].mxu0  ;;  %v13574_v8 = vld [vmem:[%s14515_s19] ss:$0 sm:$0xff]  ;;  %v7424_v61 = vadd.f32 %v7392_v3, %v7324_v31  ;;  %v13588_v31 = vld [vmem:[#allocation4 + $0x71] sm:$0xff] }
 0x6c7   : > { %v7027_v41 = vadd.f32 %v6995_v53, %v6927_v57  ;;  %v7668_v27 = vadd.f32 %v13370_v34, %v6526_v62  ;;  %6634 = vst.msk [vmem:[#allocation4 + $0xc8] sm:$0xff] %vm2192_vm2, %v6526_v62  ;;  %v6496_v51 = vadd.f32 %v13340_v18, %v6378_v38  ;;  %v7295_v10 = vmul.f32 %v13486_v36, %v13558_v28 }
 0x6c8   : > { %v7525_v2 = vadd.f32 %v7493_v11, %v7425_v56  ;;  %7701 = vst.msk [vmem:[%s13404_s0 + $0x58] sm:$0xff] %vm2192_vm2, %v7669_v26  ;;  %v6529_v42 = vmax.f32 %v6497_v15, 0.0  ;;  %v7524_v5 = vadd.f32 %v7492_v25, %v7424_v61  ;;  %v7395_v50 = vmul.f32 %v13476_v43, %v13566_v55 }
 0x6c9   : > { %v7127_v33 = vadd.f32 %v7095_v1, %v7027_v41  ;;  %7700 = vst.msk [vmem:[%s13404_s0 + $0x50] sm:$0xff] %vm2192_vm2, %v7668_v27  ;;  %v6528_v3 = vmax.f32 %v6496_v51, 0.0  ;;  %v8635_v34 = vpop.f32.mrb[34].mxu0  ;;  %v6694_v11 = vmul.f32 %v13488_v13, %v13361_v35  ;;  %v6794_v57 = vmul.f32 %v13490_v20, %v13364_v60 }
 0x6ca   : > { %v7563_v53 = vadd.f32 %v13574_v8, %v7525_v2  ;;  %v7671_v25 = vadd.f32 %v13373_v49, %v6529_v42  ;;  %6637 = vst.msk [vmem:[#allocation4 + $0xf0] sm:$0xff] %vm2192_vm2, %v6529_v42  ;;  %v6499_v62 = vadd.f32 %v8635_v34, %v13340_v18  ;;  %v6388_v56 = vpop.f32.mrb[35].mxu0  ;;  %v7562_v1 = vadd.f32 %v13574_v8, %v7524_v5 }
 0x6cb   : > { %v7227_v26 = vadd.f32 %v7195_v29, %v7127_v33  ;;  %v7670_v15 = vadd.f32 %v13377_v14, %v6528_v3  ;;  %6636 = vst.msk [vmem:[#allocation4 + $0xe8] sm:$0xff] %vm2192_vm2, %v6528_v3  ;;  %v6498_v13 = vadd.f32 %v13340_v18, %v6388_v56  ;;  %v6826_v61 = vadd.f32 %v6794_v57, %v6694_v11 }
 0x6cc   : > { %v7595_v38 = vmax.f32 %v7563_v53, 0.0  ;;  %7703 = vst.msk [vmem:[%s13404_s0 + $0x68] sm:$0xff] %vm2192_vm2, %v7671_v25  ;;  %v6531_v49 = vmax.f32 %v6499_v62, 0.0  ;;  %v7594_v20 = vmax.f32 %v7562_v1, 0.0  ;;  %v7495_v27 = vmul.f32 %v13479_v4, %v13588_v31 }
 0x6cd   : > { %v7327_v41 = vadd.f32 %v7295_v10, %v7227_v26  ;;  %7702 = vst.msk [vmem:[%s13404_s0 + $0x60] sm:$0xff] %vm2192_vm2, %v7670_v15  ;;  %v6530_v51 = vmax.f32 %v6498_v13, 0.0  ;;  %v8638_v29 = vpop.f32.mrb[36].mxu0  ;;  %v6894_v2 = vmul.f32 %v13498_v39, %v13398_v6  ;;  %v6994_v42 = vmul.f32 %v13523_v9, %v13458_v40 }
 0x6ce   : > { %v7755_v14 = vadd.f32 %v13252_v17, %v7595_v38  ;;  %v7673_v5 = vadd.f32 %v13380_v52, %v6531_v49  ;;  %6639 = vst.msk [vmem:[#allocation4 + $0x110] sm:$0xff] %vm2192_vm2, %v6531_v49  ;;  %v6501_v10 = vadd.f32 %v8638_v29, %v13340_v18  ;;  %v6398_v33 = vpop.f32.mrb[37].mxu0  ;;  %v7754_v3 = vadd.f32 %v13249_v22, %v7594_v20  ;;  %v15169_v52 = vld [vmem:[#allocation12_spill] sm:$0xff]  ;;  %v13641_v20 = vld [vmem:[#allocation4 + $0x67] sm:$0xff] }
 0x6cf   : > { %v7427_v34 = vadd.f32 %v7395_v50, %v7327_v41  ;;  %v7672_v17 = vadd.f32 %v13383_v63, %v6530_v51  ;;  %6638 = vst.msk [vmem:[#allocation4 + $0x108] sm:$0xff] %vm2192_vm2, %v6530_v51  ;;  %v6500_v39 = vadd.f32 %v13340_v18, %v6398_v33  ;;  %v6926_v53 = vadd.f32 %v6894_v2, %v6826_v61  ;;  %v15170_v50 = vld [vmem:[#allocation61_spill] sm:$0xff]  ;;  %v13652_v2 = vld [vmem:[#allocation4 + $0x68] sm:$0xff] }
 0x6d0   : > { %7820 = vrot.lane.b32.xlu1 %v7755_v14, %s8802_s3  ;;  %v13621_v11 = vmul.f32 2.0, %v15169_v52  ;;  %7705 = vst.msk [vmem:[%s13404_s0 + $0x78] sm:$0xff] %vm2192_vm2, %v7673_v5  ;;  %v6533_v57 = vmax.f32 %v6501_v10, 0.0  ;;  %7818 = vrot.lane.b32.xlu0 %v7754_v3, %s8802_s3  ;;  %v7094_v63 = vmul.f32 %v13525_v48, %v13449_v24  ;;  %v13629_v25 = vmul.f32 2.0, %v15170_v50  ;;  %v13660_v33 = vld [vmem:[#allocation4 + $0x69] sm:$0xff]  ;;  %v15171_v3 = vld [vmem:[#allocation13_spill] sm:$0xff] }
 0x6d1   : > { %v7527_v22 = vadd.f32 %v7495_v27, %v7427_v34  ;;  %7704 = vst.msk [vmem:[%s13404_s0 + $0x70] sm:$0xff] %vm2192_vm2, %v7672_v17  ;;  %v6532_v62 = vmax.f32 %v6500_v39, 0.0  ;;  %v8641_v56 = vpop.f32.mrb[38].mxu0  ;;  %v7026_v1 = vadd.f32 %v6994_v42, %v6926_v53  ;;  %v7194_v26 = vmul.f32 %v13542_v19, %v13466_v12 }
 0x6d2   : > { %v6697_v15 = vmul.f32 %v13517_v0, %v13361_v35  ;;  %v7675_v13 = vadd.f32 %v13387_v45, %v6533_v57  ;;  %6641 = vst.msk [vmem:[#allocation4 + $0x130] sm:$0xff] %vm2192_vm2, %v6533_v57  ;;  %v6503_v38 = vadd.f32 %v8641_v56, %v13340_v18  ;;  %v6408_v61 = vpop.f32.mrb[39].mxu0  ;;  %v6797_v41 = vmul.f32 %v13509_v21, %v13364_v60 }
 0x6d3   : > { %v7565_v49 = vadd.f32 %v13574_v8, %v7527_v22  ;;  %v7674_v27 = vadd.f32 %v13390_v46, %v6532_v62  ;;  %6640 = vst.msk [vmem:[#allocation4 + $0x128] sm:$0xff] %vm2192_vm2, %v6532_v62  ;;  %v6502_v0 = vadd.f32 %v13340_v18, %v6408_v61  ;;  %v7126_v45 = vadd.f32 %v7094_v63, %v7026_v1 }
 0x6d4   : > { %v6897_v51 = vmul.f32 %v13511_v58, %v13398_v6  ;;  %7707 = vst.msk [vmem:[%s13404_s0 + $0x88] sm:$0xff] %vm2192_vm2, %v7675_v13  ;;  %v6535_v29 = vmax.f32 %v6503_v38, 0.0  ;;  %v6829_v42 = vadd.f32 %v6797_v41, %v6697_v15  ;;  %v6997_v21 = vmul.f32 %v13558_v28, %v13458_v40  ;;  %v13683_v15 = vld [vmem:[#allocation4 + $0x8f] sm:$0xff] }
 0x6d5   : > { %v7597_v14 = vmax.f32 %v7565_v49, 0.0  ;;  %7706 = vst.msk [vmem:[%s13404_s0 + $0x80] sm:$0xff] %vm2192_vm2, %v7674_v27  ;;  %v6534_v46 = vmax.f32 %v6502_v0, 0.0  ;;  %v7226_v5 = vadd.f32 %v7194_v26, %v7126_v45  ;;  %v7294_v10 = vmul.f32 %v13486_v36, %v13641_v20  ;;  %v8644_v58 = vpop.f32.mrb[40].mxu0  ;;  %v13685_v13 = vld [vmem:[#allocation4 + $0x90] sm:$0xff] }
 0x6d6   : > { %v13663_v34 = vmul.f32 2.0, %v15171_v3  ;;  %v7677_v17 = vadd.f32 %v13393_v32, %v6535_v29  ;;  %6643 = vst.msk [vmem:[#allocation4 + $0x150] sm:$0xff] %vm2192_vm2, %v6535_v29  ;;  %v6505_v53 = vadd.f32 %v8644_v58, %v13340_v18  ;;  %v6418_v52 = vpop.f32.mrb[41].mxu0  ;;  %v6929_v57 = vadd.f32 %v6897_v51, %v6829_v42  ;;  %v13687_v38 = vld [vmem:[#allocation4 + $0x91] sm:$0xff] }
 0x6d7   : > { %v7757_v39 = vadd.f32 %v13258_v54, %v7597_v14  ;;  %v7676_v22 = vadd.f32 %v13409_v30, %v6534_v46  ;;  %6642 = vst.msk [vmem:[#allocation4 + $0x148] sm:$0xff] %vm2192_vm2, %v6534_v46  ;;  %v7326_v63 = vadd.f32 %v7294_v10, %v7226_v5  ;;  %v7394_v50 = vmul.f32 %v13476_v43, %v13652_v2 }
 0x6d8   : > { %v6504_v62 = vadd.f32 %v13340_v18, %v6418_v52  ;;  %7709 = vst.msk [vmem:[%s13404_s0 + $0x98] sm:$0xff] %vm2192_vm2, %v7677_v17  ;;  %v7494_v54 = vmul.f32 %v13479_v4, %v13660_v33  ;;  %v6537_v32 = vmax.f32 %v6505_v53, 0.0  ;;  %v7029_v56 = vadd.f32 %v6997_v21, %v6929_v57 }
 0x6d9   : > { %7824 = vrot.lane.b32.xlu1 %v7757_v39, %s8802_s3  ;;  %v7097_v30 = vmul.f32 %v13566_v55, %v13449_v24  ;;  %7708 = vst.msk [vmem:[%s13404_s0 + $0x90] sm:$0xff] %vm2192_vm2, %v7676_v22  ;;  %v7426_v1 = vadd.f32 %v7394_v50, %v7326_v63  ;;  %v6696_v61 = vmul.f32 %v13523_v9, %v13361_v35  ;;  %v8647_v41 = vpop.f32.mrb[42].mxu0  ;;  %v13722_v50 = vld [vmem:[#allocation4 + $0x87] sm:$0xff] }
 0x6da   : > { %v6536_v26 = vmax.f32 %v6504_v62, 0.0  ;;  %v6796_v49 = vmul.f32 %v13525_v48, %v13364_v60  ;;  %v7679_v27 = vadd.f32 %v13414_v7, %v6537_v32  ;;  %6645 = vst.msk [vmem:[#allocation4 + $0x170] sm:$0xff] %vm2192_vm2, %v6537_v32  ;;  %v7197_v45 = vmul.f32 %v13588_v31, %v13466_v12  ;;  %v6428_v29 = vpop.f32.mrb[43].mxu0 }
 0x6db   : > { %v7129_v0 = vadd.f32 %v7097_v30, %v7029_v56  ;;  %v6896_v51 = vmul.f32 %v13542_v19, %v13398_v6  ;;  %v7526_v14 = vadd.f32 %v7494_v54, %v7426_v1  ;;  %v6996_v7 = vmul.f32 %v13641_v20, %v13458_v40  ;;  %v13726_v56 = vld [vmem:[#allocation4 + $0x88] sm:$0xff] }
 0x6dc   : > { %v7678_v9 = vadd.f32 %v13417_v23, %v6536_v26  ;;  %6644 = vst.msk [vmem:[#allocation4 + $0x168] sm:$0xff] %vm2192_vm2, %v6536_v26  ;;  %v6828_v48 = vadd.f32 %v6796_v49, %v6696_v61  ;;  %7711 = vst.msk [vmem:[%s13404_s0 + $0xa8] sm:$0xff] %vm2192_vm2, %v7679_v27  ;;  %v7297_v21 = vmul.f32 %v13486_v36, %v13683_v15  ;;  %v13728_v30 = vld [vmem:[#allocation4 + $0x89] sm:$0xff] }
 0x6dd   : > { %v7229_v42 = vadd.f32 %v7197_v45, %v7129_v0  ;;  %v7397_v46 = vmul.f32 %v13476_v43, %v13685_v13  ;;  %v7497_v19 = vmul.f32 %v13479_v4, %v13687_v38  ;;  %v7564_v23 = vadd.f32 %v13574_v8, %v7526_v14  ;;  %v8650_v3 = vpop.f32.mrb[44].mxu0 }
 0x6de   : > { %7710 = vst.msk [vmem:[%s13404_s0 + $0xa0] sm:$0xff] %vm2192_vm2, %v7678_v9  ;;  %v6928_v5 = vadd.f32 %v6896_v51, %v6828_v48  ;;  %v7096_v10 = vmul.f32 %v13652_v2, %v13449_v24  ;;  %v6507_v58 = vadd.f32 %v8647_v41, %v13340_v18  ;;  %v6506_v39 = vadd.f32 %v13340_v18, %v6428_v29  ;;  %v6438_v57 = vpop.f32.mrb[45].mxu0  ;;  %v13743_v51 = vld [vmem:[#allocation4 + $0xaf] sm:$0xff] }
 0x6df   : > { %v7329_v17 = vadd.f32 %v7297_v21, %v7229_v42  ;;  %v6699_v53 = vmul.f32 %v13558_v28, %v13361_v35  ;;  %v6799_v52 = vmul.f32 %v13566_v55, %v13364_v60  ;;  %v7596_v22 = vmax.f32 %v7564_v23, 0.0  ;;  %v13759_v42 = vld [vmem:[#allocation4 + $0xb0] sm:$0xff] }
 0x6e0   : > { %v7028_v63 = vadd.f32 %v6996_v7, %v6928_v5  ;;  %v6539_v62 = vmax.f32 %v6507_v58, 0.0  ;;  %v6899_v54 = vmul.f32 %v13588_v31, %v13398_v6  ;;  %v6538_v1 = vmax.f32 %v6506_v39, 0.0  ;;  %v13761_v21 = vld [vmem:[#allocation4 + $0xb1] sm:$0xff] }
 0x6e1   : > { %v7429_v32 = vadd.f32 %v7397_v46, %v7329_v17  ;;  %v6831_v26 = vadd.f32 %v6799_v52, %v6699_v53  ;;  %v6999_v28 = vmul.f32 %v13683_v15, %v13458_v40  ;;  %v7756_v55 = vadd.f32 %v13255_v47, %v7596_v22  ;;  %v13737_v31 = vpop.f32.mrb[46].mxu0 }
 0x6e2   : > { %v7128_v61 = vadd.f32 %v7096_v10, %v7028_v63  ;;  %v7196_v49 = vmul.f32 %v13660_v33, %v13466_v12  ;;  %v7681_v41 = vadd.f32 %v13425_v37, %v6539_v62  ;;  %6647 = vst.msk [vmem:[#allocation4 + $0x190] sm:$0xff] %vm2192_vm2, %v6539_v62  ;;  %v7296_v0 = vmul.f32 %v13486_v36, %v13722_v50  ;;  %v13745_v29 = vpop.f32.mrb[47].mxu0 }
 0x6e3   : > { %v7529_v27 = vadd.f32 %v7497_v19, %v7429_v32  ;;  %v7680_v45 = vadd.f32 %v13428_v16, %v6538_v1  ;;  %6646 = vst.msk [vmem:[#allocation4 + $0x188] sm:$0xff] %vm2192_vm2, %v6538_v1  ;;  %v6931_v47 = vadd.f32 %v6899_v54, %v6831_v26  ;;  %7822 = vrot.lane.b32.xlu0 %v7756_v55, %s8802_s3 }
 0x6e4   : > { %v7228_v37 = vadd.f32 %v7196_v49, %v7128_v61  ;;  %v7396_v14 = vmul.f32 %v13476_v43, %v13726_v56  ;;  %v7496_v9 = vmul.f32 %v13479_v4, %v13728_v30  ;;  %7713 = vst.msk [vmem:[%s13404_s0 + $0xb8] sm:$0xff] %vm2192_vm2, %v7681_v41  ;;  %v7099_v16 = vmul.f32 %v13685_v13, %v13449_v24 }
 0x6e5   : > { %v7567_v48 = vadd.f32 %v13574_v8, %v7529_v27  ;;  %7712 = vst.msk [vmem:[%s13404_s0 + $0xb0] sm:$0xff] %vm2192_vm2, %v7680_v45  ;;  %v7031_v7 = vadd.f32 %v6999_v28, %v6931_v47  ;;  %v6698_v46 = vmul.f32 %v13641_v20, %v13361_v35  ;;  %v6798_v19 = vmul.f32 %v13652_v2, %v13364_v60  ;;  %v13773_v17 = vpop.f32.mrb[48].mxu0 }
 0x6e6   : > { %v7328_v23 = vadd.f32 %v7296_v0, %v7228_v37  ;;  %v7199_v5 = vmul.f32 %v13687_v38, %v13466_v12  ;;  %v7299_v10 = vmul.f32 %v13486_v36, %v13743_v51  ;;  %v6898_v58 = vmul.f32 %v13660_v33, %v13398_v6  ;;  %v13777_v22 = vpop.f32.mrb[49].mxu0  ;;  %v13804_v37 = vld [vmem:[#allocation4 + $0xa9] sm:$0xff] }
 0x6e7   : > { %v7599_v39 = vmax.f32 %v7567_v48, 0.0  ;;  %v7131_v53 = vadd.f32 %v7099_v16, %v7031_v7  ;;  %v6830_v52 = vadd.f32 %v6798_v19, %v6698_v46  ;;  %v6998_v20 = vmul.f32 %v13722_v50, %v13458_v40 }
 0x6e8   : > { %v7428_v2 = vadd.f32 %v7396_v14, %v7328_v23  ;;  %v7399_v63 = vmul.f32 %v13476_v43, %v13759_v42  ;;  %v7499_v62 = vmul.f32 %v13479_v4, %v13761_v21  ;;  %v7098_v33 = vmul.f32 %v13726_v56, %v13449_v24  ;;  %v15172_v23 = vld [vmem:[#allocation66_spill] sm:$0xff] }
 0x6e9   : > { %v7759_v54 = vadd.f32 %v13261_v59, %v7599_v39  ;;  %v7231_v32 = vadd.f32 %v7199_v5, %v7131_v53  ;;  %v6930_v1 = vadd.f32 %v6898_v58, %v6830_v52  ;;  %v6509_v26 = vadd.f32 %v8650_v3, %v13340_v18  ;;  %v13792_v41 = vpop.f32.mrb[50].mxu0  ;;  %v13795_v59 = vld [vmem:[#allocation4 + $0xa7] sm:$0xff] }
 0x6ea   : > { %v7528_v28 = vadd.f32 %v7496_v9, %v7428_v2  ;;  %v6508_v55 = vadd.f32 %v13340_v18, %v6438_v57  ;;  %v6701_v61 = vmul.f32 %v13683_v15, %v13361_v35  ;;  %v6801_v49 = vmul.f32 %v13685_v13, %v13364_v60  ;;  %v13799_v47 = vpop.f32.mrb[51].mxu0  ;;  %v13802_v15 = vld [vmem:[#allocation4 + $0xa8] sm:$0xff]  ;;  %v15173_v2 = vld [vmem:[#allocation96_spill] sm:$0xff] }
 0x6eb   : > { %7828 = vrot.lane.b32.xlu1 %v7759_v54, %s8802_s3  ;;  %v7331_v27 = vadd.f32 %v7299_v10, %v7231_v32  ;;  %v7030_v0 = vadd.f32 %v6998_v20, %v6930_v1  ;;  %v6541_v45 = vmax.f32 %v6509_v26, 0.0  ;;  %v6901_v3 = vmul.f32 %v13687_v38, %v13398_v6  ;;  %v13824_v20 = vld [vmem:[#allocation4 + $0xd0] sm:$0xff] }
 0x6ec   : > { %v7566_v57 = vadd.f32 %v13574_v8, %v7528_v28  ;;  %v6540_v13 = vmax.f32 %v6508_v55, 0.0  ;;  %v6833_v14 = vadd.f32 %v6801_v49, %v6701_v61  ;;  %v7001_v9 = vmul.f32 %v13743_v51, %v13458_v40  ;;  %v13836_v28 = vld [vmem:[#allocation4 + $0xd1] sm:$0xff] }
 0x6ed   : > { %v7431_v16 = vadd.f32 %v7399_v63, %v7331_v27  ;;  %v7130_v48 = vadd.f32 %v7098_v33, %v7030_v0  ;;  %v7198_v7 = vmul.f32 %v13728_v30, %v13466_v12  ;;  %v7683_v38 = vadd.f32 %v13434_v44, %v6541_v45  ;;  %6649 = vst.msk [vmem:[#allocation4 + $0x1b0] sm:$0xff] %vm2192_vm2, %v6541_v45  ;;  %v13822_v44 = vld [vmem:[#allocation4 + $0xcf] sm:$0xff] }
 0x6ee   : > { %v7598_v46 = vmax.f32 %v7566_v57, 0.0  ;;  %v7298_v19 = vmul.f32 %v13486_v36, %v13795_v59  ;;  %v7682_v5 = vadd.f32 %v15172_v23, %v6540_v13  ;;  %6648 = vst.msk [vmem:[#allocation4 + $0x1a8] sm:$0xff] %vm2192_vm2, %v6540_v13  ;;  %v6933_v10 = vadd.f32 %v6901_v3, %v6833_v14 }
 0x6ef   : > { %v7531_v58 = vadd.f32 %v7499_v62, %v7431_v16  ;;  %v7230_v39 = vadd.f32 %v7198_v7, %v7130_v48  ;;  %v7398_v53 = vmul.f32 %v13476_v43, %v13802_v15  ;;  %v7498_v52 = vmul.f32 %v13479_v4, %v13804_v37  ;;  %7715 = vst.msk [vmem:[%s13404_s0 + $0xc8] sm:$0xff] %vm2192_vm2, %v7683_v38  ;;  %v15174_v16 = vld [vmem:[#allocation5_spill] sm:$0xff] }
 0x6f0   : > { %v7758_v63 = vadd.f32 %v15173_v2, %v7598_v46  ;;  %7714 = vst.msk [vmem:[%s13404_s0 + $0xc0] sm:$0xff] %vm2192_vm2, %v7682_v5  ;;  %v7033_v33 = vadd.f32 %v7001_v9, %v6933_v10  ;;  %v7101_v62 = vmul.f32 %v13759_v42, %v13449_v24  ;;  %v6700_v54 = vmul.f32 %v13722_v50, %v13361_v35  ;;  %v13870_v2 = vld [vmem:[#allocation4 + $0xc9] sm:$0xff] }
 0x6f1   : > { %v7569_v32 = vadd.f32 %v13574_v8, %v7531_v58  ;;  %v7330_v1 = vadd.f32 %v7298_v19, %v7230_v39  ;;  %v7201_v26 = vmul.f32 %v13761_v21, %v13466_v12  ;;  %v6800_v55 = vmul.f32 %v13726_v56, %v13364_v60  ;;  %v13864_v58 = vld [vmem:[#allocation4 + $0xc7] sm:$0xff] }
 0x6f2   : > { %7826 = vrot.lane.b32.xlu0 %v7758_v63, %s8802_s3  ;;  %v7133_v61 = vadd.f32 %v7101_v62, %v7033_v33  ;;  %v7301_v49 = vmul.f32 %v13486_v36, %v13822_v44  ;;  %v7401_v50 = vmul.f32 %v13476_v43, %v13824_v20  ;;  %v6900_v27 = vmul.f32 %v13728_v30, %v13398_v6  ;;  %v13866_v39 = vld [vmem:[#allocation4 + $0xc8] sm:$0xff] }
 0x6f3   : > { %v7601_v0 = vmax.f32 %v7569_v32, 0.0  ;;  %v7430_v45 = vadd.f32 %v7398_v53, %v7330_v1  ;;  %v6832_v3 = vadd.f32 %v6800_v55, %v6700_v54  ;;  %v7000_v57 = vmul.f32 %v13795_v59, %v13458_v40  ;;  %v15176_v1 = vld [vmem:[#allocation65_spill] sm:$0xff] }
 0x6f4   : > { %v7233_v13 = vadd.f32 %v7201_v26, %v7133_v61  ;;  %v7501_v56 = vmul.f32 %v13479_v4, %v13836_v28  ;;  %v7100_v14 = vmul.f32 %v13802_v15, %v13449_v24  ;;  %v6511_v9 = vadd.f32 %v13737_v31, %v13340_v18 }
 0x6f5   : > { %v7761_v48 = vadd.f32 %v15174_v16, %v7601_v0  ;;  %v7530_v7 = vadd.f32 %v7498_v52, %v7430_v45  ;;  %v6932_v30 = vadd.f32 %v6900_v27, %v6832_v3  ;;  %v6510_v38 = vadd.f32 %v13340_v18, %v13745_v29  ;;  %v15177_v27 = vld [vmem:[#allocation17_spill] sm:$0xff] }
 0x6f6   : > { %v7333_v46 = vadd.f32 %v7301_v49, %v7233_v13  ;;  %v6543_v19 = vmax.f32 %v6511_v9, 0.0  ;;  %v6703_v23 = vmul.f32 %v13743_v51, %v13361_v35  ;;  %v6803_v5 = vmul.f32 %v13759_v42, %v13364_v60  ;;  %v15175_v51 = vld [vmem:[#allocation14_spill] sm:$0xff]  ;;  %v13898_v9 = vld [vmem:[#allocation4 + $0xf1] sm:$0xff] }
 0x6f7   : > { %7832 = vrot.lane.b32.xlu1 %v7761_v48, %s8802_s3  ;;  %v7568_v10 = vadd.f32 %v13574_v8, %v7530_v7  ;;  %v7032_v31 = vadd.f32 %v7000_v57, %v6932_v30  ;;  %v6542_v53 = vmax.f32 %v6510_v38, 0.0  ;;  %v6903_v29 = vmul.f32 %v13761_v21, %v13398_v6 }
 0x6f8   : > { %v7433_v52 = vadd.f32 %v7401_v50, %v7333_v46  ;;  %v7685_v63 = vadd.f32 %v15175_v51, %v6543_v19  ;;  %6651 = vst.msk [vmem:[#allocation4 + $0x1d0] sm:$0xff] %vm2192_vm2, %v6543_v19  ;;  %v6835_v42 = vadd.f32 %v6803_v5, %v6703_v23  ;;  %v7003_v33 = vmul.f32 %v13822_v44, %v13458_v40  ;;  %v13886_v50 = vld [vmem:[#allocation4 + $0xef] sm:$0xff] }
 0x6f9   : > { %v7600_v62 = vmax.f32 %v7568_v10, 0.0  ;;  %v7132_v54 = vadd.f32 %v7100_v14, %v7032_v31  ;;  %v7200_v32 = vmul.f32 %v13804_v37, %v13466_v12  ;;  %v7684_v26 = vadd.f32 %v15176_v1, %v6542_v53  ;;  %6650 = vst.msk [vmem:[#allocation4 + $0x1c8] sm:$0xff] %vm2192_vm2, %v6542_v53  ;;  %v13896_v14 = vld [vmem:[#allocation4 + $0xf0] sm:$0xff] }
 0x6fa   : > { %v7533_v21 = vadd.f32 %v7501_v56, %v7433_v52  ;;  %v7300_v55 = vmul.f32 %v13486_v36, %v13864_v58  ;;  %v7400_v61 = vmul.f32 %v13476_v43, %v13866_v39  ;;  %7717 = vst.msk [vmem:[%s13404_s0 + $0xd8] sm:$0xff] %vm2192_vm2, %v7685_v63  ;;  %v6935_v49 = vadd.f32 %v6903_v29, %v6835_v42  ;;  %v15178_v29 = vld [vmem:[#allocation69_spill] sm:$0xff] }
 0x6fb   : > { %v7760_v0 = vadd.f32 %v15177_v27, %v7600_v62  ;;  %v7232_v45 = vadd.f32 %v7200_v32, %v7132_v54  ;;  %v7500_v3 = vmul.f32 %v13479_v4, %v13870_v2  ;;  %7716 = vst.msk [vmem:[%s13404_s0 + $0xd0] sm:$0xff] %vm2192_vm2, %v7684_v26  ;;  %v7103_v57 = vmul.f32 %v13824_v20, %v13449_v24  ;;  %v13929_v26 = vld [vmem:[#allocation4 + $0xe7] sm:$0xff] }
 0x6fc   : > { %v7571_v13 = vadd.f32 %v13574_v8, %v7533_v21  ;;  %v7035_v56 = vadd.f32 %v7003_v33, %v6935_v49  ;;  %v6702_v16 = vmul.f32 %v13795_v59, %v13361_v35  ;;  %v6802_v48 = vmul.f32 %v13802_v15, %v13364_v60 }
 0x6fd   : > { %7830 = vrot.lane.b32.xlu0 %v7760_v0, %s8802_s3  ;;  %v7332_v7 = vadd.f32 %v7300_v55, %v7232_v45  ;;  %v7203_v30 = vmul.f32 %v13836_v28, %v13466_v12  ;;  %v7303_v38 = vmul.f32 %v13486_v36, %v13886_v50  ;;  %v6902_v46 = vmul.f32 %v13804_v37, %v13398_v6  ;;  %v15179_v45 = vld [vmem:[#allocation15_spill] sm:$0xff] }
 0x6fe   : > { %v7603_v19 = vmax.f32 %v7571_v13, 0.0  ;;  %v7135_v23 = vadd.f32 %v7103_v57, %v7035_v56  ;;  %v6834_v5 = vadd.f32 %v6802_v48, %v6702_v16  ;;  %v7002_v59 = vmul.f32 %v13864_v58, %v13458_v40 }
 0x6ff   : > { %v7432_v10 = vadd.f32 %v7400_v61, %v7332_v7  ;;  %v7403_v15 = vmul.f32 %v13476_v43, %v13896_v14  ;;  %v7503_v31 = vmul.f32 %v13479_v4, %v13898_v9  ;;  %v7102_v53 = vmul.f32 %v13866_v39, %v13449_v24  ;;  %v13934_v61 = vld [vmem:[#allocation4 + $0xe8] sm:$0xff] }
 0x700   : > { %v7763_v52 = vadd.f32 %v15178_v29, %v7603_v19  ;;  %v7235_v51 = vadd.f32 %v7203_v30, %v7135_v23  ;;  %v6934_v37 = vadd.f32 %v6902_v46, %v6834_v5  ;;  %v6513_v63 = vadd.f32 %v13773_v17, %v13340_v18  ;;  %v13956_v46 = vld [vmem:[#allocation4 + $0x110] sm:$0xff]  ;;  %v15180_v19 = vld [vmem:[#allocation82_spill] sm:$0xff] }
 0x701   : > { %v7532_v42 = vadd.f32 %v7500_v3, %v7432_v10  ;;  %v6512_v33 = vadd.f32 %v13340_v18, %v13777_v22  ;;  %v6705_v62 = vmul.f32 %v13822_v44, %v13361_v35  ;;  %v6805_v54 = vmul.f32 %v13824_v20, %v13364_v60  ;;  %v13936_v18 = vld [vmem:[#allocation4 + $0xe9] sm:$0xff] }
 0x702   : > { %7836 = vrot.lane.b32.xlu1 %v7763_v52, %s8802_s3  ;;  %v7335_v32 = vadd.f32 %v7303_v38, %v7235_v51  ;;  %v7034_v1 = vadd.f32 %v7002_v59, %v6934_v37  ;;  %v6545_v21 = vmax.f32 %v6513_v63, 0.0  ;;  %v6905_v17 = vmul.f32 %v13836_v28, %v13398_v6  ;;  %v13954_v38 = vld [vmem:[#allocation4 + $0x10f] sm:$0xff] }
 0x703   : > { %v7570_v55 = vadd.f32 %v13574_v8, %v7532_v42  ;;  %v6544_v22 = vmax.f32 %v6512_v33, 0.0  ;;  %v6837_v44 = vadd.f32 %v6805_v54, %v6705_v62  ;;  %v7005_v20 = vmul.f32 %v13886_v50, %v13458_v40 }
 0x704   : > { %v7435_v49 = vadd.f32 %v7403_v15, %v7335_v32  ;;  %v7134_v27 = vadd.f32 %v7102_v53, %v7034_v1  ;;  %v7202_v0 = vmul.f32 %v13870_v2, %v13466_v12  ;;  %v7687_v28 = vadd.f32 %v15179_v45, %v6545_v21  ;;  %6653 = vst.msk [vmem:[#allocation4 + $0x1f0] sm:$0xff] %vm2192_vm2, %v6545_v21  ;;  %v13968_v53 = vld [vmem:[#allocation4 + $0x111] sm:$0xff]  ;;  %v8787_v1 = vld [vmem:[%s14513_s17] ss:$0 sm:$0xff] }
 0x705   : > { %v7602_v3 = vmax.f32 %v7570_v55, 0.0  ;;  %v7302_v57 = vmul.f32 %v13486_v36, %v13929_v26  ;;  %v7686_v13 = vadd.f32 %v13621_v11, %v6544_v22  ;;  %6652 = vst.msk [vmem:[#allocation4 + $0x1e8] sm:$0xff] %vm2192_vm2, %v6544_v22  ;;  %v6937_v56 = vadd.f32 %v6905_v17, %v6837_v44 }
 0x706   : > { %v7535_v16 = vadd.f32 %v7503_v31, %v7435_v49  ;;  %v7234_v48 = vadd.f32 %v7202_v0, %v7134_v27  ;;  %v7402_v7 = vmul.f32 %v13476_v43, %v13934_v61  ;;  %v7502_v30 = vmul.f32 %v13479_v4, %v13936_v18  ;;  %7719 = vst.msk [vmem:[%s13404_s0 + $0xe8] sm:$0xff] %vm2192_vm2, %v7687_v28 }
 0x707   : > { %v7762_v23 = vadd.f32 %v15180_v19, %v7602_v3  ;;  %7718 = vst.msk [vmem:[%s13404_s0 + $0xe0] sm:$0xff] %vm2192_vm2, %v7686_v13  ;;  %v7037_v11 = vadd.f32 %v7005_v20, %v6937_v56  ;;  %v7105_v5 = vmul.f32 %v13896_v14, %v13449_v24  ;;  %v6704_v59 = vmul.f32 %v13864_v58, %v13361_v35  ;;  %v15183_v19 = vld [vmem:[#allocation80_spill] sm:$0xff] }
 0x708   : > { %v7573_v10 = vadd.f32 %v13574_v8, %v7535_v16  ;;  %v7334_v15 = vadd.f32 %v7302_v57, %v7234_v48  ;;  %v7205_v31 = vmul.f32 %v13898_v9, %v13466_v12  ;;  %v6804_v29 = vmul.f32 %v13866_v39, %v13364_v60 }
 0x709   : > { %7834 = vrot.lane.b32.xlu0 %v7762_v23, %s8802_s3  ;;  %v7137_v52 = vadd.f32 %v7105_v5, %v7037_v11  ;;  %v7305_v51 = vmul.f32 %v13486_v36, %v13954_v38  ;;  %v7405_v58 = vmul.f32 %v13476_v43, %v13956_v46  ;;  %v6904_v37 = vmul.f32 %v13870_v2, %v13398_v6  ;;  %v15181_v2 = vld [vmem:[#allocation84_spill] sm:$0xff]  ;;  %v7368_v11 = vld [vmem:[#allocation4 + $0x108] sm:$0xff] }
 0x70a   : > { %v7605_v63 = vmax.f32 %v7573_v10, 0.0  ;;  %v7434_v42 = vadd.f32 %v7402_v7, %v7334_v15  ;;  %v6836_v33 = vadd.f32 %v6804_v29, %v6704_v59  ;;  %v7004_v62 = vmul.f32 %v13929_v26, %v13458_v40  ;;  %v15182_v7 = vld [vmem:[#allocation79_spill] sm:$0xff]  ;;  %v15184_v59 = vld [vmem:[#allocation93_spill] sm:$0xff] }
 0x70b   : > { %v7237_v54 = vadd.f32 %v7205_v31, %v7137_v52  ;;  %v7505_v39 = vmul.f32 %v13479_v4, %v13968_v53  ;;  %v7104_v32 = vmul.f32 %v13934_v61, %v13449_v24  ;;  %v6515_v21 = vadd.f32 %v8787_v1, %v13792_v41  ;;  %v7468_v52 = vld [vmem:[#allocation4 + $0x109] sm:$0xff] }
 0x70c   : > { %v7765_v17 = vadd.f32 %v15181_v2, %v7605_v63  ;;  %v7534_v55 = vadd.f32 %v7502_v30, %v7434_v42  ;;  %v6936_v22 = vadd.f32 %v6904_v37, %v6836_v33  ;;  %v6514_v44 = vadd.f32 %v8787_v1, %v13799_v47  ;;  %v13999_v47 = vld [vmem:[#allocation4 + $0x107] sm:$0xff]  ;;  %v14027_v37 = vld [vmem:[#allocation4 + $0x130] sm:$0xff] }
 0x70d   : > { %v7337_v20 = vadd.f32 %v7305_v51, %v7237_v54  ;;  %v6547_v49 = vmax.f32 %v6515_v21, 0.0  ;;  %v6707_v27 = vmul.f32 %v13886_v50, %v13361_v35  ;;  %v6807_v0 = vmul.f32 %v13896_v14, %v13364_v60  ;;  %v14039_v21 = vld [vmem:[#allocation4 + $0x131] sm:$0xff] }
 0x70e   : > { %7840 = vrot.lane.b32.xlu1 %v7765_v17, %s8802_s3  ;;  %v7572_v45 = vadd.f32 %v13574_v8, %v7534_v55  ;;  %v7036_v28 = vadd.f32 %v7004_v62, %v6936_v22  ;;  %v6546_v41 = vmax.f32 %v6514_v44, 0.0  ;;  %v6907_v3 = vmul.f32 %v13898_v9, %v13398_v6  ;;  %v14048_v44 = vld [vmem:[#allocation4 + $0x127] sm:$0xff] }
 0x70f   : > { %v7437_v57 = vadd.f32 %v7405_v58, %v7337_v20  ;;  %6655 = vst.msk [vmem:[#allocation4 + $0x210] sm:$0xff] %vm2192_vm2, %v6547_v49  ;;  %v7689_v50 = vadd.f32 %v13629_v25, %v6547_v49  ;;  %v6839_v13 = vadd.f32 %v6807_v0, %v6707_v27  ;;  %v7007_v14 = vmul.f32 %v13954_v38, %v13458_v40  ;;  %v14025_v58 = vld [vmem:[#allocation4 + $0x12f] sm:$0xff] }
 0x710   : > { %v7604_v56 = vmax.f32 %v7572_v45, 0.0  ;;  %v7136_v16 = vadd.f32 %v7104_v32, %v7036_v28  ;;  %v7204_v48 = vmul.f32 %v13936_v18, %v13466_v12  ;;  %6654 = vst.msk [vmem:[#allocation4 + $0x208] sm:$0xff] %vm2192_vm2, %v6546_v41  ;;  %v7688_v9 = vadd.f32 %v13663_v34, %v6546_v41 }
 0x711   : > { %v14010_v30 = vmul.f32 2.0, %v15182_v7  ;;  %v14013_v23 = vmul.f32 2.0, %v15183_v19  ;;  %v7537_v25 = vadd.f32 %v7505_v39, %v7437_v57  ;;  %7721 = vst.msk [vmem:[%s13404_s0 + $0xf8] sm:$0xff] %vm2192_vm2, %v7689_v50  ;;  %v6939_v5 = vadd.f32 %v6907_v3, %v6839_v13  ;;  %v14056_v3 = vld [vmem:[#allocation4 + $0x128] sm:$0xff] }
 0x712   : > { %v7764_v10 = vadd.f32 %v15184_v59, %v7604_v56  ;;  %v7236_v15 = vadd.f32 %v7204_v48, %v7136_v16  ;;  %v7304_v31 = vmul.f32 %v13486_v36, %v13999_v47  ;;  %7720 = vst.msk [vmem:[%s13404_s0 + $0xf0] sm:$0xff] %vm2192_vm2, %v7688_v9  ;;  %v7107_v34 = vmul.f32 %v13956_v46, %v13449_v24  ;;  %v14064_v56 = vld [vmem:[#allocation4 + $0x129] sm:$0xff] }
 0x713   : > { %v7575_v29 = vadd.f32 %v13574_v8, %v7537_v25  ;;  %v7039_v51 = vadd.f32 %v7007_v14, %v6939_v5  ;;  %v6706_v63 = vmul.f32 %v13929_v26, %v13361_v35  ;;  %v6806_v42 = vmul.f32 %v13934_v61, %v13364_v60 }
 0x714   : > { %7838 = vrot.lane.b32.xlu0 %v7764_v10, %s8802_s3  ;;  %v7336_v33 = vadd.f32 %v7304_v31, %v7236_v15  ;;  %v7404_v62 = vmul.f32 %v13476_v43, %v7368_v11  ;;  %v7207_v54 = vmul.f32 %v13968_v53, %v13466_v12  ;;  %v6906_v39 = vmul.f32 %v13936_v18, %v13398_v6  ;;  %v15185_v18 = vld [vmem:[#allocation95_spill] sm:$0xff] }
 0x715   : > { %v7607_v32 = vmax.f32 %v7575_v29, 0.0  ;;  %v7139_v1 = vadd.f32 %v7107_v34, %v7039_v51  ;;  %v6838_v2 = vadd.f32 %v6806_v42, %v6706_v63  ;;  %v7006_v26 = vmul.f32 %v13999_v47, %v13458_v40  ;;  %v14077_v31 = vld [vmem:[#allocation4 + $0x14f] sm:$0xff] }
 0x716   : > { %v7436_v61 = vadd.f32 %v7404_v62, %v7336_v33  ;;  %v7504_v17 = vmul.f32 %v13479_v4, %v7468_v52  ;;  %v7307_v55 = vmul.f32 %v13486_v36, %v14025_v58  ;;  %v7407_v22 = vmul.f32 %v13476_v43, %v14027_v37  ;;  %v14082_v63 = vld [vmem:[#allocation4 + $0x150] sm:$0xff]  ;;  %v15186_v33 = vld [vmem:[#allocation97_spill] sm:$0xff] }
 0x717   : > { %v7767_v20 = vadd.f32 %v15185_v18, %v7607_v32  ;;  %v7239_v49 = vadd.f32 %v7207_v54, %v7139_v1  ;;  %v6938_v27 = vadd.f32 %v6906_v39, %v6838_v2  ;;  %v6709_v0 = vmul.f32 %v13954_v38, %v13361_v35  ;;  %v14086_v54 = vld [vmem:[#allocation4 + $0x151] sm:$0xff] }
 0x718   : > { %v7536_v45 = vadd.f32 %v7504_v17, %v7436_v61  ;;  %v7507_v28 = vmul.f32 %v13479_v4, %v14039_v21  ;;  %v7106_v41 = vmul.f32 %v7368_v11, %v13449_v24  ;;  %v6809_v57 = vmul.f32 %v13956_v46, %v13364_v60 }
 0x719   : > { %7844 = vrot.lane.b32.xlu1 %v7767_v20, %s8802_s3  ;;  %v7339_v50 = vadd.f32 %v7307_v55, %v7239_v49  ;;  %v7038_v13 = vadd.f32 %v7006_v26, %v6938_v27  ;;  %v7206_v14 = vmul.f32 %v7468_v52, %v13466_v12  ;;  %v7306_v38 = vmul.f32 %v13486_v36, %v14048_v44  ;;  %v14102_v49 = vld [vmem:[#allocation4 + $0x147] sm:$0xff] }
 0x71a   : > { %v7574_v16 = vadd.f32 %v13574_v8, %v7536_v45  ;;  %v6841_v48 = vadd.f32 %v6809_v57, %v6709_v0  ;;  %v6909_v9 = vmul.f32 %v13968_v53, %v13398_v6  ;;  %v7009_v46 = vmul.f32 %v14025_v58, %v13458_v40  ;;  %v15187_v57 = vld [vmem:[#allocation102_spill] sm:$0xff] }
 0x71b   : > { %v7439_v7 = vadd.f32 %v7407_v22, %v7339_v50  ;;  %v7138_v19 = vadd.f32 %v7106_v41, %v7038_v13  ;;  %v7406_v25 = vmul.f32 %v13476_v43, %v14056_v3  ;;  %v6708_v5 = vmul.f32 %v13999_v47, %v13361_v35  ;;  %v14108_v41 = vld [vmem:[#allocation4 + $0x148] sm:$0xff] }
 0x71c   : > { %v7606_v59 = vmax.f32 %v7574_v16, 0.0  ;;  %v7506_v10 = vmul.f32 %v13479_v4, %v14064_v56  ;;  %v6941_v15 = vadd.f32 %v6909_v9, %v6841_v48  ;;  %v6808_v53 = vmul.f32 %v7368_v11, %v13364_v60 }
 0x71d   : > { %v7539_v34 = vadd.f32 %v7507_v28, %v7439_v7  ;;  %v7238_v29 = vadd.f32 %v7206_v14, %v7138_v19  ;;  %v7109_v51 = vmul.f32 %v14027_v37, %v13449_v24  ;;  %v6908_v42 = vmul.f32 %v7468_v52, %v13398_v6  ;;  %v14113_v14 = vld [vmem:[#allocation4 + $0x149] sm:$0xff] }
 0x71e   : > { %v7766_v47 = vadd.f32 %v15186_v33, %v7606_v59  ;;  %v7041_v62 = vadd.f32 %v7009_v46, %v6941_v15  ;;  %v6840_v39 = vadd.f32 %v6808_v53, %v6708_v5  ;;  %v7008_v32 = vmul.f32 %v14048_v44, %v13458_v40  ;;  %v14129_v15 = vld [vmem:[#allocation4 + $0x16f] sm:$0xff] }
 0x71f   : > { %v7577_v11 = vadd.f32 %v13574_v8, %v7539_v34  ;;  %v7338_v1 = vadd.f32 %v7306_v38, %v7238_v29  ;;  %v7209_v2 = vmul.f32 %v14039_v21, %v13466_v12  ;;  %v7309_v26 = vmul.f32 %v13486_v36, %v14077_v31 }
 0x720   : > { %7842 = vrot.lane.b32.xlu0 %v7766_v47, %s8802_s3  ;;  %v7141_v52 = vadd.f32 %v7109_v51, %v7041_v62  ;;  %v7409_v61 = vmul.f32 %v13476_v43, %v14082_v63  ;;  %v6940_v17 = vadd.f32 %v6908_v42, %v6840_v39  ;;  %v6711_v55 = vmul.f32 %v14025_v58, %v13361_v35  ;;  %v14135_v51 = vld [vmem:[#allocation4 + $0x170] sm:$0xff] }
 0x721   : > { %v7609_v22 = vmax.f32 %v7577_v11, 0.0  ;;  %v7438_v18 = vadd.f32 %v7406_v25, %v7338_v1  ;;  %v7509_v20 = vmul.f32 %v13479_v4, %v14086_v54  ;;  %v6811_v27 = vmul.f32 %v14027_v37, %v13364_v60  ;;  %v14139_v47 = vld [vmem:[#allocation4 + $0x171] sm:$0xff] }
 0x722   : > { %v7241_v0 = vadd.f32 %v7209_v2, %v7141_v52  ;;  %v7040_v45 = vadd.f32 %v7008_v32, %v6940_v17  ;;  %v7108_v28 = vmul.f32 %v14056_v3, %v13449_v24  ;;  %v6911_v58 = vmul.f32 %v14039_v21, %v13398_v6  ;;  %v15188_v32 = vld [vmem:[#allocation106_spill] sm:$0xff] }
 0x723   : > { %v7769_v50 = vadd.f32 %v15187_v57, %v7609_v22  ;;  %v7538_v13 = vadd.f32 %v7506_v10, %v7438_v18  ;;  %v6843_v38 = vadd.f32 %v6811_v27, %v6711_v55  ;;  %v7011_v16 = vmul.f32 %v14077_v31, %v13458_v40  ;;  %v14167_v57 = vld [vmem:[#allocation4 + $0x168] sm:$0xff] }
 0x724   : > { %v7341_v37 = vadd.f32 %v7309_v26, %v7241_v0  ;;  %v7140_v48 = vadd.f32 %v7108_v28, %v7040_v45  ;;  %v7208_v9 = vmul.f32 %v14064_v56, %v13466_v12  ;;  %v7308_v46 = vmul.f32 %v13486_v36, %v14102_v49 }
 0x725   : > { %7848 = vrot.lane.b32.xlu1 %v7769_v50, %s8802_s3  ;;  %v7576_v21 = vadd.f32 %v13574_v8, %v7538_v13  ;;  %v7408_v7 = vmul.f32 %v13476_v43, %v14108_v41  ;;  %v6943_v19 = vadd.f32 %v6911_v58, %v6843_v38  ;;  %v6710_v25 = vmul.f32 %v14048_v44, %v13361_v35  ;;  %v14165_v58 = vld [vmem:[#allocation4 + $0x167] sm:$0xff] }
 0x726   : > { %v7441_v5 = vadd.f32 %v7409_v61, %v7341_v37  ;;  %v7240_v59 = vadd.f32 %v7208_v9, %v7140_v48  ;;  %v7508_v10 = vmul.f32 %v13479_v4, %v14113_v14  ;;  %v6810_v53 = vmul.f32 %v14056_v3, %v13364_v60 }
 0x727   : > { %v7608_v34 = vmax.f32 %v7576_v21, 0.0  ;;  %v7043_v29 = vadd.f32 %v7011_v16, %v6943_v19  ;;  %v7111_v8 = vmul.f32 %v14082_v63, %v13449_v24  ;;  %v6910_v44 = vmul.f32 %v14064_v56, %v13398_v6  ;;  %v14151_v56 = vld [vmem:[%s14515_s19] ss:$0 sm:$0xff]  ;;  %v15189_v16 = vld [vmem:[#allocation108_spill] sm:$0xff] }
 0x728   : > { %v7541_v42 = vadd.f32 %v7509_v20, %v7441_v5  ;;  %v7340_v33 = vadd.f32 %v7308_v46, %v7240_v59  ;;  %v6842_v62 = vadd.f32 %v6810_v53, %v6710_v25  ;;  %v7010_v39 = vmul.f32 %v14102_v49, %v13458_v40  ;;  %v7474_v5 = vld [vmem:[#allocation4 + $0x169] sm:$0xff] }
 0x729   : > { %v7768_v3 = vadd.f32 %v15188_v32, %v7608_v34  ;;  %v7143_v11 = vadd.f32 %v7111_v8, %v7043_v29  ;;  %v7211_v1 = vmul.f32 %v14086_v54, %v13466_v12  ;;  %v7311_v2 = vmul.f32 %v13486_v36, %v14129_v15  ;;  %v14188_v8 = vld [vmem:[#allocation4 + $0x18f] sm:$0xff] }
 0x72a   : > { %v7579_v26 = vadd.f32 %v14151_v56, %v7541_v42  ;;  %v7440_v52 = vadd.f32 %v7408_v7, %v7340_v33  ;;  %v7411_v61 = vmul.f32 %v13476_v43, %v14135_v51  ;;  %v6942_v17 = vadd.f32 %v6910_v44, %v6842_v62  ;;  %v14190_v44 = vld [vmem:[#allocation4 + $0x190] sm:$0xff]  ;;  %v15190_v33 = vld [vmem:[#allocation109_spill] sm:$0xff] }
 0x72b   : > { %7846 = vrot.lane.b32.xlu0 %v7768_v3, %s8802_s3  ;;  %v7243_v55 = vadd.f32 %v7211_v1, %v7143_v11  ;;  %v7511_v22 = vmul.f32 %v13479_v4, %v14139_v47  ;;  %v6713_v18 = vmul.f32 %v14077_v31, %v13361_v35  ;;  %v6813_v20 = vmul.f32 %v14082_v63, %v13364_v60 }
 0x72c   : > { %v7611_v27 = vmax.f32 %v7579_v26, 0.0  ;;  %v7540_v0 = vadd.f32 %v7508_v10, %v7440_v52  ;;  %v7042_v45 = vadd.f32 %v7010_v39, %v6942_v17  ;;  %v7110_v28 = vmul.f32 %v14108_v41, %v13449_v24 }
 0x72d   : > { %v7343_v50 = vadd.f32 %v7311_v2, %v7243_v55  ;;  %v6845_v13 = vadd.f32 %v6813_v20, %v6713_v18  ;;  %v6913_v38 = vmul.f32 %v14086_v54, %v13398_v6  ;;  %v7013_v31 = vmul.f32 %v14129_v15, %v13458_v40  ;;  %v7477_v55 = vld [vmem:[#allocation4 + $0x191] sm:$0xff] }
 0x72e   : > { %v7771_v63 = vadd.f32 %v15189_v16, %v7611_v27  ;;  %v7578_v37 = vadd.f32 %v14151_v56, %v7540_v0  ;;  %v7142_v48 = vadd.f32 %v7110_v28, %v7042_v45  ;;  %v7210_v9 = vmul.f32 %v14113_v14, %v13466_v12  ;;  %v14212_v45 = vld [vmem:[#allocation4 + $0x187] sm:$0xff] }
 0x72f   : > { %v7443_v46 = vadd.f32 %v7411_v61, %v7343_v50  ;;  %v7310_v21 = vmul.f32 %v13486_v36, %v14165_v58  ;;  %v7410_v7 = vmul.f32 %v13476_v43, %v14167_v57  ;;  %v6945_v19 = vadd.f32 %v6913_v38, %v6845_v13  ;;  %v14214_v28 = vld [vmem:[#allocation4 + $0x188] sm:$0xff] }
 0x730   : > { %7852 = vrot.lane.b32.xlu1 %v7771_v63, %s8802_s3  ;;  %v7610_v54 = vmax.f32 %v7578_v37, 0.0  ;;  %v7242_v25 = vadd.f32 %v7210_v9, %v7142_v48  ;;  %v6712_v59 = vmul.f32 %v14102_v49, %v13361_v35  ;;  %v6812_v10 = vmul.f32 %v14108_v41, %v13364_v60  ;;  %v15191_v13 = vld [vmem:[#allocation110_spill] sm:$0xff] }
 0x731   : > { %v7543_v53 = vadd.f32 %v7511_v22, %v7443_v46  ;;  %v7045_v34 = vadd.f32 %v7013_v31, %v6945_v19  ;;  %v7113_v29 = vmul.f32 %v14135_v51, %v13449_v24  ;;  %v6912_v42 = vmul.f32 %v14113_v14, %v13398_v6 }
 0x732   : > { %v7770_v62 = vadd.f32 %v15190_v33, %v7610_v54  ;;  %v7342_v39 = vadd.f32 %v7310_v21, %v7242_v25  ;;  %v6844_v32 = vadd.f32 %v6812_v10, %v6712_v59  ;;  %v7012_v49 = vmul.f32 %v14165_v58, %v13458_v40  ;;  %v7476_v54 = vld [vmem:[#allocation4 + $0x189] sm:$0xff] }
 0x733   : > { %v7581_v41 = vadd.f32 %v14151_v56, %v7543_v53  ;;  %v7510_v3 = vmul.f32 %v13479_v4, %v7474_v5  ;;  %v7145_v11 = vadd.f32 %v7113_v29, %v7045_v34  ;;  %v7213_v1 = vmul.f32 %v14139_v47, %v13466_v12  ;;  %v14235_v29 = vld [vmem:[#allocation4 + $0x1af] sm:$0xff] }
 0x734   : > { %7850 = vrot.lane.b32.xlu0 %v7770_v62, %s8802_s3  ;;  %v7442_v2 = vadd.f32 %v7410_v7, %v7342_v39  ;;  %v7313_v14 = vmul.f32 %v13486_v36, %v14188_v8  ;;  %v7413_v26 = vmul.f32 %v13476_v43, %v14190_v44  ;;  %v6944_v52 = vadd.f32 %v6912_v42, %v6844_v32  ;;  %v14237_v42 = vld [vmem:[#allocation4 + $0x1b0] sm:$0xff] }
 0x735   : > { %v7613_v61 = vmax.f32 %v7581_v41, 0.0  ;;  %v7245_v17 = vadd.f32 %v7213_v1, %v7145_v11  ;;  %v6715_v22 = vmul.f32 %v14129_v15, %v13361_v35  ;;  %v6815_v18 = vmul.f32 %v14135_v51, %v13364_v60  ;;  %v15192_v62 = vld [vmem:[#allocation111_spill] sm:$0xff] }
 0x736   : > { %v7542_v20 = vadd.f32 %v7510_v3, %v7442_v2  ;;  %v7044_v27 = vadd.f32 %v7012_v49, %v6944_v52  ;;  %v7112_v0 = vmul.f32 %v14167_v57, %v13449_v24  ;;  %v6915_v50 = vmul.f32 %v14139_v47, %v13398_v6 }
 0x737   : > { %v7773_v38 = vadd.f32 %v15191_v13, %v7613_v61  ;;  %v7345_v31 = vadd.f32 %v7313_v14, %v7245_v17  ;;  %v6847_v16 = vadd.f32 %v6815_v18, %v6715_v22  ;;  %v7015_v15 = vmul.f32 %v14188_v8, %v13458_v40  ;;  %v7479_v61 = vld [vmem:[#allocation4 + $0x1b1] sm:$0xff] }
 0x738   : > { %v7580_v51 = vadd.f32 %v14151_v56, %v7542_v20  ;;  %v7513_v63 = vmul.f32 %v13479_v4, %v7477_v55  ;;  %v7144_v37 = vadd.f32 %v7112_v0, %v7044_v27  ;;  %v7212_v48 = vmul.f32 %v7474_v5, %v13466_v12  ;;  %v14257_v0 = vld [vmem:[#allocation4 + $0x1a7] sm:$0xff] }
 0x739   : > { %7856 = vrot.lane.b32.xlu1 %v7773_v38, %s8802_s3  ;;  %v7445_v9 = vadd.f32 %v7413_v26, %v7345_v31  ;;  %v7312_v47 = vmul.f32 %v13486_v36, %v14212_v45  ;;  %v7412_v46 = vmul.f32 %v13476_v43, %v14214_v28  ;;  %v6947_v21 = vadd.f32 %v6915_v50, %v6847_v16  ;;  %v14259_v50 = vld [vmem:[#allocation4 + $0x1a8] sm:$0xff]  ;;  %v15193_v38 = vld [vmem:[#allocation112_spill] sm:$0xff] }
 0x73a   : > { %v7612_v7 = vmax.f32 %v7580_v51, 0.0  ;;  %v7244_v19 = vadd.f32 %v7212_v48, %v7144_v37  ;;  %v6714_v25 = vmul.f32 %v14165_v58, %v13361_v35  ;;  %v6814_v59 = vmul.f32 %v14167_v57, %v13364_v60 }
 0x73b   : > { %v7545_v10 = vadd.f32 %v7513_v63, %v7445_v9  ;;  %v7047_v53 = vadd.f32 %v7015_v15, %v6947_v21  ;;  %v7115_v34 = vmul.f32 %v14190_v44, %v13449_v24  ;;  %v6914_v33 = vmul.f32 %v7474_v5, %v13398_v6 }
 0x73c   : > { %v7772_v39 = vadd.f32 %v15192_v62, %v7612_v7  ;;  %v7344_v32 = vadd.f32 %v7312_v47, %v7244_v19  ;;  %v6846_v49 = vadd.f32 %v6814_v59, %v6714_v25  ;;  %v7014_v58 = vmul.f32 %v14212_v45, %v13458_v40  ;;  %v7478_v7 = vld [vmem:[#allocation4 + $0x1a9] sm:$0xff] }
 0x73d   : > { %v7583_v57 = vadd.f32 %v14151_v56, %v7545_v10  ;;  %v7512_v41 = vmul.f32 %v13479_v4, %v7476_v54  ;;  %v7147_v3 = vadd.f32 %v7115_v34, %v7047_v53  ;;  %v7215_v11 = vmul.f32 %v7477_v55, %v13466_v12  ;;  %v14279_v34 = vld [vmem:[#allocation4 + $0x1cf] sm:$0xff] }
 0x73e   : > { %7854 = vrot.lane.b32.xlu0 %v7772_v39, %s8802_s3  ;;  %v7444_v1 = vadd.f32 %v7412_v46, %v7344_v32  ;;  %v7315_v5 = vmul.f32 %v13486_v36, %v14235_v29  ;;  %v7415_v2 = vmul.f32 %v13476_v43, %v14237_v42  ;;  %v6946_v14 = vadd.f32 %v6914_v33, %v6846_v49  ;;  %v14281_v33 = vld [vmem:[#allocation4 + $0x1d0] sm:$0xff]  ;;  %v15194_v39 = vld [vmem:[#allocation113_spill] sm:$0xff] }
 0x73f   : > { %v7615_v26 = vmax.f32 %v7583_v57, 0.0  ;;  %v7247_v52 = vadd.f32 %v7215_v11, %v7147_v3  ;;  %v6717_v17 = vmul.f32 %v14188_v8, %v13361_v35  ;;  %v6817_v22 = vmul.f32 %v14190_v44, %v13364_v60 }
 0x740   : > { %v7544_v18 = vadd.f32 %v7512_v41, %v7444_v1  ;;  %v7046_v20 = vadd.f32 %v7014_v58, %v6946_v14  ;;  %v7114_v27 = vmul.f32 %v14214_v28, %v13449_v24  ;;  %v6917_v13 = vmul.f32 %v7477_v55, %v13398_v6 }
 0x741   : > { %v7775_v31 = vadd.f32 %v15193_v38, %v7615_v26  ;;  %v7347_v16 = vadd.f32 %v7315_v5, %v7247_v52  ;;  %v6849_v15 = vadd.f32 %v6817_v22, %v6717_v17  ;;  %v7017_v8 = vmul.f32 %v14235_v29, %v13458_v40  ;;  %v7481_v26 = vld [vmem:[#allocation4 + $0x1d1] sm:$0xff] }
 0x742   : > { %v7582_v44 = vadd.f32 %v14151_v56, %v7544_v18  ;;  %v7515_v51 = vmul.f32 %v13479_v4, %v7479_v61  ;;  %v7146_v63 = vadd.f32 %v7114_v27, %v7046_v20  ;;  %v7214_v37 = vmul.f32 %v7476_v54, %v13466_v12  ;;  %v14301_v27 = vld [vmem:[#allocation4 + $0x1c7] sm:$0xff] }
 0x743   : > { %7860 = vrot.lane.b32.xlu1 %v7775_v31, %s8802_s3  ;;  %v7447_v48 = vadd.f32 %v7415_v2, %v7347_v16  ;;  %v7314_v55 = vmul.f32 %v13486_v36, %v14257_v0  ;;  %v7414_v9 = vmul.f32 %v13476_v43, %v14259_v50  ;;  %v6949_v47 = vadd.f32 %v6917_v13, %v6849_v15  ;;  %v14303_v13 = vld [vmem:[#allocation4 + $0x1c8] sm:$0xff] }
 0x744   : > { %v7614_v46 = vmax.f32 %v7582_v44, 0.0  ;;  %v7246_v21 = vadd.f32 %v7214_v37, %v7146_v63  ;;  %v6716_v19 = vmul.f32 %v14212_v45, %v13361_v35  ;;  %v6816_v25 = vmul.f32 %v14214_v28, %v13364_v60  ;;  %v15195_v31 = vld [vmem:[#allocation90_spill] sm:$0xff] }
 0x745   : > { %v7547_v59 = vadd.f32 %v7515_v51, %v7447_v48  ;;  %v7049_v10 = vadd.f32 %v7017_v8, %v6949_v47  ;;  %v7117_v53 = vmul.f32 %v14237_v42, %v13449_v24  ;;  %v6916_v62 = vmul.f32 %v7476_v54, %v13398_v6 }
 0x746   : > { %v7774_v32 = vadd.f32 %v15194_v39, %v7614_v46  ;;  %v7346_v49 = vadd.f32 %v7314_v55, %v7246_v21  ;;  %v6848_v58 = vadd.f32 %v6816_v25, %v6716_v19  ;;  %v7016_v45 = vmul.f32 %v14257_v0, %v13458_v40  ;;  %v7480_v46 = vld [vmem:[#allocation4 + $0x1c9] sm:$0xff] }
 0x747   : > { %v7585_v28 = vadd.f32 %v14151_v56, %v7547_v59  ;;  %v7514_v57 = vmul.f32 %v13479_v4, %v7478_v7  ;;  %v7149_v41 = vadd.f32 %v7117_v53, %v7049_v10  ;;  %v7217_v3 = vmul.f32 %v7479_v61, %v13466_v12  ;;  %v14323_v53 = vld [vmem:[#allocation4 + $0x1ef] sm:$0xff] }
 0x748   : > { %7858 = vrot.lane.b32.xlu0 %v7774_v32, %s8802_s3  ;;  %v7446_v11 = vadd.f32 %v7414_v9, %v7346_v49  ;;  %v7317_v54 = vmul.f32 %v13486_v36, %v14279_v34  ;;  %v7417_v1 = vmul.f32 %v13476_v43, %v14281_v33  ;;  %v6948_v5 = vadd.f32 %v6916_v62, %v6848_v58  ;;  %v14325_v62 = vld [vmem:[#allocation4 + $0x1f0] sm:$0xff] }
 0x749   : > { %v7617_v2 = vmax.f32 %v7585_v28, 0.0  ;;  %v7249_v14 = vadd.f32 %v7217_v3, %v7149_v41  ;;  %v6719_v52 = vmul.f32 %v14235_v29, %v13361_v35  ;;  %v6819_v17 = vmul.f32 %v14237_v42, %v13364_v60  ;;  %v15196_v32 = vld [vmem:[#allocation91_spill] sm:$0xff] }
 0x74a   : > { %v7546_v22 = vadd.f32 %v7514_v57, %v7446_v11  ;;  %v7048_v18 = vadd.f32 %v7016_v45, %v6948_v5  ;;  %v7116_v20 = vmul.f32 %v14259_v50, %v13449_v24  ;;  %v6919_v38 = vmul.f32 %v7479_v61, %v13398_v6 }
 0x74b   : > { %v7777_v16 = vadd.f32 %v15195_v31, %v7617_v2  ;;  %v7349_v15 = vadd.f32 %v7317_v54, %v7249_v14  ;;  %v6851_v8 = vadd.f32 %v6819_v17, %v6719_v52  ;;  %v7019_v29 = vmul.f32 %v14279_v34, %v13458_v40  ;;  %v7483_v2 = vld [vmem:[#allocation4 + $0x1f1] sm:$0xff] }
 0x74c   : > { %v7584_v42 = vadd.f32 %v14151_v56, %v7546_v22  ;;  %v7517_v44 = vmul.f32 %v13479_v4, %v7481_v26  ;;  %v7148_v51 = vadd.f32 %v7116_v20, %v7048_v18  ;;  %v7216_v63 = vmul.f32 %v7478_v7, %v13466_v12  ;;  %v14345_v20 = vld [vmem:[#allocation4 + $0x1e7] sm:$0xff] }
 0x74d   : > { %7864 = vrot.lane.b32.xlu1 %v7777_v16, %s8802_s3  ;;  %v7449_v37 = vadd.f32 %v7417_v1, %v7349_v15  ;;  %v7316_v61 = vmul.f32 %v13486_v36, %v14301_v27  ;;  %v7416_v48 = vmul.f32 %v13476_v43, %v14303_v13  ;;  %v6951_v55 = vadd.f32 %v6919_v38, %v6851_v8  ;;  %v14347_v38 = vld [vmem:[#allocation4 + $0x1e8] sm:$0xff]  ;;  %v15197_v16 = vld [vmem:[#allocation92_spill] sm:$0xff] }
 0x74e   : > { %v7616_v9 = vmax.f32 %v7584_v42, 0.0  ;;  %v7248_v47 = vadd.f32 %v7216_v63, %v7148_v51  ;;  %v6718_v21 = vmul.f32 %v14257_v0, %v13361_v35  ;;  %v6818_v19 = vmul.f32 %v14259_v50, %v13364_v60 }
 0x74f   : > { %v7549_v25 = vadd.f32 %v7517_v44, %v7449_v37  ;;  %v7051_v59 = vadd.f32 %v7019_v29, %v6951_v55  ;;  %v7119_v10 = vmul.f32 %v14281_v33, %v13449_v24  ;;  %v6918_v39 = vmul.f32 %v7478_v7, %v13398_v6 }
 0x750   : > { %v7776_v49 = vadd.f32 %v15196_v32, %v7616_v9  ;;  %v7348_v58 = vadd.f32 %v7316_v61, %v7248_v47  ;;  %v6850_v45 = vadd.f32 %v6818_v19, %v6718_v21  ;;  %v7018_v0 = vmul.f32 %v14301_v27, %v13458_v40  ;;  %v7482_v47 = vld [vmem:[#allocation4 + $0x1e9] sm:$0xff] }
 0x751   : > { %v7587_v50 = vadd.f32 %v14151_v56, %v7549_v25  ;;  %v7516_v28 = vmul.f32 %v13479_v4, %v7480_v46  ;;  %v7151_v57 = vadd.f32 %v7119_v10, %v7051_v59  ;;  %v7219_v41 = vmul.f32 %v7481_v26, %v13466_v12  ;;  %v7385_v32 = vld [vmem:[#allocation4 + $0x210] sm:$0xff] }
 0x752   : > { %7862 = vrot.lane.b32.xlu0 %v7776_v49, %s8802_s3  ;;  %v7448_v3 = vadd.f32 %v7416_v48, %v7348_v58  ;;  %v7319_v7 = vmul.f32 %v13486_v36, %v14323_v53  ;;  %v7419_v11 = vmul.f32 %v13476_v43, %v14325_v62  ;;  %v6950_v54 = vadd.f32 %v6918_v39, %v6850_v45  ;;  %v14361_v48 = vpop.permute.xlu1 %7820  ;;  %v7285_v39 = vld [vmem:[#allocation4 + $0x20f] sm:$0xff]  ;;  %v14370_v58 = vpop.permute.xlu0 %7818 }
 0x753   : > { %v7619_v1 = vmax.f32 %v7587_v50, 0.0  ;;  %v7251_v5 = vadd.f32 %v7219_v41, %v7151_v57  ;;  %v6721_v14 = vmul.f32 %v14279_v34, %v13361_v35  ;;  %v6821_v52 = vmul.f32 %v14281_v33, %v13364_v60  ;;  %v15198_v45 = vld [vmem:[#allocation94_spill] sm:$0xff]  ;;  %7916 = vst.msk [vmem:[%s13404_s0 + $0x8] sm:$0xff] %vm7914_vm5, %v14361_v48  ;;  %7915 = vst.msk [vmem:[%s13404_s0] sm:$0xff] %vm7914_vm5, %v14370_v58 }
 0x754   : > { %v7548_v17 = vadd.f32 %v7516_v28, %v7448_v3  ;;  %v7050_v22 = vadd.f32 %v7018_v0, %v6950_v54  ;;  %v7118_v18 = vmul.f32 %v14303_v13, %v13449_v24  ;;  %v6921_v31 = vmul.f32 %v7481_v26, %v13398_v6 }
 0x755   : > { %v7779_v15 = vadd.f32 %v15197_v16, %v7619_v1  ;;  %v7351_v8 = vadd.f32 %v7319_v7, %v7251_v5  ;;  %v6853_v29 = vadd.f32 %v6821_v52, %v6721_v14  ;;  %v7021_v34 = vmul.f32 %v14323_v53, %v13458_v40  ;;  %v7485_v14 = vld [vmem:[#allocation4 + $0x211] sm:$0xff] }
 0x756   : > { %v7586_v33 = vadd.f32 %v14151_v56, %v7548_v17  ;;  %v7519_v42 = vmul.f32 %v13479_v4, %v7483_v2  ;;  %v7150_v44 = vadd.f32 %v7118_v18, %v7050_v22  ;;  %v7218_v51 = vmul.f32 %v7480_v46, %v13466_v12  ;;  %v7825_v22 = vpop.permute.xlu1 %7824 }
 0x757   : > { %7868 = vrot.lane.b32.xlu1 %v7779_v15, %s8802_s3  ;;  %v7451_v63 = vadd.f32 %v7419_v11, %v7351_v8  ;;  %v7318_v26 = vmul.f32 %v13486_v36, %v14345_v20  ;;  %v7418_v37 = vmul.f32 %v13476_v43, %v14347_v38  ;;  %v6953_v61 = vadd.f32 %v6921_v31, %v6853_v29  ;;  %v7284_v15 = vld [vmem:[#allocation4 + $0x207] sm:$0xff] }
 0x758   : > { %v7618_v55 = vmax.f32 %v7586_v33, 0.0  ;;  %v7250_v9 = vadd.f32 %v7218_v51, %v7150_v44  ;;  %v6720_v21 = vmul.f32 %v14301_v27, %v13361_v35  ;;  %v6820_v19 = vmul.f32 %v14303_v13, %v13364_v60  ;;  %v7384_v8 = vld [vmem:[#allocation4 + $0x208] sm:$0xff]  ;;  %7918 = vst.msk [vmem:[%s13404_s0 + $0x18] sm:$0xff] %vm7914_vm5, %v7825_v22 }
 0x759   : > { %v7551_v25 = vadd.f32 %v7519_v42, %v7451_v63  ;;  %v7053_v59 = vadd.f32 %v7021_v34, %v6953_v61  ;;  %v7121_v10 = vmul.f32 %v14325_v62, %v13449_v24  ;;  %v6920_v49 = vmul.f32 %v7480_v46, %v13398_v6 }
 0x75a   : > { %v7778_v0 = vadd.f32 %v15198_v45, %v7618_v55  ;;  %v7350_v50 = vadd.f32 %v7318_v26, %v7250_v9  ;;  %v6852_v28 = vadd.f32 %v6820_v19, %v6720_v21  ;;  %v7020_v27 = vmul.f32 %v14345_v20, %v13458_v40  ;;  %v7287_v21 = vld [vmem:[#allocation4 + $0x22f] sm:$0xff] }
 0x75b   : > { %v7589_v13 = vadd.f32 %v14151_v56, %v7551_v25  ;;  %v7518_v57 = vmul.f32 %v13479_v4, %v7482_v47  ;;  %v7153_v41 = vadd.f32 %v7121_v10, %v7053_v59  ;;  %v7221_v3 = vmul.f32 %v7483_v2, %v13466_v12  ;;  %v7484_v10 = vld [vmem:[#allocation4 + $0x209] sm:$0xff] }
 0x75c   : > { %7866 = vrot.lane.b32.xlu0 %v7778_v0, %s8802_s3  ;;  %v7450_v7 = vadd.f32 %v7418_v37, %v7350_v50  ;;  %v7321_v46 = vmul.f32 %v13486_v36, %v7285_v39  ;;  %v7421_v11 = vmul.f32 %v13476_v43, %v7385_v32  ;;  %v6952_v54 = vadd.f32 %v6920_v49, %v6852_v28 }
 0x75d   : > { %v7621_v1 = vmax.f32 %v7589_v13, 0.0  ;;  %v7253_v5 = vadd.f32 %v7221_v3, %v7153_v41  ;;  %v6723_v52 = vmul.f32 %v14323_v53, %v13361_v35  ;;  %v6823_v17 = vmul.f32 %v14325_v62, %v13364_v60  ;;  %v7823_v53 = vpop.permute.xlu0 %7822  ;;  %v7829_v0 = vpop.permute.xlu1 %7828 }
 0x75e   : > { %v7550_v18 = vadd.f32 %v7518_v57, %v7450_v7  ;;  %v7052_v31 = vadd.f32 %v7020_v27, %v6952_v54  ;;  %v7120_v16 = vmul.f32 %v14347_v38, %v13449_v24  ;;  %v6923_v29 = vmul.f32 %v7483_v2, %v13398_v6  ;;  %v7387_v27 = vld [vmem:[#allocation4 + $0x230] sm:$0xff]  ;;  %v7286_v54 = vld [vmem:[#allocation4 + $0x227] sm:$0xff]  ;;  %7917 = vst.msk [vmem:[%s13404_s0 + $0x10] sm:$0xff] %vm7914_vm5, %v7823_v53 }
 0x75f   : > { %v7781_v34 = vadd.f32 %v14010_v30, %v7621_v1  ;;  %v7353_v33 = vadd.f32 %v7321_v46, %v7253_v5  ;;  %v6855_v42 = vadd.f32 %v6823_v17, %v6723_v52  ;;  %v7023_v44 = vmul.f32 %v7285_v39, %v13458_v40  ;;  %7920 = vst.msk [vmem:[%s13404_s0 + $0x28] sm:$0xff] %vm7914_vm5, %v7829_v0 }
 0x760   : > { %v7588_v51 = vadd.f32 %v14151_v56, %v7550_v18  ;;  %v7521_v62 = vmul.f32 %v13479_v4, %v7485_v14  ;;  %v7152_v63 = vadd.f32 %v7120_v16, %v7052_v31  ;;  %v7220_v26 = vmul.f32 %v7482_v47, %v13466_v12 }
 0x761   : > { %7872 = vrot.lane.b32.xlu1 %v7781_v34, %s8802_s3  ;;  %v7453_v37 = vadd.f32 %v7421_v11, %v7353_v33  ;;  %v7320_v61 = vmul.f32 %v13486_v36, %v7284_v15  ;;  %v7420_v2 = vmul.f32 %v13476_v43, %v7384_v8  ;;  %v6955_v30 = vadd.f32 %v6923_v29, %v6855_v42  ;;  %v15200_v29 = vld [vmem:[#allocation40_spill] sm:$0xff] }
 0x762   : > { %v7620_v55 = vmax.f32 %v7588_v51, 0.0  ;;  %v7252_v9 = vadd.f32 %v7220_v26, %v7152_v63  ;;  %v6722_v19 = vmul.f32 %v14345_v20, %v13361_v35  ;;  %v6822_v25 = vmul.f32 %v14347_v38, %v13364_v60 }
 0x763   : > { %v7553_v59 = vadd.f32 %v7521_v62, %v7453_v37  ;;  %v7055_v39 = vadd.f32 %v7023_v44, %v6955_v30  ;;  %v7123_v49 = vmul.f32 %v7385_v32, %v13449_v24  ;;  %v6922_v45 = vmul.f32 %v7482_v47, %v13398_v6  ;;  %v15199_v32 = vld [vmem:[#allocation45_spill] sm:$0xff]  ;;  %v7487_v47 = vld [vmem:[#allocation4 + $0x231] sm:$0xff] }
 0x764   : > { %v7780_v50 = vadd.f32 %v14013_v23, %v7620_v55  ;;  %v7352_v28 = vadd.f32 %v7320_v61, %v7252_v9  ;;  %v6854_v13 = vadd.f32 %v6822_v25, %v6722_v19  ;;  %v7022_v57 = vmul.f32 %v7284_v15, %v13458_v40  ;;  %v7827_v41 = vpop.permute.xlu0 %7826  ;;  %v15201_v37 = vld [vmem:[#allocation81_spill] sm:$0xff]  ;;  %v15202_v9 = vld [vmem:[#allocation46_spill] sm:$0xff] }
 0x765   : > { %v7591_v35 = vadd.f32 %v14151_v56, %v7553_v59  ;;  %v7155_v20 = vadd.f32 %v7123_v49, %v7055_v39  ;;  %v7223_v60 = vmul.f32 %v7485_v14, %v13466_v12  ;;  %v7323_v38 = vmul.f32 %v13486_v36, %v7287_v21  ;;  %7919 = vst.msk [vmem:[%s13404_s0 + $0x20] sm:$0xff] %vm7914_vm5, %v7827_v41 }
 0x766   : > { %v7751_v6 = vmul.f32 2.0, %v15199_v32  ;;  %7870 = vrot.lane.b32.xlu0 %v7780_v50, %s8802_s3  ;;  %v7452_v23 = vadd.f32 %v7420_v2, %v7352_v28  ;;  %v7520_v40 = vmul.f32 %v13479_v4, %v7484_v10  ;;  %v6954_v3 = vadd.f32 %v6922_v45, %v6854_v13 }
 0x767   : > { %v7623_v7 = vmax.f32 %v7591_v35, 0.0  ;;  %v7255_v46 = vadd.f32 %v7223_v60, %v7155_v20  ;;  %v7423_v11 = vmul.f32 %v13476_v43, %v7387_v27  ;;  %v7122_v14 = vmul.f32 %v7384_v8, %v13449_v24  ;;  %v7386_v24 = vld [vmem:[#allocation4 + $0x228] sm:$0xff] }
 0x768   : > { %v7552_v1 = vadd.f32 %v7520_v40, %v7452_v23  ;;  %v7054_v5 = vadd.f32 %v7022_v57, %v6954_v3  ;;  %v7523_v18 = vmul.f32 %v13479_v4, %v7487_v47  ;;  %v7222_v15 = vmul.f32 %v7484_v10, %v13466_v12  ;;  %v7486_v8 = vld [vmem:[#allocation4 + $0x229] sm:$0xff] }
 0x769   : > { %v7783_v52 = vadd.f32 %v7751_v6, %v7623_v7  ;;  %v7355_v17 = vadd.f32 %v7323_v38, %v7255_v46  ;;  %v7833_v31 = vpop.permute.xlu1 %7832  ;;  %v7322_v58 = vmul.f32 %v13486_v36, %v7286_v54  ;;  %v7750_v34 = vmul.f32 2.0, %v15200_v29 }
 0x76a   : > { %v7590_v16 = vadd.f32 %v14151_v56, %v7552_v1  ;;  %v7154_v48 = vadd.f32 %v7122_v14, %v7054_v5  ;;  %7922 = vst.msk [vmem:[%s13404_s0 + $0x38] sm:$0xff] %vm7914_vm5, %v7833_v31  ;;  %v7422_v44 = vmul.f32 %v13476_v43, %v7386_v24  ;;  %v7522_v12 = vmul.f32 %v13479_v4, %v7486_v8 }
 0x76b   : > { %7876 = vrot.lane.b32.xlu1 %v7783_v52, %s8802_s3  ;;  %v7455_v22 = vadd.f32 %v7423_v11, %v7355_v17  ;;  %v7753_v61 = vmul.f32 2.0, %v15201_v37  ;;  %v7752_v21 = vmul.f32 2.0, %v15202_v9 }
 0x76c   : > { %v7622_v33 = vmax.f32 %v7590_v16, 0.0  ;;  %v7254_v42 = vadd.f32 %v7222_v15, %v7154_v48 }
 0x76d   : > { %v7555_v53 = vadd.f32 %v7523_v18, %v7455_v22 }
 0x76e   : > { %v7782_v51 = vadd.f32 %v7750_v34, %v7622_v33  ;;  %v7354_v62 = vadd.f32 %v7322_v58, %v7254_v42 }
 0x76f   : > { %v7593_v36 = vadd.f32 %v14151_v56, %v7555_v53  ;;  %v7831_v63 = vpop.permute.xlu0 %7830 }
 0x770   : > { %7874 = vrot.lane.b32.xlu0 %v7782_v51, %s8802_s3  ;;  %v7454_v26 = vadd.f32 %v7422_v44, %v7354_v62  ;;  %7921 = vst.msk [vmem:[%s13404_s0 + $0x30] sm:$0xff] %vm7914_vm5, %v7831_v63 }
 0x771   : > { %v7625_v2 = vmax.f32 %v7593_v36, 0.0 }
 0x772   : > { %v7554_v43 = vadd.f32 %v7522_v12, %v7454_v26 }
 0x773   : > { %v7785_v30 = vadd.f32 %v7753_v61, %v7625_v2 }
 0x774   : > { %v7592_v55 = vadd.f32 %v14151_v56, %v7554_v43  ;;  %v7837_v4 = vpop.permute.xlu1 %7836 }
 0x775   : > { %7880 = vrot.lane.b32.xlu1 %v7785_v30, %s8802_s3  ;;  %7924 = vst.msk [vmem:[%s13404_s0 + $0x48] sm:$0xff] %vm7914_vm5, %v7837_v4 }
 0x776   : > { %v7624_v19 = vmax.f32 %v7592_v55, 0.0 }
 0x778   : > { %v7784_v25 = vadd.f32 %v7752_v21, %v7624_v19 }
 0x77a   : > { %7878 = vrot.lane.b32.xlu0 %v7784_v25, %s8802_s3 }
 0x77b   : > { %v7835_v59 = vpop.permute.xlu0 %7834 }
 0x77c   : > { %7923 = vst.msk [vmem:[%s13404_s0 + $0x40] sm:$0xff] %vm7914_vm5, %v7835_v59 }
 0x780   : > { %v7841_v56 = vpop.permute.xlu1 %7840 }
 0x781   : > { %7926 = vst.msk [vmem:[%s13404_s0 + $0x58] sm:$0xff] %vm7914_vm5, %v7841_v56 }
 0x786   : > { %v7839_v10 = vpop.permute.xlu0 %7838 }
 0x787   : > { %7925 = vst.msk [vmem:[%s13404_s0 + $0x50] sm:$0xff] %vm7914_vm5, %v7839_v10 }
 0x78b   : > { %v7845_v39 = vpop.permute.xlu1 %7844 }
 0x78c   : > { %7928 = vst.msk [vmem:[%s13404_s0 + $0x68] sm:$0xff] %vm7914_vm5, %v7845_v39 }
 0x792   : > { %v7843_v49 = vpop.permute.xlu0 %7842 }
 0x793   : > { %7927 = vst.msk [vmem:[%s13404_s0 + $0x60] sm:$0xff] %vm7914_vm5, %v7843_v49 }
 0x797   : > { %v7849_v45 = vpop.permute.xlu1 %7848 }
 0x798   : > { %7930 = vst.msk [vmem:[%s13404_s0 + $0x78] sm:$0xff] %vm7914_vm5, %v7849_v45 }
 0x79d   : > { %v7847_v0 = vpop.permute.xlu0 %7846 }
 0x79e   : > { %7929 = vst.msk [vmem:[%s13404_s0 + $0x70] sm:$0xff] %vm7914_vm5, %v7847_v0 }
 0x7a2   : > { %v7853_v50 = vpop.permute.xlu1 %7852 }
 0x7a3   : > { %7932 = vst.msk [vmem:[%s13404_s0 + $0x88] sm:$0xff] %vm7914_vm5, %v7853_v50 }
 0x7a6   : > { %v7851_v28 = vpop.permute.xlu0 %7850 }
 0x7a7   : > { %7931 = vst.msk [vmem:[%s13404_s0 + $0x80] sm:$0xff] %vm7914_vm5, %v7851_v28 }
 0x7ab   : > { %v7857_v27 = vpop.permute.xlu1 %7856 }
 0x7ac   : > { %7934 = vst.msk [vmem:[%s13404_s0 + $0x98] sm:$0xff] %vm7914_vm5, %v7857_v27 }
 0x7b0   : > { %v7855_v13 = vpop.permute.xlu0 %7854 }
 0x7b1   : > { %7933 = vst.msk [vmem:[%s13404_s0 + $0x90] sm:$0xff] %vm7914_vm5, %v7855_v13 }
 0x7b5   : > { %v7861_v57 = vpop.permute.xlu1 %7860 }
 0x7b6   : > { %7936 = vst.msk [vmem:[%s13404_s0 + $0xa8] sm:$0xff] %vm7914_vm5, %v7861_v57 }
 0x7ba   : > { %v7859_v35 = vpop.permute.xlu0 %7858 }
 0x7bb   : > { %7935 = vst.msk [vmem:[%s13404_s0 + $0xa0] sm:$0xff] %vm7914_vm5, %v7859_v35 }
 0x7bf   : > { %v7865_v20 = vpop.permute.xlu1 %7864 }
 0x7c0   : > { %7938 = vst.msk [vmem:[%s13404_s0 + $0xb8] sm:$0xff] %vm7914_vm5, %v7865_v20 }
 0x7c4   : > { %v7863_v60 = vpop.permute.xlu0 %7862 }
 0x7c5   : > { %7937 = vst.msk [vmem:[%s13404_s0 + $0xb0] sm:$0xff] %vm7914_vm5, %v7863_v60 }
 0x7c9   : > { %v7869_v38 = vpop.permute.xlu1 %7868 }
 0x7ca   : > { %7940 = vst.msk [vmem:[%s13404_s0 + $0xc8] sm:$0xff] %vm7914_vm5, %v7869_v38 }
 0x7ce   : > { %v7867_v41 = vpop.permute.xlu0 %7866 }
 0x7cf   : > { %7939 = vst.msk [vmem:[%s13404_s0 + $0xc0] sm:$0xff] %vm7914_vm5, %v7867_v41 }
 0x7d3   : > { %v7873_v32 = vpop.permute.xlu1 %7872 }
 0x7d4   : > { %7942 = vst.msk [vmem:[%s13404_s0 + $0xd8] sm:$0xff] %vm7914_vm5, %v7873_v32 }
 0x7d8   : > { %v7871_v6 = vpop.permute.xlu0 %7870 }
 0x7d9   : > { %7941 = vst.msk [vmem:[%s13404_s0 + $0xd0] sm:$0xff] %vm7914_vm5, %v7871_v6 }
 0x7dd   : > { %v7877_v23 = vpop.permute.xlu1 %7876 }
 0x7de   : > { %7944 = vst.msk [vmem:[%s13404_s0 + $0xe8] sm:$0xff] %vm7914_vm5, %v7877_v23 }
 0x7e2   : > { %v7875_v40 = vpop.permute.xlu0 %7874 }
 0x7e3   : > { %7943 = vst.msk [vmem:[%s13404_s0 + $0xe0] sm:$0xff] %vm7914_vm5, %v7875_v40 }
 0x7e7   : > { %v7881_v47 = vpop.permute.xlu1 %7880 }
 0x7e8   : > { %7946 = vst.msk [vmem:[%s13404_s0 + $0xf8] sm:$0xff] %vm7914_vm5, %v7881_v47 }
 0x7ec   : > { %v7879_v3 = vpop.permute.xlu0 %7878 }
 0x7ed   : > { %7945 = vst.msk [vmem:[%s13404_s0 + $0xf0] sm:$0xff] %vm7914_vm5, %v7879_v3 }
 0x7ee PF: > { %s30_s1 = sadd.s32 1, %s8795_s1  }
 0x7ef   : > { %p27_p4 = scmp.ge.s32.totalorder %s30_s1, 4  }
 0x7f1   :  { %29 = sbr.rel (!%p27_p4) target bundleno = 6 (0x6), region = 139 }

</bundles_post_ra>
